<compile_context>
chip_gen: v6e
topology: v6e:2x2x1
jax: 0.10.0
libtpu: 0.0.40
codegen_flags: <defaults>
</compile_context>

<pallas_src>
import numpy as np
import jax
import jax.numpy as jnp
from jax.experimental import pallas as pl
from jax.experimental.pallas import tpu as pltpu


def _round_up(x: int, m: int) -> int:
    return (x + m - 1) // m * m


# ----------------------------------------------------------------------------
# Fused kernel: 4 x (conv3x3x3 + bias + relu) + residual, NB samples per step
# ----------------------------------------------------------------------------
def _make_fused_kernel(HP, WP, R, RW, SR, KP, n_layers, L):
    """R = NB*C activation rows; RW = round_up(R,8) weight rows; SR = 8-row tap slab."""
    C0 = HP * WP + WP + 1                        # flat offset of the tap center
    offs = [kd * HP * WP + kh * WP + kw
            for kd in range(3) for kh in range(3) for kw in range(3)]
    shifts = [(C0 - o) % L for o in offs]        # lane-roll amount per tap
    n_taps = 27
    reps = -(-SR // R)                           # row duplication factor when R < SR

    def kernel(x_ref, w_ref, b_ref, m_ref, o_ref, stack_ref):
        a0 = x_ref[...]                          # [R, L] input embedded in padded grid (0 border)
        w_all = w_ref[...]                       # [RW, n_layers*KP] packed block-diag weights
        b_all = b_ref[...]                       # [R, n_layers]
        maskb = jnp.broadcast_to(m_ref[...], (R, L))   # interior mask, hoisted (one bcast/step)

        # Rows [27*SR, KP) of the im2col scratch are never written by the tap
        # loop; zero them so stale VMEM can't leak NaNs into the matmul
        # (the matching weight columns are zero).  Aligned, once per step.
        if n_taps * SR < KP:
            stack_ref[pl.ds(n_taps * SR, KP - n_taps * SR), :] = jnp.zeros(
                (KP - n_taps * SR, L), jnp.float32)

        a = a0
        for layer in range(n_layers):
            # ---- build the sublane-stacked im2col operand: [KP, L] ----
            for k in range(n_taps):
                s = shifts[k]
                rolled = a if s == 0 else pltpu.roll(a, shift=s, axis=1)  # XLU lane roll
                if R < SR:
                    # duplicate rows to fill the 8-row slab (their weights are 0)
                    rolled = jnp.concatenate([rolled] * reps, axis=0)[:SR]
                # aligned full-slab store (sublane offset is a multiple of 8)
                stack_ref[pl.ds(k * SR, SR), :] = rolled

            # ---- one MXU contraction per layer: [RW, KP] @ [KP, L] ----
            wl = w_all[:, layer * KP:(layer + 1) * KP]     # 128-aligned lane slice
            h = jnp.dot(wl, stack_ref[...], preferred_element_type=jnp.float32)
            if R < RW:
                h = h[:R, :]
            bl = b_all[:, layer:layer + 1]                 # [R, 1]
            h = jnp.maximum(h + bl, 0.0)
            if layer < n_layers - 1:
                # zero the padded border so it acts as the next layer's implicit
                # zero padding (final layer skipped: wrapper slices the interior)
                h = h * maskb
            a = h

        # residual: a0 holds the (pooled) input at interior positions, 0 elsewhere
        o_ref[...] = (a + a0).astype(o_ref.dtype)

    return kernel


def basic_block_forward(x_ncdhw, w_stack, b_stack, *, downsample=False):
    """x: [N,C,D,H,W] f32; w_stack: [n_layers,Cout,Cin,3,3,3]; b_stack: [n_layers,Cout]."""
    if downsample:
        # TODO(synk): MaxPool3d(2,2) stays as plain-JAX reshape-max glue (even dims
        # only); it is not fused into the pallas_call prologue.
        N, C, D, H, W = x_ncdhw.shape
        x_ncdhw = x_ncdhw.reshape(N, C, D // 2, 2, H // 2, 2, W // 2, 2).max(axis=(3, 5, 7))
    N, C, D, H, W = x_ncdhw.shape
    n_layers = w_stack.shape[0]

    # Samples per grid step: fill all 8 f32 sublanes (2 samples x 4 channels) when
    # possible, while keeping >= 2 grid steps so both v7x TensorCores are fed.
    NB = 2 if (N % 2 == 0 and N >= 4) else 1
    G = N // NB
    R = NB * C                      # activation rows per block
    RW = _round_up(R, 8)            # weight/matmul M dimension (8-aligned)
    SR = _round_up(R, 8)            # rows per tap slab in the im2col stack
    KP = _round_up(27 * SR, 128)    # MXU contraction dim (216 -> 256)

    DP, HP, WP = D + 2, H + 2, W + 2
    Pp = DP * HP * WP
    L = _round_up(Pp, 128)

    # Single pad-in for the whole fused block: embed into the zero-padded flat
    # grid, lane-padded to a multiple of 128, NB samples stacked on sublanes.
    xp = jnp.pad(x_ncdhw, ((0, 0), (0, 0), (1, 1), (1, 1), (1, 1))).reshape(N, C, Pp)
    xp = jnp.pad(xp, ((0, 0), (0, 0), (0, L - Pp))).reshape(G, R, L)

    # Pack weights once, block-diagonal across the NB samples, each tap's Cin
    # block at a sublane-aligned offset k*SR:
    #   wcol[s*C+cout, layer*KP + k*SR + s*C + cin] = w_stack[layer, cout, cin, kd, kh, kw]
    A = jnp.transpose(w_stack, (0, 1, 3, 4, 5, 2)).reshape(n_layers, C, 27, C)
    Wb = jnp.zeros((n_layers, NB, C, 27, SR), w_stack.dtype)
    for s in range(NB):
        Wb = Wb.at[:, s, :, :, s * C:(s + 1) * C].set(A)
    Wb = Wb.reshape(n_layers, R, 27 * SR)
    Wb = jnp.pad(Wb, ((0, 0), (0, RW - R), (0, KP - 27 * SR)))      # [n_layers, RW, KP]
    wcol = jnp.transpose(Wb, (1, 0, 2)).reshape(RW, n_layers * KP)
    bcol = jnp.tile(jnp.transpose(b_stack, (1, 0)), (NB, 1))        # [R, n_layers]

    # Interior mask over the padded grid (1 at 1<=d<=D, 1<=h<=H, 1<=w<=W)
    m = np.zeros((DP, HP, WP), np.float32)
    m[1:D + 1, 1:H + 1, 1:W + 1] = 1.0
    mask = jnp.asarray(np.pad(m.reshape(-1), (0, L - Pp))).reshape(1, L)

    kernel = _make_fused_kernel(HP, WP, R, RW, SR, KP, n_layers, L)
    yp = pl.pallas_call(
        kernel,
        out_shape=jax.ShapeDtypeStruct((G, R, L), x_ncdhw.dtype),
        grid=(G,),
        in_specs=[
            pl.BlockSpec((None, R, L), lambda g: (g, 0, 0)),          # activations (lane-dense)
            pl.BlockSpec((RW, n_layers * KP), lambda g: (0, 0)),      # packed block-diag weights
            pl.BlockSpec((R, n_layers), lambda g: (0, 0)),            # biases
            pl.BlockSpec((1, L), lambda g: (0, 0)),                   # interior mask
        ],
        out_specs=pl.BlockSpec((None, R, L), lambda g: (g, 0, 0)),
        scratch_shapes=[pltpu.VMEM((KP, L), jnp.float32)],            # im2col stack
        input_output_aliases={0: 0},                                  # "inplace": reuse xp buffer
        compiler_params=pltpu.CompilerParams(dimension_semantics=("parallel",)),
    )(xp, wcol, bcol, mask)

    # Single slice-out for the whole block: extract the valid interior.
    y = yp.reshape(N, C, L)[:, :, :Pp].reshape(N, C, DP, HP, WP)
    return y[:, :, 1:D + 1, 1:H + 1, 1:W + 1]


# ----------------------------------------------------------------------------
# Module: BasicBlockInv_Pool_constant_noBN_n4_inplace
# ----------------------------------------------------------------------------
class BasicBlockPallas:
    def __init__(self, inplanes, downsample=False, key=None):
        self.downsample = downsample
        self.inplanes = inplanes
        if key is None:
            key = jax.random.PRNGKey(0)
        keys = jax.random.split(key, 8)
        fan_in = inplanes * 27
        bound = 1.0 / (fan_in ** 0.5)
        ws, bs = [], []
        for i in range(4):
            w = jax.random.uniform(keys[2 * i], (inplanes, inplanes, 3, 3, 3),
                                   jnp.float32, -bound, bound)
            b = jax.random.uniform(keys[2 * i + 1], (inplanes,), jnp.float32, -bound, bound)
            ws.append(w)
            bs.append(b)
        self.w_stack = jnp.stack(ws)    # [4, Cout, Cin, 3, 3, 3] (PyTorch OIDHW per layer)
        self.b_stack = jnp.stack(bs)    # [4, Cout]

    def __call__(self, x_ncdhw):
        return basic_block_forward(x_ncdhw, self.w_stack, self.b_stack,
                                   downsample=self.downsample)


# ----------------------------------------------------------------------------
# Pure-JAX reference (NCDHW, matches the PyTorch forward)
# ----------------------------------------------------------------------------
def ref_forward(x, w_stack, b_stack, downsample=False):
    if downsample:
        N, C, D, H, W = x.shape
        x = x.reshape(N, C, D // 2, 2, H // 2, 2, W // 2, 2).max(axis=(3, 5, 7))
    out = x
    for i in range(w_stack.shape[0]):
        out = jax.lax.conv_general_dilated(
            out, w_stack[i], window_strides=(1, 1, 1),
            padding=((1, 1), (1, 1), (1, 1)),
            dimension_numbers=('NCDHW', 'OIDHW', 'NCDHW'),
            precision=jax.lax.Precision.HIGHEST)
        out = jnp.maximum(out + b_stack[i].reshape(1, -1, 1, 1, 1), 0.0)
    return out + x


if __name__ == "__main__":
    key = jax.random.PRNGKey(0)
    k_x, k_p = jax.random.split(key)

    # Main test: N=4 -> 2 samples/grid-step (full sublanes) AND 2 parallel steps.
    N, C, D, H, W = 4, 4, 8, 8, 8
    x = jax.random.normal(k_x, (N, C, D, H, W), dtype=jnp.float32)
    block = BasicBlockPallas(inplanes=C, downsample=False, key=k_p)

    out = jax.block_until_ready(block(x))
    ref = jax.block_until_ready(ref_forward(x, block.w_stack, block.b_stack,
                                            downsample=False))
    assert out.shape == ref.shape == (N, C, D, H, W)
    err = float(jnp.max(jnp.abs(out - ref)))
    assert jnp.allclose(out, ref, rtol=2e-2, atol=2e-2), err

    # Downsample path (MaxPool3d(2,2) prologue) + the 1-sample/step fallback (N=2).
    x2 = jax.random.normal(jax.random.PRNGKey(1), (2, C, D, H, W), dtype=jnp.float32)
    block2 = BasicBlockPallas(inplanes=C, downsample=True, key=jax.random.PRNGKey(2))
    out2 = jax.block_until_ready(block2(x2))
    ref2 = jax.block_until_ready(ref_forward(x2, block2.w_stack, block2.b_stack,
                                             downsample=True))
    assert out2.shape == ref2.shape == (2, C, D // 2, H // 2, W // 2)
    err2 = float(jnp.max(jnp.abs(out2 - ref2)))
    assert jnp.allclose(out2, ref2, rtol=2e-2, atol=2e-2), err2

    print("KERNEL_OK")
</pallas_src>

<mosaic_0001>
module attributes {stable_mosaic.version = 11 : i64} {
  func.func @kernel(%arg0: i32, %arg1: memref<1x8x1024xf32, #tpu.memory_space<vmem>>, %arg2: memref<8x1024xf32, #tpu.memory_space<vmem>>, %arg3: memref<8x4xf32, #tpu.memory_space<vmem>>, %arg4: memref<1x1024xf32, #tpu.memory_space<vmem>>, %arg5: memref<1x8x1024xf32, #tpu.memory_space<vmem>>, %arg6: memref<256x1024xf32, #tpu.memory_space<vmem>>) attributes {dimension_semantics = [#tpu.dimension_semantics<parallel>], iteration_bounds = array<i64: 2>, scalar_prefetch = 0 : i64, scratch_operands = 1 : i64, tpu.core_type = #tpu.core_type<tc>, window_params = [{transform_indices = @transform_0, window_bounds = array<i64: 1, 8, 1024>}, {pipeline_mode = #tpu.pipeline_mode<synchronous>, transform_indices = @transform_1, window_bounds = array<i64: 8, 1024>}, {pipeline_mode = #tpu.pipeline_mode<synchronous>, transform_indices = @transform_2, window_bounds = array<i64: 8, 4>}, {pipeline_mode = #tpu.pipeline_mode<synchronous>, transform_indices = @transform_3, window_bounds = array<i64: 1, 1024>}, {transform_indices = @transform_4, window_bounds = array<i64: 1, 8, 1024>}]} {
    %c0 = arith.constant 0 : index
    %c0_0 = arith.constant 0 : index
    %c0_1 = arith.constant 0 : index
    %0 = vector.load %arg1[%c0, %c0_0, %c0_1] : memref<1x8x1024xf32, #tpu.memory_space<vmem>>, vector<1x8x1024xf32>
    %1 = vector.shape_cast %0 : vector<1x8x1024xf32> to vector<8x1024xf32>
    %c0_2 = arith.constant 0 : index
    %c0_3 = arith.constant 0 : index
    %2 = vector.load %arg2[%c0_2, %c0_3] : memref<8x1024xf32, #tpu.memory_space<vmem>>, vector<8x1024xf32>
    %c0_4 = arith.constant 0 : index
    %c0_5 = arith.constant 0 : index
    %3 = vector.load %arg3[%c0_4, %c0_5] : memref<8x4xf32, #tpu.memory_space<vmem>>, vector<8x4xf32>
    %c0_6 = arith.constant 0 : index
    %c0_7 = arith.constant 0 : index
    %4 = vector.load %arg4[%c0_6, %c0_7] : memref<1x1024xf32, #tpu.memory_space<vmem>>, vector<1x1024xf32>
    %5 = vector.shape_cast %4 : vector<1x1024xf32> to vector<1x1024xf32>
    %6 = vector.broadcast %5 : vector<1x1024xf32> to vector<8x1024xf32>
    %cst = arith.constant 0.000000e+00 : f32
    %7 = vector.broadcast %cst : f32 to vector<40x1024xf32>
    %c216 = arith.constant 216 : index
    %c0_8 = arith.constant 0 : index
    %8 = vector.load %arg6[%c216, %c0_8] : memref<256x1024xf32, #tpu.memory_space<vmem>>, vector<40x1024xf32>
    tpu.vector_store %arg6[%c216, %c0_8], %7 {strides = array<i32>} : memref<256x1024xf32, #tpu.memory_space<vmem>>, vector<40x1024xf32>,
    %c111_i32 = arith.constant 111 : i32
    %9 = tpu.dynamic_rotate %1 by %c111_i32 dim 1 : vector<8x1024xf32>, i32 -> vector<8x1024xf32>
    %c0_9 = arith.constant 0 : index
    %c0_10 = arith.constant 0 : index
    %10 = vector.load %arg6[%c0_9, %c0_10] : memref<256x1024xf32, #tpu.memory_space<vmem>>, vector<8x1024xf32>
    tpu.vector_store %arg6[%c0_9, %c0_10], %9 {strides = array<i32>} : memref<256x1024xf32, #tpu.memory_space<vmem>>, vector<8x1024xf32>,
    %c110_i32 = arith.constant 110 : i32
    %11 = tpu.dynamic_rotate %1 by %c110_i32 dim 1 : vector<8x1024xf32>, i32 -> vector<8x1024xf32>
    %c8 = arith.constant 8 : index
    %c0_11 = arith.constant 0 : index
    %12 = vector.load %arg6[%c8, %c0_11] : memref<256x1024xf32, #tpu.memory_space<vmem>>, vector<8x1024xf32>
    tpu.vector_store %arg6[%c8, %c0_11], %11 {strides = array<i32>} : memref<256x1024xf32, #tpu.memory_space<vmem>>, vector<8x1024xf32>,
    %c109_i32 = arith.constant 109 : i32
    %13 = tpu.dynamic_rotate %1 by %c109_i32 dim 1 : vector<8x1024xf32>, i32 -> vector<8x1024xf32>
    %c16 = arith.constant 16 : index
    %c0_12 = arith.constant 0 : index
    %14 = vector.load %arg6[%c16, %c0_12] : memref<256x1024xf32, #tpu.memory_space<vmem>>, vector<8x1024xf32>
    tpu.vector_store %arg6[%c16, %c0_12], %13 {strides = array<i32>} : memref<256x1024xf32, #tpu.memory_space<vmem>>, vector<8x1024xf32>,
    %c101_i32 = arith.constant 101 : i32
    %15 = tpu.dynamic_rotate %1 by %c101_i32 dim 1 : vector<8x1024xf32>, i32 -> vector<8x1024xf32>
    %c24 = arith.constant 24 : index
    %c0_13 = arith.constant 0 : index
    %16 = vector.load %arg6[%c24, %c0_13] : memref<256x1024xf32, #tpu.memory_space<vmem>>, vector<8x1024xf32>
    tpu.vector_store %arg6[%c24, %c0_13], %15 {strides = array<i32>} : memref<256x1024xf32, #tpu.memory_space<vmem>>, vector<8x1024xf32>,
    %c100_i32 = arith.constant 100 : i32
    %17 = tpu.dynamic_rotate %1 by %c100_i32 dim 1 : vector<8x1024xf32>, i32 -> vector<8x1024xf32>
    %c32 = arith.constant 32 : index
    %c0_14 = arith.constant 0 : index
    %18 = vector.load %arg6[%c32, %c0_14] : memref<256x1024xf32, #tpu.memory_space<vmem>>, vector<8x1024xf32>
    tpu.vector_store %arg6[%c32, %c0_14], %17 {strides = array<i32>} : memref<256x1024xf32, #tpu.memory_space<vmem>>, vector<8x1024xf32>,
    %c99_i32 = arith.constant 99 : i32
    %19 = tpu.dynamic_rotate %1 by %c99_i32 dim 1 : vector<8x1024xf32>, i32 -> vector<8x1024xf32>
    %c40 = arith.constant 40 : index
    %c0_15 = arith.constant 0 : index
    %20 = vector.load %arg6[%c40, %c0_15] : memref<256x1024xf32, #tpu.memory_space<vmem>>, vector<8x1024xf32>
    tpu.vector_store %arg6[%c40, %c0_15], %19 {strides = array<i32>} : memref<256x1024xf32, #tpu.memory_space<vmem>>, vector<8x1024xf32>,
    %c91_i32 = arith.constant 91 : i32
    %21 = tpu.dynamic_rotate %1 by %c91_i32 dim 1 : vector<8x1024xf32>, i32 -> vector<8x1024xf32>
    %c48 = arith.constant 48 : index
    %c0_16 = arith.constant 0 : index
    %22 = vector.load %arg6[%c48, %c0_16] : memref<256x1024xf32, #tpu.memory_space<vmem>>, vector<8x1024xf32>
    tpu.vector_store %arg6[%c48, %c0_16], %21 {strides = array<i32>} : memref<256x1024xf32, #tpu.memory_space<vmem>>, vector<8x1024xf32>,
    %c90_i32 = arith.constant 90 : i32
    %23 = tpu.dynamic_rotate %1 by %c90_i32 dim 1 : vector<8x1024xf32>, i32 -> vector<8x1024xf32>
    %c56 = arith.constant 56 : index
    %c0_17 = arith.constant 0 : index
    %24 = vector.load %arg6[%c56, %c0_17] : memref<256x1024xf32, #tpu.memory_space<vmem>>, vector<8x1024xf32>
    tpu.vector_store %arg6[%c56, %c0_17], %23 {strides = array<i32>} : memref<256x1024xf32, #tpu.memory_space<vmem>>, vector<8x1024xf32>,
    %c89_i32 = arith.constant 89 : i32
    %25 = tpu.dynamic_rotate %1 by %c89_i32 dim 1 : vector<8x1024xf32>, i32 -> vector<8x1024xf32>
    %c64 = arith.constant 64 : index
    %c0_18 = arith.constant 0 : index
    %26 = vector.load %arg6[%c64, %c0_18] : memref<256x1024xf32, #tpu.memory_space<vmem>>, vector<8x1024xf32>
    tpu.vector_store %arg6[%c64, %c0_18], %25 {strides = array<i32>} : memref<256x1024xf32, #tpu.memory_space<vmem>>, vector<8x1024xf32>,
    %c11_i32 = arith.constant 11 : i32
    %27 = tpu.dynamic_rotate %1 by %c11_i32 dim 1 : vector<8x1024xf32>, i32 -> vector<8x1024xf32>
    %c72 = arith.constant 72 : index
    %c0_19 = arith.constant 0 : index
    %28 = vector.load %arg6[%c72, %c0_19] : memref<256x1024xf32, #tpu.memory_space<vmem>>, vector<8x1024xf32>
    tpu.vector_store %arg6[%c72, %c0_19], %27 {strides = array<i32>} : memref<256x1024xf32, #tpu.memory_space<vmem>>, vector<8x1024xf32>,
    %c10_i32 = arith.constant 10 : i32
    %29 = tpu.dynamic_rotate %1 by %c10_i32 dim 1 : vector<8x1024xf32>, i32 -> vector<8x1024xf32>
    %c80 = arith.constant 80 : index
    %c0_20 = arith.constant 0 : index
    %30 = vector.load %arg6[%c80, %c0_20] : memref<256x1024xf32, #tpu.memory_space<vmem>>, vector<8x1024xf32>
    tpu.vector_store %arg6[%c80, %c0_20], %29 {strides = array<i32>} : memref<256x1024xf32, #tpu.memory_space<vmem>>, vector<8x1024xf32>,
    %c9_i32 = arith.constant 9 : i32
    %31 = tpu.dynamic_rotate %1 by %c9_i32 dim 1 : vector<8x1024xf32>, i32 -> vector<8x1024xf32>
    %c88 = arith.constant 88 : index
    %c0_21 = arith.constant 0 : index
    %32 = vector.load %arg6[%c88, %c0_21] : memref<256x1024xf32, #tpu.memory_space<vmem>>, vector<8x1024xf32>
    tpu.vector_store %arg6[%c88, %c0_21], %31 {strides = array<i32>} : memref<256x1024xf32, #tpu.memory_space<vmem>>, vector<8x1024xf32>,
    %c1_i32 = arith.constant 1 : i32
    %33 = tpu.dynamic_rotate %1 by %c1_i32 dim 1 : vector<8x1024xf32>, i32 -> vector<8x1024xf32>
    %c96 = arith.constant 96 : index
    %c0_22 = arith.constant 0 : index
    %34 = vector.load %arg6[%c96, %c0_22] : memref<256x1024xf32, #tpu.memory_space<vmem>>, vector<8x1024xf32>
    tpu.vector_store %arg6[%c96, %c0_22], %33 {strides = array<i32>} : memref<256x1024xf32, #tpu.memory_space<vmem>>, vector<8x1024xf32>,
    %c104 = arith.constant 104 : index
    %c0_23 = arith.constant 0 : index
    %35 = vector.load %arg6[%c104, %c0_23] : memref<256x1024xf32, #tpu.memory_space<vmem>>, vector<8x1024xf32>
    tpu.vector_store %arg6[%c104, %c0_23], %1 {strides = array<i32>} : memref<256x1024xf32, #tpu.memory_space<vmem>>, vector<8x1024xf32>,
    %c1023_i32 = arith.constant 1023 : i32
    %36 = tpu.dynamic_rotate %1 by %c1023_i32 dim 1 : vector<8x1024xf32>, i32 -> vector<8x1024xf32>
    %c112 = arith.constant 112 : index
    %c0_24 = arith.constant 0 : index
    %37 = vector.load %arg6[%c112, %c0_24] : memref<256x1024xf32, #tpu.memory_space<vmem>>, vector<8x1024xf32>
    tpu.vector_store %arg6[%c112, %c0_24], %36 {strides = array<i32>} : memref<256x1024xf32, #tpu.memory_space<vmem>>, vector<8x1024xf32>,
    %c1015_i32 = arith.constant 1015 : i32
    %38 = tpu.dynamic_rotate %1 by %c1015_i32 dim 1 : vector<8x1024xf32>, i32 -> vector<8x1024xf32>
    %c120 = arith.constant 120 : index
    %c0_25 = arith.constant 0 : index
    %39 = vector.load %arg6[%c120, %c0_25] : memref<256x1024xf32, #tpu.memory_space<vmem>>, vector<8x1024xf32>
    tpu.vector_store %arg6[%c120, %c0_25], %38 {strides = array<i32>} : memref<256x1024xf32, #tpu.memory_space<vmem>>, vector<8x1024xf32>,
    %c1014_i32 = arith.constant 1014 : i32
    %40 = tpu.dynamic_rotate %1 by %c1014_i32 dim 1 : vector<8x1024xf32>, i32 -> vector<8x1024xf32>
    %c128 = arith.constant 128 : index
    %c0_26 = arith.constant 0 : index
    %41 = vector.load %arg6[%c128, %c0_26] : memref<256x1024xf32, #tpu.memory_space<vmem>>, vector<8x1024xf32>
    tpu.vector_store %arg6[%c128, %c0_26], %40 {strides = array<i32>} : memref<256x1024xf32, #tpu.memory_space<vmem>>, vector<8x1024xf32>,
    %c1013_i32 = arith.constant 1013 : i32
    %42 = tpu.dynamic_rotate %1 by %c1013_i32 dim 1 : vector<8x1024xf32>, i32 -> vector<8x1024xf32>
    %c136 = arith.constant 136 : index
    %c0_27 = arith.constant 0 : index
    %43 = vector.load %arg6[%c136, %c0_27] : memref<256x1024xf32, #tpu.memory_space<vmem>>, vector<8x1024xf32>
    tpu.vector_store %arg6[%c136, %c0_27], %42 {strides = array<i32>} : memref<256x1024xf32, #tpu.memory_space<vmem>>, vector<8x1024xf32>,
    %c935_i32 = arith.constant 935 : i32
    %44 = tpu.dynamic_rotate %1 by %c935_i32 dim 1 : vector<8x1024xf32>, i32 -> vector<8x1024xf32>
    %c144 = arith.constant 144 : index
    %c0_28 = arith.constant 0 : index
    %45 = vector.load %arg6[%c144, %c0_28] : memref<256x1024xf32, #tpu.memory_space<vmem>>, vector<8x1024xf32>
    tpu.vector_store %arg6[%c144, %c0_28], %44 {strides = array<i32>} : memref<256x1024xf32, #tpu.memory_space<vmem>>, vector<8x1024xf32>,
    %c934_i32 = arith.constant 934 : i32
    %46 = tpu.dynamic_rotate %1 by %c934_i32 dim 1 : vector<8x1024xf32>, i32 -> vector<8x1024xf32>
    %c152 = arith.constant 152 : index
    %c0_29 = arith.constant 0 : index
    %47 = vector.load %arg6[%c152, %c0_29] : memref<256x1024xf32, #tpu.memory_space<vmem>>, vector<8x1024xf32>
    tpu.vector_store %arg6[%c152, %c0_29], %46 {strides = array<i32>} : memref<256x1024xf32, #tpu.memory_space<vmem>>, vector<8x1024xf32>,
    %c933_i32 = arith.constant 933 : i32
    %48 = tpu.dynamic_rotate %1 by %c933_i32 dim 1 : vector<8x1024xf32>, i32 -> vector<8x1024xf32>
    %c160 = arith.constant 160 : index
    %c0_30 = arith.constant 0 : index
    %49 = vector.load %arg6[%c160, %c0_30] : memref<256x1024xf32, #tpu.memory_space<vmem>>, vector<8x1024xf32>
    tpu.vector_store %arg6[%c160, %c0_30], %48 {strides = array<i32>} : memref<256x1024xf32, #tpu.memory_space<vmem>>, vector<8x1024xf32>,
    %c925_i32 = arith.constant 925 : i32
    %50 = tpu.dynamic_rotate %1 by %c925_i32 dim 1 : vector<8x1024xf32>, i32 -> vector<8x1024xf32>
    %c168 = arith.constant 168 : index
    %c0_31 = arith.constant 0 : index
    %51 = vector.load %arg6[%c168, %c0_31] : memref<256x1024xf32, #tpu.memory_space<vmem>>, vector<8x1024xf32>
    tpu.vector_store %arg6[%c168, %c0_31], %50 {strides = array<i32>} : memref<256x1024xf32, #tpu.memory_space<vmem>>, vector<8x1024xf32>,
    %c924_i32 = arith.constant 924 : i32
    %52 = tpu.dynamic_rotate %1 by %c924_i32 dim 1 : vector<8x1024xf32>, i32 -> vector<8x1024xf32>
    %c176 = arith.constant 176 : index
    %c0_32 = arith.constant 0 : index
    %53 = vector.load %arg6[%c176, %c0_32] : memref<256x1024xf32, #tpu.memory_space<vmem>>, vector<8x1024xf32>
    tpu.vector_store %arg6[%c176, %c0_32], %52 {strides = array<i32>} : memref<256x1024xf32, #tpu.memory_space<vmem>>, vector<8x1024xf32>,
    %c923_i32 = arith.constant 923 : i32
    %54 = tpu.dynamic_rotate %1 by %c923_i32 dim 1 : vector<8x1024xf32>, i32 -> vector<8x1024xf32>
    %c184 = arith.constant 184 : index
    %c0_33 = arith.constant 0 : index
    %55 = vector.load %arg6[%c184, %c0_33] : memref<256x1024xf32, #tpu.memory_space<vmem>>, vector<8x1024xf32>
    tpu.vector_store %arg6[%c184, %c0_33], %54 {strides = array<i32>} : memref<256x1024xf32, #tpu.memory_space<vmem>>, vector<8x1024xf32>,
    %c915_i32 = arith.constant 915 : i32
    %56 = tpu.dynamic_rotate %1 by %c915_i32 dim 1 : vector<8x1024xf32>, i32 -> vector<8x1024xf32>
    %c192 = arith.constant 192 : index
    %c0_34 = arith.constant 0 : index
    %57 = vector.load %arg6[%c192, %c0_34] : memref<256x1024xf32, #tpu.memory_space<vmem>>, vector<8x1024xf32>
    tpu.vector_store %arg6[%c192, %c0_34], %56 {strides = array<i32>} : memref<256x1024xf32, #tpu.memory_space<vmem>>, vector<8x1024xf32>,
    %c914_i32 = arith.constant 914 : i32
    %58 = tpu.dynamic_rotate %1 by %c914_i32 dim 1 : vector<8x1024xf32>, i32 -> vector<8x1024xf32>
    %c200 = arith.constant 200 : index
    %c0_35 = arith.constant 0 : index
    %59 = vector.load %arg6[%c200, %c0_35] : memref<256x1024xf32, #tpu.memory_space<vmem>>, vector<8x1024xf32>
    tpu.vector_store %arg6[%c200, %c0_35], %58 {strides = array<i32>} : memref<256x1024xf32, #tpu.memory_space<vmem>>, vector<8x1024xf32>,
    %c913_i32 = arith.constant 913 : i32
    %60 = tpu.dynamic_rotate %1 by %c913_i32 dim 1 : vector<8x1024xf32>, i32 -> vector<8x1024xf32>
    %c208 = arith.constant 208 : index
    %c0_36 = arith.constant 0 : index
    %61 = vector.load %arg6[%c208, %c0_36] : memref<256x1024xf32, #tpu.memory_space<vmem>>, vector<8x1024xf32>
    tpu.vector_store %arg6[%c208, %c0_36], %60 {strides = array<i32>} : memref<256x1024xf32, #tpu.memory_space<vmem>>, vector<8x1024xf32>,
    %62 = vector.extract_strided_slice %2 {offsets = [0, 0], sizes = [8, 256], strides = [1, 1]} : vector<8x1024xf32> to vector<8x256xf32>
    %c0_37 = arith.constant 0 : index
    %c0_38 = arith.constant 0 : index
    %63 = vector.load %arg6[%c0_37, %c0_38] : memref<256x1024xf32, #tpu.memory_space<vmem>>, vector<256x1024xf32>
    %cst_39 = arith.constant dense<0.000000e+00> : vector<8x1024xf32>
    %64 = tpu.matmul %62, %63, %cst_39 {dimension_numbers = #tpu.dot_dimension_numbers<[1], [0], [0], [1], [0, 0, 1, 1], [], []>} : vector<8x256xf32>, vector<256x1024xf32>, vector<8x1024xf32> -> vector<8x1024xf32>
    %65 = vector.extract_strided_slice %3 {offsets = [0, 0], sizes = [8, 1], strides = [1, 1]} : vector<8x4xf32> to vector<8x1xf32>
    %66 = vector.broadcast %65 : vector<8x1xf32> to vector<8x1024xf32>
    %67 = arith.addf %64, %66 : vector<8x1024xf32>
    %cst_40 = arith.constant 0.000000e+00 : f32
    %68 = vector.broadcast %cst_40 : f32 to vector<8x1024xf32>
    %69 = arith.maximumf %67, %68 : vector<8x1024xf32>
    %70 = arith.mulf %69, %6 : vector<8x1024xf32>
    %c111_i32_41 = arith.constant 111 : i32
    %71 = tpu.dynamic_rotate %70 by %c111_i32_41 dim 1 : vector<8x1024xf32>, i32 -> vector<8x1024xf32>
    %c0_42 = arith.constant 0 : index
    %c0_43 = arith.constant 0 : index
    %72 = vector.load %arg6[%c0_42, %c0_43] : memref<256x1024xf32, #tpu.memory_space<vmem>>, vector<8x1024xf32>
    tpu.vector_store %arg6[%c0_42, %c0_43], %71 {strides = array<i32>} : memref<256x1024xf32, #tpu.memory_space<vmem>>, vector<8x1024xf32>,
    %c110_i32_44 = arith.constant 110 : i32
    %73 = tpu.dynamic_rotate %70 by %c110_i32_44 dim 1 : vector<8x1024xf32>, i32 -> vector<8x1024xf32>
    %c8_45 = arith.constant 8 : index
    %c0_46 = arith.constant 0 : index
    %74 = vector.load %arg6[%c8_45, %c0_46] : memref<256x1024xf32, #tpu.memory_space<vmem>>, vector<8x1024xf32>
    tpu.vector_store %arg6[%c8_45, %c0_46], %73 {strides = array<i32>} : memref<256x1024xf32, #tpu.memory_space<vmem>>, vector<8x1024xf32>,
    %c109_i32_47 = arith.constant 109 : i32
    %75 = tpu.dynamic_rotate %70 by %c109_i32_47 dim 1 : vector<8x1024xf32>, i32 -> vector<8x1024xf32>
    %c16_48 = arith.constant 16 : index
    %c0_49 = arith.constant 0 : index
    %76 = vector.load %arg6[%c16_48, %c0_49] : memref<256x1024xf32, #tpu.memory_space<vmem>>, vector<8x1024xf32>
    tpu.vector_store %arg6[%c16_48, %c0_49], %75 {strides = array<i32>} : memref<256x1024xf32, #tpu.memory_space<vmem>>, vector<8x1024xf32>,
    %c101_i32_50 = arith.constant 101 : i32
    %77 = tpu.dynamic_rotate %70 by %c101_i32_50 dim 1 : vector<8x1024xf32>, i32 -> vector<8x1024xf32>
    %c24_51 = arith.constant 24 : index
    %c0_52 = arith.constant 0 : index
    %78 = vector.load %arg6[%c24_51, %c0_52] : memref<256x1024xf32, #tpu.memory_space<vmem>>, vector<8x1024xf32>
    tpu.vector_store %arg6[%c24_51, %c0_52], %77 {strides = array<i32>} : memref<256x1024xf32, #tpu.memory_space<vmem>>, vector<8x1024xf32>,
    %c100_i32_53 = arith.constant 100 : i32
    %79 = tpu.dynamic_rotate %70 by %c100_i32_53 dim 1 : vector<8x1024xf32>, i32 -> vector<8x1024xf32>
    %c32_54 = arith.constant 32 : index
    %c0_55 = arith.constant 0 : index
    %80 = vector.load %arg6[%c32_54, %c0_55] : memref<256x1024xf32, #tpu.memory_space<vmem>>, vector<8x1024xf32>
    tpu.vector_store %arg6[%c32_54, %c0_55], %79 {strides = array<i32>} : memref<256x1024xf32, #tpu.memory_space<vmem>>, vector<8x1024xf32>,
    %c99_i32_56 = arith.constant 99 : i32
    %81 = tpu.dynamic_rotate %70 by %c99_i32_56 dim 1 : vector<8x1024xf32>, i32 -> vector<8x1024xf32>
    %c40_57 = arith.constant 40 : index
    %c0_58 = arith.constant 0 : index
    %82 = vector.load %arg6[%c40_57, %c0_58] : memref<256x1024xf32, #tpu.memory_space<vmem>>, vector<8x1024xf32>
    tpu.vector_store %arg6[%c40_57, %c0_58], %81 {strides = array<i32>} : memref<256x1024xf32, #tpu.memory_space<vmem>>, vector<8x1024xf32>,
    %c91_i32_59 = arith.constant 91 : i32
    %83 = tpu.dynamic_rotate %70 by %c91_i32_59 dim 1 : vector<8x1024xf32>, i32 -> vector<8x1024xf32>
    %c48_60 = arith.constant 48 : index
    %c0_61 = arith.constant 0 : index
    %84 = vector.load %arg6[%c48_60, %c0_61] : memref<256x1024xf32, #tpu.memory_space<vmem>>, vector<8x1024xf32>
    tpu.vector_store %arg6[%c48_60, %c0_61], %83 {strides = array<i32>} : memref<256x1024xf32, #tpu.memory_space<vmem>>, vector<8x1024xf32>,
    %c90_i32_62 = arith.constant 90 : i32
    %85 = tpu.dynamic_rotate %70 by %c90_i32_62 dim 1 : vector<8x1024xf32>, i32 -> vector<8x1024xf32>
    %c56_63 = arith.constant 56 : index
    %c0_64 = arith.constant 0 : index
    %86 = vector.load %arg6[%c56_63, %c0_64] : memref<256x1024xf32, #tpu.memory_space<vmem>>, vector<8x1024xf32>
    tpu.vector_store %arg6[%c56_63, %c0_64], %85 {strides = array<i32>} : memref<256x1024xf32, #tpu.memory_space<vmem>>, vector<8x1024xf32>,
    %c89_i32_65 = arith.constant 89 : i32
    %87 = tpu.dynamic_rotate %70 by %c89_i32_65 dim 1 : vector<8x1024xf32>, i32 -> vector<8x1024xf32>
    %c64_66 = arith.constant 64 : index
    %c0_67 = arith.constant 0 : index
    %88 = vector.load %arg6[%c64_66, %c0_67] : memref<256x1024xf32, #tpu.memory_space<vmem>>, vector<8x1024xf32>
    tpu.vector_store %arg6[%c64_66, %c0_67], %87 {strides = array<i32>} : memref<256x1024xf32, #tpu.memory_space<vmem>>, vector<8x1024xf32>,
    %c11_i32_68 = arith.constant 11 : i32
    %89 = tpu.dynamic_rotate %70 by %c11_i32_68 dim 1 : vector<8x1024xf32>, i32 -> vector<8x1024xf32>
    %c72_69 = arith.constant 72 : index
    %c0_70 = arith.constant 0 : index
    %90 = vector.load %arg6[%c72_69, %c0_70] : memref<256x1024xf32, #tpu.memory_space<vmem>>, vector<8x1024xf32>
    tpu.vector_store %arg6[%c72_69, %c0_70], %89 {strides = array<i32>} : memref<256x1024xf32, #tpu.memory_space<vmem>>, vector<8x1024xf32>,
    %c10_i32_71 = arith.constant 10 : i32
    %91 = tpu.dynamic_rotate %70 by %c10_i32_71 dim 1 : vector<8x1024xf32>, i32 -> vector<8x1024xf32>
    %c80_72 = arith.constant 80 : index
    %c0_73 = arith.constant 0 : index
    %92 = vector.load %arg6[%c80_72, %c0_73] : memref<256x1024xf32, #tpu.memory_space<vmem>>, vector<8x1024xf32>
    tpu.vector_store %arg6[%c80_72, %c0_73], %91 {strides = array<i32>} : memref<256x1024xf32, #tpu.memory_space<vmem>>, vector<8x1024xf32>,
    %c9_i32_74 = arith.constant 9 : i32
    %93 = tpu.dynamic_rotate %70 by %c9_i32_74 dim 1 : vector<8x1024xf32>, i32 -> vector<8x1024xf32>
    %c88_75 = arith.constant 88 : index
    %c0_76 = arith.constant 0 : index
    %94 = vector.load %arg6[%c88_75, %c0_76] : memref<256x1024xf32, #tpu.memory_space<vmem>>, vector<8x1024xf32>
    tpu.vector_store %arg6[%c88_75, %c0_76], %93 {strides = array<i32>} : memref<256x1024xf32, #tpu.memory_space<vmem>>, vector<8x1024xf32>,
    %c1_i32_77 = arith.constant 1 : i32
    %95 = tpu.dynamic_rotate %70 by %c1_i32_77 dim 1 : vector<8x1024xf32>, i32 -> vector<8x1024xf32>
    %c96_78 = arith.constant 96 : index
    %c0_79 = arith.constant 0 : index
    %96 = vector.load %arg6[%c96_78, %c0_79] : memref<256x1024xf32, #tpu.memory_space<vmem>>, vector<8x1024xf32>
    tpu.vector_store %arg6[%c96_78, %c0_79], %95 {strides = array<i32>} : memref<256x1024xf32, #tpu.memory_space<vmem>>, vector<8x1024xf32>,
    %c104_80 = arith.constant 104 : index
    %c0_81 = arith.constant 0 : index
    %97 = vector.load %arg6[%c104_80, %c0_81] : memref<256x1024xf32, #tpu.memory_space<vmem>>, vector<8x1024xf32>
    tpu.vector_store %arg6[%c104_80, %c0_81], %70 {strides = array<i32>} : memref<256x1024xf32, #tpu.memory_space<vmem>>, vector<8x1024xf32>,
    %c1023_i32_82 = arith.constant 1023 : i32
    %98 = tpu.dynamic_rotate %70 by %c1023_i32_82 dim 1 : vector<8x1024xf32>, i32 -> vector<8x1024xf32>
    %c112_83 = arith.constant 112 : index
    %c0_84 = arith.constant 0 : index
    %99 = vector.load %arg6[%c112_83, %c0_84] : memref<256x1024xf32, #tpu.memory_space<vmem>>, vector<8x1024xf32>
    tpu.vector_store %arg6[%c112_83, %c0_84], %98 {strides = array<i32>} : memref<256x1024xf32, #tpu.memory_space<vmem>>, vector<8x1024xf32>,
    %c1015_i32_85 = arith.constant 1015 : i32
    %100 = tpu.dynamic_rotate %70 by %c1015_i32_85 dim 1 : vector<8x1024xf32>, i32 -> vector<8x1024xf32>
    %c120_86 = arith.constant 120 : index
    %c0_87 = arith.constant 0 : index
    %101 = vector.load %arg6[%c120_86, %c0_87] : memref<256x1024xf32, #tpu.memory_space<vmem>>, vector<8x1024xf32>
    tpu.vector_store %arg6[%c120_86, %c0_87], %100 {strides = array<i32>} : memref<256x1024xf32, #tpu.memory_space<vmem>>, vector<8x1024xf32>,
    %c1014_i32_88 = arith.constant 1014 : i32
    %102 = tpu.dynamic_rotate %70 by %c1014_i32_88 dim 1 : vector<8x1024xf32>, i32 -> vector<8x1024xf32>
    %c128_89 = arith.constant 128 : index
    %c0_90 = arith.constant 0 : index
    %103 = vector.load %arg6[%c128_89, %c0_90] : memref<256x1024xf32, #tpu.memory_space<vmem>>, vector<8x1024xf32>
    tpu.vector_store %arg6[%c128_89, %c0_90], %102 {strides = array<i32>} : memref<256x1024xf32, #tpu.memory_space<vmem>>, vector<8x1024xf32>,
    %c1013_i32_91 = arith.constant 1013 : i32
    %104 = tpu.dynamic_rotate %70 by %c1013_i32_91 dim 1 : vector<8x1024xf32>, i32 -> vector<8x1024xf32>
    %c136_92 = arith.constant 136 : index
    %c0_93 = arith.constant 0 : index
    %105 = vector.load %arg6[%c136_92, %c0_93] : memref<256x1024xf32, #tpu.memory_space<vmem>>, vector<8x1024xf32>
    tpu.vector_store %arg6[%c136_92, %c0_93], %104 {strides = array<i32>} : memref<256x1024xf32, #tpu.memory_space<vmem>>, vector<8x1024xf32>,
    %c935_i32_94 = arith.constant 935 : i32
    %106 = tpu.dynamic_rotate %70 by %c935_i32_94 dim 1 : vector<8x1024xf32>, i32 -> vector<8x1024xf32>
    %c144_95 = arith.constant 144 : index
    %c0_96 = arith.constant 0 : index
    %107 = vector.load %arg6[%c144_95, %c0_96] : memref<256x1024xf32, #tpu.memory_space<vmem>>, vector<8x1024xf32>
    tpu.vector_store %arg6[%c144_95, %c0_96], %106 {strides = array<i32>} : memref<256x1024xf32, #tpu.memory_space<vmem>>, vector<8x1024xf32>,
    %c934_i32_97 = arith.constant 934 : i32
    %108 = tpu.dynamic_rotate %70 by %c934_i32_97 dim 1 : vector<8x1024xf32>, i32 -> vector<8x1024xf32>
    %c152_98 = arith.constant 152 : index
    %c0_99 = arith.constant 0 : index
    %109 = vector.load %arg6[%c152_98, %c0_99] : memref<256x1024xf32, #tpu.memory_space<vmem>>, vector<8x1024xf32>
    tpu.vector_store %arg6[%c152_98, %c0_99], %108 {strides = array<i32>} : memref<256x1024xf32, #tpu.memory_space<vmem>>, vector<8x1024xf32>,
    %c933_i32_100 = arith.constant 933 : i32
    %110 = tpu.dynamic_rotate %70 by %c933_i32_100 dim 1 : vector<8x1024xf32>, i32 -> vector<8x1024xf32>
    %c160_101 = arith.constant 160 : index
    %c0_102 = arith.constant 0 : index
    %111 = vector.load %arg6[%c160_101, %c0_102] : memref<256x1024xf32, #tpu.memory_space<vmem>>, vector<8x1024xf32>
    tpu.vector_store %arg6[%c160_101, %c0_102], %110 {strides = array<i32>} : memref<256x1024xf32, #tpu.memory_space<vmem>>, vector<8x1024xf32>,
    %c925_i32_103 = arith.constant 925 : i32
    %112 = tpu.dynamic_rotate %70 by %c925_i32_103 dim 1 : vector<8x1024xf32>, i32 -> vector<8x1024xf32>
    %c168_104 = arith.constant 168 : index
    %c0_105 = arith.constant 0 : index
    %113 = vector.load %arg6[%c168_104, %c0_105] : memref<256x1024xf32, #tpu.memory_space<vmem>>, vector<8x1024xf32>
    tpu.vector_store %arg6[%c168_104, %c0_105], %112 {strides = array<i32>} : memref<256x1024xf32, #tpu.memory_space<vmem>>, vector<8x1024xf32>,
    %c924_i32_106 = arith.constant 924 : i32
    %114 = tpu.dynamic_rotate %70 by %c924_i32_106 dim 1 : vector<8x1024xf32>, i32 -> vector<8x1024xf32>
    %c176_107 = arith.constant 176 : index
    %c0_108 = arith.constant 0 : index
    %115 = vector.load %arg6[%c176_107, %c0_108] : memref<256x1024xf32, #tpu.memory_space<vmem>>, vector<8x1024xf32>
    tpu.vector_store %arg6[%c176_107, %c0_108], %114 {strides = array<i32>} : memref<256x1024xf32, #tpu.memory_space<vmem>>, vector<8x1024xf32>,
    %c923_i32_109 = arith.constant 923 : i32
    %116 = tpu.dynamic_rotate %70 by %c923_i32_109 dim 1 : vector<8x1024xf32>, i32 -> vector<8x1024xf32>
    %c184_110 = arith.constant 184 : index
    %c0_111 = arith.constant 0 : index
    %117 = vector.load %arg6[%c184_110, %c0_111] : memref<256x1024xf32, #tpu.memory_space<vmem>>, vector<8x1024xf32>
    tpu.vector_store %arg6[%c184_110, %c0_111], %116 {strides = array<i32>} : memref<256x1024xf32, #tpu.memory_space<vmem>>, vector<8x1024xf32>,
    %c915_i32_112 = arith.constant 915 : i32
    %118 = tpu.dynamic_rotate %70 by %c915_i32_112 dim 1 : vector<8x1024xf32>, i32 -> vector<8x1024xf32>
    %c192_113 = arith.constant 192 : index
    %c0_114 = arith.constant 0 : index
    %119 = vector.load %arg6[%c192_113, %c0_114] : memref<256x1024xf32, #tpu.memory_space<vmem>>, vector<8x1024xf32>
    tpu.vector_store %arg6[%c192_113, %c0_114], %118 {strides = array<i32>} : memref<256x1024xf32, #tpu.memory_space<vmem>>, vector<8x1024xf32>,
    %c914_i32_115 = arith.constant 914 : i32
    %120 = tpu.dynamic_rotate %70 by %c914_i32_115 dim 1 : vector<8x1024xf32>, i32 -> vector<8x1024xf32>
    %c200_116 = arith.constant 200 : index
    %c0_117 = arith.constant 0 : index
    %121 = vector.load %arg6[%c200_116, %c0_117] : memref<256x1024xf32, #tpu.memory_space<vmem>>, vector<8x1024xf32>
    tpu.vector_store %arg6[%c200_116, %c0_117], %120 {strides = array<i32>} : memref<256x1024xf32, #tpu.memory_space<vmem>>, vector<8x1024xf32>,
    %c913_i32_118 = arith.constant 913 : i32
    %122 = tpu.dynamic_rotate %70 by %c913_i32_118 dim 1 : vector<8x1024xf32>, i32 -> vector<8x1024xf32>
    %c208_119 = arith.constant 208 : index
    %c0_120 = arith.constant 0 : index
    %123 = vector.load %arg6[%c208_119, %c0_120] : memref<256x1024xf32, #tpu.memory_space<vmem>>, vector<8x1024xf32>
    tpu.vector_store %arg6[%c208_119, %c0_120], %122 {strides = array<i32>} : memref<256x1024xf32, #tpu.memory_space<vmem>>, vector<8x1024xf32>,
    %124 = vector.extract_strided_slice %2 {offsets = [0, 256], sizes = [8, 256], strides = [1, 1]} : vector<8x1024xf32> to vector<8x256xf32>
    %c0_121 = arith.constant 0 : index
    %c0_122 = arith.constant 0 : index
    %125 = vector.load %arg6[%c0_121, %c0_122] : memref<256x1024xf32, #tpu.memory_space<vmem>>, vector<256x1024xf32>
    %cst_123 = arith.constant dense<0.000000e+00> : vector<8x1024xf32>
    %126 = tpu.matmul %124, %125, %cst_123 {dimension_numbers = #tpu.dot_dimension_numbers<[1], [0], [0], [1], [0, 0, 1, 1], [], []>} : vector<8x256xf32>, vector<256x1024xf32>, vector<8x1024xf32> -> vector<8x1024xf32>
    %127 = vector.extract_strided_slice %3 {offsets = [0, 1], sizes = [8, 1], strides = [1, 1]} : vector<8x4xf32> to vector<8x1xf32>
    %128 = vector.broadcast %127 : vector<8x1xf32> to vector<8x1024xf32>
    %129 = arith.addf %126, %128 : vector<8x1024xf32>
    %cst_124 = arith.constant 0.000000e+00 : f32
    %130 = vector.broadcast %cst_124 : f32 to vector<8x1024xf32>
    %131 = arith.maximumf %129, %130 : vector<8x1024xf32>
    %132 = arith.mulf %131, %6 : vector<8x1024xf32>
    %c111_i32_125 = arith.constant 111 : i32
    %133 = tpu.dynamic_rotate %132 by %c111_i32_125 dim 1 : vector<8x1024xf32>, i32 -> vector<8x1024xf32>
    %c0_126 = arith.constant 0 : index
    %c0_127 = arith.constant 0 : index
    %134 = vector.load %arg6[%c0_126, %c0_127] : memref<256x1024xf32, #tpu.memory_space<vmem>>, vector<8x1024xf32>
    tpu.vector_store %arg6[%c0_126, %c0_127], %133 {strides = array<i32>} : memref<256x1024xf32, #tpu.memory_space<vmem>>, vector<8x1024xf32>,
    %c110_i32_128 = arith.constant 110 : i32
    %135 = tpu.dynamic_rotate %132 by %c110_i32_128 dim 1 : vector<8x1024xf32>, i32 -> vector<8x1024xf32>
    %c8_129 = arith.constant 8 : index
    %c0_130 = arith.constant 0 : index
    %136 = vector.load %arg6[%c8_129, %c0_130] : memref<256x1024xf32, #tpu.memory_space<vmem>>, vector<8x1024xf32>
    tpu.vector_store %arg6[%c8_129, %c0_130], %135 {strides = array<i32>} : memref<256x1024xf32, #tpu.memory_space<vmem>>, vector<8x1024xf32>,
    %c109_i32_131 = arith.constant 109 : i32
    %137 = tpu.dynamic_rotate %132 by %c109_i32_131 dim 1 : vector<8x1024xf32>, i32 -> vector<8x1024xf32>
    %c16_132 = arith.constant 16 : index
    %c0_133 = arith.constant 0 : index
    %138 = vector.load %arg6[%c16_132, %c0_133] : memref<256x1024xf32, #tpu.memory_space<vmem>>, vector<8x1024xf32>
    tpu.vector_store %arg6[%c16_132, %c0_133], %137 {strides = array<i32>} : memref<256x1024xf32, #tpu.memory_space<vmem>>, vector<8x1024xf32>,
    %c101_i32_134 = arith.constant 101 : i32
    %139 = tpu.dynamic_rotate %132 by %c101_i32_134 dim 1 : vector<8x1024xf32>, i32 -> vector<8x1024xf32>
    %c24_135 = arith.constant 24 : index
    %c0_136 = arith.constant 0 : index
    %140 = vector.load %arg6[%c24_135, %c0_136] : memref<256x1024xf32, #tpu.memory_space<vmem>>, vector<8x1024xf32>
    tpu.vector_store %arg6[%c24_135, %c0_136], %139 {strides = array<i32>} : memref<256x1024xf32, #tpu.memory_space<vmem>>, vector<8x1024xf32>,
    %c100_i32_137 = arith.constant 100 : i32
    %141 = tpu.dynamic_rotate %132 by %c100_i32_137 dim 1 : vector<8x1024xf32>, i32 -> vector<8x1024xf32>
    %c32_138 = arith.constant 32 : index
    %c0_139 = arith.constant 0 : index
    %142 = vector.load %arg6[%c32_138, %c0_139] : memref<256x1024xf32, #tpu.memory_space<vmem>>, vector<8x1024xf32>
    tpu.vector_store %arg6[%c32_138, %c0_139], %141 {strides = array<i32>} : memref<256x1024xf32, #tpu.memory_space<vmem>>, vector<8x1024xf32>,
    %c99_i32_140 = arith.constant 99 : i32
    %143 = tpu.dynamic_rotate %132 by %c99_i32_140 dim 1 : vector<8x1024xf32>, i32 -> vector<8x1024xf32>
    %c40_141 = arith.constant 40 : index
    %c0_142 = arith.constant 0 : index
    %144 = vector.load %arg6[%c40_141, %c0_142] : memref<256x1024xf32, #tpu.memory_space<vmem>>, vector<8x1024xf32>
    tpu.vector_store %arg6[%c40_141, %c0_142], %143 {strides = array<i32>} : memref<256x1024xf32, #tpu.memory_space<vmem>>, vector<8x1024xf32>,
    %c91_i32_143 = arith.constant 91 : i32
    %145 = tpu.dynamic_rotate %132 by %c91_i32_143 dim 1 : vector<8x1024xf32>, i32 -> vector<8x1024xf32>
    %c48_144 = arith.constant 48 : index
    %c0_145 = arith.constant 0 : index
    %146 = vector.load %arg6[%c48_144, %c0_145] : memref<256x1024xf32, #tpu.memory_space<vmem>>, vector<8x1024xf32>
    tpu.vector_store %arg6[%c48_144, %c0_145], %145 {strides = array<i32>} : memref<256x1024xf32, #tpu.memory_space<vmem>>, vector<8x1024xf32>,
    %c90_i32_146 = arith.constant 90 : i32
    %147 = tpu.dynamic_rotate %132 by %c90_i32_146 dim 1 : vector<8x1024xf32>, i32 -> vector<8x1024xf32>
    %c56_147 = arith.constant 56 : index
    %c0_148 = arith.constant 0 : index
    %148 = vector.load %arg6[%c56_147, %c0_148] : memref<256x1024xf32, #tpu.memory_space<vmem>>, vector<8x1024xf32>
    tpu.vector_store %arg6[%c56_147, %c0_148], %147 {strides = array<i32>} : memref<256x1024xf32, #tpu.memory_space<vmem>>, vector<8x1024xf32>,
    %c89_i32_149 = arith.constant 89 : i32
    %149 = tpu.dynamic_rotate %132 by %c89_i32_149 dim 1 : vector<8x1024xf32>, i32 -> vector<8x1024xf32>
    %c64_150 = arith.constant 64 : index
    %c0_151 = arith.constant 0 : index
    %150 = vector.load %arg6[%c64_150, %c0_151] : memref<256x1024xf32, #tpu.memory_space<vmem>>, vector<8x1024xf32>
    tpu.vector_store %arg6[%c64_150, %c0_151], %149 {strides = array<i32>} : memref<256x1024xf32, #tpu.memory_space<vmem>>, vector<8x1024xf32>,
    %c11_i32_152 = arith.constant 11 : i32
    %151 = tpu.dynamic_rotate %132 by %c11_i32_152 dim 1 : vector<8x1024xf32>, i32 -> vector<8x1024xf32>
    %c72_153 = arith.constant 72 : index
    %c0_154 = arith.constant 0 : index
    %152 = vector.load %arg6[%c72_153, %c0_154] : memref<256x1024xf32, #tpu.memory_space<vmem>>, vector<8x1024xf32>
    tpu.vector_store %arg6[%c72_153, %c0_154], %151 {strides = array<i32>} : memref<256x1024xf32, #tpu.memory_space<vmem>>, vector<8x1024xf32>,
    %c10_i32_155 = arith.constant 10 : i32
    %153 = tpu.dynamic_rotate %132 by %c10_i32_155 dim 1 : vector<8x1024xf32>, i32 -> vector<8x1024xf32>
    %c80_156 = arith.constant 80 : index
    %c0_157 = arith.constant 0 : index
    %154 = vector.load %arg6[%c80_156, %c0_157] : memref<256x1024xf32, #tpu.memory_space<vmem>>, vector<8x1024xf32>
    tpu.vector_store %arg6[%c80_156, %c0_157], %153 {strides = array<i32>} : memref<256x1024xf32, #tpu.memory_space<vmem>>, vector<8x1024xf32>,
    %c9_i32_158 = arith.constant 9 : i32
    %155 = tpu.dynamic_rotate %132 by %c9_i32_158 dim 1 : vector<8x1024xf32>, i32 -> vector<8x1024xf32>
    %c88_159 = arith.constant 88 : index
    %c0_160 = arith.constant 0 : index
    %156 = vector.load %arg6[%c88_159, %c0_160] : memref<256x1024xf32, #tpu.memory_space<vmem>>, vector<8x1024xf32>
    tpu.vector_store %arg6[%c88_159, %c0_160], %155 {strides = array<i32>} : memref<256x1024xf32, #tpu.memory_space<vmem>>, vector<8x1024xf32>,
    %c1_i32_161 = arith.constant 1 : i32
    %157 = tpu.dynamic_rotate %132 by %c1_i32_161 dim 1 : vector<8x1024xf32>, i32 -> vector<8x1024xf32>
    %c96_162 = arith.constant 96 : index
    %c0_163 = arith.constant 0 : index
    %158 = vector.load %arg6[%c96_162, %c0_163] : memref<256x1024xf32, #tpu.memory_space<vmem>>, vector<8x1024xf32>
    tpu.vector_store %arg6[%c96_162, %c0_163], %157 {strides = array<i32>} : memref<256x1024xf32, #tpu.memory_space<vmem>>, vector<8x1024xf32>,
    %c104_164 = arith.constant 104 : index
    %c0_165 = arith.constant 0 : index
    %159 = vector.load %arg6[%c104_164, %c0_165] : memref<256x1024xf32, #tpu.memory_space<vmem>>, vector<8x1024xf32>
    tpu.vector_store %arg6[%c104_164, %c0_165], %132 {strides = array<i32>} : memref<256x1024xf32, #tpu.memory_space<vmem>>, vector<8x1024xf32>,
    %c1023_i32_166 = arith.constant 1023 : i32
    %160 = tpu.dynamic_rotate %132 by %c1023_i32_166 dim 1 : vector<8x1024xf32>, i32 -> vector<8x1024xf32>
    %c112_167 = arith.constant 112 : index
    %c0_168 = arith.constant 0 : index
    %161 = vector.load %arg6[%c112_167, %c0_168] : memref<256x1024xf32, #tpu.memory_space<vmem>>, vector<8x1024xf32>
    tpu.vector_store %arg6[%c112_167, %c0_168], %160 {strides = array<i32>} : memref<256x1024xf32, #tpu.memory_space<vmem>>, vector<8x1024xf32>,
    %c1015_i32_169 = arith.constant 1015 : i32
    %162 = tpu.dynamic_rotate %132 by %c1015_i32_169 dim 1 : vector<8x1024xf32>, i32 -> vector<8x1024xf32>
    %c120_170 = arith.constant 120 : index
    %c0_171 = arith.constant 0 : index
    %163 = vector.load %arg6[%c120_170, %c0_171] : memref<256x1024xf32, #tpu.memory_space<vmem>>, vector<8x1024xf32>
    tpu.vector_store %arg6[%c120_170, %c0_171], %162 {strides = array<i32>} : memref<256x1024xf32, #tpu.memory_space<vmem>>, vector<8x1024xf32>,
    %c1014_i32_172 = arith.constant 1014 : i32
    %164 = tpu.dynamic_rotate %132 by %c1014_i32_172 dim 1 : vector<8x1024xf32>, i32 -> vector<8x1024xf32>
    %c128_173 = arith.constant 128 : index
    %c0_174 = arith.constant 0 : index
    %165 = vector.load %arg6[%c128_173, %c0_174] : memref<256x1024xf32, #tpu.memory_space<vmem>>, vector<8x1024xf32>
    tpu.vector_store %arg6[%c128_173, %c0_174], %164 {strides = array<i32>} : memref<256x1024xf32, #tpu.memory_space<vmem>>, vector<8x1024xf32>,
    %c1013_i32_175 = arith.constant 1013 : i32
    %166 = tpu.dynamic_rotate %132 by %c1013_i32_175 dim 1 : vector<8x1024xf32>, i32 -> vector<8x1024xf32>
    %c136_176 = arith.constant 136 : index
    %c0_177 = arith.constant 0 : index
    %167 = vector.load %arg6[%c136_176, %c0_177] : memref<256x1024xf32, #tpu.memory_space<vmem>>, vector<8x1024xf32>
    tpu.vector_store %arg6[%c136_176, %c0_177], %166 {strides = array<i32>} : memref<256x1024xf32, #tpu.memory_space<vmem>>, vector<8x1024xf32>,
    %c935_i32_178 = arith.constant 935 : i32
    %168 = tpu.dynamic_rotate %132 by %c935_i32_178 dim 1 : vector<8x1024xf32>, i32 -> vector<8x1024xf32>
    %c144_179 = arith.constant 144 : index
    %c0_180 = arith.constant 0 : index
    %169 = vector.load %arg6[%c144_179, %c0_180] : memref<256x1024xf32, #tpu.memory_space<vmem>>, vector<8x1024xf32>
    tpu.vector_store %arg6[%c144_179, %c0_180], %168 {strides = array<i32>} : memref<256x1024xf32, #tpu.memory_space<vmem>>, vector<8x1024xf32>,
    %c934_i32_181 = arith.constant 934 : i32
    %170 = tpu.dynamic_rotate %132 by %c934_i32_181 dim 1 : vector<8x1024xf32>, i32 -> vector<8x1024xf32>
    %c152_182 = arith.constant 152 : index
    %c0_183 = arith.constant 0 : index
    %171 = vector.load %arg6[%c152_182, %c0_183] : memref<256x1024xf32, #tpu.memory_space<vmem>>, vector<8x1024xf32>
    tpu.vector_store %arg6[%c152_182, %c0_183], %170 {strides = array<i32>} : memref<256x1024xf32, #tpu.memory_space<vmem>>, vector<8x1024xf32>,
    %c933_i32_184 = arith.constant 933 : i32
    %172 = tpu.dynamic_rotate %132 by %c933_i32_184 dim 1 : vector<8x1024xf32>, i32 -> vector<8x1024xf32>
    %c160_185 = arith.constant 160 : index
    %c0_186 = arith.constant 0 : index
    %173 = vector.load %arg6[%c160_185, %c0_186] : memref<256x1024xf32, #tpu.memory_space<vmem>>, vector<8x1024xf32>
    tpu.vector_store %arg6[%c160_185, %c0_186], %172 {strides = array<i32>} : memref<256x1024xf32, #tpu.memory_space<vmem>>, vector<8x1024xf32>,
    %c925_i32_187 = arith.constant 925 : i32
    %174 = tpu.dynamic_rotate %132 by %c925_i32_187 dim 1 : vector<8x1024xf32>, i32 -> vector<8x1024xf32>
    %c168_188 = arith.constant 168 : index
    %c0_189 = arith.constant 0 : index
    %175 = vector.load %arg6[%c168_188, %c0_189] : memref<256x1024xf32, #tpu.memory_space<vmem>>, vector<8x1024xf32>
    tpu.vector_store %arg6[%c168_188, %c0_189], %174 {strides = array<i32>} : memref<256x1024xf32, #tpu.memory_space<vmem>>, vector<8x1024xf32>,
    %c924_i32_190 = arith.constant 924 : i32
    %176 = tpu.dynamic_rotate %132 by %c924_i32_190 dim 1 : vector<8x1024xf32>, i32 -> vector<8x1024xf32>
    %c176_191 = arith.constant 176 : index
    %c0_192 = arith.constant 0 : index
    %177 = vector.load %arg6[%c176_191, %c0_192] : memref<256x1024xf32, #tpu.memory_space<vmem>>, vector<8x1024xf32>
    tpu.vector_store %arg6[%c176_191, %c0_192], %176 {strides = array<i32>} : memref<256x1024xf32, #tpu.memory_space<vmem>>, vector<8x1024xf32>,
    %c923_i32_193 = arith.constant 923 : i32
    %178 = tpu.dynamic_rotate %132 by %c923_i32_193 dim 1 : vector<8x1024xf32>, i32 -> vector<8x1024xf32>
    %c184_194 = arith.constant 184 : index
    %c0_195 = arith.constant 0 : index
    %179 = vector.load %arg6[%c184_194, %c0_195] : memref<256x1024xf32, #tpu.memory_space<vmem>>, vector<8x1024xf32>
    tpu.vector_store %arg6[%c184_194, %c0_195], %178 {strides = array<i32>} : memref<256x1024xf32, #tpu.memory_space<vmem>>, vector<8x1024xf32>,
    %c915_i32_196 = arith.constant 915 : i32
    %180 = tpu.dynamic_rotate %132 by %c915_i32_196 dim 1 : vector<8x1024xf32>, i32 -> vector<8x1024xf32>
    %c192_197 = arith.constant 192 : index
    %c0_198 = arith.constant 0 : index
    %181 = vector.load %arg6[%c192_197, %c0_198] : memref<256x1024xf32, #tpu.memory_space<vmem>>, vector<8x1024xf32>
    tpu.vector_store %arg6[%c192_197, %c0_198], %180 {strides = array<i32>} : memref<256x1024xf32, #tpu.memory_space<vmem>>, vector<8x1024xf32>,
    %c914_i32_199 = arith.constant 914 : i32
    %182 = tpu.dynamic_rotate %132 by %c914_i32_199 dim 1 : vector<8x1024xf32>, i32 -> vector<8x1024xf32>
    %c200_200 = arith.constant 200 : index
    %c0_201 = arith.constant 0 : index
    %183 = vector.load %arg6[%c200_200, %c0_201] : memref<256x1024xf32, #tpu.memory_space<vmem>>, vector<8x1024xf32>
    tpu.vector_store %arg6[%c200_200, %c0_201], %182 {strides = array<i32>} : memref<256x1024xf32, #tpu.memory_space<vmem>>, vector<8x1024xf32>,
    %c913_i32_202 = arith.constant 913 : i32
    %184 = tpu.dynamic_rotate %132 by %c913_i32_202 dim 1 : vector<8x1024xf32>, i32 -> vector<8x1024xf32>
    %c208_203 = arith.constant 208 : index
    %c0_204 = arith.constant 0 : index
    %185 = vector.load %arg6[%c208_203, %c0_204] : memref<256x1024xf32, #tpu.memory_space<vmem>>, vector<8x1024xf32>
    tpu.vector_store %arg6[%c208_203, %c0_204], %184 {strides = array<i32>} : memref<256x1024xf32, #tpu.memory_space<vmem>>, vector<8x1024xf32>,
    %186 = vector.extract_strided_slice %2 {offsets = [0, 512], sizes = [8, 256], strides = [1, 1]} : vector<8x1024xf32> to vector<8x256xf32>
    %c0_205 = arith.constant 0 : index
    %c0_206 = arith.constant 0 : index
    %187 = vector.load %arg6[%c0_205, %c0_206] : memref<256x1024xf32, #tpu.memory_space<vmem>>, vector<256x1024xf32>
    %cst_207 = arith.constant dense<0.000000e+00> : vector<8x1024xf32>
    %188 = tpu.matmul %186, %187, %cst_207 {dimension_numbers = #tpu.dot_dimension_numbers<[1], [0], [0], [1], [0, 0, 1, 1], [], []>} : vector<8x256xf32>, vector<256x1024xf32>, vector<8x1024xf32> -> vector<8x1024xf32>
    %189 = vector.extract_strided_slice %3 {offsets = [0, 2], sizes = [8, 1], strides = [1, 1]} : vector<8x4xf32> to vector<8x1xf32>
    %190 = vector.broadcast %189 : vector<8x1xf32> to vector<8x1024xf32>
    %191 = arith.addf %188, %190 : vector<8x1024xf32>
    %cst_208 = arith.constant 0.000000e+00 : f32
    %192 = vector.broadcast %cst_208 : f32 to vector<8x1024xf32>
    %193 = arith.maximumf %191, %192 : vector<8x1024xf32>
    %194 = arith.mulf %193, %6 : vector<8x1024xf32>
    %c111_i32_209 = arith.constant 111 : i32
    %195 = tpu.dynamic_rotate %194 by %c111_i32_209 dim 1 : vector<8x1024xf32>, i32 -> vector<8x1024xf32>
    %c0_210 = arith.constant 0 : index
    %c0_211 = arith.constant 0 : index
    %196 = vector.load %arg6[%c0_210, %c0_211] : memref<256x1024xf32, #tpu.memory_space<vmem>>, vector<8x1024xf32>
    tpu.vector_store %arg6[%c0_210, %c0_211], %195 {strides = array<i32>} : memref<256x1024xf32, #tpu.memory_space<vmem>>, vector<8x1024xf32>,
    %c110_i32_212 = arith.constant 110 : i32
    %197 = tpu.dynamic_rotate %194 by %c110_i32_212 dim 1 : vector<8x1024xf32>, i32 -> vector<8x1024xf32>
    %c8_213 = arith.constant 8 : index
    %c0_214 = arith.constant 0 : index
    %198 = vector.load %arg6[%c8_213, %c0_214] : memref<256x1024xf32, #tpu.memory_space<vmem>>, vector<8x1024xf32>
    tpu.vector_store %arg6[%c8_213, %c0_214], %197 {strides = array<i32>} : memref<256x1024xf32, #tpu.memory_space<vmem>>, vector<8x1024xf32>,
    %c109_i32_215 = arith.constant 109 : i32
    %199 = tpu.dynamic_rotate %194 by %c109_i32_215 dim 1 : vector<8x1024xf32>, i32 -> vector<8x1024xf32>
    %c16_216 = arith.constant 16 : index
    %c0_217 = arith.constant 0 : index
    %200 = vector.load %arg6[%c16_216, %c0_217] : memref<256x1024xf32, #tpu.memory_space<vmem>>, vector<8x1024xf32>
    tpu.vector_store %arg6[%c16_216, %c0_217], %199 {strides = array<i32>} : memref<256x1024xf32, #tpu.memory_space<vmem>>, vector<8x1024xf32>,
    %c101_i32_218 = arith.constant 101 : i32
    %201 = tpu.dynamic_rotate %194 by %c101_i32_218 dim 1 : vector<8x1024xf32>, i32 -> vector<8x1024xf32>
    %c24_219 = arith.constant 24 : index
    %c0_220 = arith.constant 0 : index
    %202 = vector.load %arg6[%c24_219, %c0_220] : memref<256x1024xf32, #tpu.memory_space<vmem>>, vector<8x1024xf32>
    tpu.vector_store %arg6[%c24_219, %c0_220], %201 {strides = array<i32>} : memref<256x1024xf32, #tpu.memory_space<vmem>>, vector<8x1024xf32>,
    %c100_i32_221 = arith.constant 100 : i32
    %203 = tpu.dynamic_rotate %194 by %c100_i32_221 dim 1 : vector<8x1024xf32>, i32 -> vector<8x1024xf32>
    %c32_222 = arith.constant 32 : index
    %c0_223 = arith.constant 0 : index
    %204 = vector.load %arg6[%c32_222, %c0_223] : memref<256x1024xf32, #tpu.memory_space<vmem>>, vector<8x1024xf32>
    tpu.vector_store %arg6[%c32_222, %c0_223], %203 {strides = array<i32>} : memref<256x1024xf32, #tpu.memory_space<vmem>>, vector<8x1024xf32>,
    %c99_i32_224 = arith.constant 99 : i32
    %205 = tpu.dynamic_rotate %194 by %c99_i32_224 dim 1 : vector<8x1024xf32>, i32 -> vector<8x1024xf32>
    %c40_225 = arith.constant 40 : index
    %c0_226 = arith.constant 0 : index
    %206 = vector.load %arg6[%c40_225, %c0_226] : memref<256x1024xf32, #tpu.memory_space<vmem>>, vector<8x1024xf32>
    tpu.vector_store %arg6[%c40_225, %c0_226], %205 {strides = array<i32>} : memref<256x1024xf32, #tpu.memory_space<vmem>>, vector<8x1024xf32>,
    %c91_i32_227 = arith.constant 91 : i32
    %207 = tpu.dynamic_rotate %194 by %c91_i32_227 dim 1 : vector<8x1024xf32>, i32 -> vector<8x1024xf32>
    %c48_228 = arith.constant 48 : index
    %c0_229 = arith.constant 0 : index
    %208 = vector.load %arg6[%c48_228, %c0_229] : memref<256x1024xf32, #tpu.memory_space<vmem>>, vector<8x1024xf32>
    tpu.vector_store %arg6[%c48_228, %c0_229], %207 {strides = array<i32>} : memref<256x1024xf32, #tpu.memory_space<vmem>>, vector<8x1024xf32>,
    %c90_i32_230 = arith.constant 90 : i32
    %209 = tpu.dynamic_rotate %194 by %c90_i32_230 dim 1 : vector<8x1024xf32>, i32 -> vector<8x1024xf32>
    %c56_231 = arith.constant 56 : index
    %c0_232 = arith.constant 0 : index
    %210 = vector.load %arg6[%c56_231, %c0_232] : memref<256x1024xf32, #tpu.memory_space<vmem>>, vector<8x1024xf32>
    tpu.vector_store %arg6[%c56_231, %c0_232], %209 {strides = array<i32>} : memref<256x1024xf32, #tpu.memory_space<vmem>>, vector<8x1024xf32>,
    %c89_i32_233 = arith.constant 89 : i32
    %211 = tpu.dynamic_rotate %194 by %c89_i32_233 dim 1 : vector<8x1024xf32>, i32 -> vector<8x1024xf32>
    %c64_234 = arith.constant 64 : index
    %c0_235 = arith.constant 0 : index
    %212 = vector.load %arg6[%c64_234, %c0_235] : memref<256x1024xf32, #tpu.memory_space<vmem>>, vector<8x1024xf32>
    tpu.vector_store %arg6[%c64_234, %c0_235], %211 {strides = array<i32>} : memref<256x1024xf32, #tpu.memory_space<vmem>>, vector<8x1024xf32>,
    %c11_i32_236 = arith.constant 11 : i32
    %213 = tpu.dynamic_rotate %194 by %c11_i32_236 dim 1 : vector<8x1024xf32>, i32 -> vector<8x1024xf32>
    %c72_237 = arith.constant 72 : index
    %c0_238 = arith.constant 0 : index
    %214 = vector.load %arg6[%c72_237, %c0_238] : memref<256x1024xf32, #tpu.memory_space<vmem>>, vector<8x1024xf32>
    tpu.vector_store %arg6[%c72_237, %c0_238], %213 {strides = array<i32>} : memref<256x1024xf32, #tpu.memory_space<vmem>>, vector<8x1024xf32>,
    %c10_i32_239 = arith.constant 10 : i32
    %215 = tpu.dynamic_rotate %194 by %c10_i32_239 dim 1 : vector<8x1024xf32>, i32 -> vector<8x1024xf32>
    %c80_240 = arith.constant 80 : index
    %c0_241 = arith.constant 0 : index
    %216 = vector.load %arg6[%c80_240, %c0_241] : memref<256x1024xf32, #tpu.memory_space<vmem>>, vector<8x1024xf32>
    tpu.vector_store %arg6[%c80_240, %c0_241], %215 {strides = array<i32>} : memref<256x1024xf32, #tpu.memory_space<vmem>>, vector<8x1024xf32>,
    %c9_i32_242 = arith.constant 9 : i32
    %217 = tpu.dynamic_rotate %194 by %c9_i32_242 dim 1 : vector<8x1024xf32>, i32 -> vector<8x1024xf32>
    %c88_243 = arith.constant 88 : index
    %c0_244 = arith.constant 0 : index
    %218 = vector.load %arg6[%c88_243, %c0_244] : memref<256x1024xf32, #tpu.memory_space<vmem>>, vector<8x1024xf32>
    tpu.vector_store %arg6[%c88_243, %c0_244], %217 {strides = array<i32>} : memref<256x1024xf32, #tpu.memory_space<vmem>>, vector<8x1024xf32>,
    %c1_i32_245 = arith.constant 1 : i32
    %219 = tpu.dynamic_rotate %194 by %c1_i32_245 dim 1 : vector<8x1024xf32>, i32 -> vector<8x1024xf32>
    %c96_246 = arith.constant 96 : index
    %c0_247 = arith.constant 0 : index
    %220 = vector.load %arg6[%c96_246, %c0_247] : memref<256x1024xf32, #tpu.memory_space<vmem>>, vector<8x1024xf32>
    tpu.vector_store %arg6[%c96_246, %c0_247], %219 {strides = array<i32>} : memref<256x1024xf32, #tpu.memory_space<vmem>>, vector<8x1024xf32>,
    %c104_248 = arith.constant 104 : index
    %c0_249 = arith.constant 0 : index
    %221 = vector.load %arg6[%c104_248, %c0_249] : memref<256x1024xf32, #tpu.memory_space<vmem>>, vector<8x1024xf32>
    tpu.vector_store %arg6[%c104_248, %c0_249], %194 {strides = array<i32>} : memref<256x1024xf32, #tpu.memory_space<vmem>>, vector<8x1024xf32>,
    %c1023_i32_250 = arith.constant 1023 : i32
    %222 = tpu.dynamic_rotate %194 by %c1023_i32_250 dim 1 : vector<8x1024xf32>, i32 -> vector<8x1024xf32>
    %c112_251 = arith.constant 112 : index
    %c0_252 = arith.constant 0 : index
    %223 = vector.load %arg6[%c112_251, %c0_252] : memref<256x1024xf32, #tpu.memory_space<vmem>>, vector<8x1024xf32>
    tpu.vector_store %arg6[%c112_251, %c0_252], %222 {strides = array<i32>} : memref<256x1024xf32, #tpu.memory_space<vmem>>, vector<8x1024xf32>,
    %c1015_i32_253 = arith.constant 1015 : i32
    %224 = tpu.dynamic_rotate %194 by %c1015_i32_253 dim 1 : vector<8x1024xf32>, i32 -> vector<8x1024xf32>
    %c120_254 = arith.constant 120 : index
    %c0_255 = arith.constant 0 : index
    %225 = vector.load %arg6[%c120_254, %c0_255] : memref<256x1024xf32, #tpu.memory_space<vmem>>, vector<8x1024xf32>
    tpu.vector_store %arg6[%c120_254, %c0_255], %224 {strides = array<i32>} : memref<256x1024xf32, #tpu.memory_space<vmem>>, vector<8x1024xf32>,
    %c1014_i32_256 = arith.constant 1014 : i32
    %226 = tpu.dynamic_rotate %194 by %c1014_i32_256 dim 1 : vector<8x1024xf32>, i32 -> vector<8x1024xf32>
    %c128_257 = arith.constant 128 : index
    %c0_258 = arith.constant 0 : index
    %227 = vector.load %arg6[%c128_257, %c0_258] : memref<256x1024xf32, #tpu.memory_space<vmem>>, vector<8x1024xf32>
    tpu.vector_store %arg6[%c128_257, %c0_258], %226 {strides = array<i32>} : memref<256x1024xf32, #tpu.memory_space<vmem>>, vector<8x1024xf32>,
    %c1013_i32_259 = arith.constant 1013 : i32
    %228 = tpu.dynamic_rotate %194 by %c1013_i32_259 dim 1 : vector<8x1024xf32>, i32 -> vector<8x1024xf32>
    %c136_260 = arith.constant 136 : index
    %c0_261 = arith.constant 0 : index
    %229 = vector.load %arg6[%c136_260, %c0_261] : memref<256x1024xf32, #tpu.memory_space<vmem>>, vector<8x1024xf32>
    tpu.vector_store %arg6[%c136_260, %c0_261], %228 {strides = array<i32>} : memref<256x1024xf32, #tpu.memory_space<vmem>>, vector<8x1024xf32>,
    %c935_i32_262 = arith.constant 935 : i32
    %230 = tpu.dynamic_rotate %194 by %c935_i32_262 dim 1 : vector<8x1024xf32>, i32 -> vector<8x1024xf32>
    %c144_263 = arith.constant 144 : index
    %c0_264 = arith.constant 0 : index
    %231 = vector.load %arg6[%c144_263, %c0_264] : memref<256x1024xf32, #tpu.memory_space<vmem>>, vector<8x1024xf32>
    tpu.vector_store %arg6[%c144_263, %c0_264], %230 {strides = array<i32>} : memref<256x1024xf32, #tpu.memory_space<vmem>>, vector<8x1024xf32>,
    %c934_i32_265 = arith.constant 934 : i32
    %232 = tpu.dynamic_rotate %194 by %c934_i32_265 dim 1 : vector<8x1024xf32>, i32 -> vector<8x1024xf32>
    %c152_266 = arith.constant 152 : index
    %c0_267 = arith.constant 0 : index
    %233 = vector.load %arg6[%c152_266, %c0_267] : memref<256x1024xf32, #tpu.memory_space<vmem>>, vector<8x1024xf32>
    tpu.vector_store %arg6[%c152_266, %c0_267], %232 {strides = array<i32>} : memref<256x1024xf32, #tpu.memory_space<vmem>>, vector<8x1024xf32>,
    %c933_i32_268 = arith.constant 933 : i32
    %234 = tpu.dynamic_rotate %194 by %c933_i32_268 dim 1 : vector<8x1024xf32>, i32 -> vector<8x1024xf32>
    %c160_269 = arith.constant 160 : index
    %c0_270 = arith.constant 0 : index
    %235 = vector.load %arg6[%c160_269, %c0_270] : memref<256x1024xf32, #tpu.memory_space<vmem>>, vector<8x1024xf32>
    tpu.vector_store %arg6[%c160_269, %c0_270], %234 {strides = array<i32>} : memref<256x1024xf32, #tpu.memory_space<vmem>>, vector<8x1024xf32>,
    %c925_i32_271 = arith.constant 925 : i32
    %236 = tpu.dynamic_rotate %194 by %c925_i32_271 dim 1 : vector<8x1024xf32>, i32 -> vector<8x1024xf32>
    %c168_272 = arith.constant 168 : index
    %c0_273 = arith.constant 0 : index
    %237 = vector.load %arg6[%c168_272, %c0_273] : memref<256x1024xf32, #tpu.memory_space<vmem>>, vector<8x1024xf32>
    tpu.vector_store %arg6[%c168_272, %c0_273], %236 {strides = array<i32>} : memref<256x1024xf32, #tpu.memory_space<vmem>>, vector<8x1024xf32>,
    %c924_i32_274 = arith.constant 924 : i32
    %238 = tpu.dynamic_rotate %194 by %c924_i32_274 dim 1 : vector<8x1024xf32>, i32 -> vector<8x1024xf32>
    %c176_275 = arith.constant 176 : index
    %c0_276 = arith.constant 0 : index
    %239 = vector.load %arg6[%c176_275, %c0_276] : memref<256x1024xf32, #tpu.memory_space<vmem>>, vector<8x1024xf32>
    tpu.vector_store %arg6[%c176_275, %c0_276], %238 {strides = array<i32>} : memref<256x1024xf32, #tpu.memory_space<vmem>>, vector<8x1024xf32>,
    %c923_i32_277 = arith.constant 923 : i32
    %240 = tpu.dynamic_rotate %194 by %c923_i32_277 dim 1 : vector<8x1024xf32>, i32 -> vector<8x1024xf32>
    %c184_278 = arith.constant 184 : index
    %c0_279 = arith.constant 0 : index
    %241 = vector.load %arg6[%c184_278, %c0_279] : memref<256x1024xf32, #tpu.memory_space<vmem>>, vector<8x1024xf32>
    tpu.vector_store %arg6[%c184_278, %c0_279], %240 {strides = array<i32>} : memref<256x1024xf32, #tpu.memory_space<vmem>>, vector<8x1024xf32>,
    %c915_i32_280 = arith.constant 915 : i32
    %242 = tpu.dynamic_rotate %194 by %c915_i32_280 dim 1 : vector<8x1024xf32>, i32 -> vector<8x1024xf32>
    %c192_281 = arith.constant 192 : index
    %c0_282 = arith.constant 0 : index
    %243 = vector.load %arg6[%c192_281, %c0_282] : memref<256x1024xf32, #tpu.memory_space<vmem>>, vector<8x1024xf32>
    tpu.vector_store %arg6[%c192_281, %c0_282], %242 {strides = array<i32>} : memref<256x1024xf32, #tpu.memory_space<vmem>>, vector<8x1024xf32>,
    %c914_i32_283 = arith.constant 914 : i32
    %244 = tpu.dynamic_rotate %194 by %c914_i32_283 dim 1 : vector<8x1024xf32>, i32 -> vector<8x1024xf32>
    %c200_284 = arith.constant 200 : index
    %c0_285 = arith.constant 0 : index
    %245 = vector.load %arg6[%c200_284, %c0_285] : memref<256x1024xf32, #tpu.memory_space<vmem>>, vector<8x1024xf32>
    tpu.vector_store %arg6[%c200_284, %c0_285], %244 {strides = array<i32>} : memref<256x1024xf32, #tpu.memory_space<vmem>>, vector<8x1024xf32>,
    %c913_i32_286 = arith.constant 913 : i32
    %246 = tpu.dynamic_rotate %194 by %c913_i32_286 dim 1 : vector<8x1024xf32>, i32 -> vector<8x1024xf32>
    %c208_287 = arith.constant 208 : index
    %c0_288 = arith.constant 0 : index
    %247 = vector.load %arg6[%c208_287, %c0_288] : memref<256x1024xf32, #tpu.memory_space<vmem>>, vector<8x1024xf32>
    tpu.vector_store %arg6[%c208_287, %c0_288], %246 {strides = array<i32>} : memref<256x1024xf32, #tpu.memory_space<vmem>>, vector<8x1024xf32>,
    %248 = vector.extract_strided_slice %2 {offsets = [0, 768], sizes = [8, 256], strides = [1, 1]} : vector<8x1024xf32> to vector<8x256xf32>
    %c0_289 = arith.constant 0 : index
    %c0_290 = arith.constant 0 : index
    %249 = vector.load %arg6[%c0_289, %c0_290] : memref<256x1024xf32, #tpu.memory_space<vmem>>, vector<256x1024xf32>
    %cst_291 = arith.constant dense<0.000000e+00> : vector<8x1024xf32>
    %250 = tpu.matmul %248, %249, %cst_291 {dimension_numbers = #tpu.dot_dimension_numbers<[1], [0], [0], [1], [0, 0, 1, 1], [], []>} : vector<8x256xf32>, vector<256x1024xf32>, vector<8x1024xf32> -> vector<8x1024xf32>
    %251 = vector.extract_strided_slice %3 {offsets = [0, 3], sizes = [8, 1], strides = [1, 1]} : vector<8x4xf32> to vector<8x1xf32>
    %252 = vector.broadcast %251 : vector<8x1xf32> to vector<8x1024xf32>
    %253 = arith.addf %250, %252 : vector<8x1024xf32>
    %cst_292 = arith.constant 0.000000e+00 : f32
    %254 = vector.broadcast %cst_292 : f32 to vector<8x1024xf32>
    %255 = arith.maximumf %253, %254 : vector<8x1024xf32>
    %256 = arith.addf %255, %1 : vector<8x1024xf32>
    %c0_293 = arith.constant 0 : index
    %c0_294 = arith.constant 0 : index
    %c0_295 = arith.constant 0 : index
    %257 = vector.load %arg5[%c0_293, %c0_294, %c0_295] : memref<1x8x1024xf32, #tpu.memory_space<vmem>>, vector<1x8x1024xf32>
    %258 = vector.shape_cast %257 : vector<1x8x1024xf32> to vector<8x1024xf32>
    %259 = vector.shape_cast %256 : vector<8x1024xf32> to vector<1x8x1024xf32>
    tpu.vector_store %arg5[%c0_293, %c0_294, %c0_295], %259 {strides = array<i32>} : memref<1x8x1024xf32, #tpu.memory_space<vmem>>, vector<1x8x1024xf32>,
    return
  }
  func.func @transform_0(%arg0: i32) -> (i32, i32, i32) {
    %c0_i32 = arith.constant 0 : i32
    %c0_i32_0 = arith.constant 0 : i32
    %c0_i32_1 = arith.constant 0 : i32
    return %arg0, %c0_i32, %c0_i32_0 : i32, i32, i32
  }
  func.func @transform_1(%arg0: i32) -> (i32, i32) {
    %c0_i32 = arith.constant 0 : i32
    %c0_i32_0 = arith.constant 0 : i32
    %c0_i32_1 = arith.constant 0 : i32
    return %c0_i32, %c0_i32_0 : i32, i32
  }
  func.func @transform_2(%arg0: i32) -> (i32, i32) {
    %c0_i32 = arith.constant 0 : i32
    %c0_i32_0 = arith.constant 0 : i32
    %c0_i32_1 = arith.constant 0 : i32
    return %c0_i32, %c0_i32_0 : i32, i32
  }
  func.func @transform_3(%arg0: i32) -> (i32, i32) {
    %c0_i32 = arith.constant 0 : i32
    %c0_i32_0 = arith.constant 0 : i32
    %c0_i32_1 = arith.constant 0 : i32
    return %c0_i32, %c0_i32_0 : i32, i32
  }
  func.func @transform_4(%arg0: i32) -> (i32, i32, i32) {
    %c0_i32 = arith.constant 0 : i32
    %c0_i32_0 = arith.constant 0 : i32
    %c0_i32_1 = arith.constant 0 : i32
    return %arg0, %c0_i32, %c0_i32_0 : i32, i32, i32
  }
}

</mosaic_0001>

<bundles_post_ra>
// kernel: tpu_custom_call.1
= control target key start
LH: loop header
LB: loop body
LE: loop exit
PB: predicated region body
PF: predicated region fallthrough
CT: control target
= control target key end

     0   :  { %s11828_s0 = inlined_call_operand.hbm [shape: f32[2,8,1024], index: 0, kind: input, shape index: {}, may-alias: {0,4}]   ;;  %s11829_s1 = inlined_call_operand.vmem [shape: f32[8,1024], index: 1, kind: input, shape index: {}]   ;;  %s11830_s2 = inlined_call_operand.vmem [shape: f32[8,4], index: 2, kind: input, shape index: {}]   ;;  %s11831_s3 = inlined_call_operand.vmem [shape: f32[1,1024], index: 3, kind: input, shape index: {}]   ;;  %s11832_s4 = inlined_call_operand.hbm [shape: f32[2,8,1024], index: 4, kind: output, shape index: {}, may-alias: {0,4}]  }
   0x1   :  { %12084 = sst [smem:[#allocation84_spill]] %s11828_s0 }
   0x2   :  { %12085 = sst [smem:[#allocation85_spill]] %s11831_s3 }
   0x3   :  { %12086 = sst [smem:[#allocation86_spill]] %s11832_s4 }
   0x4   :  { %9 = vsyncpa [#allocation4], 0 }
   0x5   :  { %11 = vsyncpa [#allocation4 + $0x1], 0 }
   0x6   :  { %12 = vsyncpa [#allocation5], 0 }
   0x7   :  { %14 = vsyncpa [#allocation5 + $0x1], 0  ;;  %s6298_s15 = smov 0   ;;  %s6300_s16 = smov 0  }
   0x8   :  { %s6302_s17 = smov 0   ;;  %s6304_s18 = smov 0  }
   0x9 LB: > { %12087 = sst [smem:[#allocation9_spill]] %s6227_s15  ;;  %s6319_s19 = sadd.s32 4294967295, %s6239_s18   ;;  %s6239_s18 = sphi %s6304_s18, %s12850_s18   ;;  %s6235_s17 = sphi %s6302_s17, %s12853_s17   ;;  %s6231_s16 = sphi %s6300_s16, %s12852_s16   ;;  %s6227_s15 = sphi %s6298_s15, %s12851_s15  }
   0xa   : > { %12088 = sst [smem:[#allocation10_spill]] %s6231_s16  ;;  %s6035_s20 = sadd.s32 4294967294, %s6239_s18  }
   0xb   : > { %12089 = sst [smem:[#allocation11_spill]] %s6235_s17  ;;  %s6323_s21 = sadd.s32 1, %s6239_s18  }
   0xc   : > { %12090 = sst [smem:[#allocation12_spill]] %s6239_s18  ;;  %s27_s22 = sadd.s32 1, %s6235_s17 }
   0xd   : > { %12091 = sst [smem:[#allocation13_spill]] %s6319_s19  ;;  %s24_s23 = ssub.s32 %s6239_s18, %s6323_s21 }
   0xe   : > { %12092 = sst [smem:[#allocation14_spill]] %s6323_s21  ;;  %p34_p0 = scmp.ne.s32.totalorder %s6235_s17, %s6231_s16 }
   0xf   : > { %p25_p1 = scmp.eq.s32.totalorder %s24_s23, 0  ;;  %p35_p2 = scmp.eq.s32.totalorder %s6239_s18, 0 }
  0x10   : > { %p40_p3 = scmp.ne.s32.totalorder %s6231_s16, %s6227_s15  ;;  %p41_p4 = scmp.eq.s32.totalorder %s6319_s19, 0 }
  0x11   : > { %s6335_s24 = scalar_select %p25_p1, %s6235_s17, %s27_s22  }
  0x12   : > { %p6337_p5 = por %p35_p2, %p34_p0  ;;  %p6341_p6 = por %p41_p4, %p40_p3 }
  0x13   : > { %12093 = sst [smem:[#allocation15_spill]] %s6335_s24  ;;  %p127_p7 = scmp.eq.s32.totalorder %s6319_s19, 1 }
  0x14   : > { %s12095_s26 = scalar_select %p6341_p6, 1, 0 }
  0x15   : > { %p133_p8 = scmp.eq.s32.totalorder %s6035_s20, 1  ;;  %p6063_p10 = scmp.lt.s32.totalorder %s6239_s18, 2 }
  0x16   : > { %p6348_p11 = por %p127_p7, %p34_p0  ;;  %s162_s29 = sand.u32 1, %s6235_s17  }
  0x17   : > { %p6352_p12 = por %p133_p8, %p40_p3  ;;  %s6049_s30 = sshll.u32 %s6239_s18, 10 }
  0x18   : > { %s12096_s27 = scalar_select %p6348_p11, 1, 0 }
  0x19   : > { %s12098_s28 = scalar_select %p6352_p12, 1, 0 }
  0x1a   : > { %12097 = sst [smem:[#allocation16_spill]] %s12096_s27  ;;  %s6038_s5 = sshll.u32 %s162_s29, 6 }
  0x1b   : > { %12099 = sst [smem:[#allocation17_spill]] %s12098_s28  ;;  %s166_s9 = scalar_lea.vmem [#allocation3], %s6038_s5 }
  0x1c   : > { %s12100_s0 = sld [smem:[#allocation84_spill]]  ;;  %s174_s10 = sshll.u32 %s166_s9, 4  ;;  %s6369_s10 = int_to_ptr.vmem [resolvable:$true] %s174_s10 }
  0x1d   : > { %p6365_p13 = pnand %p6063_p10, %p6337_p5  ;;  %s163_s12 = scalar_lea.sflag [#allocation4], %s162_s29 }
  0x1f   : > { %p6149_p3 = pneg %p6365_p13 }
  0x22   : > { %s6361_s8 = scalar_lea.hbm %s12100_s0, %s6049_s30  ;;  %s6152_s22 = scalar_lea.hbm %s12100_s0, 2048 }
  0x23   : > { %s6147_s13 = scalar_lea.hbm %s6361_s8, 1024  ;;  %p6153_p5 = scmp.lt.s32.totalorder %s6361_s8, %s12100_s0 }
  0x24   : > { %p6148_p2 = scmp.ne.s32.totalorder %s6361_s8, %s6147_s13  ;;  %p6154_p8 = scmp.lt.s32.totalorder %s6152_s22, %s6147_s13 }
  0x26   : > { %p6150_p4 = pnand %p6149_p3, %p6148_p2  ;;  %p6155_p10 = por %p6154_p8, %p6153_p5 }
  0x28   : > { %p6151_p7 = pneg %p6150_p4 }
  0x2a   : > { %p6156_p9 = pnand %p6155_p10, %p6151_p7 }
  0x2c   : > { %6159 = shalt.err (!%p6156_p9)
}
  0x2d   : > { %s6160_s29 = scalar_lea.vmem %s6369_s10, 1024  ;;  %s6241_s30 = smov [#allocation3]  }
  0x2e   : > { %p6161_p0 = scmp.ne.s32.totalorder %s6369_s10, %s6160_s29  ;;  %s6165_s5 = sshll.u32 %s6241_s30, 4  ;;  %s6166_s5 = int_to_ptr.vmem [resolvable:$false] %s6165_s5 }
  0x2f   : > { %s6167_s6 = scalar_lea.vmem %s6166_s5, 2048  ;;  %p6168_p4 = scmp.lt.s32.totalorder %s6369_s10, %s6166_s5 }
  0x30   : > { %p6163_p1 = pnand %p6161_p0, %p6149_p3  ;;  %p6169_p12 = scmp.lt.s32.totalorder %s6167_s6, %s6160_s29 }
  0x32   : > { %p6164_p2 = pneg %p6163_p1  ;;  %p6170_p11 = por %p6169_p12, %p6168_p4 }
  0x34   : > { %p6171_p6 = pnand %p6170_p11, %p6164_p2 }
  0x36   : > { %6174 = shalt.err (!%p6171_p6)
}
  0x37   : > { %6058 = dma.hbm_to_vmem [thread:$0]  (!%p6365_p13), %s6361_s8, 1024, %s6369_s10, %s163_s12  }
  0x38   : > { %p12102_p9 = scmp.lt.s32.totalorder %s6239_s18, 3  ;;  %p12103_p7 = scmp.ge.s32.totalorder %s6239_s18, 1 }
  0x3a   : > { %p180_p0 = pnand %p12103_p7, %p12102_p9 }
  0x3c   : > { %183 = sbr.rel (%p180_p0) target bundleno = 2992 (0xbb0), region = 36 }
  0x41   : > { %s6396_s7 = sand.u32 1, %s6231_s16   ;;  %p12105_p6 = scmp.ne.s32.totalorder %s12095_s26, 0 }
  0x42   : > { %12104 = sst [smem:[#allocation18_spill]] %s6396_s7  ;;  %s11835_s9 = sshll.u32 %s6396_s7, 6 }
  0x43   : > { %s186_s13 = scalar_lea.sflag [#allocation4], %s6396_s7  ;;  %s6402_s11 = scalar_lea.vmem [#allocation3], %s11835_s9 }
  0x44   : > { %6218 = dma.done.wait (%p12105_p6), %s186_s13, 1024  }
  0x45   : > { %6220 = vsyncadd (%p12105_p6), %s186_s13, 4294966272  ;;  %v6409_v0 = vld [vmem:[%s6402_s11 + $0x10] sm:$0xff]  ;;  %v6412_v1 = vld [vmem:[%s6402_s11] sm:$0xff]  ;;  %s11952_s8 = smov 111   ;;  %s11950_s26 = smov 110  }
  0x46   : > { %317 = vrot.lane.b32.xlu1 %v6409_v0, %s11952_s8  ;;  %313 = vrot.lane.b32.xlu0 %v6412_v1, %s11952_s8  ;;  %v6419_v2 = vld [vmem:[%s6402_s11 + $0x18] sm:$0xff]  ;;  %v6422_v3 = vld [vmem:[%s6402_s11 + $0x8] sm:$0xff]  ;;  %s11917_s10 = smov 109   ;;  %s11911_s12 = smov 101  }
  0x47   : > { %v6429_v4 = vld [vmem:[%s6402_s11 + $0x28] sm:$0xff]  ;;  %v6432_v5 = vld [vmem:[%s6402_s11 + $0x20] sm:$0xff]  ;;  %v6439_v6 = vld [vmem:[%s6402_s11 + $0x38] sm:$0xff]  ;;  %s11909_s14 = smov 100   ;;  %s11902_s20 = smov 99  }
  0x48   : > { %v6442_v7 = vld [vmem:[%s6402_s11 + $0x30] sm:$0xff]  ;;  %s11896_s22 = smov 91   ;;  %s11888_s23 = smov 90  }
  0x49   : > { %s11882_s25 = smov 89   ;;  %s11874_s29 = smov 11  }
  0x4a   : > { %319 = vrot.lane.b32.xlu1 %v6419_v2, %s11952_s8  ;;  %315 = vrot.lane.b32.xlu0 %v6422_v3, %s11952_s8  ;;  %s11868_s30 = smov 10   ;;  %s11844_s5 = smov 9  }
  0x4b   : > { %s11850_s6 = smov 1   ;;  %s11856_s13 = smov 127  }
  0x4c   : > { %s11860_s9 = smov 119   ;;  %s12293_s3 = sld [smem:[#allocation85_spill]] }
  0x4d   : > { %s12348_s0 = smov 28   ;;  %s12355_s24 = smov 37  }
  0x4e   : > { %323 = vrot.lane.b32.xlu1 %v6429_v4, %s11952_s8  ;;  %321 = vrot.lane.b32.xlu0 %v6432_v5, %s11952_s8  ;;  %s12356_s17 = smov 38   ;;  %s12363_s16 = smov 39  }
  0x4f   : > { %s12370_s21 = smov 117   ;;  %s12372_s15 = smov 118  }
  0x50   : > { %s12414_s18 = smov 17   ;;  %s12418_s28 = smov 18  }
  0x51   : > { %s12519_s4 = smov 111   ;;  %s12525_s27 = smov 110  }
  0x52   : > { %327 = vrot.lane.b32.xlu1 %v6439_v6, %s11952_s8  ;;  %325 = vrot.lane.b32.xlu0 %v6442_v7, %s11952_s8 }
  0x56   : > { %350 = vrot.lane.b32.xlu1 %v6422_v3, %s11950_s26  ;;  %348 = vrot.lane.b32.xlu0 %v6412_v1, %s11950_s26 }
  0x5a   : > { %354 = vrot.lane.b32.xlu1 %v6419_v2, %s11950_s26  ;;  %352 = vrot.lane.b32.xlu0 %v6409_v0, %s11950_s26 }
  0x5e   : > { %358 = vrot.lane.b32.xlu1 %v6429_v4, %s11950_s26  ;;  %356 = vrot.lane.b32.xlu0 %v6432_v5, %s11950_s26 }
  0x62   : > { %362 = vrot.lane.b32.xlu1 %v6439_v6, %s11950_s26  ;;  %360 = vrot.lane.b32.xlu0 %v6442_v7, %s11950_s26 }
  0x66   : > { %383 = vrot.lane.b32.xlu1 %v6422_v3, %s11917_s10  ;;  %381 = vrot.lane.b32.xlu0 %v6412_v1, %s11917_s10 }
  0x6a   : > { %387 = vrot.lane.b32.xlu1 %v6419_v2, %s11917_s10  ;;  %385 = vrot.lane.b32.xlu0 %v6409_v0, %s11917_s10 }
  0x6e   : > { %391 = vrot.lane.b32.xlu1 %v6429_v4, %s11917_s10  ;;  %389 = vrot.lane.b32.xlu0 %v6432_v5, %s11917_s10 }
  0x72   : > { %395 = vrot.lane.b32.xlu1 %v6439_v6, %s11917_s10  ;;  %393 = vrot.lane.b32.xlu0 %v6442_v7, %s11917_s10  ;;  %s11956_s10 = smov 117  }
  0x76   : > { %416 = vrot.lane.b32.xlu1 %v6422_v3, %s11911_s12  ;;  %414 = vrot.lane.b32.xlu0 %v6412_v1, %s11911_s12 }
  0x7a   : > { %420 = vrot.lane.b32.xlu1 %v6419_v2, %s11911_s12  ;;  %418 = vrot.lane.b32.xlu0 %v6409_v0, %s11911_s12 }
  0x7e   : > { %424 = vrot.lane.b32.xlu1 %v6429_v4, %s11911_s12  ;;  %422 = vrot.lane.b32.xlu0 %v6432_v5, %s11911_s12 }
  0x82   : > { %428 = vrot.lane.b32.xlu1 %v6439_v6, %s11911_s12  ;;  %426 = vrot.lane.b32.xlu0 %v6442_v7, %s11911_s12  ;;  %s12302_s12 = smov 109  }
  0x86   : > { %449 = vrot.lane.b32.xlu1 %v6422_v3, %s11909_s14  ;;  %447 = vrot.lane.b32.xlu0 %v6412_v1, %s11909_s14 }
  0x8a   : > { %453 = vrot.lane.b32.xlu1 %v6419_v2, %s11909_s14  ;;  %451 = vrot.lane.b32.xlu0 %v6409_v0, %s11909_s14 }
  0x8e   : > { %457 = vrot.lane.b32.xlu1 %v6429_v4, %s11909_s14  ;;  %455 = vrot.lane.b32.xlu0 %v6432_v5, %s11909_s14 }
  0x92   : > { %461 = vrot.lane.b32.xlu1 %v6439_v6, %s11909_s14  ;;  %459 = vrot.lane.b32.xlu0 %v6442_v7, %s11909_s14  ;;  %s12303_s14 = smov 101  }
  0x96   : > { %482 = vrot.lane.b32.xlu1 %v6422_v3, %s11902_s20  ;;  %480 = vrot.lane.b32.xlu0 %v6412_v1, %s11902_s20 }
  0x9a   : > { %486 = vrot.lane.b32.xlu1 %v6419_v2, %s11902_s20  ;;  %484 = vrot.lane.b32.xlu0 %v6409_v0, %s11902_s20 }
  0x9e   : > { %490 = vrot.lane.b32.xlu1 %v6429_v4, %s11902_s20  ;;  %488 = vrot.lane.b32.xlu0 %v6432_v5, %s11902_s20 }
  0xa2   : > { %494 = vrot.lane.b32.xlu1 %v6439_v6, %s11902_s20  ;;  %492 = vrot.lane.b32.xlu0 %v6442_v7, %s11902_s20  ;;  %s11958_s20 = smov 39  }
  0xa6   : > { %515 = vrot.lane.b32.xlu1 %v6422_v3, %s11896_s22  ;;  %513 = vrot.lane.b32.xlu0 %v6412_v1, %s11896_s22 }
  0xaa   : > { %519 = vrot.lane.b32.xlu1 %v6419_v2, %s11896_s22  ;;  %517 = vrot.lane.b32.xlu0 %v6409_v0, %s11896_s22 }
  0xae   : > { %523 = vrot.lane.b32.xlu1 %v6429_v4, %s11896_s22  ;;  %521 = vrot.lane.b32.xlu0 %v6432_v5, %s11896_s22 }
  0xb2   : > { %527 = vrot.lane.b32.xlu1 %v6439_v6, %s11896_s22  ;;  %525 = vrot.lane.b32.xlu0 %v6442_v7, %s11896_s22  ;;  %s11960_s22 = smov 38  }
  0xb6   : > { %548 = vrot.lane.b32.xlu1 %v6422_v3, %s11888_s23  ;;  %546 = vrot.lane.b32.xlu0 %v6412_v1, %s11888_s23 }
  0xb8   : > { %v6548_v8 = vpop.permute.xlu1 %317  ;;  %v6550_v9 = vpop.permute.xlu0 %313 }
  0xb9   : > { %12106 = vst [vmem:[#allocation19_spill] sm:$0xff] %v6548_v8  ;;  %12107 = vst [vmem:[#allocation20_spill] sm:$0xff] %v6550_v9 }
  0xba   : > { %552 = vrot.lane.b32.xlu1 %v6419_v2, %s11888_s23  ;;  %550 = vrot.lane.b32.xlu0 %v6409_v0, %s11888_s23 }
  0xbc   : > { %v6556_v10 = vpop.permute.xlu1 %319  ;;  %v6558_v11 = vpop.permute.xlu0 %315 }
  0xbd   : > { %12108 = vst [vmem:[#allocation21_spill] sm:$0xff] %v6556_v10  ;;  %12109 = vst [vmem:[#allocation22_spill] sm:$0xff] %v6558_v11 }
  0xbe   : > { %556 = vrot.lane.b32.xlu1 %v6429_v4, %s11888_s23  ;;  %554 = vrot.lane.b32.xlu0 %v6432_v5, %s11888_s23 }
  0xc0   : > { %v6564_v12 = vpop.permute.xlu1 %323  ;;  %v6566_v13 = vpop.permute.xlu0 %321 }
  0xc1   : > { %12110 = vst [vmem:[#allocation23_spill] sm:$0xff] %v6564_v12  ;;  %12111 = vst [vmem:[#allocation24_spill] sm:$0xff] %v6566_v13 }
  0xc2   : > { %560 = vrot.lane.b32.xlu1 %v6439_v6, %s11888_s23  ;;  %558 = vrot.lane.b32.xlu0 %v6442_v7, %s11888_s23  ;;  %s11962_s23 = smov 37  }
  0xc4   : > { %v6572_v14 = vpop.permute.xlu1 %327  ;;  %v6574_v15 = vpop.permute.xlu0 %325 }
  0xc5   : > { %12112 = vst [vmem:[#allocation25_spill] sm:$0xff] %v6572_v14  ;;  %12113 = vst [vmem:[#allocation26_spill] sm:$0xff] %v6574_v15 }
  0xc6   : > { %581 = vrot.lane.b32.xlu1 %v6422_v3, %s11882_s25  ;;  %579 = vrot.lane.b32.xlu0 %v6412_v1, %s11882_s25 }
  0xc8   : > { %v6580_v16 = vpop.permute.xlu1 %350  ;;  %v6582_v17 = vpop.permute.xlu0 %348 }
  0xc9   : > { %12114 = vst [vmem:[#allocation27_spill] sm:$0xff] %v6580_v16  ;;  %12115 = vst [vmem:[#allocation28_spill] sm:$0xff] %v6582_v17 }
  0xca   : > { %585 = vrot.lane.b32.xlu1 %v6419_v2, %s11882_s25  ;;  %583 = vrot.lane.b32.xlu0 %v6409_v0, %s11882_s25 }
  0xcc   : > { %v6588_v18 = vpop.permute.xlu1 %354  ;;  %v6590_v19 = vpop.permute.xlu0 %352 }
  0xcd   : > { %12116 = vst [vmem:[#allocation29_spill] sm:$0xff] %v6588_v18  ;;  %12117 = vst [vmem:[#allocation30_spill] sm:$0xff] %v6590_v19 }
  0xce   : > { %589 = vrot.lane.b32.xlu1 %v6429_v4, %s11882_s25  ;;  %587 = vrot.lane.b32.xlu0 %v6432_v5, %s11882_s25 }
  0xd0   : > { %v6596_v20 = vpop.permute.xlu1 %358  ;;  %v6598_v21 = vpop.permute.xlu0 %356 }
  0xd1   : > { %12118 = vst [vmem:[#allocation31_spill] sm:$0xff] %v6596_v20  ;;  %12119 = vst [vmem:[#allocation32_spill] sm:$0xff] %v6598_v21 }
  0xd2   : > { %593 = vrot.lane.b32.xlu1 %v6439_v6, %s11882_s25  ;;  %591 = vrot.lane.b32.xlu0 %v6442_v7, %s11882_s25  ;;  %s11964_s25 = smov 29  }
  0xd4   : > { %v6604_v22 = vpop.permute.xlu1 %362  ;;  %v6606_v23 = vpop.permute.xlu0 %360 }
  0xd5   : > { %12120 = vst [vmem:[#allocation33_spill] sm:$0xff] %v6604_v22  ;;  %12121 = vst [vmem:[#allocation34_spill] sm:$0xff] %v6606_v23 }
  0xd6   : > { %614 = vrot.lane.b32.xlu1 %v6422_v3, %s11874_s29  ;;  %612 = vrot.lane.b32.xlu0 %v6412_v1, %s11874_s29 }
  0xd8   : > { %v6612_v24 = vpop.permute.xlu1 %383  ;;  %v6614_v25 = vpop.permute.xlu0 %381 }
  0xd9   : > { %12122 = vst [vmem:[#allocation35_spill] sm:$0xff] %v6612_v24  ;;  %12123 = vst [vmem:[#allocation36_spill] sm:$0xff] %v6614_v25 }
  0xda   : > { %618 = vrot.lane.b32.xlu1 %v6419_v2, %s11874_s29  ;;  %616 = vrot.lane.b32.xlu0 %v6409_v0, %s11874_s29 }
  0xdc   : > { %v6620_v26 = vpop.permute.xlu1 %387  ;;  %v6622_v27 = vpop.permute.xlu0 %385 }
  0xdd   : > { %12124 = vst [vmem:[#allocation37_spill] sm:$0xff] %v6620_v26  ;;  %12125 = vst [vmem:[#allocation38_spill] sm:$0xff] %v6622_v27 }
  0xde   : > { %622 = vrot.lane.b32.xlu1 %v6429_v4, %s11874_s29  ;;  %620 = vrot.lane.b32.xlu0 %v6432_v5, %s11874_s29 }
  0xe0   : > { %v6628_v28 = vpop.permute.xlu1 %391  ;;  %v6630_v29 = vpop.permute.xlu0 %389 }
  0xe1   : > { %12126 = vst [vmem:[#allocation39_spill] sm:$0xff] %v6628_v28  ;;  %12127 = vst [vmem:[#allocation40_spill] sm:$0xff] %v6630_v29 }
  0xe2   : > { %626 = vrot.lane.b32.xlu1 %v6439_v6, %s11874_s29  ;;  %624 = vrot.lane.b32.xlu0 %v6442_v7, %s11874_s29  ;;  %s11966_s29 = smov 28  }
  0xe4   : > { %v6636_v30 = vpop.permute.xlu1 %395  ;;  %v6638_v31 = vpop.permute.xlu0 %393 }
  0xe5   : > { %12128 = vst [vmem:[#allocation41_spill] sm:$0xff] %v6636_v30  ;;  %12129 = vst [vmem:[#allocation42_spill] sm:$0xff] %v6638_v31  ;;  %v11922_v30 = vlaneseq }
  0xe6   : > { %647 = vrot.lane.b32.xlu1 %v6422_v3, %s11868_s30  ;;  %645 = vrot.lane.b32.xlu0 %v6412_v1, %s11868_s30 }
  0xe7   : > { %v6984_v25 = vand.u32 127, %v11922_v30 }
  0xe8   : > { %v6644_v32 = vpop.permute.xlu1 %416  ;;  %v6646_v33 = vpop.permute.xlu0 %414 }
  0xe9   : > { %12130 = vst [vmem:[#allocation43_spill] sm:$0xff] %v6646_v33  ;;  %vm11947_vm0 = vcmp.lt.s32.totalorder %v6984_v25, 119  ;;  %vm11946_vm1 = vcmp.lt.s32.totalorder %v6984_v25, 127  ;;  %vm727_vm2 = vcmp.lt.s32.totalorder %v6984_v25, 1  ;;  %vm694_vm3 = vcmp.lt.s32.totalorder %v6984_v25, 9 }
  0xea   : > { %651 = vrot.lane.b32.xlu1 %v6419_v2, %s11868_s30  ;;  %649 = vrot.lane.b32.xlu0 %v6409_v0, %s11868_s30  ;;  %vm661_vm4 = vcmp.lt.s32.totalorder %v6984_v25, 10  ;;  %vm628_vm5 = vcmp.lt.s32.totalorder %v6984_v25, 11  ;;  %vm595_vm6 = vcmp.lt.s32.totalorder %v6984_v25, 89  ;;  %vm562_vm7 = vcmp.lt.s32.totalorder %v6984_v25, 90 }
  0xeb   : > { %vm11948_vm8 = vcmp.lt.s32.totalorder %v6984_v25, 91  ;;  %vm11949_vm9 = vcmp.lt.s32.totalorder %v6984_v25, 99  ;;  %vm11927_vm10 = vcmp.lt.s32.totalorder %v6984_v25, 100  ;;  %vm12040_vm11 = vcmp.lt.s32.totalorder %v6984_v25, 101 }
  0xec   : > { %v6652_v34 = vpop.permute.xlu1 %420  ;;  %v6654_v35 = vpop.permute.xlu0 %418  ;;  %vm11928_vm12 = vcmp.lt.s32.totalorder %v6984_v25, 109  ;;  %vm11943_vm13 = vcmp.lt.s32.totalorder %v6984_v25, 110  ;;  %vm11929_vm14 = vcmp.lt.s32.totalorder %v6984_v25, 111  ;;  %vm11930_vm15 = vcmp.lt.s32.totalorder %v6984_v25, 17 }
  0xed   : > { %12131 = vst [vmem:[#allocation44_spill] sm:$0xff] %v6652_v34  ;;  %12132 = vst [vmem:[#allocation45_spill] sm:$0xff] %v6654_v35 }
  0xee   : > { %655 = vrot.lane.b32.xlu1 %v6429_v4, %s11868_s30  ;;  %653 = vrot.lane.b32.xlu0 %v6432_v5, %s11868_s30 }
  0xf0   : > { %v6660_v36 = vpop.permute.xlu1 %424  ;;  %v6662_v37 = vpop.permute.xlu0 %422 }
  0xf1   : > { %12133 = vst [vmem:[#allocation46_spill] sm:$0xff] %v6660_v36  ;;  %12134 = vst [vmem:[#allocation47_spill] sm:$0xff] %v6662_v37 }
  0xf2   : > { %659 = vrot.lane.b32.xlu1 %v6439_v6, %s11868_s30  ;;  %657 = vrot.lane.b32.xlu0 %v6442_v7, %s11868_s30  ;;  %s11968_s30 = smov 27  }
  0xf4   : > { %v6668_v38 = vpop.permute.xlu1 %428  ;;  %v6670_v39 = vpop.permute.xlu0 %426 }
  0xf5   : > { %12135 = vst [vmem:[#allocation48_spill] sm:$0xff] %v6668_v38  ;;  %12136 = vst [vmem:[#allocation49_spill] sm:$0xff] %v6670_v39 }
  0xf6   : > { %680 = vrot.lane.b32.xlu1 %v6422_v3, %s11844_s5  ;;  %678 = vrot.lane.b32.xlu0 %v6412_v1, %s11844_s5 }
  0xf8   : > { %v6676_v40 = vpop.permute.xlu1 %449  ;;  %v6678_v41 = vpop.permute.xlu0 %447 }
  0xfa   : > { %684 = vrot.lane.b32.xlu1 %v6419_v2, %s11844_s5  ;;  %682 = vrot.lane.b32.xlu0 %v6409_v0, %s11844_s5 }
  0xfc   : > { %v6684_v42 = vpop.permute.xlu1 %453  ;;  %v6686_v43 = vpop.permute.xlu0 %451 }
  0xfd   : > { %12137 = vst [vmem:[#allocation50_spill] sm:$0xff] %v6684_v42  ;;  %12138 = vst [vmem:[#allocation51_spill] sm:$0xff] %v6686_v43 }
  0xfe   : > { %688 = vrot.lane.b32.xlu1 %v6429_v4, %s11844_s5  ;;  %686 = vrot.lane.b32.xlu0 %v6432_v5, %s11844_s5 }
 0x100   : > { %v6692_v44 = vpop.permute.xlu1 %457  ;;  %v6694_v45 = vpop.permute.xlu0 %455 }
 0x101   : > { %12139 = vst [vmem:[#allocation52_spill] sm:$0xff] %v6692_v44  ;;  %12140 = vst [vmem:[#allocation53_spill] sm:$0xff] %v6694_v45 }
 0x102   : > { %692 = vrot.lane.b32.xlu1 %v6439_v6, %s11844_s5  ;;  %690 = vrot.lane.b32.xlu0 %v6442_v7, %s11844_s5  ;;  %s11954_s5 = smov 118  }
 0x104   : > { %v6700_v46 = vpop.permute.xlu1 %461  ;;  %v6702_v47 = vpop.permute.xlu0 %459 }
 0x105   : > { %12141 = vst [vmem:[#allocation54_spill] sm:$0xff] %v6702_v47 }
 0x106   : > { %713 = vrot.lane.b32.xlu1 %v6422_v3, %s11850_s6  ;;  %711 = vrot.lane.b32.xlu0 %v6412_v1, %s11850_s6 }
 0x108   : > { %v6708_v48 = vpop.permute.xlu1 %482  ;;  %v6710_v49 = vpop.permute.xlu0 %480 }
 0x10a   : > { %717 = vrot.lane.b32.xlu1 %v6419_v2, %s11850_s6  ;;  %715 = vrot.lane.b32.xlu0 %v6409_v0, %s11850_s6 }
 0x10c   : > { %v6716_v50 = vpop.permute.xlu1 %486  ;;  %v6718_v51 = vpop.permute.xlu0 %484 }
 0x10d   : > { %12142 = vst [vmem:[#allocation55_spill] sm:$0xff] %v6716_v50  ;;  %12143 = vst [vmem:[#allocation56_spill] sm:$0xff] %v6718_v51 }
 0x10e   : > { %721 = vrot.lane.b32.xlu1 %v6429_v4, %s11850_s6  ;;  %719 = vrot.lane.b32.xlu0 %v6432_v5, %s11850_s6 }
 0x110   : > { %v6724_v52 = vpop.permute.xlu1 %490  ;;  %v6726_v53 = vpop.permute.xlu0 %488 }
 0x111   : > { %12144 = vst [vmem:[#allocation57_spill] sm:$0xff] %v6724_v52  ;;  %12145 = vst [vmem:[#allocation58_spill] sm:$0xff] %v6726_v53 }
 0x112   : > { %725 = vrot.lane.b32.xlu1 %v6439_v6, %s11850_s6  ;;  %723 = vrot.lane.b32.xlu0 %v6442_v7, %s11850_s6  ;;  %s11992_s6 = smov 17  }
 0x114   : > { %v6732_v54 = vpop.permute.xlu1 %494  ;;  %v6734_v55 = vpop.permute.xlu0 %492 }
 0x115   : > { %12146 = vst [vmem:[#allocation59_spill] sm:$0xff] %v6734_v55 }
 0x116   : > { %754 = vrot.lane.b32.xlu1 %v6422_v3, %s11856_s13  ;;  %752 = vrot.lane.b32.xlu0 %v6412_v1, %s11856_s13 }
 0x118   : > { %v6740_v56 = vpop.permute.xlu1 %515  ;;  %v6742_v57 = vpop.permute.xlu0 %513 }
 0x11a   : > { %758 = vrot.lane.b32.xlu1 %v6419_v2, %s11856_s13  ;;  %756 = vrot.lane.b32.xlu0 %v6409_v0, %s11856_s13 }
 0x11c   : > { %v6748_v58 = vpop.permute.xlu1 %519  ;;  %v6750_v59 = vpop.permute.xlu0 %517 }
 0x11e   : > { %787 = vrot.lane.b32.xlu1 %v6422_v3, %s11860_s9  ;;  %760 = vrot.lane.b32.xlu0 %v6432_v5, %s11856_s13 }
 0x120   : > { %v6756_v60 = vpop.permute.xlu1 %523  ;;  %v6758_v61 = vpop.permute.xlu0 %521 }
 0x121   : > { %12147 = vst [vmem:[#allocation60_spill] sm:$0xff] %v6756_v60  ;;  %12148 = vst [vmem:[#allocation61_spill] sm:$0xff] %v6758_v61 }
 0x122   : > { %785 = vrot.lane.b32.xlu1 %v6412_v1, %s11860_s9  ;;  %789 = vrot.lane.b32.xlu0 %v6409_v0, %s11860_s9 }
 0x124   : > { %v6764_v62 = vpop.permute.xlu1 %527  ;;  %v6766_v63 = vpop.permute.xlu0 %525 }
 0x125   : > { %12149 = vst [vmem:[#allocation62_spill] sm:$0xff] %v6766_v63 }
 0x126   : > { %793 = vrot.lane.b32.xlu1 %v6432_v5, %s11860_s9  ;;  %791 = vrot.lane.b32.xlu0 %v6419_v2, %s11860_s9 }
 0x128   : > { %v6772_v15 = vpop.permute.xlu1 %548  ;;  %v6774_v23 = vpop.permute.xlu0 %546 }
 0x12a   : > { %764 = vrot.lane.b32.xlu1 %v6442_v7, %s11856_s13  ;;  %762 = vrot.lane.b32.xlu0 %v6429_v4, %s11856_s13 }
 0x12c   : > { %v6780_v31 = vpop.permute.xlu1 %552  ;;  %v6782_v39 = vpop.permute.xlu0 %550 }
 0x12e   : > { %795 = vrot.lane.b32.xlu1 %v6429_v4, %s11860_s9  ;;  %766 = vrot.lane.b32.xlu0 %v6439_v6, %s11856_s13  ;;  %s11998_s13 = smov 18  }
 0x130   : > { %v6788_v47 = vpop.permute.xlu1 %556  ;;  %v6790_v55 = vpop.permute.xlu0 %554 }
 0x131   : > { %12150 = vst [vmem:[#allocation63_spill] sm:$0xff] %v6788_v47  ;;  %12151 = vst [vmem:[#allocation64_spill] sm:$0xff] %v6790_v55 }
 0x132   : > { %799 = vrot.lane.b32.xlu1 %v6439_v6, %s11860_s9  ;;  %797 = vrot.lane.b32.xlu0 %v6442_v7, %s11860_s9  ;;  %s11970_s9 = smov 19  }
 0x134   : > { %v6796_v63 = vpop.permute.xlu1 %560  ;;  %v6798_v13 = vpop.permute.xlu0 %558 }
 0x135   : > { %12152 = vst [vmem:[#allocation65_spill] sm:$0xff] %v6798_v13 }
 0x136   : > { %820 = vrot.lane.b32.xlu1 %v6422_v3, %s11954_s5  ;;  %818 = vrot.lane.b32.xlu0 %v6412_v1, %s11954_s5 }
 0x138   : > { %v6804_v12 = vpop.permute.xlu1 %581  ;;  %v6806_v21 = vpop.permute.xlu0 %579 }
 0x13a   : > { %824 = vrot.lane.b32.xlu1 %v6419_v2, %s11954_s5  ;;  %822 = vrot.lane.b32.xlu0 %v6409_v0, %s11954_s5 }
 0x13c   : > { %v6812_v20 = vpop.permute.xlu1 %585  ;;  %v6814_v13 = vpop.permute.xlu0 %583 }
 0x13e   : > { %1150 = vrot.lane.b32.xlu1 %v6422_v3, %s11992_s6  ;;  %826 = vrot.lane.b32.xlu0 %v6432_v5, %s11954_s5 }
 0x140   : > { %v6820_v29 = vpop.permute.xlu1 %589  ;;  %v6822_v28 = vpop.permute.xlu0 %587 }
 0x141   : > { %12153 = vst [vmem:[#allocation66_spill] sm:$0xff] %v6820_v29  ;;  %12154 = vst [vmem:[#allocation67_spill] sm:$0xff] %v6822_v28 }
 0x142   : > { %1148 = vrot.lane.b32.xlu1 %v6412_v1, %s11992_s6  ;;  %1152 = vrot.lane.b32.xlu0 %v6409_v0, %s11992_s6 }
 0x144   : > { %v6828_v37 = vpop.permute.xlu1 %593  ;;  %v6830_v36 = vpop.permute.xlu0 %591 }
 0x145   : > { %12155 = vst [vmem:[#allocation68_spill] sm:$0xff] %v6830_v36 }
 0x146   : > { %1119 = vrot.lane.b32.xlu1 %v6409_v0, %s11998_s13  ;;  %1117 = vrot.lane.b32.xlu0 %v6422_v3, %s11998_s13 }
 0x148   : > { %v6836_v45 = vpop.permute.xlu1 %614  ;;  %v6838_v44 = vpop.permute.xlu0 %612 }
 0x14a   : > { %1084 = vrot.lane.b32.xlu1 %v6422_v3, %s11970_s9  ;;  %1115 = vrot.lane.b32.xlu0 %v6412_v1, %s11998_s13 }
 0x14c   : > { %v6844_v53 = vpop.permute.xlu1 %618  ;;  %v6846_v36 = vpop.permute.xlu0 %616 }
 0x14e   : > { %1082 = vrot.lane.b32.xlu1 %v6412_v1, %s11970_s9  ;;  %1086 = vrot.lane.b32.xlu0 %v6409_v0, %s11970_s9 }
 0x150   : > { %v6852_v52 = vpop.permute.xlu1 %622  ;;  %v6854_v61 = vpop.permute.xlu0 %620 }
 0x151   : > { %12156 = vst [vmem:[#allocation69_spill] sm:$0xff] %v6852_v52  ;;  %12157 = vst [vmem:[#allocation70_spill] sm:$0xff] %v6854_v61 }
 0x152   : > { %1156 = vrot.lane.b32.xlu1 %v6432_v5, %s11992_s6  ;;  %1154 = vrot.lane.b32.xlu0 %v6419_v2, %s11992_s6 }
 0x154   : > { %v6860_v60 = vpop.permute.xlu1 %626  ;;  %v6862_v55 = vpop.permute.xlu0 %624 }
 0x155   : > { %12158 = vst [vmem:[#allocation71_spill] sm:$0xff] %v6862_v55 }
 0x156   : > { %1053 = vrot.lane.b32.xlu1 %v6409_v0, %s11968_s30  ;;  %1051 = vrot.lane.b32.xlu0 %v6422_v3, %s11968_s30 }
 0x158   : > { %v6868_v47 = vpop.permute.xlu1 %647  ;;  %v6870_v28 = vpop.permute.xlu0 %645 }
 0x15a   : > { %1121 = vrot.lane.b32.xlu1 %v6419_v2, %s11998_s13  ;;  %1049 = vrot.lane.b32.xlu0 %v6412_v1, %s11968_s30 }
 0x15c   : > { %v6876_v29 = vpop.permute.xlu1 %651  ;;  %v6878_v55 = vpop.permute.xlu0 %649 }
 0x15e   : > { %1018 = vrot.lane.b32.xlu1 %v6422_v3, %s11966_s29  ;;  %1123 = vrot.lane.b32.xlu0 %v6432_v5, %s11998_s13 }
 0x160   : > { %v6884_v61 = vpop.permute.xlu1 %655  ;;  %v6886_v52 = vpop.permute.xlu0 %653 }
 0x161   : > { %12159 = vst [vmem:[#allocation72_spill] sm:$0xff] %v6884_v61  ;;  %12160 = vst [vmem:[#allocation73_spill] sm:$0xff] %v6886_v52 }
 0x162   : > { %1016 = vrot.lane.b32.xlu1 %v6412_v1, %s11966_s29  ;;  %1020 = vrot.lane.b32.xlu0 %v6409_v0, %s11966_s29 }
 0x164   : > { %v6892_v8 = vpop.permute.xlu1 %659  ;;  %v6894_v10 = vpop.permute.xlu0 %657 }
 0x165   : > { %12161 = vst [vmem:[#allocation74_spill] sm:$0xff] %v6894_v10 }
 0x166   : > { %1090 = vrot.lane.b32.xlu1 %v6432_v5, %s11970_s9  ;;  %1088 = vrot.lane.b32.xlu0 %v6419_v2, %s11970_s9 }
 0x168   : > { %v6900_v19 = vpop.permute.xlu1 %680  ;;  %v6902_v61 = vpop.permute.xlu0 %678 }
 0x16a   : > { %987 = vrot.lane.b32.xlu1 %v6409_v0, %s11964_s25  ;;  %985 = vrot.lane.b32.xlu0 %v6422_v3, %s11964_s25 }
 0x16c   : > { %v6908_v52 = vpop.permute.xlu1 %684  ;;  %v6910_v10 = vpop.permute.xlu0 %682 }
 0x16e   : > { %1055 = vrot.lane.b32.xlu1 %v6419_v2, %s11968_s30  ;;  %983 = vrot.lane.b32.xlu0 %v6412_v1, %s11964_s25 }
 0x170   : > { %v6916_v18 = vpop.permute.xlu1 %688  ;;  %v6918_v14 = vpop.permute.xlu0 %686 }
 0x171   : > { %12162 = vst [vmem:[#allocation75_spill] sm:$0xff] %v6916_v18  ;;  %12163 = vst [vmem:[#allocation76_spill] sm:$0xff] %v6918_v14 }
 0x172   : > { %952 = vrot.lane.b32.xlu1 %v6422_v3, %s11962_s23  ;;  %1057 = vrot.lane.b32.xlu0 %v6432_v5, %s11968_s30 }
 0x174   : > { %v6924_v27 = vpop.permute.xlu1 %692  ;;  %v6926_v26 = vpop.permute.xlu0 %690 }
 0x175   : > { %12164 = vst [vmem:[#allocation77_spill] sm:$0xff] %v6926_v26 }
 0x176   : > { %950 = vrot.lane.b32.xlu1 %v6412_v1, %s11962_s23  ;;  %954 = vrot.lane.b32.xlu0 %v6409_v0, %s11962_s23 }
 0x178   : > { %v6932_v18 = vpop.permute.xlu1 %713  ;;  %v6934_v14 = vpop.permute.xlu0 %711 }
 0x17a   : > { %1024 = vrot.lane.b32.xlu1 %v6432_v5, %s11966_s29  ;;  %1022 = vrot.lane.b32.xlu0 %v6419_v2, %s11966_s29 }
 0x17c   : > { %v6940_v9 = vpop.permute.xlu1 %717  ;;  %v6942_v11 = vpop.permute.xlu0 %715 }
 0x17e   : > { %921 = vrot.lane.b32.xlu1 %v6409_v0, %s11960_s22  ;;  %919 = vrot.lane.b32.xlu0 %v6422_v3, %s11960_s22 }
 0x180   : > { %v6948_v26 = vpop.permute.xlu1 %721  ;;  %v6950_v22 = vpop.permute.xlu0 %719 }
 0x181   : > { %12165 = vst [vmem:[#allocation78_spill] sm:$0xff] %v6948_v26  ;;  %12166 = vst [vmem:[#allocation79_spill] sm:$0xff] %v6950_v22 }
 0x182   : > { %989 = vrot.lane.b32.xlu1 %v6419_v2, %s11964_s25  ;;  %917 = vrot.lane.b32.xlu0 %v6412_v1, %s11960_s22 }
 0x184   : > { %v6956_v35 = vpop.permute.xlu1 %725  ;;  %v6958_v34 = vpop.permute.xlu0 %723 }
 0x185   : > { %12167 = vst [vmem:[#allocation80_spill] sm:$0xff] %v6958_v34  ;;  %v6973_v34 = vld [vmem:[%s11829_s1 + $0x8] sm:$0xff] }
 0x186   : > { %886 = vrot.lane.b32.xlu1 %v6422_v3, %s11958_s20  ;;  %991 = vrot.lane.b32.xlu0 %v6432_v5, %s11964_s25  ;;  %12168 = vst [vmem:[#allocation81_spill] sm:$0xff] %v6973_v34 }
 0x187   : > { %1506 = vmatprep.mubr.f32.mxu0 %v6973_v34  ;;  %1577 = vmatprep.mubr.f32.mxu1 %v6973_v34 }
 0x188   : > { %v755_v26 = vpop.permute.xlu1 %754  ;;  %v6964_v17 = vpop.permute.xlu0 %752 }
 0x18a   : > { %884 = vrot.lane.b32.xlu1 %v6412_v1, %s11958_s20  ;;  %888 = vrot.lane.b32.xlu0 %v6409_v0, %s11958_s20 }
 0x18c   : > { %v759_v22 = vpop.permute.xlu1 %758  ;;  %v757_v16 = vpop.permute.xlu0 %756 }
 0x18d   : > { %v774_v50 = vsel %vm11946_vm1, %v755_v26, %v757_v16 }
 0x18e   : > { %958 = vrot.lane.b32.xlu1 %v6432_v5, %s11962_s23  ;;  %956 = vrot.lane.b32.xlu0 %v6419_v2, %s11962_s23 }
 0x190   : > { %v788_v43 = vpop.permute.xlu1 %787  ;;  %v6981_v42 = vpop.permute.xlu0 %760 }
 0x192   : > { %855 = vrot.lane.b32.xlu1 %v6409_v0, %s11956_s10  ;;  %853 = vrot.lane.b32.xlu0 %v6422_v3, %s11956_s10 }
 0x194   : > { %v6991_v24 = vpop.permute.xlu1 %785  ;;  %v790_v38 = vpop.permute.xlu0 %789 }
 0x195   : > { %12169 = vst [vmem:[#allocation82_spill] sm:$0xff] %v6991_v24  ;;  %v807_v34 = vsel %vm11947_vm0, %v788_v43, %v790_v38  ;;  %v808_v30 = vsel %vm11947_vm0, %v6991_v24, %v788_v43  ;;  %v775_v43 = vsel %vm11946_vm1, %v6964_v17, %v755_v26 }
 0x196   : > { %923 = vrot.lane.b32.xlu1 %v6419_v2, %s11960_s22  ;;  %851 = vrot.lane.b32.xlu0 %v6412_v1, %s11956_s10 }
 0x197   : > { %1442 = vmatprep.subr.mxu0 %v807_v34  ;;  %v734_v34 = vsel %vm727_vm2, %v6934_v14, %v6932_v18 }
 0x198   : > { %1443 = vmatpush1.msra.mxu0 %v808_v30  ;;  %v7003_v51 = vpop.permute.xlu1 %793  ;;  %v792_v33 = vpop.permute.xlu0 %791 }
 0x199   : > { %1444 = vmatprep.subr.mxu0 %v774_v50  ;;  %v805_v24 = vsel %vm11947_vm0, %v792_v33, %v7003_v51  ;;  %v806_v30 = vsel %vm11947_vm0, %v790_v38, %v792_v33  ;;  %v701_v33 = vsel %vm694_vm3, %v6902_v61, %v6900_v19  ;;  %v668_v38 = vsel %vm661_vm4, %v6870_v28, %v6868_v47 }
 0x19a   : > { %1445 = vmatpush1.msra.mxu0 %v775_v43  ;;  %890 = vrot.lane.b32.xlu1 %v6419_v2, %s11958_s20  ;;  %v733_v43 = vsel %vm727_vm2, %v6932_v18, %v6942_v11  ;;  %v636_v18 = vsel %vm628_vm5, %v6860_v60, %v6838_v44 }
 0x19b   : > { %925 = vrot.lane.b32.xlu0 %v6432_v5, %s11960_s22  ;;  %1446 = vmatprep.subr.mxu0 %v6422_v3  ;;  %v772_v3 = vsel %vm11946_vm1, %v759_v22, %v6981_v42 }
 0x19c   : > { %1513 = vmatprep.subr.mxu1 %v805_v24  ;;  %1447 = vmatpush1.msra.mxu0 %v6412_v1  ;;  %v7022_v26 = vpop.permute.xlu1 %764  ;;  %v7028_v50 = vpop.permute.xlu0 %762  ;;  %v735_v1 = vsel %vm727_vm2, %v6956_v35, %v6934_v14  ;;  %v773_v24 = vsel %vm11946_vm1, %v757_v16, %v759_v22  ;;  %v702_v14 = vsel %vm694_vm3, %v6924_v27, %v6902_v61 }
 0x19d   : > { %1514 = vmatpush1.msra.mxu1 %v806_v30  ;;  %1448 = vmatprep.subr.mxu0 %v734_v34  ;;  %v732_v61 = vsel %vm727_vm2, %v6942_v11, %v6940_v9  ;;  %v699_v11 = vsel %vm694_vm3, %v6910_v10, %v6908_v52  ;;  %v700_v34 = vsel %vm694_vm3, %v6900_v19, %v6910_v10 }
 0x19e   : > { %1515 = vmatprep.subr.mxu1 %v772_v3  ;;  %1449 = vmatpush1.msra.mxu0 %v735_v1  ;;  %v603_v3 = vsel %vm595_vm6, %v6828_v37, %v6806_v21  ;;  %v667_v10 = vsel %vm661_vm4, %v6868_v47, %v6878_v55  ;;  %v633_v47 = vsel %vm628_vm5, %v6846_v36, %v6844_v53 }
 0x19f   : > { %1516 = vmatpush1.msra.mxu1 %v773_v24  ;;  %857 = vrot.lane.b32.xlu1 %v6419_v2, %s11956_s10  ;;  %v634_v24 = vsel %vm628_vm5, %v6836_v45, %v6846_v36 }
 0x1a0   : > { %892 = vrot.lane.b32.xlu0 %v6432_v5, %s11958_s20  ;;  %1450 = vmatprep.subr.mxu0 %v701_v33  ;;  %v7053_v16 = vpop.permute.xlu1 %795  ;;  %v7055_v22 = vpop.permute.xlu0 %766  ;;  %v536_v33 = vsel %vm11948_vm8, %v6742_v57, %v6740_v56 }
 0x1a1   : > { %1517 = vmatprep.subr.mxu1 %v6419_v2  ;;  %1451 = vmatpush1.msra.mxu0 %v702_v14  ;;  %v669_v2 = vsel %vm661_vm4, %v6892_v8, %v6870_v28  ;;  %v537_v14 = vsel %vm11948_vm8, %v6764_v62, %v6742_v57  ;;  %v503_v57 = vsel %vm11949_vm9, %v6710_v49, %v6708_v48 }
 0x1a2   : > { %1518 = vmatpush1.msra.mxu1 %v6409_v0  ;;  %1452 = vmatprep.subr.mxu0 %v668_v38  ;;  %v635_v0 = vsel %vm628_vm5, %v6838_v44, %v6836_v45  ;;  %v666_v44 = vsel %vm661_vm4, %v6878_v55, %v6876_v29  ;;  %v570_v55 = vsel %vm562_vm7, %v6796_v63, %v6774_v23 }
 0x1a3   : > { %1519 = vmatprep.subr.mxu1 %v732_v61  ;;  %1453 = vmatpush1.msra.mxu0 %v669_v2  ;;  %v601_v38 = vsel %vm595_vm6, %v6804_v12, %v6814_v13  ;;  %v568_v61 = vsel %vm562_vm7, %v6772_v15, %v6782_v39  ;;  %v470_v2 = vsel %vm11927_vm10, %v6678_v41, %v6676_v40 }
 0x1a4   : > { %1520 = vmatpush1.msra.mxu1 %v733_v43  ;;  %1158 = vrot.lane.b32.xlu1 %v6429_v4, %s11992_s6  ;;  %v7083_v30 = vpop.permute.xlu1 %799  ;;  %v7085_v28 = vpop.permute.xlu0 %797 }
 0x1a5   : > { %859 = vrot.lane.b32.xlu0 %v6432_v5, %s11956_s10  ;;  %1454 = vmatprep.subr.mxu0 %v635_v0  ;;  %v602_v5 = vsel %vm595_vm6, %v6806_v21, %v6804_v12  ;;  %v569_v21 = vsel %vm562_vm7, %v6774_v23, %v6772_v15  ;;  %v600_v23 = vsel %vm595_vm6, %v6814_v13, %v6812_v20 }
 0x1a6   : > { %1521 = vmatprep.subr.mxu1 %v699_v11  ;;  %1455 = vmatpush1.msra.mxu0 %v636_v18  ;;  %v567_v12 = vsel %vm562_vm7, %v6782_v39, %v6780_v31  ;;  %v504_v13 = vsel %vm11949_vm9, %v6732_v54, %v6710_v49  ;;  %v534_v49 = vsel %vm11948_vm8, %v6750_v59, %v6748_v58  ;;  %v12171_v11 = vld [vmem:[#allocation43_spill] sm:$0xff] }
 0x1a7   : > { %1522 = vmatpush1.msra.mxu1 %v700_v34  ;;  %1456 = vmatprep.subr.mxu0 %v602_v5  ;;  %v471_v15 = vsel %vm11927_vm10, %v6700_v46, %v6678_v41  ;;  %v535_v39 = vsel %vm11948_vm8, %v6740_v56, %v6750_v59  ;;  %v437_v18 = vsel %vm12040_vm11, %v12171_v11, %v6644_v32  ;;  %v12172_v41 = vld [vmem:[#allocation55_spill] sm:$0xff]  ;;  %v12173_v34 = vld [vmem:[#allocation56_spill] sm:$0xff] }
 0x1a8   : > { %1523 = vmatprep.subr.mxu1 %v666_v44  ;;  %1457 = vmatpush1.msra.mxu0 %v603_v3  ;;  %v7118_v19 = vpop.permute.xlu1 %820  ;;  %v7121_v1 = vpop.permute.xlu0 %818  ;;  %v501_v56 = vsel %vm11949_vm9, %v12173_v34, %v12172_v41  ;;  %v12174_v59 = vld [vmem:[#allocation48_spill] sm:$0xff] }
 0x1a9   : > { %12170 = vst [vmem:[#allocation83_spill] sm:$0xff] %v7121_v1  ;;  %1524 = vmatpush1.msra.mxu1 %v667_v10  ;;  %1125 = vrot.lane.b32.xlu1 %v6429_v4, %s11998_s13  ;;  %v438_v5 = vsel %vm12040_vm11, %v12174_v59, %v12171_v11  ;;  %v502_v10 = vsel %vm11949_vm9, %v6708_v48, %v12173_v34  ;;  %v12185_v34 = vld [vmem:[#allocation22_spill] sm:$0xff] }
 0x1aa   : > { %1160 = vrot.lane.b32.xlu0 %v6442_v7, %s11992_s6  ;;  %1458 = vmatprep.subr.mxu0 %v569_v21  ;;  %v12175_v21 = vld [vmem:[#allocation35_spill] sm:$0xff] }
 0x1ab   : > { %1525 = vmatprep.subr.mxu1 %v633_v47  ;;  %1459 = vmatpush1.msra.mxu0 %v570_v55  ;;  %v12176_v47 = vld [vmem:[#allocation36_spill] sm:$0xff] }
 0x1ac   : > { %1526 = vmatpush1.msra.mxu1 %v634_v24  ;;  %1460 = vmatprep.subr.mxu0 %v536_v33  ;;  %v7156_v36 = vpop.permute.xlu1 %824  ;;  %v7158_v45 = vpop.permute.xlu0 %822  ;;  %v404_v55 = vsel %vm11928_vm12, %v12176_v47, %v12175_v21  ;;  %v12177_v24 = vld [vmem:[#allocation50_spill] sm:$0xff]  ;;  %v12178_v33 = vld [vmem:[#allocation51_spill] sm:$0xff] }
 0x1ad   : > { %1527 = vmatprep.subr.mxu1 %v600_v23  ;;  %1461 = vmatpush1.msra.mxu0 %v537_v14  ;;  %v468_v23 = vsel %vm11927_vm10, %v12178_v33, %v12177_v24  ;;  %v12179_v14 = vld [vmem:[#allocation41_spill] sm:$0xff]  ;;  %v469_v48 = vsel %vm11927_vm10, %v6676_v40, %v12178_v33  ;;  %v12182_v40 = vld [vmem:[#allocation44_spill] sm:$0xff]  ;;  %vm11931_vm10 = vcmp.lt.s32.totalorder %v6984_v25, 18 }
 0x1ae   : > { %1528 = vmatpush1.msra.mxu1 %v601_v38  ;;  %1092 = vrot.lane.b32.xlu1 %v6429_v4, %s11970_s9  ;;  %v405_v38 = vsel %vm11928_vm12, %v12179_v14, %v12176_v47  ;;  %v12188_v47 = vld [vmem:[#allocation38_spill] sm:$0xff]  ;;  %v12189_v33 = vld [vmem:[#allocation25_spill] sm:$0xff] }
 0x1af   : > { %1127 = vrot.lane.b32.xlu0 %v6442_v7, %s11998_s13  ;;  %1462 = vmatprep.subr.mxu0 %v503_v57  ;;  %v12180_v57 = vld [vmem:[#allocation27_spill] sm:$0xff] }
 0x1b0   : > { %1529 = vmatprep.subr.mxu1 %v567_v12  ;;  %1463 = vmatpush1.msra.mxu0 %v504_v13  ;;  %v1151_v43 = vpop.permute.xlu1 %1150  ;;  %v7190_v0 = vpop.permute.xlu0 %826  ;;  %v12181_v12 = vld [vmem:[#allocation28_spill] sm:$0xff] }
 0x1b1   : > { %1530 = vmatpush1.msra.mxu1 %v568_v61  ;;  %1464 = vmatprep.subr.mxu0 %v470_v2  ;;  %v371_v13 = vsel %vm11943_vm13, %v12181_v12, %v12180_v57 }
 0x1b2   : > { %1531 = vmatprep.subr.mxu1 %v534_v49  ;;  %1465 = vmatpush1.msra.mxu0 %v471_v15  ;;  %v12183_v49 = vld [vmem:[#allocation45_spill] sm:$0xff] }
 0x1b3   : > { %1532 = vmatpush1.msra.mxu1 %v535_v39  ;;  %1162 = vrot.lane.b32.xlu1 %v6439_v6, %s11992_s6  ;;  %v435_v15 = vsel %vm12040_vm11, %v12183_v49, %v12182_v40  ;;  %v12184_v39 = vld [vmem:[#allocation33_spill] sm:$0xff] }
 0x1b4   : > { %1094 = vrot.lane.b32.xlu0 %v6442_v7, %s11970_s9  ;;  %1466 = vmatprep.subr.mxu0 %v437_v18  ;;  %v7221_v44 = vpop.permute.xlu1 %1148  ;;  %v7223_v3 = vpop.permute.xlu0 %1152  ;;  %v372_v11 = vsel %vm11943_vm13, %v12184_v39, %v12181_v12  ;;  %v436_v18 = vsel %vm12040_vm11, %v6644_v32, %v12183_v49 }
 0x1b5   : > { %1533 = vmatprep.subr.mxu1 %v501_v56  ;;  %1467 = vmatpush1.msra.mxu0 %v438_v5  ;;  %v12186_v56 = vld [vmem:[#allocation20_spill] sm:$0xff]  ;;  %v1170_v32 = vsel %vm11930_vm15, %v1151_v43, %v7223_v3 }
 0x1b6   : > { %1534 = vmatpush1.msra.mxu1 %v502_v10  ;;  %1468 = vmatprep.subr.mxu0 %v404_v55  ;;  %v338_v5 = vsel %vm11929_vm14, %v12186_v56, %v12185_v34  ;;  %v12187_v10 = vld [vmem:[#allocation37_spill] sm:$0xff] }
 0x1b7   : > { %1535 = vmatprep.subr.mxu1 %v468_v23  ;;  %1469 = vmatpush1.msra.mxu0 %v405_v38  ;;  %v402_v55 = vsel %vm11928_vm12, %v12188_v47, %v12187_v10  ;;  %v339_v23 = vsel %vm11929_vm14, %v12189_v33, %v12186_v56  ;;  %v403_v38 = vsel %vm11928_vm12, %v12175_v21, %v12188_v47  ;;  %v12191_v21 = vld [vmem:[#allocation29_spill] sm:$0xff]  ;;  %vm11932_vm12 = vcmp.lt.s32.totalorder %v6984_v25, 19  ;;  %v12194_v56 = vld [vmem:[#allocation19_spill] sm:$0xff] }
 0x1b8   : > { %1536 = vmatpush1.msra.mxu1 %v469_v48  ;;  %1061 = vrot.lane.b32.xlu1 %v6442_v7, %s11968_s30  ;;  %v7254_v61 = vpop.permute.xlu1 %1119  ;;  %v1118_v2 = vpop.permute.xlu0 %1117  ;;  %v1171_v48 = vsel %vm11930_vm15, %v7221_v44, %v1151_v43 }
 0x1b9   : > { %1059 = vrot.lane.b32.xlu0 %v6429_v4, %s11968_s30  ;;  %1470 = vmatprep.subr.mxu0 %v371_v13  ;;  %v1137_v49 = vsel %vm11931_vm10, %v1118_v2, %v7254_v61 }
 0x1ba   : > { %1537 = vmatprep.subr.mxu1 %v435_v15  ;;  %1471 = vmatpush1.msra.mxu0 %v372_v11  ;;  %v12192_v15 = vld [vmem:[#allocation30_spill] sm:$0xff] }
 0x1bb   : > { %1538 = vmatpush1.msra.mxu1 %v436_v18  ;;  %1472 = vmatprep.subr.mxu0 %v338_v5  ;;  %v369_v43 = vsel %vm11943_vm13, %v12192_v15, %v12191_v21  ;;  %v370_v11 = vsel %vm11943_vm13, %v12180_v57, %v12192_v15  ;;  %v12193_v18 = vld [vmem:[#allocation21_spill] sm:$0xff]  ;;  %v337_v57 = vsel %vm11929_vm14, %v12185_v34, %v12194_v56  ;;  %vm834_vm13 = vcmp.lt.s32.totalorder %v6984_v25, 118 }
 0x1bc   : > { %1539 = vmatprep.subr.mxu1 %v402_v55  ;;  %1473 = vmatpush1.msra.mxu0 %v339_v23  ;;  %v1085_v12 = vpop.permute.xlu1 %1084  ;;  %v7293_v13 = vpop.permute.xlu0 %1115  ;;  %v336_v5 = vsel %vm11929_vm14, %v12194_v56, %v12193_v18  ;;  %vm11935_vm14 = vcmp.lt.s32.totalorder %v6984_v25, 27  ;;  %v7366_v56 = vld [vmem:[%s6402_s11 + $0x30] sm:$0xff] }
 0x1bd   : > { %12190 = vst [vmem:[#allocation43_spill] sm:$0xff] %v7293_v13  ;;  %1540 = vmatpush1.msra.mxu1 %v403_v38  ;;  %1026 = vrot.lane.b32.xlu1 %v6429_v4, %s11966_s29  ;;  %v1138_v47 = vsel %vm11931_vm10, %v7293_v13, %v1118_v2 }
 0x1be   : > { %1129 = vrot.lane.b32.xlu0 %v6439_v6, %s11998_s13  ;;  %1484 = vmatprep.subr.mxu0 %v1170_v32 }
 0x1bf   : > { %1541 = vmatprep.subr.mxu1 %v369_v43  ;;  %1485 = vmatpush2.msra.mxu0 %v1171_v48  ;;  %v7354_v43 = vld [vmem:[%s6402_s11 + $0x38] sm:$0xff] }
 0x1c0   : > { %1542 = vmatpush1.msra.mxu1 %v370_v11  ;;  %1486 = vmatprep.subr.mxu0 %v1137_v49  ;;  %v7318_v55 = vpop.permute.xlu1 %1082  ;;  %v1087_v23 = vpop.permute.xlu0 %1086 }
 0x1c1   : > { %12195 = vst [vmem:[#allocation55_spill] sm:$0xff] %v7318_v55  ;;  %1543 = vmatprep.subr.mxu1 %v336_v5  ;;  %1096 = vrot.lane.b32.xlu1 %v6439_v6, %s11970_s9  ;;  %v1104_v32 = vsel %vm11932_vm12, %v1085_v12, %v1087_v23  ;;  %v1105_v2 = vsel %vm11932_vm12, %v7318_v55, %v1085_v12  ;;  %s12335_s9 = smov 9  }
 0x1c2   : > { %1544 = vmatpush1.msra.mxu1 %v337_v57  ;;  %1028 = vrot.lane.b32.xlu0 %v6442_v7, %s11966_s29 }
 0x1c3   : > { %1487 = vmatpush2.msra.mxu0 %v1138_v47 }
 0x1c4   : > { %1488 = vmatprep.subr.mxu0 %v1104_v32  ;;  %v7333_v38 = vpop.permute.xlu1 %1156  ;;  %v1155_v34 = vpop.permute.xlu0 %1154 }
 0x1c5   : > { %995 = vrot.lane.b32.xlu1 %v6442_v7, %s11964_s25  ;;  %1489 = vmatpush2.msra.mxu0 %v1105_v2  ;;  %v1168_v6 = vsel %vm11930_vm15, %v1155_v34, %v7333_v38  ;;  %v1169_v48 = vsel %vm11930_vm15, %v7223_v3, %v1155_v34  ;;  %v7347_v7 = vld [vmem:[%s6402_s11 + $0x28] sm:$0xff]  ;;  %vm11939_vm15 = vcmp.lt.s32.totalorder %v6984_v25, 28 }
 0x1c6   : > { %993 = vrot.lane.b32.xlu0 %v6429_v4, %s11964_s25  ;;  %1555 = vmatprep.subr.mxu1 %v1168_v6 }
 0x1c7   : > { %1556 = vmatpush2.msra.mxu1 %v1169_v48 }
 0x1c8   : > { %v1054_v12 = vpop.permute.xlu1 %1053  ;;  %v1052_v49 = vpop.permute.xlu0 %1051 }
 0x1c9   : > { %960 = vrot.lane.b32.xlu1 %v7347_v7, %s11962_s23  ;;  %v1071_v15 = vsel %vm11935_vm14, %v1052_v49, %v1054_v12 }
 0x1ca   : > { %1063 = vrot.lane.b32.xlu0 %v7354_v43, %s11968_s30  ;;  %1490 = vmatprep.subr.mxu0 %v1071_v15  ;;  %s12331_s30 = smov 1  }
 0x1cc   : > { %v1122_v4 = vpop.permute.xlu1 %1121  ;;  %v7358_v3 = vpop.permute.xlu0 %1049 }
 0x1cd   : > { %12196 = vst [vmem:[#allocation56_spill] sm:$0xff] %v7358_v3  ;;  %1030 = vrot.lane.b32.xlu1 %v7354_v43, %s11966_s29  ;;  %v1072_v11 = vsel %vm11935_vm14, %v7358_v3, %v1052_v49  ;;  %v1136_v32 = vsel %vm11931_vm10, %v7254_v61, %v1122_v4  ;;  %s12330_s29 = smov 127  }
 0x1ce   : > { %962 = vrot.lane.b32.xlu0 %v7366_v56, %s11962_s23  ;;  %1491 = vmatpush2.msra.mxu0 %v1072_v11 }
 0x1d0   : > { %v1019_v5 = vpop.permute.xlu1 %1018  ;;  %v7370_v47 = vpop.permute.xlu0 %1123 }
 0x1d1   : > { %929 = vrot.lane.b32.xlu1 %v7366_v56, %s11960_s22  ;;  %v1135_v57 = vsel %vm11931_vm10, %v1122_v4, %v7370_v47  ;;  %vm11941_vm10 = vcmp.lt.s32.totalorder %v6984_v25, 29 }
 0x1d2   : > { %927 = vrot.lane.b32.xlu0 %v7347_v7, %s11960_s22  ;;  %1557 = vmatprep.subr.mxu1 %v1135_v57 }
 0x1d3   : > { %1558 = vmatpush2.msra.mxu1 %v1136_v32 }
 0x1d4   : > { %v7383_v2 = vpop.permute.xlu1 %1016  ;;  %v1021_v34 = vpop.permute.xlu0 %1020 }
 0x1d5   : > { %12197 = vst [vmem:[#allocation48_spill] sm:$0xff] %v7383_v2  ;;  %894 = vrot.lane.b32.xlu1 %v7347_v7, %s11958_s20  ;;  %v1038_v6 = vsel %vm11939_vm15, %v1019_v5, %v1021_v34  ;;  %v1039_v48 = vsel %vm11939_vm15, %v7383_v2, %v1019_v5 }
 0x1d6   : > { %997 = vrot.lane.b32.xlu0 %v7354_v43, %s11964_s25  ;;  %1492 = vmatprep.subr.mxu0 %v1038_v6  ;;  %s12326_s25 = smov 119  }
 0x1d7   : > { %1493 = vmatpush2.msra.mxu0 %v1039_v48  ;;  %v6268_v48 = vmov 0  }
 0x1d8   : > { %v7394_v61 = vpop.permute.xlu1 %1090  ;;  %v1089_v49 = vpop.permute.xlu0 %1088  ;;  %6127 = vset.pattern.permute.xlu0 %v6268_v48 }
 0x1d9   : > { %964 = vrot.lane.b32.xlu1 %v7354_v43, %s11962_s23  ;;  %v1102_v15 = vsel %vm11932_vm12, %v1089_v49, %v7394_v61  ;;  %v1103_v4 = vsel %vm11932_vm12, %v1087_v23, %v1089_v49  ;;  %vm966_vm12 = vcmp.lt.s32.totalorder %v6984_v25, 37  ;;  %s12325_s23 = smov 10  }
 0x1da   : > { %896 = vrot.lane.b32.xlu0 %v7366_v56, %s11958_s20  ;;  %1559 = vmatprep.subr.mxu1 %v1102_v15 }
 0x1db   : > { %1560 = vmatpush2.msra.mxu1 %v1103_v4 }
 0x1dc   : > { %v988_v11 = vpop.permute.xlu1 %987  ;;  %v986_v5 = vpop.permute.xlu0 %985 }
 0x1dd   : > { %863 = vrot.lane.b32.xlu1 %v7366_v56, %s11956_s10  ;;  %v1005_v57 = vsel %vm11941_vm10, %v986_v5, %v988_v11 }
 0x1de   : > { %861 = vrot.lane.b32.xlu0 %v7347_v7, %s11956_s10  ;;  %1494 = vmatprep.subr.mxu0 %v1005_v57 }
 0x1e0   : > { %v1056_v23 = vpop.permute.xlu1 %1055  ;;  %v7412_v32 = vpop.permute.xlu0 %983 }
 0x1e1   : > { %12198 = vst [vmem:[#allocation35_spill] sm:$0xff] %v7412_v32  ;;  %828 = vrot.lane.b32.xlu1 %v7347_v7, %s11954_s5  ;;  %v1006_v6 = vsel %vm11941_vm10, %v7412_v32, %v986_v5  ;;  %v1070_v5 = vsel %vm11935_vm14, %v1054_v12, %v1056_v23  ;;  %v230_v12 = vld [vmem:[%s11830_s2] sm:$0xff] }
 0x1e2   : > { %931 = vrot.lane.b32.xlu0 %v7354_v43, %s11960_s22  ;;  %1495 = vmatpush2.msra.mxu0 %v1006_v6  ;;  %s12320_s22 = smov 11  }
 0x1e4   : > { %v953_v49 = vpop.permute.xlu1 %952  ;;  %v7421_v15 = vpop.permute.xlu0 %1057 }
 0x1e5   : > { %898 = vrot.lane.b32.xlu1 %v7354_v43, %s11958_s20  ;;  %v1069_v4 = vsel %vm11935_vm14, %v1056_v23, %v7421_v15  ;;  %vm933_vm14 = vcmp.lt.s32.totalorder %v6984_v25, 38  ;;  %s12315_s20 = smov 89  }
 0x1e6   : > { %830 = vrot.lane.b32.xlu0 %v7366_v56, %s11954_s5  ;;  %1561 = vmatprep.subr.mxu1 %v1069_v4 }
 0x1e7   : > { %1562 = vmatpush2.msra.mxu1 %v1070_v5 }
 0x1e8   : > { %v7433_v57 = vpop.permute.xlu1 %950  ;;  %v955_v6 = vpop.permute.xlu0 %954 }
 0x1e9   : > { %12199 = vst [vmem:[#allocation36_spill] sm:$0xff] %v7433_v57  ;;  %832 = vrot.lane.b32.xlu1 %v7354_v43, %s11954_s5  ;;  %v972_v48 = vsel %vm966_vm12, %v953_v49, %v955_v6  ;;  %v973_v32 = vsel %vm966_vm12, %v7433_v57, %v953_v49  ;;  %s12306_s5 = smov 91  }
 0x1ea   : > { %865 = vrot.lane.b32.xlu0 %v7354_v43, %s11956_s10  ;;  %1496 = vmatprep.subr.mxu0 %v972_v48  ;;  %s12308_s10 = smov 90  }
 0x1eb   : > { %1497 = vmatpush2.msra.mxu0 %v973_v32 }
 0x1ec   : > { %v7447_v23 = vpop.permute.xlu1 %1024  ;;  %v1023_v4 = vpop.permute.xlu0 %1022 }
 0x1ed   : > { %v1036_v5 = vsel %vm11939_vm15, %v1023_v4, %v7447_v23  ;;  %v1037_v2 = vsel %vm11939_vm15, %v1021_v34, %v1023_v4  ;;  %vm900_vm15 = vcmp.lt.s32.totalorder %v6984_v25, 39 }
 0x1ee   : > { %1563 = vmatprep.subr.mxu1 %v1036_v5  ;;  %1439 = vperm.xlu0 %6127, %v230_v12  }
 0x1ef   : > { %1564 = vmatpush2.msra.mxu1 %v1037_v2 }
 0x1f0   : > { %v922_v32 = vpop.permute.xlu1 %921  ;;  %v920_v49 = vpop.permute.xlu0 %919 }
 0x1f1   : > { %v939_v48 = vsel %vm933_vm14, %v920_v49, %v922_v32 }
 0x1f2   : > { %1498 = vmatprep.subr.mxu0 %v939_v48 }
 0x1f4   : > { %v990_v57 = vpop.permute.xlu1 %989  ;;  %v7457_v3 = vpop.permute.xlu0 %917 }
 0x1f5   : > { %12200 = vst [vmem:[#allocation50_spill] sm:$0xff] %v7457_v3  ;;  %v940_v55 = vsel %vm933_vm14, %v7457_v3, %v920_v49  ;;  %v1004_v12 = vsel %vm11941_vm10, %v988_v11, %v990_v57 }
 0x1f6   : > { %1499 = vmatpush2.msra.mxu0 %v940_v55 }
 0x1f8   : > { %v887_v34 = vpop.permute.xlu1 %886  ;;  %v7462_v4 = vpop.permute.xlu0 %991 }
 0x1f9   : > { %v1003_v2 = vsel %vm11941_vm10, %v990_v57, %v7462_v4  ;;  %vm867_vm10 = vcmp.lt.s32.totalorder %v6984_v25, 117 }
 0x1fa   : > { %1565 = vmatprep.subr.mxu1 %v1003_v2 }
 0x1fb   : > { %1566 = vmatpush2.msra.mxu1 %v1004_v12 }
 0x1fc   : > { %v7470_v5 = vpop.permute.xlu1 %884  ;;  %v889_v48 = vpop.permute.xlu0 %888 }
 0x1fd   : > { %12201 = vst [vmem:[#allocation51_spill] sm:$0xff] %v7470_v5  ;;  %v906_v55 = vsel %vm900_vm15, %v887_v34, %v889_v48  ;;  %v907_v49 = vsel %vm900_vm15, %v7470_v5, %v887_v34 }
 0x1fe   : > { %1500 = vmatprep.subr.mxu0 %v906_v55 }
 0x1ff   : > { %1501 = vmatpush2.msra.mxu0 %v907_v49 }
 0x200   : > { %v7477_v3 = vpop.permute.xlu1 %958  ;;  %v957_v2 = vpop.permute.xlu0 %956 }
 0x201   : > { %v970_v11 = vsel %vm966_vm12, %v957_v2, %v7477_v3  ;;  %v971_v57 = vsel %vm966_vm12, %v955_v6, %v957_v2  ;;  %v840_v6 = vsel %vm834_vm13, %v7118_v19, %v7158_v45  ;;  %v7500_v2 = vld [vmem:[%s11829_s1] sm:$0xff] }
 0x202   : > { %1567 = vmatprep.subr.mxu1 %v970_v11  ;;  %v841_v11 = vsel %vm834_vm13, %v7121_v1, %v7118_v19  ;;  %v6134_v1 = vld [vmem:[%s6402_s11 + $0x20] sm:$0xff] }
 0x203   : > { %1568 = vmatpush2.msra.mxu1 %v971_v57 }
 0x204   : > { %v856_v12 = vpop.permute.xlu1 %855  ;;  %v854_v13 = vpop.permute.xlu0 %853 }
 0x205   : > { %v873_v34 = vsel %vm867_vm10, %v854_v13, %v856_v12 }
 0x206   : > { %1502 = vmatprep.subr.mxu0 %v873_v34  ;;  %v804_v34 = vsel %vm11947_vm0, %v7003_v51, %v7053_v16  ;;  %v771_v51 = vsel %vm11946_vm1, %v6981_v42, %v7028_v50 }
 0x208   : > { %v924_v55 = vpop.permute.xlu1 %923  ;;  %v7487_v49 = vpop.permute.xlu0 %851 }
 0x209   : > { %v874_v5 = vsel %vm867_vm10, %v7487_v49, %v854_v13  ;;  %v803_v13 = vsel %vm11947_vm0, %v7053_v16, %v7085_v28 }
 0x20a   : > { %1503 = vmatpush2.msra.mxu0 %v874_v5 }
 0x20b   : > { %1504 = vmatprep.subr.mxu0 %v840_v6  ;;  %v770_v6 = vsel %vm11946_vm1, %v7028_v50, %v7022_v26 }
 0x20c   : > { %v891_v57 = vpop.permute.xlu1 %890  ;;  %1505 = vmatpush2.msra.mxu0 %v841_v11  ;;  %v12202_v11 = vld [vmem:[#allocation81_spill] sm:$0xff] }
 0x20d   : > { %v7510_v5 = vpop.permute.xlu0 %925  ;;  %1584 = vmatprep.subr.mxu0 %v803_v13  ;;  %1507 = vmatmul.mubr.f32.vlgmr.msra.gmra.mxu0 %v7500_v2  ;;  %v938_v13 = vsel %vm933_vm14, %v922_v32, %v924_v55  ;;  %v905_v50 = vsel %vm900_vm15, %v889_v48, %v891_v57 }
 0x20e   : > { %v937_v19 = vsel %vm933_vm14, %v924_v55, %v7510_v5  ;;  %1585 = vmatpush1.msra.mxu0 %v804_v34  ;;  %1648 = vmatprep.mubr.f32.mxu0 %v12202_v11  ;;  %v12203_v11 = vld [vmem:[#allocation78_spill] sm:$0xff] }
 0x20f   : > { %1569 = vmatprep.subr.mxu1 %v937_v19  ;;  %1586 = vmatprep.subr.mxu0 %v770_v6  ;;  %v12204_v19 = vld [vmem:[#allocation79_spill] sm:$0xff] }
 0x210   : > { %1570 = vmatpush2.msra.mxu1 %v938_v13  ;;  %1587 = vmatpush1.msra.mxu0 %v771_v51  ;;  %v730_v32 = vsel %vm727_vm2, %v12204_v19, %v12203_v11  ;;  %v731_v42 = vsel %vm727_vm2, %v6940_v9, %v12204_v19  ;;  %v12207_v9 = vld [vmem:[#allocation72_spill] sm:$0xff]  ;;  %v12208_v19 = vld [vmem:[#allocation73_spill] sm:$0xff] }
 0x211   : > { %v858_v16 = vpop.permute.xlu1 %857  ;;  %1588 = vmatprep.subr.mxu0 %v7347_v7  ;;  %v12206_v7 = vld [vmem:[#allocation76_spill] sm:$0xff]  ;;  %v664_v48 = vsel %vm661_vm4, %v12208_v19, %v12207_v9 }
 0x212   : > { %v7532_v34 = vpop.permute.xlu0 %892  ;;  %1589 = vmatpush1.msra.mxu0 %v6134_v1  ;;  %v12205_v1 = vld [vmem:[#allocation75_spill] sm:$0xff]  ;;  %v698_v13 = vsel %vm694_vm3, %v6908_v52, %v12206_v7 }
 0x213   : > { %v904_v55 = vsel %vm900_vm15, %v891_v57, %v7532_v34  ;;  %1590 = vmatprep.subr.mxu0 %v730_v32  ;;  %v697_v6 = vsel %vm694_vm3, %v12206_v7, %v12205_v1  ;;  %v665_v32 = vsel %vm661_vm4, %v6876_v29, %v12208_v19  ;;  %v872_v7 = vsel %vm867_vm10, %v856_v12, %v858_v16  ;;  %v12212_v19 = vld [vmem:[#allocation67_spill] sm:$0xff] }
 0x214   : > { %1571 = vmatprep.subr.mxu1 %v904_v55  ;;  %1591 = vmatpush1.msra.mxu0 %v731_v42  ;;  %v12209_v55 = vld [vmem:[#allocation69_spill] sm:$0xff]  ;;  %v12210_v42 = vld [vmem:[#allocation70_spill] sm:$0xff]  ;;  %v599_v12 = vsel %vm595_vm6, %v6812_v20, %v12212_v19 }
 0x215   : > { %1572 = vmatpush2.msra.mxu1 %v905_v50  ;;  %1592 = vmatprep.subr.mxu0 %v697_v6  ;;  %v631_v50 = vsel %vm628_vm5, %v12210_v42, %v12209_v55  ;;  %v632_v29 = vsel %vm628_vm5, %v6844_v53, %v12210_v42  ;;  %v838_v6 = vsel %vm834_vm13, %v7156_v36, %v7190_v0 }
 0x216   : > { %v7556_v51 = vpop.permute.xlu1 %1158  ;;  %1593 = vmatpush1.msra.mxu0 %v698_v13  ;;  %v12211_v13 = vld [vmem:[#allocation66_spill] sm:$0xff]  ;;  %v839_v53 = vsel %vm834_vm13, %v7158_v45, %v7156_v36  ;;  %v802_v36 = vsel %vm11947_vm0, %v7085_v28, %v7083_v30  ;;  %v12214_v45 = vld [vmem:[#allocation63_spill] sm:$0xff]  ;;  %v12216_v28 = vld [vmem:[#allocation60_spill] sm:$0xff] }
 0x217   : > { %v7562_v57 = vpop.permute.xlu0 %859  ;;  %1594 = vmatprep.subr.mxu0 %v664_v48  ;;  %v598_v48 = vsel %vm595_vm6, %v12212_v19, %v12211_v13 }
 0x218   : > { %v871_v52 = vsel %vm867_vm10, %v858_v16, %v7562_v57  ;;  %1595 = vmatpush1.msra.mxu0 %v665_v32 }
 0x219   : > { %1573 = vmatprep.subr.mxu1 %v871_v52  ;;  %1596 = vmatprep.subr.mxu0 %v631_v50  ;;  %v12213_v52 = vld [vmem:[#allocation82_spill] sm:$0xff]  ;;  %v12215_v50 = vld [vmem:[#allocation64_spill] sm:$0xff] }
 0x21a   : > { %1574 = vmatpush2.msra.mxu1 %v872_v7  ;;  %1597 = vmatpush1.msra.mxu0 %v632_v29  ;;  %v809_v42 = vsel %vm11947_vm0, %v7083_v30, %v12213_v52  ;;  %v565_v20 = vsel %vm562_vm7, %v12215_v50, %v12214_v45  ;;  %v776_v7 = vsel %vm11946_vm1, %v7055_v22, %v6964_v17 }
 0x21b   : > { %v7589_v32 = vpop.permute.xlu1 %1125  ;;  %1575 = vmatprep.subr.mxu1 %v838_v6  ;;  %1598 = vmatprep.subr.mxu0 %v598_v48  ;;  %v566_v29 = vsel %vm562_vm7, %v6780_v31, %v12215_v50  ;;  %v769_v30 = vsel %vm11946_vm1, %v7022_v26, %v7055_v22  ;;  %v12217_v6 = vld [vmem:[#allocation61_spill] sm:$0xff]  ;;  %v12219_v22 = vld [vmem:[#allocation58_spill] sm:$0xff]  ;;  %vm12223_vm1 = vcmp.lt.s32.totalorder %v6984_v25, 100 }
 0x21c   : > { %v7599_v16 = vpop.permute.xlu0 %1160  ;;  %1576 = vmatpush2.msra.mxu1 %v839_v53  ;;  %1599 = vmatpush1.msra.mxu0 %v599_v12  ;;  %v532_v19 = vsel %vm11948_vm8, %v12217_v6, %v12216_v28  ;;  %v533_v17 = vsel %vm11948_vm8, %v6748_v58, %v12217_v6  ;;  %v12218_v26 = vld [vmem:[#allocation57_spill] sm:$0xff]  ;;  %v12220_v12 = vld [vmem:[#allocation80_spill] sm:$0xff]  ;;  %v500_v58 = vsel %vm11949_vm9, %v12172_v41, %v12219_v22  ;;  %vm12225_vm0 = vmmov %vm12223_vm1 }
 0x21d   : > { %1655 = vmatprep.subr.mxu1 %v809_v42  ;;  %1578 = vmatmul.mubr.f32.vlgmr.msra.gmra.mxu1 %v7500_v2  ;;  %v499_v53 = vsel %vm11949_vm9, %v12219_v22, %v12218_v26  ;;  %v728_v52 = vsel %vm727_vm2, %v12220_v12, %v6956_v35  ;;  %v12221_v42 = vld [vmem:[#allocation52_spill] sm:$0xff]  ;;  %v12224_v35 = vld [vmem:[#allocation77_spill] sm:$0xff]  ;;  %v12228_v6 = vld [vmem:[#allocation74_spill] sm:$0xff] }
 0x21e   : > { %1656 = vmatpush1.msra.mxu1 %v802_v36  ;;  %1600 = vmatprep.subr.mxu0 %v565_v20  ;;  %v695_v50 = vsel %vm694_vm3, %v12224_v35, %v6924_v27  ;;  %v12230_v22 = vld [vmem:[#allocation40_spill] sm:$0xff] }
 0x21f   : > { %1657 = vmatprep.subr.mxu1 %v776_v7  ;;  %1601 = vmatpush1.msra.mxu0 %v566_v29  ;;  %v12226_v7 = vld [vmem:[#allocation46_spill] sm:$0xff]  ;;  %v12227_v29 = vld [vmem:[#allocation47_spill] sm:$0xff] }
 0x220   : > { %v7630_v48 = vpop.permute.xlu1 %1092  ;;  %1658 = vmatpush1.msra.mxu1 %v769_v30  ;;  %1602 = vmatprep.subr.mxu0 %v532_v19  ;;  %v433_v27 = vsel %vm12040_vm11, %v12227_v29, %v12226_v7  ;;  %v663_v19 = vsel %vm661_vm4, %v12207_v9, %v12228_v6 }
 0x221   : > { %v7636_v31 = vpop.permute.xlu0 %1127  ;;  %1659 = vmatprep.subr.mxu1 %v7354_v43  ;;  %1603 = vmatpush1.msra.mxu0 %v533_v17  ;;  %v729_v43 = vsel %vm727_vm2, %v12203_v11, %v12220_v12  ;;  %v696_v11 = vsel %vm694_vm3, %v12205_v1, %v12224_v35  ;;  %v434_v1 = vsel %vm12040_vm11, %v12182_v40, %v12227_v29  ;;  %v12229_v17 = vld [vmem:[#allocation39_spill] sm:$0xff] }
 0x222   : > { %1660 = vmatpush1.msra.mxu1 %v7366_v56  ;;  %1604 = vmatprep.subr.mxu0 %v499_v53  ;;  %v12222_v56 = vld [vmem:[#allocation53_spill] sm:$0xff] }
 0x223   : > { %1661 = vmatprep.subr.mxu1 %v728_v52  ;;  %1605 = vmatpush1.msra.mxu0 %v500_v58  ;;  %v466_v36 = vsel %vm12223_vm1, %v12222_v56, %v12221_v42  ;;  %v467_v41 = vsel %vm12225_vm0, %v12177_v24, %v12222_v56  ;;  %v662_v24 = vsel %vm661_vm4, %v12228_v6, %v6892_v8  ;;  %vm12231_vm0 = vcmp.lt.s32.totalorder %v6984_v25, 109  ;;  %v12232_v8 = vld [vmem:[#allocation71_spill] sm:$0xff]  ;;  %v12235_v58 = vld [vmem:[#allocation32_spill] sm:$0xff] }
 0x224   : > { %1662 = vmatpush1.msra.mxu1 %v729_v43  ;;  %1606 = vmatprep.subr.mxu0 %v466_v36  ;;  %v400_v53 = vsel %vm12231_vm0, %v12230_v22, %v12229_v17  ;;  %v629_v12 = vsel %vm628_vm5, %v12232_v8, %v6860_v60  ;;  %vm12233_vm1 = vmmov %vm12231_vm0  ;;  %v630_v9 = vsel %vm628_vm5, %v12209_v55, %v12232_v8  ;;  %v12234_v52 = vld [vmem:[#allocation31_spill] sm:$0xff]  ;;  %vm12236_vm0 = vcmp.lt.s32.totalorder %v6984_v25, 110  ;;  %v12237_v60 = vld [vmem:[#allocation68_spill] sm:$0xff] }
 0x225   : > { %v7668_v20 = vpop.permute.xlu1 %1162  ;;  %1663 = vmatprep.subr.mxu1 %v695_v50  ;;  %1607 = vmatpush1.msra.mxu0 %v467_v41  ;;  %v401_v40 = vsel %vm12233_vm1, %v12187_v10, %v12230_v22  ;;  %v367_v43 = vsel %vm12236_vm0, %v12235_v58, %v12234_v52  ;;  %v596_v10 = vsel %vm595_vm6, %v12237_v60, %v6828_v37  ;;  %vm12238_vm1 = vmmov %vm12236_vm0  ;;  %v12239_v50 = vld [vmem:[#allocation23_spill] sm:$0xff]  ;;  %v12240_v41 = vld [vmem:[#allocation24_spill] sm:$0xff]  ;;  %vm12241_vm0 = vcmp.lt.s32.totalorder %v6984_v25, 111 }
 0x226   : > { %v7678_v30 = vpop.permute.xlu0 %1094  ;;  %1664 = vmatpush1.msra.mxu1 %v696_v11  ;;  %1608 = vmatprep.subr.mxu0 %v433_v27  ;;  %v368_v55 = vsel %vm12238_vm1, %v12191_v21, %v12235_v58  ;;  %v597_v35 = vsel %vm595_vm6, %v12211_v13, %v12237_v60  ;;  %v334_v11 = vsel %vm12241_vm0, %v12240_v41, %v12239_v50  ;;  %v12242_v37 = vld [vmem:[#allocation65_spill] sm:$0xff]  ;;  %vm12243_vm1 = vmmov %vm12241_vm0  ;;  %vm12244_vm0 = vcmp.lt.s32.totalorder %v6984_v25, 17  ;;  %v12263_v60 = vld [vmem:[#allocation34_spill] sm:$0xff] }
 0x227   : > { %1665 = vmatprep.subr.mxu1 %v662_v24  ;;  %1609 = vmatpush1.msra.mxu0 %v434_v1  ;;  %v563_v29 = vsel %vm562_vm7, %v12242_v37, %v6796_v63  ;;  %v335_v21 = vsel %vm12243_vm1, %v12193_v18, %v12240_v41  ;;  %v564_v13 = vsel %vm562_vm7, %v12214_v45, %v12242_v37  ;;  %v12245_v63 = vld [vmem:[#allocation62_spill] sm:$0xff]  ;;  %vm12246_vm1 = vmmov %vm12244_vm0 }
 0x228   : > { %1666 = vmatpush1.msra.mxu1 %v663_v19  ;;  %1610 = vmatprep.subr.mxu0 %v400_v53  ;;  %v1166_v27 = vsel %vm12244_vm0, %v7556_v51, %v7599_v16  ;;  %v530_v6 = vsel %vm11948_vm8, %v12245_v63, %v6764_v62  ;;  %v1167_v18 = vsel %vm12246_vm1, %v7333_v38, %v7556_v51  ;;  %vm12247_vm0 = vcmp.lt.s32.totalorder %v6984_v25, 18  ;;  %v12248_v19 = vld [vmem:[#allocation59_spill] sm:$0xff] }
 0x229   : > { %1667 = vmatprep.subr.mxu1 %v629_v12  ;;  %1611 = vmatpush1.msra.mxu0 %v401_v40  ;;  %v531_v45 = vsel %vm11948_vm8, %v12216_v28, %v12245_v63  ;;  %v1133_v1 = vsel %vm12247_vm0, %v7589_v32, %v7636_v31  ;;  %v497_v38 = vsel %vm11949_vm9, %v12248_v19, %v6732_v54  ;;  %vm12249_vm1 = vmmov %vm12247_vm0  ;;  %vm12250_vm0 = vcmp.lt.s32.totalorder %v6984_v25, 19  ;;  %v12251_v54 = vld [vmem:[#allocation54_spill] sm:$0xff] }
 0x22a   : > { %v7712_v56 = vpop.permute.xlu1 %1061  ;;  %1668 = vmatpush1.msra.mxu1 %v630_v9  ;;  %1612 = vmatprep.subr.mxu0 %v367_v43  ;;  %v1134_v51 = vsel %vm12249_vm1, %v7370_v47, %v7589_v32  ;;  %v498_v28 = vsel %vm11949_vm9, %v12218_v26, %v12248_v19  ;;  %v1100_v22 = vsel %vm12250_vm0, %v7630_v48, %v7678_v30  ;;  %vm12252_vm8 = vcmp.lt.s32.totalorder %v6984_v25, 100  ;;  %vm12253_vm1 = vmmov %vm12250_vm0  ;;  %v12259_v9 = vld [vmem:[#allocation42_spill] sm:$0xff] }
 0x22b   : > { %v1060_v36 = vpop.permute.xlu0 %1059  ;;  %1669 = vmatprep.subr.mxu1 %v596_v10  ;;  %1613 = vmatpush1.msra.mxu0 %v368_v55  ;;  %v464_v53 = vsel %vm12252_vm8, %v12251_v54, %v6700_v46  ;;  %v1101_v47 = vsel %vm12253_vm1, %v7394_v61, %v7630_v48  ;;  %vm12254_vm9 = vmmov %vm12252_vm8  ;;  %vm12255_vm0 = vcmp.lt.s32.totalorder %v6984_v25, 27  ;;  %v12256_v46 = vld [vmem:[#allocation49_spill] sm:$0xff]  ;;  %vm12260_vm1 = vcmp.lt.s32.totalorder %v6984_v25, 109  ;;  %v6135_v10 = vld [vmem:[%s11829_s1 + $0x8] sm:$0xff] }
 0x22c   : > { %1670 = vmatpush1.msra.mxu1 %v597_v35  ;;  %1614 = vmatprep.subr.mxu0 %v334_v11  ;;  %v465_v26 = vsel %vm12254_vm9, %v12221_v42, %v12251_v54  ;;  %v1067_v8 = vsel %vm12255_vm0, %v1060_v36, %v7712_v56  ;;  %v431_v61 = vsel %vm12040_vm11, %v12256_v46, %v12174_v59  ;;  %vm12257_vm8 = vmmov %vm12255_vm0  ;;  %vm12258_vm9 = vcmp.lt.s32.totalorder %v6984_v25, 28  ;;  %v12268_v55 = vld [vmem:[#allocation26_spill] sm:$0xff]  ;;  %v12273_v11 = vld [vmem:[#allocation43_spill] sm:$0xff] }
 0x22d   : > { %1671 = vmatprep.subr.mxu1 %v563_v29  ;;  %1615 = vmatpush1.msra.mxu0 %v335_v21  ;;  %v1068_v48 = vsel %vm12257_vm8, %v7421_v15, %v1060_v36  ;;  %v432_v42 = vsel %vm12040_vm11, %v12226_v7, %v12256_v46  ;;  %v398_v59 = vsel %vm12260_vm1, %v12259_v9, %v12179_v14  ;;  %vm12261_vm0 = vmmov %vm12258_vm9  ;;  %v12288_v54 = vld [vmem:[#allocation36_spill] sm:$0xff] }
 0x22e   : > { %1672 = vmatpush1.msra.mxu1 %v564_v13  ;;  %1626 = vmatprep.subr.mxu0 %v1166_v27  ;;  %vm12262_vm8 = vmmov %vm12260_vm1  ;;  %vm12265_vm1 = vcmp.lt.s32.totalorder %v6984_v25, 29 }
 0x22f   : > { %v1027_v24 = vpop.permute.xlu1 %1026  ;;  %1673 = vmatprep.subr.mxu1 %v530_v6  ;;  %1627 = vmatpush2.msra.mxu0 %v1167_v18  ;;  %v399_v7 = vsel %vm12262_vm8, %v12229_v17, %v12259_v9  ;;  %vm12267_vm8 = vmmov %vm12265_vm1 }
 0x230   : > { %v1130_v62 = vpop.permute.xlu0 %1129  ;;  %1674 = vmatpush1.msra.mxu1 %v531_v45  ;;  %1628 = vmatprep.subr.mxu0 %v1133_v1  ;;  %v1035_v15 = vsel %vm12261_vm0, %v7447_v23, %v1027_v24 }
 0x231   : > { %1675 = vmatprep.subr.mxu1 %v497_v38  ;;  %1629 = vmatpush2.msra.mxu0 %v1134_v51  ;;  %v12285_v38 = vld [vmem:[#allocation35_spill] sm:$0xff] }
 0x232   : > { %1676 = vmatpush1.msra.mxu1 %v498_v28  ;;  %1630 = vmatprep.subr.mxu0 %v1100_v22 }
 0x233   : > { %v1097_v32 = vpop.permute.xlu1 %1096  ;;  %1677 = vmatprep.subr.mxu1 %v464_v53  ;;  %1631 = vmatpush2.msra.mxu0 %v1101_v47 }
 0x234   : > { %v7793_v12 = vpop.permute.xlu0 %1028  ;;  %1678 = vmatpush1.msra.mxu1 %v465_v26  ;;  %1632 = vmatprep.subr.mxu0 %v1067_v8 }
 0x235   : > { %1679 = vmatprep.subr.mxu1 %v431_v61  ;;  %1633 = vmatpush2.msra.mxu0 %v1068_v48  ;;  %v1034_v40 = vsel %vm12258_vm9, %v1027_v24, %v7793_v12  ;;  %vm12264_vm9 = vcmp.lt.s32.totalorder %v6984_v25, 110 }
 0x236   : > { %1680 = vmatpush1.msra.mxu1 %v432_v42  ;;  %1634 = vmatprep.subr.mxu0 %v1034_v40  ;;  %v365_v14 = vsel %vm12264_vm9, %v12263_v60, %v12184_v39  ;;  %vm12266_vm0 = vmmov %vm12264_vm9  ;;  %vm12269_vm9 = vcmp.lt.s32.totalorder %v6984_v25, 111  ;;  %v12289_v40 = vld [vmem:[#allocation50_spill] sm:$0xff] }
 0x237   : > { %v996_v58 = vpop.permute.xlu1 %995  ;;  %1681 = vmatprep.subr.mxu1 %v398_v59  ;;  %1635 = vmatpush2.msra.mxu0 %v1035_v15  ;;  %v366_v17 = vsel %vm12266_vm0, %v12234_v52, %v12263_v60  ;;  %v332_v36 = vsel %vm12269_vm9, %v12268_v55, %v12189_v33  ;;  %vm12271_vm0 = vcmp.lt.s32.totalorder %v6984_v25, 17 }
 0x238   : > { %v994_v43 = vpop.permute.xlu0 %993  ;;  %1682 = vmatpush1.msra.mxu1 %v399_v7  ;;  %1719 = vmatprep.mubr.f32.mxu1 %v6135_v10 }
 0x239   : > { %1683 = vmatprep.subr.mxu1 %v365_v14  ;;  %v1001_v23 = vsel %vm12265_vm1, %v994_v43, %v996_v58  ;;  %v1002_v39 = vsel %vm12267_vm8, %v7462_v4, %v994_v43  ;;  %vm12270_vm1 = vmmov %vm12269_vm9  ;;  %v1172_v4 = vsel %vm12271_vm0, %v7668_v20, %v7221_v44  ;;  %vm12274_vm9 = vcmp.lt.s32.totalorder %v6984_v25, 18  ;;  %v12276_v44 = vld [vmem:[#allocation55_spill] sm:$0xff] }
 0x23a   : > { %1636 = vmatprep.subr.mxu0 %v1001_v23  ;;  %1684 = vmatpush1.msra.mxu1 %v366_v17  ;;  %v333_v41 = vsel %vm12270_vm1, %v12239_v50, %v12268_v55  ;;  %vm12272_vm8 = vmmov %vm12271_vm0  ;;  %v1139_v37 = vsel %vm12274_vm9, %v1130_v62, %v12273_v11  ;;  %vm12277_vm0 = vcmp.lt.s32.totalorder %v6984_v25, 19 }
 0x23b   : > { %v961_v35 = vpop.permute.xlu1 %960  ;;  %1637 = vmatpush2.msra.mxu0 %v1002_v39  ;;  %1685 = vmatprep.subr.mxu1 %v332_v36  ;;  %v1165_v33 = vsel %vm12272_vm8, %v7599_v16, %v7668_v20  ;;  %vm12275_vm1 = vmmov %vm12274_vm9  ;;  %v1106_v13 = vsel %vm12277_vm0, %v1097_v32, %v12276_v44  ;;  %vm12280_vm9 = vcmp.lt.s32.totalorder %v6984_v25, 27  ;;  %v12291_v39 = vld [vmem:[#allocation83_spill] sm:$0xff]  ;;  %v12292_v36 = vlaneseq }
 0x23c   : > { %v1064_v52 = vpop.permute.xlu0 %1063  ;;  %1686 = vmatpush1.msra.mxu1 %v333_v41  ;;  %v1132_v50 = vsel %vm12275_vm1, %v7636_v31, %v1130_v62  ;;  %vm12278_vm8 = vmmov %vm12277_vm0  ;;  %v969_v27 = vsel %vm966_vm12, %v7477_v3, %v961_v35  ;;  %v12279_v31 = vld [vmem:[#allocation56_spill] sm:$0xff]  ;;  %vm12283_vm0 = vcmp.lt.s32.totalorder %v6984_v25, 28 }
 0x23d   : > { %1697 = vmatprep.subr.mxu1 %v1172_v4  ;;  %v1099_v20 = vsel %vm12278_vm8, %v7678_v30, %v1097_v32  ;;  %v1073_v63 = vsel %vm12280_vm9, %v1064_v52, %v12279_v31  ;;  %vm12281_vm1 = vmmov %vm12280_vm9  ;;  %v12282_v30 = vld [vmem:[#allocation48_spill] sm:$0xff]  ;;  %vm12286_vm9 = vcmp.lt.s32.totalorder %v6984_v25, 29 }
 0x23e   : > { %1698 = vmatpush2.msra.mxu1 %v1165_v33  ;;  %v1066_v18 = vsel %vm12281_vm1, %v7712_v56, %v1064_v52  ;;  %vm12284_vm8 = vmmov %vm12283_vm0  ;;  %v231_v52 = vld [vmem:[%s12293_s3] sm:$0xff]  ;;  %s12351_s3 = smov 29  }
 0x23f   : > { %v1031_v29 = vpop.permute.xlu1 %1030  ;;  %1699 = vmatprep.subr.mxu1 %v1139_v37  ;;  %vm12287_vm1 = vmmov %vm12286_vm9 }
 0x240   : > { %v963_v21 = vpop.permute.xlu0 %962  ;;  %1700 = vmatpush2.msra.mxu1 %v1132_v50  ;;  %v1040_v45 = vsel %vm12283_vm0, %v1031_v29, %v12282_v30  ;;  %v1033_v62 = vsel %vm12284_vm8, %v7793_v12, %v1031_v29  ;;  %vm12357_vm0 = vcmp.lt.s32.totalorder %v6984_v25, 119 }
 0x241   : > { %v968_v16 = vsel %vm966_vm12, %v961_v35, %v963_v21  ;;  %1701 = vmatprep.subr.mxu1 %v1106_v13  ;;  %v234_v35 = vshrl.u32 %v12292_v36, 7  ;;  %vm12359_vm8 = vmmov %vm12357_vm0 }
 0x242   : > { %1638 = vmatprep.subr.mxu0 %v968_v16  ;;  %1702 = vmatpush2.msra.mxu1 %v1099_v20 }
 0x243   : > { %1639 = vmatpush2.msra.mxu0 %v969_v27  ;;  %v930_v6 = vpop.permute.xlu1 %929  ;;  %1703 = vmatprep.subr.mxu1 %v1073_v63  ;;  %v235_v41 = vsub.s32 0, %v234_v35  ;;  %v239_v4 = vsub.s32 1, %v234_v35  ;;  %v243_v20 = vsub.s32 2, %v234_v35  ;;  %v247_v27 = vsub.s32 3, %v234_v35 }
 0x244   : > { %v928_v24 = vpop.permute.xlu0 %927  ;;  %1704 = vmatpush2.msra.mxu1 %v1066_v18 }
 0x245   : > { %v935_v3 = vsel %vm933_vm14, %v928_v24, %v930_v6  ;;  %v936_v1 = vsel %vm933_vm14, %v7510_v5, %v928_v24  ;;  %1705 = vmatprep.subr.mxu1 %v1040_v45  ;;  %v7937_v37 = vrot.slane %v231_v52, %v235_v41  ;;  %v7951_v63 = vrot.slane %v231_v52, %v243_v20 }
 0x246   : > { %1640 = vmatprep.subr.mxu0 %v935_v3  ;;  %1706 = vmatpush2.msra.mxu1 %v1033_v62  ;;  %v7953_v30 = vrot.slane %v231_v52, %v247_v27 }
 0x247   : > { %1641 = vmatpush2.msra.mxu0 %v936_v1  ;;  %v895_v56 = vpop.permute.xlu1 %894  ;;  %12294 = vst [vmem:[#allocation41_spill] sm:$0xff] %v7937_v37  ;;  %12296 = vst [vmem:[#allocation28_spill] sm:$0xff] %v7951_v63 }
 0x248   : > { %v998_v19 = vpop.permute.xlu0 %997  ;;  %v903_v26 = vsel %vm900_vm15, %v7532_v34, %v895_v56  ;;  %12297 = vst [vmem:[#allocation44_spill] sm:$0xff] %v7953_v30 }
 0x249   : > { %v1007_v51 = vsel %vm12286_vm9, %v998_v19, %v12285_v38  ;;  %v1000_v28 = vsel %vm12287_vm1, %v996_v58, %v998_v19  ;;  %v12290_v58 = vld [vmem:[#allocation51_spill] sm:$0xff]  ;;  %v255_v19 = vsub.s32 5, %v234_v35  ;;  %vm12361_vm9 = vmmov %vm12357_vm0 }
 0x24a   : > { %1707 = vmatprep.subr.mxu1 %v1007_v51  ;;  %vm12362_vm1 = vmmov %vm12357_vm0 }
 0x24b   : > { %v965_v22 = vpop.permute.xlu1 %964  ;;  %1708 = vmatpush2.msra.mxu1 %v1000_v28 }
 0x24c   : > { %v897_v5 = vpop.permute.xlu0 %896  ;;  %v974_v53 = vsel %vm966_vm12, %v965_v22, %v12288_v54  ;;  %v967_v47 = vsel %vm966_vm12, %v963_v21, %v965_v22  ;;  %v7939_v21 = vrot.slane %v231_v52, %v239_v4  ;;  %v7967_v54 = vrot.slane %v231_v52, %v255_v19 }
 0x24d   : > { %v902_v32 = vsel %vm900_vm15, %v895_v56, %v897_v5  ;;  %1709 = vmatprep.subr.mxu1 %v974_v53  ;;  %v251_v56 = vsub.s32 4, %v234_v35 }
 0x24e   : > { %1642 = vmatprep.subr.mxu0 %v902_v32  ;;  %1710 = vmatpush2.msra.mxu1 %v967_v47  ;;  %12295 = vst [vmem:[#allocation27_spill] sm:$0xff] %v7939_v21  ;;  %12299 = vst [vmem:[#allocation33_spill] sm:$0xff] %v7967_v54  ;;  %v259_v47 = vsub.s32 6, %v234_v35 }
 0x24f   : > { %1643 = vmatpush2.msra.mxu0 %v903_v26  ;;  %v864_v8 = vpop.permute.xlu1 %863  ;;  %v7965_v51 = vrot.slane %v231_v52, %v251_v56 }
 0x250   : > { %v862_v12 = vpop.permute.xlu0 %861 }
 0x251   : > { %v869_v46 = vsel %vm867_vm10, %v862_v12, %v864_v8  ;;  %v870_v61 = vsel %vm867_vm10, %v7562_v57, %v862_v12  ;;  %12298 = vst [vmem:[#allocation45_spill] sm:$0xff] %v7965_v51 }
 0x252   : > { %1644 = vmatprep.subr.mxu0 %v869_v46 }
 0x253   : > { %1645 = vmatpush2.msra.mxu0 %v870_v61  ;;  %v829_v48 = vpop.permute.xlu1 %828  ;;  %v7975_v61 = vrot.slane %v231_v52, %v259_v47 }
 0x254   : > { %v932_v42 = vpop.permute.xlu0 %931  ;;  %v837_v60 = vsel %vm834_vm13, %v7190_v0, %v829_v48 }
 0x255   : > { %v941_v9 = vsel %vm933_vm14, %v932_v42, %v12289_v40  ;;  %v934_v34 = vsel %vm933_vm14, %v930_v6, %v932_v42  ;;  %12300 = vst [vmem:[#allocation22_spill] sm:$0xff] %v7975_v61 }
 0x256   : > { %1711 = vmatprep.subr.mxu1 %v941_v9 }
 0x257   : > { %1712 = vmatpush2.msra.mxu1 %v934_v34  ;;  %v899_v59 = vpop.permute.xlu1 %898 }
 0x258   : > { %v831_v15 = vpop.permute.xlu0 %830  ;;  %v908_v7 = vsel %vm900_vm15, %v899_v59, %v12290_v58  ;;  %v901_v57 = vsel %vm900_vm15, %v897_v5, %v899_v59 }
 0x259   : > { %v836_v43 = vsel %vm834_vm13, %v829_v48, %v831_v15  ;;  %1713 = vmatprep.subr.mxu1 %v908_v7 }
 0x25a   : > { %1646 = vmatprep.subr.mxu0 %v836_v43  ;;  %1714 = vmatpush2.msra.mxu1 %v901_v57 }
 0x25b   : > { %1647 = vmatpush2.msra.mxu0 %v837_v60  ;;  %v833_v14 = vpop.permute.xlu1 %832 }
 0x25c   : > { %1649 = vmatmul.mubr.f32.vlgmr.msra.gmra.mxu0 %v7500_v2  ;;  %v866_v10 = vpop.permute.xlu0 %865  ;;  %v842_v55 = vsel %vm834_vm13, %v833_v14, %v12291_v39  ;;  %v835_v0 = vsel %vm834_vm13, %v831_v15, %v833_v14 }
 0x25d   : > { %v875_v23 = vsel %vm867_vm10, %v866_v10, %v7487_v49  ;;  %v868_v17 = vsel %vm867_vm10, %v864_v8, %v866_v10  ;;  %v263_v8 = vsub.s32 7, %v234_v35 }
 0x25e   : > { %1715 = vmatprep.subr.mxu1 %v875_v23 }
 0x25f   : > { %1716 = vmatpush2.msra.mxu1 %v868_v17  ;;  %v7979_v9 = vrot.slane %v231_v52, %v263_v8 }
 0x260   : > { %1717 = vmatprep.subr.mxu1 %v842_v55 }
 0x261   : > { %1718 = vmatpush2.msra.mxu1 %v835_v0  ;;  %12301 = vst [vmem:[#allocation20_spill] sm:$0xff] %v7979_v9 }
 0x262   : > { %1720 = vmatmul.mubr.f32.vlgmr.msra.gmra.mxu1 %v7500_v2 }
 0x269   : > { %v1440_v49 = vpop.permute.xlu0 %1439 }
 0x2cd   : > { %v1508_v33 = vpop.f32.mrf.mxu0 }
 0x2ce   : > { %v1509_v11 = vadd.f32 %v1508_v33, %v1440_v49 }
 0x2cf   : > { %v1510_v29 = vpop.f32.mrf.mxu0 }
 0x2d0   : > { %v1726_v50 = vmax.f32 %v1509_v11, 0.0  ;;  %v1511_v44 = vadd.f32 %v1510_v29, %v1440_v49 }
 0x2d2   : > { %v1727_v13 = vmax.f32 %v1511_v44, 0.0  ;;  %v7942_v2 = vmul.f32 %v1726_v50, %v7937_v37 }
 0x2d4   : > { %v7945_v16 = vmul.f32 %v1727_v13, %v7939_v21  ;;  %1742 = vrot.lane.b32.xlu1 %v7942_v2, %s11952_s8 }
 0x2d8   : > { %1744 = vrot.lane.b32.xlu1 %v7945_v16, %s11952_s8 }
 0x2dd   : > { %v1579_v31 = vpop.f32.mrf.mxu1 }
 0x2de   : > { %v1580_v6 = vadd.f32 %v1579_v31, %v1440_v49 }
 0x2df   : > { %v1581_v18 = vpop.f32.mrf.mxu1 }
 0x2e0   : > { %v1728_v24 = vmax.f32 %v1580_v6, 0.0  ;;  %v1582_v45 = vadd.f32 %v1581_v18, %v1440_v49 }
 0x2e2   : > { %v7956_v3 = vmul.f32 %v1728_v24, %v7951_v63  ;;  %v1729_v1 = vmax.f32 %v1582_v45, 0.0 }
 0x2e4   : > { %v7959_v62 = vmul.f32 %v1729_v1, %v7953_v30  ;;  %1746 = vrot.lane.b32.xlu0 %v7956_v3, %s11952_s8 }
 0x2e6   : > { %1748 = vrot.lane.b32.xlu1 %v7959_v62, %s11952_s8 }
 0x31c   : > { %v1650_v38 = vpop.f32.mrf.mxu0 }
 0x31d   : > { %v1651_v28 = vadd.f32 %v1650_v38, %v1440_v49 }
 0x31e   : > { %v1652_v22 = vpop.f32.mrf.mxu0 }
 0x31f   : > { %v1730_v5 = vmax.f32 %v1651_v28, 0.0  ;;  %v1653_v53 = vadd.f32 %v1652_v22, %v1440_v49 }
 0x321   : > { %v7970_v32 = vmul.f32 %v1730_v5, %v7965_v51  ;;  %v1731_v26 = vmax.f32 %v1653_v53, 0.0 }
 0x322   : > { %v1721_v12 = vpop.f32.mrf.mxu1 }
 0x323   : > { %v7973_v46 = vmul.f32 %v1731_v26, %v7967_v54  ;;  %v1722_v48 = vadd.f32 %v1721_v12, %v1440_v49  ;;  %1750 = vrot.lane.b32.xlu0 %v7970_v32, %s11952_s8 }
 0x324   : > { %v1723_v42 = vpop.f32.mrf.mxu1 }
 0x325   : > { %v1732_v40 = vmax.f32 %v1722_v48, 0.0  ;;  %v1724_v34 = vadd.f32 %v1723_v42, %v1440_v49  ;;  %1752 = vrot.lane.b32.xlu1 %v7973_v46, %s11952_s8 }
 0x327   : > { %v7984_v59 = vmul.f32 %v1732_v40, %v7975_v61  ;;  %v1733_v15 = vmax.f32 %v1724_v34, 0.0 }
 0x329   : > { %v7987_v58 = vmul.f32 %v1733_v15, %v7979_v9  ;;  %1754 = vrot.lane.b32.xlu0 %v7984_v59, %s11952_s8 }
 0x32b   : > { %1756 = vrot.lane.b32.xlu1 %v7987_v58, %s11952_s8  ;;  %s12305_s8 = smov 99  }
 0x32d   : > { %1774 = vrot.lane.b32.xlu0 %v7942_v2, %s11950_s26 }
 0x32f   : > { %1776 = vrot.lane.b32.xlu1 %v7945_v16, %s11950_s26 }
 0x331   : > { %1778 = vrot.lane.b32.xlu0 %v7956_v3, %s11950_s26 }
 0x333   : > { %1780 = vrot.lane.b32.xlu1 %v7959_v62, %s11950_s26 }
 0x335   : > { %1782 = vrot.lane.b32.xlu0 %v7970_v32, %s11950_s26 }
 0x337   : > { %1784 = vrot.lane.b32.xlu1 %v7973_v46, %s11950_s26 }
 0x339   : > { %1786 = vrot.lane.b32.xlu0 %v7984_v59, %s11950_s26 }
 0x33b   : > { %1788 = vrot.lane.b32.xlu1 %v7987_v58, %s11950_s26  ;;  %s12304_s26 = smov 100  }
 0x33d   : > { %1806 = vrot.lane.b32.xlu0 %v7942_v2, %s12302_s12 }
 0x33f   : > { %1808 = vrot.lane.b32.xlu1 %v7945_v16, %s12302_s12 }
 0x341   : > { %1810 = vrot.lane.b32.xlu0 %v7956_v3, %s12302_s12 }
 0x343   : > { %1812 = vrot.lane.b32.xlu1 %v7959_v62, %s12302_s12 }
 0x345   : > { %1814 = vrot.lane.b32.xlu0 %v7970_v32, %s12302_s12 }
 0x346   : > { %v8085_v7 = vpop.permute.xlu1 %1742 }
 0x347   : > { %1816 = vrot.lane.b32.xlu1 %v7973_v46, %s12302_s12  ;;  %12307 = vst [vmem:[#allocation37_spill] sm:$0xff] %v8085_v7 }
 0x349   : > { %1818 = vrot.lane.b32.xlu0 %v7984_v59, %s12302_s12 }
 0x34a   : > { %v8093_v57 = vpop.permute.xlu1 %1744 }
 0x34b   : > { %1820 = vrot.lane.b32.xlu1 %v7987_v58, %s12302_s12  ;;  %12309 = vst [vmem:[#allocation38_spill] sm:$0xff] %v8093_v57 }
 0x34d   : > { %1838 = vrot.lane.b32.xlu0 %v7942_v2, %s12303_s14 }
 0x34f   : > { %1840 = vrot.lane.b32.xlu1 %v7945_v16, %s12303_s14 }
 0x351   : > { %1842 = vrot.lane.b32.xlu0 %v7956_v3, %s12303_s14 }
 0x353   : > { %1844 = vrot.lane.b32.xlu1 %v7959_v62, %s12303_s14 }
 0x355   : > { %1846 = vrot.lane.b32.xlu0 %v7970_v32, %s12303_s14 }
 0x356   : > { %v8099_v43 = vpop.permute.xlu0 %1746 }
 0x357   : > { %1848 = vrot.lane.b32.xlu1 %v7973_v46, %s12303_s14  ;;  %12310 = vst [vmem:[#allocation25_spill] sm:$0xff] %v8099_v43 }
 0x358   : > { %v8103_v60 = vpop.permute.xlu1 %1748 }
 0x359   : > { %1850 = vrot.lane.b32.xlu0 %v7984_v59, %s12303_s14  ;;  %12311 = vst [vmem:[#allocation29_spill] sm:$0xff] %v8103_v60 }
 0x35b   : > { %1852 = vrot.lane.b32.xlu1 %v7987_v58, %s12303_s14 }
 0x35d   : > { %1870 = vrot.lane.b32.xlu0 %v7942_v2, %s12304_s26 }
 0x35f   : > { %1872 = vrot.lane.b32.xlu1 %v7945_v16, %s12304_s26 }
 0x361   : > { %1874 = vrot.lane.b32.xlu0 %v7956_v3, %s12304_s26 }
 0x363   : > { %1876 = vrot.lane.b32.xlu1 %v7959_v62, %s12304_s26 }
 0x365   : > { %1878 = vrot.lane.b32.xlu0 %v7970_v32, %s12304_s26 }
 0x367   : > { %1880 = vrot.lane.b32.xlu1 %v7973_v46, %s12304_s26 }
 0x369   : > { %1882 = vrot.lane.b32.xlu0 %v7984_v59, %s12304_s26 }
 0x36b   : > { %1884 = vrot.lane.b32.xlu1 %v7987_v58, %s12304_s26 }
 0x36d   : > { %1902 = vrot.lane.b32.xlu0 %v7942_v2, %s12305_s8 }
 0x36f   : > { %1904 = vrot.lane.b32.xlu1 %v7945_v16, %s12305_s8 }
 0x371   : > { %1906 = vrot.lane.b32.xlu0 %v7956_v3, %s12305_s8 }
 0x373   : > { %1908 = vrot.lane.b32.xlu1 %v7959_v62, %s12305_s8 }
 0x375   : > { %1910 = vrot.lane.b32.xlu0 %v7970_v32, %s12305_s8 }
 0x377   : > { %1912 = vrot.lane.b32.xlu1 %v7973_v46, %s12305_s8 }
 0x379   : > { %1914 = vrot.lane.b32.xlu0 %v7984_v59, %s12305_s8 }
 0x37b   : > { %1916 = vrot.lane.b32.xlu1 %v7987_v58, %s12305_s8 }
 0x37d   : > { %1934 = vrot.lane.b32.xlu0 %v7942_v2, %s12306_s5 }
 0x37f   : > { %1936 = vrot.lane.b32.xlu1 %v7945_v16, %s12306_s5 }
 0x381   : > { %1938 = vrot.lane.b32.xlu0 %v7956_v3, %s12306_s5 }
 0x383   : > { %1940 = vrot.lane.b32.xlu1 %v7959_v62, %s12306_s5 }
 0x385   : > { %1942 = vrot.lane.b32.xlu0 %v7970_v32, %s12306_s5 }
 0x387   : > { %1944 = vrot.lane.b32.xlu1 %v7973_v46, %s12306_s5 }
 0x389   : > { %1946 = vrot.lane.b32.xlu0 %v7984_v59, %s12306_s5 }
 0x38b   : > { %1948 = vrot.lane.b32.xlu1 %v7987_v58, %s12306_s5 }
 0x38d   : > { %1966 = vrot.lane.b32.xlu0 %v7942_v2, %s12308_s10 }
 0x38f   : > { %1968 = vrot.lane.b32.xlu1 %v7945_v16, %s12308_s10 }
 0x391   : > { %1970 = vrot.lane.b32.xlu0 %v7956_v3, %s12308_s10 }
 0x393   : > { %1972 = vrot.lane.b32.xlu1 %v7959_v62, %s12308_s10 }
 0x395   : > { %1974 = vrot.lane.b32.xlu0 %v7970_v32, %s12308_s10  ;;  %v8107_v14 = vpop.permute.xlu0 %1750 }
 0x396   : > { %12312 = vst [vmem:[#allocation30_spill] sm:$0xff] %v8107_v14 }
 0x397   : > { %1976 = vrot.lane.b32.xlu1 %v7973_v46, %s12308_s10  ;;  %v8111_v10 = vpop.permute.xlu1 %1752 }
 0x398   : > { %12313 = vst [vmem:[#allocation21_spill] sm:$0xff] %v8111_v10 }
 0x399   : > { %1978 = vrot.lane.b32.xlu0 %v7984_v59, %s12308_s10 }
 0x39b   : > { %v8115_v23 = vpop.permute.xlu0 %1754  ;;  %1980 = vrot.lane.b32.xlu1 %v7987_v58, %s12308_s10 }
 0x39c   : > { %12314 = vst [vmem:[#allocation19_spill] sm:$0xff] %v8115_v23 }
 0x39d   : > { %1998 = vrot.lane.b32.xlu0 %v7942_v2, %s12315_s20  ;;  %v8121_v17 = vpop.permute.xlu1 %1756 }
 0x39e   : > { %12316 = vst [vmem:[#allocation81_spill] sm:$0xff] %v8121_v17 }
 0x39f   : > { %v8123_v39 = vpop.permute.xlu0 %1774  ;;  %2000 = vrot.lane.b32.xlu1 %v7945_v16, %s12315_s20 }
 0x3a1   : > { %2002 = vrot.lane.b32.xlu0 %v7956_v3, %s12315_s20  ;;  %v8129_v55 = vpop.permute.xlu1 %1776 }
 0x3a3   : > { %v8131_v0 = vpop.permute.xlu0 %1778  ;;  %2004 = vrot.lane.b32.xlu1 %v7959_v62, %s12315_s20 }
 0x3a5   : > { %2006 = vrot.lane.b32.xlu0 %v7970_v32, %s12315_s20  ;;  %v8137_v36 = vpop.permute.xlu1 %1780 }
 0x3a7   : > { %v8139_v35 = vpop.permute.xlu0 %1782  ;;  %2008 = vrot.lane.b32.xlu1 %v7973_v46, %s12315_s20 }
 0x3a8   : > { %12317 = vst [vmem:[#allocation78_spill] sm:$0xff] %v8139_v35 }
 0x3a9   : > { %2010 = vrot.lane.b32.xlu0 %v7984_v59, %s12315_s20  ;;  %v8145_v41 = vpop.permute.xlu1 %1784 }
 0x3aa   : > { %12318 = vst [vmem:[#allocation79_spill] sm:$0xff] %v8145_v41 }
 0x3ab   : > { %v8147_v49 = vpop.permute.xlu0 %1786  ;;  %2012 = vrot.lane.b32.xlu1 %v7987_v58, %s12315_s20 }
 0x3ac   : > { %12319 = vst [vmem:[#allocation75_spill] sm:$0xff] %v8147_v49 }
 0x3ad   : > { %2030 = vrot.lane.b32.xlu0 %v7942_v2, %s12320_s22  ;;  %v8153_v52 = vpop.permute.xlu1 %1788 }
 0x3ae   : > { %12321 = vst [vmem:[#allocation76_spill] sm:$0xff] %v8153_v52 }
 0x3af   : > { %v8155_v4 = vpop.permute.xlu0 %1806  ;;  %2032 = vrot.lane.b32.xlu1 %v7945_v16, %s12320_s22 }
 0x3b1   : > { %2034 = vrot.lane.b32.xlu0 %v7956_v3, %s12320_s22  ;;  %v8161_v33 = vpop.permute.xlu1 %1808 }
 0x3b3   : > { %v8163_v11 = vpop.permute.xlu0 %1810  ;;  %2036 = vrot.lane.b32.xlu1 %v7959_v62, %s12320_s22 }
 0x3b5   : > { %2038 = vrot.lane.b32.xlu0 %v7970_v32, %s12320_s22  ;;  %v8169_v29 = vpop.permute.xlu1 %1812 }
 0x3b7   : > { %v8171_v50 = vpop.permute.xlu0 %1814  ;;  %2040 = vrot.lane.b32.xlu1 %v7973_v46, %s12320_s22 }
 0x3b8   : > { %12322 = vst [vmem:[#allocation72_spill] sm:$0xff] %v8171_v50 }
 0x3b9   : > { %2042 = vrot.lane.b32.xlu0 %v7984_v59, %s12320_s22  ;;  %v8177_v44 = vpop.permute.xlu1 %1816 }
 0x3ba   : > { %12323 = vst [vmem:[#allocation73_spill] sm:$0xff] %v8177_v44 }
 0x3bb   : > { %v8179_v13 = vpop.permute.xlu0 %1818  ;;  %2044 = vrot.lane.b32.xlu1 %v7987_v58, %s12320_s22 }
 0x3bc   : > { %12324 = vst [vmem:[#allocation69_spill] sm:$0xff] %v8179_v13 }
 0x3bd   : > { %2062 = vrot.lane.b32.xlu0 %v7942_v2, %s12325_s23  ;;  %v8185_v20 = vpop.permute.xlu1 %1820 }
 0x3bf   : > { %v8187_v27 = vpop.permute.xlu0 %1838  ;;  %2064 = vrot.lane.b32.xlu1 %v7945_v16, %s12325_s23 }
 0x3c1   : > { %2200 = vrot.lane.b32.xlu0 %v7945_v16, %s12326_s25  ;;  %v8193_v31 = vpop.permute.xlu1 %1840 }
 0x3c3   : > { %v8195_v6 = vpop.permute.xlu0 %1842  ;;  %2202 = vrot.lane.b32.xlu1 %v7956_v3, %s12326_s25 }
 0x3c5   : > { %2204 = vrot.lane.b32.xlu0 %v7959_v62, %s12326_s25  ;;  %v8201_v18 = vpop.permute.xlu1 %1844 }
 0x3c7   : > { %v8203_v24 = vpop.permute.xlu0 %1846  ;;  %2206 = vrot.lane.b32.xlu1 %v7970_v32, %s12326_s25 }
 0x3c8   : > { %12327 = vst [vmem:[#allocation70_spill] sm:$0xff] %v8203_v24 }
 0x3c9   : > { %2198 = vrot.lane.b32.xlu0 %v7942_v2, %s12326_s25  ;;  %v8209_v45 = vpop.permute.xlu1 %1848 }
 0x3ca   : > { %12328 = vst [vmem:[#allocation66_spill] sm:$0xff] %v8209_v45 }
 0x3cb   : > { %v8211_v1 = vpop.permute.xlu0 %1850  ;;  %2168 = vrot.lane.b32.xlu1 %v7945_v16, %s12330_s29 }
 0x3cc   : > { %12329 = vst [vmem:[#allocation67_spill] sm:$0xff] %v8211_v1 }
 0x3cd   : > { %2170 = vrot.lane.b32.xlu0 %v7956_v3, %s12330_s29  ;;  %v8217_v56 = vpop.permute.xlu1 %1852 }
 0x3cf   : > { %v8219_v19 = vpop.permute.xlu0 %1870  ;;  %2172 = vrot.lane.b32.xlu1 %v7959_v62, %s12330_s29 }
 0x3d1   : > { %2174 = vrot.lane.b32.xlu0 %v7970_v32, %s12330_s29  ;;  %v8225_v38 = vpop.permute.xlu1 %1872 }
 0x3d3   : > { %v8227_v28 = vpop.permute.xlu0 %1874  ;;  %2166 = vrot.lane.b32.xlu1 %v7942_v2, %s12330_s29 }
 0x3d5   : > { %2126 = vrot.lane.b32.xlu0 %v7942_v2, %s12331_s30  ;;  %v8233_v22 = vpop.permute.xlu1 %1876 }
 0x3d7   : > { %v8235_v5 = vpop.permute.xlu0 %1878  ;;  %2128 = vrot.lane.b32.xlu1 %v7945_v16, %s12331_s30 }
 0x3d8   : > { %12332 = vst [vmem:[#allocation82_spill] sm:$0xff] %v8235_v5 }
 0x3d9   : > { %2130 = vrot.lane.b32.xlu0 %v7956_v3, %s12331_s30  ;;  %v8241_v53 = vpop.permute.xlu1 %1880 }
 0x3da   : > { %12333 = vst [vmem:[#allocation63_spill] sm:$0xff] %v8241_v53 }
 0x3db   : > { %v8243_v47 = vpop.permute.xlu0 %1882  ;;  %2132 = vrot.lane.b32.xlu1 %v7959_v62, %s12331_s30 }
 0x3dc   : > { %12334 = vst [vmem:[#allocation64_spill] sm:$0xff] %v8243_v47 }
 0x3dd   : > { %2140 = vrot.lane.b32.xlu0 %v7987_v58, %s12331_s30  ;;  %v8249_v26 = vpop.permute.xlu1 %1884 }
 0x3df   : > { %v8251_v8 = vpop.permute.xlu0 %1902  ;;  %2094 = vrot.lane.b32.xlu1 %v7942_v2, %s12335_s9 }
 0x3e1   : > { %2096 = vrot.lane.b32.xlu0 %v7945_v16, %s12335_s9  ;;  %v8257_v12 = vpop.permute.xlu1 %1904 }
 0x3e3   : > { %v8259_v48 = vpop.permute.xlu0 %1906  ;;  %2098 = vrot.lane.b32.xlu1 %v7956_v3, %s12335_s9 }
 0x3e5   : > { %2100 = vrot.lane.b32.xlu0 %v7959_v62, %s12335_s9  ;;  %v8265_v42 = vpop.permute.xlu1 %1908 }
 0x3e7   : > { %v8267_v40 = vpop.permute.xlu0 %1910  ;;  %2108 = vrot.lane.b32.xlu1 %v7987_v58, %s12335_s9 }
 0x3e8   : > { %12336 = vst [vmem:[#allocation60_spill] sm:$0xff] %v8267_v40 }
 0x3e9   : > { %2066 = vrot.lane.b32.xlu0 %v7956_v3, %s12325_s23  ;;  %v8273_v34 = vpop.permute.xlu1 %1912 }
 0x3ea   : > { %12337 = vst [vmem:[#allocation61_spill] sm:$0xff] %v8273_v34 }
 0x3eb   : > { %v8275_v15 = vpop.permute.xlu0 %1914  ;;  %2068 = vrot.lane.b32.xlu1 %v7959_v62, %s12325_s23 }
 0x3ec   : > { %12338 = vst [vmem:[#allocation57_spill] sm:$0xff] %v8275_v15 }
 0x3ed   : > { %2076 = vrot.lane.b32.xlu0 %v7987_v58, %s12325_s23  ;;  %v8281_v9 = vpop.permute.xlu1 %1916 }
 0x3ef   : > { %v8283_v61 = vpop.permute.xlu0 %1934  ;;  %2552 = vrot.lane.b32.xlu1 %v7945_v16, %s11992_s6 }
 0x3f1   : > { %2554 = vrot.lane.b32.xlu0 %v7956_v3, %s11992_s6  ;;  %v8289_v54 = vpop.permute.xlu1 %1936 }
 0x3f3   : > { %v8291_v51 = vpop.permute.xlu0 %1938  ;;  %2556 = vrot.lane.b32.xlu1 %v7959_v62, %s11992_s6 }
 0x3f5   : > { %2558 = vrot.lane.b32.xlu0 %v7970_v32, %s11992_s6  ;;  %v8297_v30 = vpop.permute.xlu1 %1940 }
 0x3f7   : > { %v8299_v21 = vpop.permute.xlu0 %1942  ;;  %2550 = vrot.lane.b32.xlu1 %v7942_v2, %s11992_s6  ;;  %s12342_s6 = smov 19  }
 0x3f8   : > { %12339 = vst [vmem:[#allocation58_spill] sm:$0xff] %v8299_v21 }
 0x3f9   : > { %2520 = vrot.lane.b32.xlu0 %v7945_v16, %s11998_s13  ;;  %v8305_v37 = vpop.permute.xlu1 %1944 }
 0x3fa   : > { %12340 = vst [vmem:[#allocation80_spill] sm:$0xff] %v8305_v37 }
 0x3fb   : > { %v8307_v63 = vpop.permute.xlu0 %1946  ;;  %2522 = vrot.lane.b32.xlu1 %v7956_v3, %s11998_s13 }
 0x3fc   : > { %12341 = vst [vmem:[#allocation52_spill] sm:$0xff] %v8307_v63 }
 0x3fd   : > { %2524 = vrot.lane.b32.xlu0 %v7959_v62, %s11998_s13  ;;  %v8313_v23 = vpop.permute.xlu1 %1948 }
 0x3ff   : > { %v8315_v49 = vpop.permute.xlu0 %1966  ;;  %2526 = vrot.lane.b32.xlu1 %v7970_v32, %s11998_s13 }
 0x401   : > { %2518 = vrot.lane.b32.xlu0 %v7942_v2, %s11998_s13  ;;  %v8321_v14 = vpop.permute.xlu1 %1968  ;;  %s12346_s13 = smov 27  }
 0x403   : > { %v8323_v10 = vpop.permute.xlu0 %1970  ;;  %2488 = vrot.lane.b32.xlu1 %v7945_v16, %s12342_s6 }
 0x405   : > { %2490 = vrot.lane.b32.xlu0 %v7956_v3, %s12342_s6  ;;  %v8329_v13 = vpop.permute.xlu1 %1972 }
 0x407   : > { %v8331_v35 = vpop.permute.xlu0 %1974  ;;  %2492 = vrot.lane.b32.xlu1 %v7959_v62, %s12342_s6 }
 0x408   : > { %12343 = vst [vmem:[#allocation53_spill] sm:$0xff] %v8331_v35 }
 0x409   : > { %2494 = vrot.lane.b32.xlu0 %v7970_v32, %s12342_s6  ;;  %v8337_v41 = vpop.permute.xlu1 %1976 }
 0x40a   : > { %12344 = vst [vmem:[#allocation77_spill] sm:$0xff] %v8337_v41 }
 0x40b   : > { %v8339_v1 = vpop.permute.xlu0 %1978  ;;  %2486 = vrot.lane.b32.xlu1 %v7942_v2, %s12342_s6 }
 0x40c   : > { %12345 = vst [vmem:[#allocation46_spill] sm:$0xff] %v8339_v1 }
 0x40d   : > { %2456 = vrot.lane.b32.xlu0 %v7945_v16, %s12346_s13  ;;  %v8345_v50 = vpop.permute.xlu1 %1980 }
 0x40f   : > { %v8347_v44 = vpop.permute.xlu0 %1998  ;;  %2458 = vrot.lane.b32.xlu1 %v7956_v3, %s12346_s13 }
 0x411   : > { %2460 = vrot.lane.b32.xlu0 %v7959_v62, %s12346_s13  ;;  %v8353_v47 = vpop.permute.xlu1 %2000 }
 0x413   : > { %v8355_v24 = vpop.permute.xlu0 %2002  ;;  %2462 = vrot.lane.b32.xlu1 %v7970_v32, %s12346_s13 }
 0x415   : > { %2454 = vrot.lane.b32.xlu0 %v7942_v2, %s12346_s13  ;;  %v8361_v45 = vpop.permute.xlu1 %2004 }
 0x417   : > { %v8363_v15 = vpop.permute.xlu0 %2006  ;;  %2424 = vrot.lane.b32.xlu1 %v7945_v16, %s12348_s0 }
 0x418   : > { %12347 = vst [vmem:[#allocation47_spill] sm:$0xff] %v8363_v15 }
 0x419   : > { %2426 = vrot.lane.b32.xlu0 %v7956_v3, %s12348_s0  ;;  %v8369_v5 = vpop.permute.xlu1 %2008 }
 0x41a   : > { %12349 = vst [vmem:[#allocation74_spill] sm:$0xff] %v8369_v5 }
 0x41b   : > { %v8371_v53 = vpop.permute.xlu0 %2010  ;;  %2428 = vrot.lane.b32.xlu1 %v7959_v62, %s12348_s0 }
 0x41c   : > { %12350 = vst [vmem:[#allocation39_spill] sm:$0xff] %v8371_v53 }
 0x41d   : > { %2430 = vrot.lane.b32.xlu0 %v7970_v32, %s12348_s0  ;;  %v8377_v63 = vpop.permute.xlu1 %2012 }
 0x41f   : > { %v8379_v40 = vpop.permute.xlu0 %2030  ;;  %2422 = vrot.lane.b32.xlu1 %v7942_v2, %s12348_s0 }
 0x421   : > { %2392 = vrot.lane.b32.xlu0 %v7945_v16, %s12351_s3  ;;  %v8385_v34 = vpop.permute.xlu1 %2032 }
 0x423   : > { %v8387_v1 = vpop.permute.xlu0 %2034  ;;  %2394 = vrot.lane.b32.xlu1 %v7956_v3, %s12351_s3 }
 0x425   : > { %2396 = vrot.lane.b32.xlu0 %v7959_v62, %s12351_s3  ;;  %v8393_v21 = vpop.permute.xlu1 %2036 }
 0x427   : > { %v8395_v37 = vpop.permute.xlu0 %2038  ;;  %2398 = vrot.lane.b32.xlu1 %v7970_v32, %s12351_s3 }
 0x428   : > { %12352 = vst [vmem:[#allocation40_spill] sm:$0xff] %v8395_v37 }
 0x429   : > { %2390 = vrot.lane.b32.xlu0 %v7942_v2, %s12351_s3  ;;  %v8401_v53 = vpop.permute.xlu1 %2040 }
 0x42a   : > { %12353 = vst [vmem:[#allocation71_spill] sm:$0xff] %v8401_v53 }
 0x42b   : > { %v8403_v35 = vpop.permute.xlu0 %2042  ;;  %2360 = vrot.lane.b32.xlu1 %v7945_v16, %s12355_s24 }
 0x42c   : > { %12354 = vst [vmem:[#allocation31_spill] sm:$0xff] %v8403_v35 }
 0x42d   : > { %2362 = vrot.lane.b32.xlu0 %v7956_v3, %s12355_s24  ;;  %v8409_v41 = vpop.permute.xlu1 %2044 }
 0x42f   : > { %v8411_v15 = vpop.permute.xlu0 %2062  ;;  %2364 = vrot.lane.b32.xlu1 %v7959_v62, %s12355_s24 }
 0x431   : > { %2366 = vrot.lane.b32.xlu0 %v7970_v32, %s12355_s24  ;;  %v8417_v5 = vpop.permute.xlu1 %2064 }
 0x433   : > { %v2201_v37 = vpop.permute.xlu0 %2200  ;;  %2358 = vrot.lane.b32.xlu1 %v7942_v2, %s12355_s24 }
 0x435   : > { %2328 = vrot.lane.b32.xlu0 %v7945_v16, %s12356_s17  ;;  %v2203_v35 = vpop.permute.xlu1 %2202 }
 0x436   : > { %v2219_v53 = vsel %vm12357_vm0, %v2201_v37, %v2203_v35  ;;  %vm12364_vm0 = vcmp.lt.s32.totalorder %v6984_v25, 127 }
 0x437   : > { %v2205_v17 = vpop.permute.xlu0 %2204  ;;  %2330 = vrot.lane.b32.xlu1 %v7956_v3, %s12356_s17  ;;  %2842 = vmatprep.subr.mxu0 %v2219_v53 }
 0x438   : > { %v2218_v60 = vsel %vm12361_vm9, %v2203_v35, %v2205_v17  ;;  %vm12368_vm9 = vmmov %vm12364_vm0 }
 0x439   : > { %2332 = vrot.lane.b32.xlu0 %v7959_v62, %s12356_s17  ;;  %v8429_v7 = vpop.permute.xlu1 %2206 }
 0x43a   : > { %12358 = vst [vmem:[#allocation32_spill] sm:$0xff] %v8429_v7  ;;  %v2217_v57 = vsel %vm12359_vm8, %v2205_v17, %v8429_v7  ;;  %vm12366_vm8 = vmmov %vm12364_vm0 }
 0x43b   : > { %v8434_v43 = vpop.permute.xlu0 %2198  ;;  %2334 = vrot.lane.b32.xlu1 %v7970_v32, %s12356_s17  ;;  %2913 = vmatprep.subr.mxu1 %v2217_v57 }
 0x43c   : > { %12360 = vst [vmem:[#allocation68_spill] sm:$0xff] %v8434_v43  ;;  %2914 = vmatpush1.msra.mxu1 %v2218_v60  ;;  %v2220_v53 = vsel %vm12362_vm1, %v8434_v43, %v2201_v37  ;;  %vm12369_vm1 = vmmov %vm12364_vm0 }
 0x43d   : > { %2326 = vrot.lane.b32.xlu0 %v7942_v2, %s12356_s17  ;;  %2843 = vmatpush1.msra.mxu0 %v2220_v53  ;;  %v2169_v52 = vpop.permute.xlu1 %2168 }
 0x43f   : > { %v2171_v7 = vpop.permute.xlu0 %2170  ;;  %2296 = vrot.lane.b32.xlu1 %v7945_v16, %s12363_s16 }
 0x440   : > { %v2187_v57 = vsel %vm12364_vm0, %v2169_v52, %v2171_v7  ;;  %vm12373_vm0 = vcmp.lt.s32.totalorder %v6984_v25, 91 }
 0x441   : > { %2298 = vrot.lane.b32.xlu0 %v7956_v3, %s12363_s16  ;;  %2844 = vmatprep.subr.mxu0 %v2187_v57  ;;  %v2173_v60 = vpop.permute.xlu1 %2172 }
 0x442   : > { %v2186_v53 = vsel %vm12368_vm9, %v2171_v7, %v2173_v60  ;;  %vm12375_vm9 = vmmov %vm12373_vm0 }
 0x443   : > { %v8451_v17 = vpop.permute.xlu0 %2174  ;;  %2300 = vrot.lane.b32.xlu1 %v7959_v62, %s12363_s16 }
 0x444   : > { %12365 = vst [vmem:[#allocation23_spill] sm:$0xff] %v8451_v17  ;;  %v2185_v37 = vsel %vm12366_vm8, %v2173_v60, %v8451_v17  ;;  %vm12374_vm8 = vmmov %vm12373_vm0 }
 0x445   : > { %2302 = vrot.lane.b32.xlu0 %v7970_v32, %s12363_s16  ;;  %2915 = vmatprep.subr.mxu1 %v2185_v37  ;;  %v8460_v35 = vpop.permute.xlu1 %2166 }
 0x446   : > { %12367 = vst [vmem:[#allocation24_spill] sm:$0xff] %v8460_v35  ;;  %2916 = vmatpush1.msra.mxu1 %v2186_v53  ;;  %v2188_v57 = vsel %vm12369_vm1, %v8460_v35, %v2169_v52  ;;  %vm12376_vm1 = vmmov %vm12373_vm0 }
 0x447   : > { %v2127_v43 = vpop.permute.xlu0 %2126  ;;  %2294 = vrot.lane.b32.xlu1 %v7942_v2, %s12363_s16  ;;  %2845 = vmatpush1.msra.mxu0 %v2188_v57 }
 0x448   : > { %2917 = vmatprep.subr.mxu1 %v7959_v62  ;;  %2846 = vmatprep.subr.mxu0 %v7945_v16 }
 0x449   : > { %2918 = vmatpush1.msra.mxu1 %v7956_v3  ;;  %2264 = vrot.lane.b32.xlu0 %v7945_v16, %s12370_s21  ;;  %v2129_v7 = vpop.permute.xlu1 %2128 }
 0x44a   : > { %2847 = vmatpush1.msra.mxu0 %v7942_v2  ;;  %v2148_v52 = vsel %vm727_vm2, %v2127_v43, %v2129_v7 }
 0x44b   : > { %v2131_v60 = vpop.permute.xlu0 %2130  ;;  %2266 = vrot.lane.b32.xlu1 %v7956_v3, %s12370_s21  ;;  %2848 = vmatprep.subr.mxu0 %v2148_v52 }
 0x44c   : > { %v2147_v35 = vsel %vm727_vm2, %v2129_v7, %v2131_v60 }
 0x44d   : > { %2268 = vrot.lane.b32.xlu0 %v7959_v62, %s12370_s21  ;;  %v8481_v37 = vpop.permute.xlu1 %2132 }
 0x44e   : > { %12371 = vst [vmem:[#allocation65_spill] sm:$0xff] %v8481_v37  ;;  %v2146_v53 = vsel %vm727_vm2, %v2131_v60, %v8481_v37  ;;  %v8500_v37 = vld [vmem:[%s11829_s1 + $0x18] sm:$0xff] }
 0x44f   : > { %v8486_v57 = vpop.permute.xlu0 %2140  ;;  %2270 = vrot.lane.b32.xlu1 %v7970_v32, %s12370_s21  ;;  %2919 = vmatprep.subr.mxu1 %v2146_v53 }
 0x450   : > { %2920 = vmatpush1.msra.mxu1 %v2147_v35  ;;  %v2149_v52 = vsel %vm727_vm2, %v8486_v57, %v2127_v43  ;;  %2906 = vmatprep.mubr.f32.mxu0 %v8500_v37 }
 0x451   : > { %2262 = vrot.lane.b32.xlu0 %v7942_v2, %s12370_s21  ;;  %2849 = vmatpush1.msra.mxu0 %v2149_v52  ;;  %v2095_v17 = vpop.permute.xlu1 %2094 }
 0x452   : > { %2977 = vmatprep.mubr.f32.mxu1 %v8500_v37 }
 0x453   : > { %v2097_v7 = vpop.permute.xlu0 %2096  ;;  %2232 = vrot.lane.b32.xlu1 %v7945_v16, %s12372_s15 }
 0x454   : > { %v2116_v43 = vsel %vm694_vm3, %v2095_v17, %v2097_v7 }
 0x455   : > { %2234 = vrot.lane.b32.xlu0 %v7956_v3, %s12372_s15  ;;  %2850 = vmatprep.subr.mxu0 %v2116_v43  ;;  %v2099_v35 = vpop.permute.xlu1 %2098 }
 0x456   : > { %v2115_v3 = vsel %vm694_vm3, %v2097_v7, %v2099_v35 }
 0x457   : > { %v8510_v60 = vpop.permute.xlu0 %2100  ;;  %2236 = vrot.lane.b32.xlu1 %v7959_v62, %s12372_s15  ;;  %v2084_v62 = vsel %vm661_vm4, %v8411_v15, %v8417_v5 }
 0x458   : > { %v2114_v53 = vsel %vm694_vm3, %v2099_v35, %v8510_v60 }
 0x459   : > { %2238 = vrot.lane.b32.xlu0 %v7970_v32, %s12372_s15  ;;  %2921 = vmatprep.subr.mxu1 %v2114_v53  ;;  %v8519_v16 = vpop.permute.xlu1 %2108 }
 0x45a   : > { %2922 = vmatpush1.msra.mxu1 %v2115_v3  ;;  %v2117_v52 = vsel %vm694_vm3, %v8519_v16, %v2095_v17  ;;  %v2050_v3 = vsel %vm628_vm5, %v8387_v1, %v8393_v21 }
 0x45b   : > { %v2067_v43 = vpop.permute.xlu0 %2066  ;;  %2230 = vrot.lane.b32.xlu1 %v7942_v2, %s12372_s15  ;;  %2851 = vmatpush1.msra.mxu0 %v2117_v52 }
 0x45c   : > { %2852 = vmatprep.subr.mxu0 %v2084_v62  ;;  %v2083_v2 = vsel %vm661_vm4, %v8417_v5, %v2067_v43  ;;  %v2052_v5 = vsel %vm628_vm5, %v8379_v40, %v8385_v34  ;;  %v2053_v62 = vsel %vm628_vm5, %v8409_v41, %v8379_v40  ;;  %v2021_v40 = vsel %vm595_vm6, %v8377_v63, %v8347_v44 }
 0x45d   : > { %2208 = vrot.lane.b32.xlu0 %v7973_v46, %s12326_s25  ;;  %v8534_v7 = vpop.permute.xlu1 %2068 }
 0x45e   : > { %v2082_v17 = vsel %vm661_vm4, %v2067_v43, %v8534_v7 }
 0x45f   : > { %v8539_v35 = vpop.permute.xlu0 %2076  ;;  %2210 = vrot.lane.b32.xlu1 %v7984_v59, %s12326_s25  ;;  %2923 = vmatprep.subr.mxu1 %v2082_v17  ;;  %v2018_v17 = vsel %vm595_vm6, %v8355_v24, %v8361_v45 }
 0x460   : > { %2924 = vmatpush1.msra.mxu1 %v2083_v2  ;;  %v2085_v53 = vsel %vm661_vm4, %v8539_v35, %v8411_v15  ;;  %v2051_v15 = vsel %vm628_vm5, %v8385_v34, %v8387_v1  ;;  %v2020_v1 = vsel %vm595_vm6, %v8347_v44, %v8353_v47  ;;  %v2019_v34 = vsel %vm595_vm6, %v8353_v47, %v8355_v24 }
 0x461   : > { %2212 = vrot.lane.b32.xlu0 %v7987_v58, %s12326_s25  ;;  %2853 = vmatpush1.msra.mxu0 %v2085_v53  ;;  %v8556_v52 = vpop.permute.xlu1 %2552  ;;  %v1986_v53 = vsel %vm562_vm7, %v8323_v10, %v8329_v13  ;;  %v1988_v24 = vsel %vm562_vm7, %v8315_v49, %v8321_v14  ;;  %v1987_v44 = vsel %vm562_vm7, %v8321_v14, %v8323_v10 }
 0x462   : > { %2925 = vmatprep.subr.mxu1 %v2050_v3  ;;  %2854 = vmatprep.subr.mxu0 %v2052_v5  ;;  %v1989_v3 = vsel %vm562_vm7, %v8345_v50, %v8315_v49  ;;  %v1954_v5 = vsel %vm12373_vm0, %v8291_v51, %v8297_v30  ;;  %v1956_v14 = vsel %vm12374_vm8, %v8283_v61, %v8289_v54  ;;  %vm12377_vm0 = vcmp.lt.s32.totalorder %v6984_v25, 99 }
 0x463   : > { %2926 = vmatpush1.msra.mxu1 %v2051_v15  ;;  %v8566_v43 = vpop.permute.xlu0 %2554  ;;  %2176 = vrot.lane.b32.xlu1 %v7973_v46, %s12330_s29  ;;  %v1955_v10 = vsel %vm12375_vm9, %v8289_v54, %v8291_v51  ;;  %v1957_v49 = vsel %vm12376_vm1, %v8313_v23, %v8283_v61  ;;  %vm12378_vm8 = vmmov %vm12377_vm0 }
 0x464   : > { %2855 = vmatpush1.msra.mxu0 %v2053_v62  ;;  %2927 = vmatprep.subr.mxu1 %v2018_v17  ;;  %v1922_v62 = vsel %vm12377_vm0, %v8259_v48, %v8265_v42  ;;  %v1924_v51 = vsel %vm12378_vm8, %v8251_v8, %v8257_v12  ;;  %vm12379_vm9 = vmmov %vm12377_vm0 }
 0x465   : > { %2856 = vmatprep.subr.mxu0 %v2020_v1  ;;  %2928 = vmatpush1.msra.mxu1 %v2019_v34  ;;  %v8590_v2 = vpop.permute.xlu1 %2556  ;;  %v1923_v61 = vsel %vm12379_vm9, %v8257_v12, %v8259_v48  ;;  %vm12380_vm1 = vmmov %vm12377_vm0  ;;  %vm12381_vm0 = vcmp.lt.s32.totalorder %v6984_v25, 100 }
 0x466   : > { %2178 = vrot.lane.b32.xlu0 %v7984_v59, %s12330_s29  ;;  %2857 = vmatpush1.msra.mxu0 %v2021_v40  ;;  %v1925_v17 = vsel %vm12380_vm1, %v8281_v9, %v8251_v8  ;;  %v1890_v1 = vsel %vm12381_vm0, %v8227_v28, %v8233_v22  ;;  %vm12382_vm8 = vmmov %vm12381_vm0 }
 0x467   : > { %2929 = vmatprep.subr.mxu1 %v1986_v53  ;;  %2858 = vmatprep.subr.mxu0 %v1988_v24  ;;  %v8606_v47 = vpop.permute.xlu0 %2558  ;;  %v1892_v12 = vsel %vm12382_vm8, %v8219_v19, %v8225_v38  ;;  %vm12383_vm9 = vmmov %vm12381_vm0  ;;  %v1858_v53 = vsel %vm12040_vm11, %v8195_v6, %v8201_v18  ;;  %v1861_v24 = vsel %vm12040_vm11, %v8217_v56, %v8187_v27 }
 0x468   : > { %2930 = vmatpush1.msra.mxu1 %v1987_v44  ;;  %2180 = vrot.lane.b32.xlu1 %v7987_v58, %s12330_s29  ;;  %v1891_v48 = vsel %vm12383_vm9, %v8225_v38, %v8227_v28  ;;  %vm12384_vm1 = vmmov %vm12381_vm0  ;;  %v1860_v38 = vsel %vm12040_vm11, %v8187_v27, %v8193_v31  ;;  %vm12385_vm0 = vcmp.lt.s32.totalorder %v6984_v25, 109 }
 0x469   : > { %2859 = vmatpush1.msra.mxu0 %v1989_v3  ;;  %2931 = vmatprep.subr.mxu1 %v1954_v5  ;;  %v8626_v15 = vpop.permute.xlu1 %2550  ;;  %v1893_v8 = vsel %vm12384_vm1, %v8249_v26, %v8219_v19  ;;  %v1859_v19 = vsel %vm12040_vm11, %v8193_v31, %v8195_v6  ;;  %v1826_v44 = vsel %vm12385_vm0, %v8163_v11, %v8169_v29  ;;  %vm12386_vm8 = vmmov %vm12385_vm0  ;;  %vm12410_vm11 = vcmp.lt.s32.totalorder %v6984_v25, 19 }
 0x46a   : > { %2860 = vmatprep.subr.mxu0 %v1956_v14  ;;  %2932 = vmatpush1.msra.mxu1 %v1955_v10  ;;  %v1828_v31 = vsel %vm12386_vm8, %v8155_v4, %v8161_v33  ;;  %vm12387_vm9 = vmmov %vm12385_vm0  ;;  %v12392_v14 = vld [vmem:[#allocation76_spill] sm:$0xff] }
 0x46b   : > { %2134 = vrot.lane.b32.xlu0 %v7970_v32, %s12331_s30  ;;  %2861 = vmatpush1.msra.mxu0 %v1957_v49  ;;  %v8642_v54 = vpop.permute.xlu0 %2520  ;;  %v1827_v6 = vsel %vm12387_vm9, %v8161_v33, %v8163_v11  ;;  %vm12388_vm1 = vmmov %vm12385_vm0  ;;  %vm12389_vm0 = vcmp.lt.s32.totalorder %v6984_v25, 110  ;;  %v12394_v49 = vld [vmem:[#allocation29_spill] sm:$0xff] }
 0x46c   : > { %2933 = vmatprep.subr.mxu1 %v1922_v62  ;;  %2862 = vmatprep.subr.mxu0 %v1924_v51  ;;  %v1829_v27 = vsel %vm12388_vm1, %v8185_v20, %v8155_v4  ;;  %v1794_v5 = vsel %vm12389_vm0, %v8131_v0, %v8137_v36  ;;  %vm12390_vm8 = vmmov %vm12389_vm0  ;;  %v12395_v62 = vld [vmem:[#allocation25_spill] sm:$0xff] }
 0x46d   : > { %2934 = vmatpush1.msra.mxu1 %v1923_v61  ;;  %2136 = vrot.lane.b32.xlu1 %v7973_v46, %s12331_s30  ;;  %v8658_v34 = vpop.permute.xlu1 %2522  ;;  %v1796_v33 = vsel %vm12390_vm8, %v8123_v39, %v8129_v55  ;;  %vm12391_vm9 = vmmov %vm12389_vm0 }
 0x46e   : > { %2863 = vmatpush1.msra.mxu0 %v1925_v17  ;;  %2935 = vmatprep.subr.mxu1 %v1890_v1  ;;  %v1795_v4 = vsel %vm12391_vm9, %v8129_v55, %v8131_v0  ;;  %vm12393_vm1 = vmmov %vm12389_vm0  ;;  %vm12396_vm0 = vcmp.lt.s32.totalorder %v6984_v25, 111  ;;  %v12397_v17 = vld [vmem:[#allocation38_spill] sm:$0xff]  ;;  %v12398_v1 = vld [vmem:[#allocation37_spill] sm:$0xff] }
 0x46f   : > { %2864 = vmatprep.subr.mxu0 %v1892_v12  ;;  %2936 = vmatpush1.msra.mxu1 %v1891_v48  ;;  %v2525_v40 = vpop.permute.xlu0 %2524  ;;  %v1797_v10 = vsel %vm12393_vm1, %v12392_v14, %v8123_v39  ;;  %v1762_v51 = vsel %vm12396_vm0, %v12395_v62, %v12394_v49  ;;  %vm12399_vm8 = vmmov %vm12396_vm0  ;;  %v12401_v39 = vld [vmem:[#allocation81_spill] sm:$0xff] }
 0x470   : > { %2138 = vrot.lane.b32.xlu0 %v7984_v59, %s12331_s30  ;;  %2865 = vmatpush1.msra.mxu0 %v1893_v8  ;;  %v1764_v55 = vsel %vm12399_vm8, %v12398_v1, %v12397_v17  ;;  %vm12400_vm9 = vmmov %vm12396_vm0 }
 0x471   : > { %2937 = vmatprep.subr.mxu1 %v1858_v53  ;;  %2866 = vmatprep.subr.mxu0 %v1860_v38  ;;  %v8686_v28 = vpop.permute.xlu1 %2526  ;;  %v1763_v0 = vsel %vm12400_vm9, %v12397_v17, %v12395_v62  ;;  %vm12402_vm1 = vmmov %vm12396_vm0  ;;  %vm12403_vm0 = vcmp.lt.s32.totalorder %v6984_v25, 17 }
 0x472   : > { %2938 = vmatpush1.msra.mxu1 %v1859_v19  ;;  %2102 = vrot.lane.b32.xlu1 %v7970_v32, %s12335_s9  ;;  %v1765_v12 = vsel %vm12402_vm1, %v12401_v39, %v12398_v1  ;;  %v2569_v8 = vsel %vm12403_vm0, %v8590_v2, %v8606_v47  ;;  %vm12404_vm8 = vmmov %vm12403_vm0 }
 0x473   : > { %2867 = vmatpush1.msra.mxu0 %v1861_v24  ;;  %2939 = vmatprep.subr.mxu1 %v1826_v44  ;;  %v8706_v3 = vpop.permute.xlu0 %2518  ;;  %v2571_v53 = vsel %vm12404_vm8, %v8556_v52, %v8566_v43  ;;  %vm12405_vm9 = vmmov %vm12403_vm0 }
 0x474   : > { %2868 = vmatprep.subr.mxu0 %v1828_v31  ;;  %2940 = vmatpush1.msra.mxu1 %v1827_v6  ;;  %v2570_v38 = vsel %vm12405_vm9, %v8566_v43, %v8590_v2  ;;  %vm12406_vm1 = vmmov %vm12403_vm0  ;;  %vm12407_vm0 = vcmp.lt.s32.totalorder %v6984_v25, 18 }
 0x475   : > { %2104 = vrot.lane.b32.xlu0 %v7973_v46, %s12335_s9  ;;  %2869 = vmatpush1.msra.mxu0 %v1829_v27  ;;  %v2489_v11 = vpop.permute.xlu1 %2488  ;;  %v2572_v24 = vsel %vm12406_vm1, %v8626_v15, %v8556_v52  ;;  %v2537_v44 = vsel %vm12407_vm0, %v2525_v40, %v8686_v28  ;;  %vm12408_vm8 = vmmov %vm12407_vm0 }
 0x476   : > { %2941 = vmatprep.subr.mxu1 %v1794_v5  ;;  %2870 = vmatprep.subr.mxu0 %v1796_v33  ;;  %v2539_v43 = vsel %vm12408_vm8, %v8642_v54, %v8658_v34  ;;  %vm12409_vm9 = vmmov %vm12407_vm0 }
 0x477   : > { %2942 = vmatpush1.msra.mxu1 %v1795_v4  ;;  %2106 = vrot.lane.b32.xlu1 %v7984_v59, %s12335_s9  ;;  %v2491_v61 = vpop.permute.xlu0 %2490  ;;  %v2538_v2 = vsel %vm12409_vm9, %v8658_v34, %v2525_v40  ;;  %vm12411_vm1 = vmmov %vm12407_vm0  ;;  %vm12416_vm9 = vcmp.lt.s32.totalorder %v6984_v25, 27 }
 0x478   : > { %2871 = vmatpush1.msra.mxu0 %v1797_v10  ;;  %2943 = vmatprep.subr.mxu1 %v1762_v51  ;;  %v2507_v31 = vsel %vm12410_vm11, %v2489_v11, %v2491_v61  ;;  %v2540_v52 = vsel %vm12411_vm1, %v8706_v3, %v8642_v54  ;;  %vm12412_vm0 = vmmov %vm12410_vm11 }
 0x479   : > { %2872 = vmatprep.subr.mxu0 %v1764_v55  ;;  %2944 = vmatpush1.msra.mxu1 %v1763_v0  ;;  %v2493_v48 = vpop.permute.xlu1 %2492  ;;  %vm12413_vm8 = vmmov %vm12412_vm0 }
 0x47a   : > { %2070 = vrot.lane.b32.xlu0 %v7970_v32, %s12325_s23  ;;  %2873 = vmatpush1.msra.mxu0 %v1765_v12  ;;  %vm12415_vm11 = vmmov %vm12412_vm0 }
 0x47b   : > { %2955 = vmatprep.subr.mxu1 %v2569_v8  ;;  %2884 = vmatprep.subr.mxu0 %v2571_v53  ;;  %v8762_v19 = vpop.permute.xlu0 %2494  ;;  %v2506_v54 = vsel %vm12415_vm11, %v2491_v61, %v2493_v48  ;;  %vm12417_vm1 = vmmov %vm12416_vm9  ;;  %vm12421_vm11 = vcmp.lt.s32.totalorder %v6984_v25, 28 }
 0x47c   : > { %2956 = vmatpush2.msra.mxu1 %v2570_v38  ;;  %2072 = vrot.lane.b32.xlu1 %v7973_v46, %s12325_s23  ;;  %v2505_v27 = vsel %vm12412_vm0, %v2493_v48, %v8762_v19  ;;  %vm12419_vm0 = vmmov %vm12417_vm1 }
 0x47d   : > { %2885 = vmatpush2.msra.mxu0 %v2572_v24  ;;  %2957 = vmatprep.subr.mxu1 %v2537_v44  ;;  %v8782_v6 = vpop.permute.xlu1 %2486 }
 0x47e   : > { %2886 = vmatprep.subr.mxu0 %v2539_v43  ;;  %2958 = vmatpush2.msra.mxu1 %v2538_v2  ;;  %v2508_v34 = vsel %vm12413_vm8, %v8782_v6, %v2489_v11  ;;  %vm12420_vm8 = vmmov %vm12419_vm0 }
 0x47f   : > { %2074 = vrot.lane.b32.xlu0 %v7984_v59, %s12325_s23  ;;  %2887 = vmatpush2.msra.mxu0 %v2540_v52  ;;  %v2457_v40 = vpop.permute.xlu0 %2456 }
 0x480   : > { %2888 = vmatprep.subr.mxu0 %v2507_v31  ;;  %2560 = vrot.lane.b32.xlu1 %v7973_v46, %s12414_s18 }
 0x481   : > { %2959 = vmatprep.subr.mxu1 %v2505_v27  ;;  %2889 = vmatpush2.msra.mxu0 %v2508_v34  ;;  %v2459_v5 = vpop.permute.xlu1 %2458 }
 0x482   : > { %2960 = vmatpush2.msra.mxu1 %v2506_v54  ;;  %v2475_v33 = vsel %vm12416_vm9, %v2457_v40, %v2459_v5  ;;  %vm12422_vm9 = vmmov %vm12421_vm11 }
 0x483   : > { %2562 = vrot.lane.b32.xlu0 %v7984_v59, %s12414_s18  ;;  %v2461_v11 = vpop.permute.xlu0 %2460  ;;  %2890 = vmatprep.subr.mxu0 %v2475_v33 }
 0x484   : > { %2564 = vrot.lane.b32.xlu1 %v7987_v58, %s12414_s18  ;;  %v2474_v51 = vsel %vm12419_vm0, %v2459_v5, %v2461_v11 }
 0x485   : > { %v8806_v4 = vpop.permute.xlu1 %2462 }
 0x486   : > { %v2473_v10 = vsel %vm12417_vm1, %v2461_v11, %v8806_v4  ;;  %vm12423_vm1 = vmmov %vm12422_vm9 }
 0x487   : > { %2528 = vrot.lane.b32.xlu0 %v7973_v46, %s12418_s28  ;;  %v8813_v62 = vpop.permute.xlu0 %2454  ;;  %2961 = vmatprep.subr.mxu1 %v2473_v10  ;;  %vm12424_vm0 = vmmov %vm12423_vm1 }
 0x488   : > { %2530 = vrot.lane.b32.xlu1 %v7984_v59, %s12418_s28  ;;  %2962 = vmatpush2.msra.mxu1 %v2474_v51  ;;  %v2476_v61 = vsel %vm12420_vm8, %v8813_v62, %v2457_v40  ;;  %vm12425_vm8 = vcmp.lt.s32.totalorder %v6984_v25, 29 }
 0x489   : > { %2891 = vmatpush2.msra.mxu0 %v2476_v61  ;;  %v2425_v17 = vpop.permute.xlu1 %2424 }
 0x48b   : > { %2532 = vrot.lane.b32.xlu0 %v7987_v58, %s12418_s28  ;;  %v2427_v1 = vpop.permute.xlu0 %2426 }
 0x48c   : > { %2496 = vrot.lane.b32.xlu1 %v7973_v46, %s12342_s6  ;;  %v2443_v55 = vsel %vm12421_vm11, %v2425_v17, %v2427_v1  ;;  %vm12426_vm11 = vmmov %vm12425_vm8 }
 0x48d   : > { %2892 = vmatprep.subr.mxu0 %v2443_v55  ;;  %v2429_v0 = vpop.permute.xlu1 %2428 }
 0x48e   : > { %v2442_v53 = vsel %vm12423_vm1, %v2427_v1, %v2429_v0  ;;  %vm12428_vm1 = vmmov %vm12425_vm8 }
 0x48f   : > { %2498 = vrot.lane.b32.xlu0 %v7984_v59, %s12342_s6  ;;  %v8830_v12 = vpop.permute.xlu0 %2430 }
 0x490   : > { %2500 = vrot.lane.b32.xlu1 %v7987_v58, %s12342_s6  ;;  %v2441_v48 = vsel %vm12422_vm9, %v2429_v0, %v8830_v12  ;;  %vm12427_vm9 = vmmov %vm12425_vm8 }
 0x491   : > { %2963 = vmatprep.subr.mxu1 %v2441_v48  ;;  %v8837_v8 = vpop.permute.xlu1 %2422 }
 0x492   : > { %2964 = vmatpush2.msra.mxu1 %v2442_v53  ;;  %v2444_v38 = vsel %vm12424_vm0, %v8837_v8, %v2425_v17  ;;  %vm12431_vm0 = vcmp.lt.s32.totalorder %v6984_v25, 119 }
 0x493   : > { %2464 = vrot.lane.b32.xlu0 %v7973_v46, %s12346_s13  ;;  %v2393_v24 = vpop.permute.xlu0 %2392  ;;  %2893 = vmatpush2.msra.mxu0 %v2444_v38 }
 0x494   : > { %2466 = vrot.lane.b32.xlu1 %v7984_v59, %s12346_s13 }
 0x495   : > { %v2395_v44 = vpop.permute.xlu1 %2394 }
 0x496   : > { %v2411_v43 = vsel %vm12425_vm8, %v2393_v24, %v2395_v44  ;;  %vm12433_vm8 = vmmov %vm12431_vm0 }
 0x497   : > { %2468 = vrot.lane.b32.xlu0 %v7987_v58, %s12346_s13  ;;  %v2397_v2 = vpop.permute.xlu0 %2396  ;;  %2894 = vmatprep.subr.mxu0 %v2411_v43 }
 0x498   : > { %2432 = vrot.lane.b32.xlu1 %v7973_v46, %s12348_s0  ;;  %v2410_v34 = vsel %vm12427_vm9, %v2395_v44, %v2397_v2  ;;  %vm12436_vm9 = vmmov %vm12431_vm0 }
 0x499   : > { %v8854_v31 = vpop.permute.xlu1 %2398 }
 0x49a   : > { %v2409_v52 = vsel %vm12426_vm11, %v2397_v2, %v8854_v31  ;;  %vm12435_vm11 = vmmov %vm12431_vm0 }
 0x49b   : > { %2434 = vrot.lane.b32.xlu0 %v7984_v59, %s12348_s0  ;;  %v8861_v27 = vpop.permute.xlu0 %2390  ;;  %2965 = vmatprep.subr.mxu1 %v2409_v52 }
 0x49c   : > { %2436 = vrot.lane.b32.xlu1 %v7987_v58, %s12348_s0  ;;  %2966 = vmatpush2.msra.mxu1 %v2410_v34  ;;  %v2412_v40 = vsel %vm12428_vm1, %v8861_v27, %v2393_v24  ;;  %vm12437_vm1 = vcmp.lt.s32.totalorder %v6984_v25, 127 }
 0x49d   : > { %2895 = vmatpush2.msra.mxu0 %v2412_v40  ;;  %v2361_v54 = vpop.permute.xlu1 %2360 }
 0x49f   : > { %2400 = vrot.lane.b32.xlu0 %v7973_v46, %s12351_s3  ;;  %v2363_v5 = vpop.permute.xlu0 %2362 }
 0x4a0   : > { %2402 = vrot.lane.b32.xlu1 %v7984_v59, %s12351_s3  ;;  %v2379_v33 = vsel %vm966_vm12, %v2361_v54, %v2363_v5 }
 0x4a1   : > { %2896 = vmatprep.subr.mxu0 %v2379_v33  ;;  %v2365_v11 = vpop.permute.xlu1 %2364 }
 0x4a2   : > { %v2378_v17 = vsel %vm966_vm12, %v2363_v5, %v2365_v11 }
 0x4a3   : > { %2404 = vrot.lane.b32.xlu0 %v7987_v58, %s12351_s3  ;;  %v8878_v10 = vpop.permute.xlu0 %2366 }
 0x4a4   : > { %2368 = vrot.lane.b32.xlu1 %v7973_v46, %s12355_s24  ;;  %v2377_v51 = vsel %vm966_vm12, %v2365_v11, %v8878_v10  ;;  %v6269_v11 = vmov 1  }
 0x4a5   : > { %2967 = vmatprep.subr.mxu1 %v2377_v51  ;;  %v8885_v61 = vpop.permute.xlu1 %2358  ;;  %6128 = vset.pattern.permute.xlu0 %v6269_v11 }
 0x4a6   : > { %2968 = vmatpush2.msra.mxu1 %v2378_v17  ;;  %v2380_v1 = vsel %vm966_vm12, %v8885_v61, %v2361_v54 }
 0x4a7   : > { %2370 = vrot.lane.b32.xlu0 %v7984_v59, %s12355_s24  ;;  %v2329_v55 = vpop.permute.xlu0 %2328  ;;  %2897 = vmatpush2.msra.mxu0 %v2380_v1 }
 0x4a8   : > { %2372 = vrot.lane.b32.xlu1 %v7987_v58, %s12355_s24 }
 0x4a9   : > { %v2331_v0 = vpop.permute.xlu1 %2330 }
 0x4aa   : > { %v2347_v48 = vsel %vm933_vm14, %v2329_v55, %v2331_v0 }
 0x4ab   : > { %2336 = vrot.lane.b32.xlu0 %v7973_v46, %s12356_s17  ;;  %v2333_v53 = vpop.permute.xlu0 %2332  ;;  %2898 = vmatprep.subr.mxu0 %v2347_v48 }
 0x4ac   : > { %2338 = vrot.lane.b32.xlu1 %v7984_v59, %s12356_s17  ;;  %v2346_v43 = vsel %vm933_vm14, %v2331_v0, %v2333_v53 }
 0x4ad   : > { %v8902_v38 = vpop.permute.xlu1 %2334 }
 0x4ae   : > { %v2345_v24 = vsel %vm933_vm14, %v2333_v53, %v8902_v38 }
 0x4af   : > { %2340 = vrot.lane.b32.xlu0 %v7987_v58, %s12356_s17  ;;  %v8909_v44 = vpop.permute.xlu0 %2326  ;;  %2969 = vmatprep.subr.mxu1 %v2345_v24 }
 0x4b0   : > { %2304 = vrot.lane.b32.xlu1 %v7973_v46, %s12363_s16  ;;  %2970 = vmatpush2.msra.mxu1 %v2346_v43  ;;  %v2348_v2 = vsel %vm933_vm14, %v8909_v44, %v2329_v55 }
 0x4b1   : > { %2899 = vmatpush2.msra.mxu0 %v2348_v2  ;;  %v2297_v52 = vpop.permute.xlu1 %2296 }
 0x4b3   : > { %2306 = vrot.lane.b32.xlu0 %v7984_v59, %s12363_s16  ;;  %v2299_v34 = vpop.permute.xlu0 %2298 }
 0x4b4   : > { %2308 = vrot.lane.b32.xlu1 %v7987_v58, %s12363_s16  ;;  %v2315_v40 = vsel %vm900_vm15, %v2297_v52, %v2299_v34 }
 0x4b5   : > { %2900 = vmatprep.subr.mxu0 %v2315_v40  ;;  %v2301_v54 = vpop.permute.xlu1 %2300 }
 0x4b6   : > { %v2314_v17 = vsel %vm900_vm15, %v2299_v34, %v2301_v54  ;;  %v6136_v34 = vld [vmem:[%s11830_s2] sm:$0xff] }
 0x4b7   : > { %2272 = vrot.lane.b32.xlu0 %v7973_v46, %s12370_s21  ;;  %v8926_v5 = vpop.permute.xlu0 %2302 }
 0x4b8   : > { %2274 = vrot.lane.b32.xlu1 %v7984_v59, %s12370_s21  ;;  %v2313_v33 = vsel %vm900_vm15, %v2301_v54, %v8926_v5 }
 0x4b9   : > { %2971 = vmatprep.subr.mxu1 %v2313_v33  ;;  %v8933_v51 = vpop.permute.xlu1 %2294 }
 0x4ba   : > { %2972 = vmatpush2.msra.mxu1 %v2314_v17  ;;  %v2316_v1 = vsel %vm900_vm15, %v8933_v51, %v2297_v52 }
 0x4bb   : > { %2276 = vrot.lane.b32.xlu0 %v7987_v58, %s12370_s21  ;;  %v2265_v55 = vpop.permute.xlu0 %2264  ;;  %2901 = vmatpush2.msra.mxu0 %v2316_v1 }
 0x4bc   : > { %2240 = vrot.lane.b32.xlu1 %v7973_v46, %s12372_s15 }
 0x4bd   : > { %v2267_v0 = vpop.permute.xlu1 %2266 }
 0x4be   : > { %v2283_v48 = vsel %vm867_vm10, %v2265_v55, %v2267_v0 }
 0x4bf   : > { %2242 = vrot.lane.b32.xlu0 %v7984_v59, %s12372_s15  ;;  %v2269_v53 = vpop.permute.xlu0 %2268  ;;  %2902 = vmatprep.subr.mxu0 %v2283_v48 }
 0x4c0   : > { %2244 = vrot.lane.b32.xlu1 %v7987_v58, %s12372_s15  ;;  %v2282_v52 = vsel %vm867_vm10, %v2267_v0, %v2269_v53 }
 0x4c1   : > { %v8950_v24 = vpop.permute.xlu1 %2270 }
 0x4c2   : > { %v2281_v43 = vsel %vm867_vm10, %v2269_v53, %v8950_v24  ;;  %v8979_v53 = vld [vmem:[%s11829_s1 + $0x10] sm:$0xff] }
 0x4c3   : > { %v8955_v2 = vpop.permute.xlu0 %2262  ;;  %2973 = vmatprep.subr.mxu1 %v2281_v43  ;;  %2839 = vperm.xlu0 %6128, %v6136_v34   ;;  %12430 = vst [vmem:[#allocation59_spill] sm:$0xff] %v8979_v53 }
 0x4c4   : > { %2974 = vmatpush2.msra.mxu1 %v2282_v52  ;;  %v2284_v40 = vsel %vm867_vm10, %v8955_v2, %v2265_v55 }
 0x4c5   : > { %2903 = vmatpush2.msra.mxu0 %v2284_v40  ;;  %v2233_v54 = vpop.permute.xlu1 %2232 }
 0x4c7   : > { %v2235_v33 = vpop.permute.xlu0 %2234 }
 0x4c8   : > { %v2251_v11 = vsel %vm834_vm13, %v2233_v54, %v2235_v33 }
 0x4c9   : > { %2904 = vmatprep.subr.mxu0 %v2251_v11  ;;  %v2237_v17 = vpop.permute.xlu1 %2236  ;;  %v12432_v11 = vld [vmem:[#allocation32_spill] sm:$0xff] }
 0x4ca   : > { %v2250_v55 = vsel %vm834_vm13, %v2235_v33, %v2237_v17 }
 0x4cb   : > { %v8967_v1 = vpop.permute.xlu0 %2238 }
 0x4cc   : > { %v2249_v0 = vsel %vm834_vm13, %v2237_v17, %v8967_v1  ;;  %v12434_v17 = vld [vmem:[#allocation68_spill] sm:$0xff] }
 0x4cd   : > { %2975 = vmatprep.subr.mxu1 %v2249_v0  ;;  %v8972_v48 = vpop.permute.xlu1 %2230 }
 0x4ce   : > { %12429 = vst [vmem:[#allocation62_spill] sm:$0xff] %v8972_v48  ;;  %2976 = vmatpush2.msra.mxu1 %v2250_v55  ;;  %v2252_v43 = vsel %vm834_vm13, %v8972_v48, %v2233_v54  ;;  %v12438_v48 = vld [vmem:[#allocation23_spill] sm:$0xff] }
 0x4cf   : > { %v2209_v52 = vpop.permute.xlu0 %2208  ;;  %2905 = vmatpush2.msra.mxu0 %v2252_v43  ;;  %2978 = vmatmul.mubr.f32.vlgmr.msra.gmra.mxu1 %v8979_v53 }
 0x4d0   : > { %2907 = vmatmul.mubr.f32.vlgmr.msra.gmra.mxu0 %v8979_v53  ;;  %3119 = vmatprep.mubr.f32.mxu1 %v8500_v37  ;;  %v2216_v54 = vsel %vm12433_vm8, %v12432_v11, %v2209_v52  ;;  %v12440_v11 = vld [vmem:[#allocation24_spill] sm:$0xff] }
 0x4d1   : > { %v2211_v34 = vpop.permute.xlu1 %2210  ;;  %3048 = vmatprep.mubr.f32.mxu0 %v8500_v37 }
 0x4d2   : > { %v2215_v40 = vsel %vm12431_vm0, %v2209_v52, %v2211_v34  ;;  %vm12439_vm0 = vmmov %vm12437_vm1 }
 0x4d3   : > { %v2213_v33 = vpop.permute.xlu0 %2212  ;;  %2984 = vmatprep.subr.mxu0 %v2215_v40  ;;  %vm12441_vm8 = vmmov %vm12439_vm0 }
 0x4d4   : > { %2985 = vmatpush1.msra.mxu0 %v2216_v54  ;;  %v2221_v0 = vsel %vm12435_vm11, %v2213_v33, %v12434_v17  ;;  %v2214_v55 = vsel %vm12436_vm9, %v2211_v34, %v2213_v33  ;;  %vm12442_vm11 = vmmov %vm12439_vm0  ;;  %v12443_v17 = vld [vmem:[#allocation65_spill] sm:$0xff]  ;;  %vm12454_vm9 = vcmp.lt.s32.totalorder %v6984_v25, 91 }
 0x4d5   : > { %3055 = vmatprep.subr.mxu1 %v2221_v0  ;;  %v2177_v43 = vpop.permute.xlu1 %2176 }
 0x4d6   : > { %3056 = vmatpush1.msra.mxu1 %v2214_v55  ;;  %v2184_v52 = vsel %vm12439_vm0, %v12438_v48, %v2177_v43  ;;  %vm12459_vm0 = vcmp.lt.s32.totalorder %v6984_v25, 99 }
 0x4d8   : > { %v2179_v37 = vpop.permute.xlu0 %2178 }
 0x4d9   : > { %v2183_v53 = vsel %vm12437_vm1, %v2177_v43, %v2179_v37  ;;  %vm12456_vm1 = vmmov %vm12454_vm9 }
 0x4da   : > { %2986 = vmatprep.subr.mxu0 %v2183_v53  ;;  %v2181_v40 = vpop.permute.xlu1 %2180 }
 0x4db   : > { %2987 = vmatpush1.msra.mxu0 %v2184_v52  ;;  %v2189_v54 = vsel %vm12441_vm8, %v2181_v40, %v12440_v11  ;;  %v2182_v34 = vsel %vm12442_vm11, %v2179_v37, %v2181_v40  ;;  %vm12461_vm8 = vmmov %vm12456_vm1 }
 0x4dc   : > { %2988 = vmatprep.subr.mxu0 %v7973_v46  ;;  %3057 = vmatprep.subr.mxu1 %v2189_v54  ;;  %vm12462_vm11 = vmmov %vm12459_vm0 }
 0x4dd   : > { %v2135_v33 = vpop.permute.xlu0 %2134  ;;  %2989 = vmatpush1.msra.mxu0 %v7970_v32  ;;  %3058 = vmatpush1.msra.mxu1 %v2182_v34 }
 0x4de   : > { %3059 = vmatprep.subr.mxu1 %v7987_v58  ;;  %v2145_v0 = vsel %vm727_vm2, %v12443_v17, %v2135_v33 }
 0x4df   : > { %v2137_v53 = vpop.permute.xlu1 %2136  ;;  %3060 = vmatpush1.msra.mxu1 %v7984_v59 }
 0x4e0   : > { %v2144_v48 = vsel %vm727_vm2, %v2135_v33, %v2137_v53 }
 0x4e1   : > { %2990 = vmatprep.subr.mxu0 %v2144_v48  ;;  %v12445_v48 = vld [vmem:[#allocation40_spill] sm:$0xff] }
 0x4e2   : > { %v2139_v55 = vpop.permute.xlu0 %2138  ;;  %2991 = vmatpush1.msra.mxu0 %v2145_v0 }
 0x4e3   : > { %v2142_v32 = vsel %vm727_vm2, %v2139_v55, %v8486_v57  ;;  %v2143_v46 = vsel %vm727_vm2, %v2137_v53, %v2139_v55  ;;  %v12444_v53 = vld [vmem:[#allocation71_spill] sm:$0xff]  ;;  %v2049_v55 = vsel %vm628_vm5, %v8393_v21, %v12445_v48 }
 0x4e4   : > { %3061 = vmatprep.subr.mxu1 %v2142_v32  ;;  %v2103_v58 = vpop.permute.xlu1 %2102  ;;  %v12446_v32 = vld [vmem:[#allocation74_spill] sm:$0xff] }
 0x4e5   : > { %3062 = vmatpush1.msra.mxu1 %v2143_v46  ;;  %v2113_v40 = vsel %vm694_vm3, %v8510_v60, %v2103_v58  ;;  %v12447_v46 = vld [vmem:[#allocation47_spill] sm:$0xff] }
 0x4e6   : > { %v2017_v21 = vsel %vm595_vm6, %v8361_v45, %v12447_v46 }
 0x4e7   : > { %v2105_v59 = vpop.permute.xlu0 %2104 }
 0x4e8   : > { %v2112_v43 = vsel %vm694_vm3, %v2103_v58, %v2105_v59  ;;  %v2016_v58 = vsel %vm595_vm6, %v12447_v46, %v12446_v32 }
 0x4e9   : > { %2992 = vmatprep.subr.mxu0 %v2112_v43  ;;  %v2107_v37 = vpop.permute.xlu1 %2106 }
 0x4ea   : > { %2993 = vmatpush1.msra.mxu0 %v2113_v40  ;;  %v2110_v57 = vsel %vm694_vm3, %v2107_v37, %v8519_v16  ;;  %v2111_v52 = vsel %vm694_vm3, %v2105_v59, %v2107_v37  ;;  %v2048_v16 = vsel %vm628_vm5, %v12445_v48, %v12444_v53  ;;  %v12449_v40 = vld [vmem:[#allocation77_spill] sm:$0xff] }
 0x4eb   : > { %3063 = vmatprep.subr.mxu1 %v2110_v57  ;;  %v12450_v57 = vld [vmem:[#allocation53_spill] sm:$0xff] }
 0x4ec   : > { %v2071_v11 = vpop.permute.xlu0 %2070  ;;  %3064 = vmatpush1.msra.mxu1 %v2111_v52  ;;  %v1984_v52 = vsel %vm562_vm7, %v12450_v57, %v12449_v40 }
 0x4ed   : > { %v2081_v60 = vsel %vm661_vm4, %v8534_v7, %v2071_v11 }
 0x4ee   : > { %v2073_v54 = vpop.permute.xlu1 %2072 }
 0x4ef   : > { %v2080_v34 = vsel %vm661_vm4, %v2071_v11, %v2073_v54 }
 0x4f0   : > { %2994 = vmatprep.subr.mxu0 %v2080_v34 }
 0x4f1   : > { %v2075_v33 = vpop.permute.xlu0 %2074  ;;  %2995 = vmatpush1.msra.mxu0 %v2081_v60  ;;  %v12452_v60 = vld [vmem:[#allocation80_spill] sm:$0xff] }
 0x4f2   : > { %2996 = vmatprep.subr.mxu0 %v2048_v16  ;;  %v2078_v17 = vsel %vm661_vm4, %v2075_v33, %v8539_v35  ;;  %v9044_v0 = vpop.permute.xlu1 %2560  ;;  %v2079_v7 = vsel %vm661_vm4, %v2073_v54, %v2075_v33  ;;  %v12448_v35 = vld [vmem:[#allocation31_spill] sm:$0xff]  ;;  %v1985_v54 = vsel %vm562_vm7, %v8329_v13, %v12450_v57  ;;  %v12453_v33 = vld [vmem:[#allocation58_spill] sm:$0xff] }
 0x4f3   : > { %3065 = vmatprep.subr.mxu1 %v2078_v17  ;;  %2997 = vmatpush1.msra.mxu0 %v2049_v55  ;;  %v2046_v59 = vsel %vm628_vm5, %v12448_v35, %v8409_v41  ;;  %v2047_v37 = vsel %vm628_vm5, %v12444_v53, %v12448_v35  ;;  %v12451_v41 = vld [vmem:[#allocation39_spill] sm:$0xff]  ;;  %v1952_v53 = vsel %vm12454_vm9, %v12453_v33, %v12452_v60  ;;  %v12457_v55 = vld [vmem:[#allocation61_spill] sm:$0xff]  ;;  %vm12463_vm9 = vmmov %vm12456_vm1 }
 0x4f4   : > { %3066 = vmatpush1.msra.mxu1 %v2079_v7  ;;  %2998 = vmatprep.subr.mxu0 %v2016_v58  ;;  %v2014_v45 = vsel %vm595_vm6, %v12451_v41, %v8377_v63  ;;  %v2015_v34 = vsel %vm595_vm6, %v12446_v32, %v12451_v41  ;;  %v12455_v63 = vld [vmem:[#allocation46_spill] sm:$0xff]  ;;  %v1953_v13 = vsel %vm12456_vm1, %v8297_v30, %v12453_v33  ;;  %v12458_v7 = vld [vmem:[#allocation60_spill] sm:$0xff]  ;;  %vm12466_vm1 = vcmp.lt.s32.totalorder %v6984_v25, 100 }
 0x4f5   : > { %v9064_v43 = vpop.permute.xlu0 %2562  ;;  %3067 = vmatprep.subr.mxu1 %v2046_v59  ;;  %2999 = vmatpush1.msra.mxu0 %v2017_v21  ;;  %v1982_v48 = vsel %vm562_vm7, %v12455_v63, %v8345_v50  ;;  %v1983_v17 = vsel %vm562_vm7, %v12449_v40, %v12455_v63  ;;  %v1920_v32 = vsel %vm12459_vm0, %v12458_v7, %v12457_v55  ;;  %v12460_v50 = vld [vmem:[#allocation52_spill] sm:$0xff]  ;;  %v12464_v59 = vld [vmem:[#allocation63_spill] sm:$0xff]  ;;  %v12465_v21 = vld [vmem:[#allocation82_spill] sm:$0xff] }
 0x4f6   : > { %3068 = vmatpush1.msra.mxu1 %v2047_v37  ;;  %3000 = vmatprep.subr.mxu0 %v1984_v52  ;;  %v9078_v11 = vpop.permute.xlu1 %2564  ;;  %v1950_v30 = vsel %vm12461_vm8, %v12460_v50, %v8313_v23  ;;  %v1921_v58 = vsel %vm12462_vm11, %v8265_v42, %v12458_v7  ;;  %v1951_v35 = vsel %vm12463_vm9, %v12452_v60, %v12460_v50  ;;  %v12467_v23 = vld [vmem:[#allocation57_spill] sm:$0xff]  ;;  %vm12468_vm8 = vmmov %vm12466_vm1  ;;  %v12470_v41 = vld [vmem:[#allocation66_spill] sm:$0xff]  ;;  %vm12472_vm9 = vcmp.lt.s32.totalorder %v6984_v25, 101 }
 0x4f7   : > { %3069 = vmatprep.subr.mxu1 %v2014_v45  ;;  %3001 = vmatpush1.msra.mxu0 %v1985_v54  ;;  %v1888_v37 = vsel %vm12466_vm1, %v12465_v21, %v12464_v59  ;;  %v1918_v40 = vsel %vm12459_vm0, %v12467_v23, %v8281_v9  ;;  %v1889_v42 = vsel %vm12468_vm8, %v8233_v22, %v12465_v21  ;;  %vm12469_vm11 = vmmov %vm12459_vm0  ;;  %v12471_v45 = vld [vmem:[#allocation70_spill] sm:$0xff]  ;;  %v12473_v9 = vld [vmem:[#allocation64_spill] sm:$0xff] }
 0x4f8   : > { %3070 = vmatpush1.msra.mxu1 %v2015_v34  ;;  %3002 = vmatprep.subr.mxu0 %v1952_v53  ;;  %v1919_v52 = vsel %vm12469_vm11, %v12457_v55, %v12467_v23  ;;  %v1856_v54 = vsel %vm12472_vm9, %v12471_v45, %v12470_v41  ;;  %v1886_v22 = vsel %vm12466_vm1, %v12473_v9, %v8249_v26  ;;  %vm12474_vm0 = vmmov %vm12472_vm9  ;;  %v12476_v53 = vld [vmem:[#allocation73_spill] sm:$0xff]  ;;  %v12477_v63 = vld [vmem:[#allocation72_spill] sm:$0xff]  ;;  %vm12478_vm11 = vcmp.lt.s32.totalorder %v6984_v25, 109 }
 0x4f9   : > { %v9100_v16 = vpop.permute.xlu0 %2528  ;;  %3071 = vmatprep.subr.mxu1 %v1982_v48  ;;  %3003 = vmatpush1.msra.mxu0 %v1953_v13  ;;  %v1857_v60 = vsel %vm12474_vm0, %v8201_v18, %v12471_v45  ;;  %vm12475_vm8 = vmmov %vm12466_vm1  ;;  %v1824_v48 = vsel %vm12478_vm11, %v12477_v63, %v12476_v53  ;;  %v12479_v26 = vld [vmem:[#allocation67_spill] sm:$0xff]  ;;  %v12489_v21 = vld [vmem:[#allocation30_spill] sm:$0xff] }
 0x4fa   : > { %3072 = vmatpush1.msra.mxu1 %v1983_v17  ;;  %3004 = vmatprep.subr.mxu0 %v1920_v32  ;;  %v9114_v46 = vpop.permute.xlu1 %2530  ;;  %v1887_v33 = vsel %vm12475_vm8, %v12464_v59, %v12473_v9  ;;  %vm12480_vm9 = vmmov %vm12474_vm0  ;;  %v1855_v55 = vsel %vm12474_vm0, %v12470_v41, %v12479_v26  ;;  %v12482_v7 = vld [vmem:[#allocation79_spill] sm:$0xff]  ;;  %v12483_v32 = vld [vmem:[#allocation78_spill] sm:$0xff]  ;;  %vm12484_vm8 = vcmp.lt.s32.totalorder %v6984_v25, 110  ;;  %vm12490_vm0 = vcmp.lt.s32.totalorder %v6984_v25, 111 }
 0x4fb   : > { %3073 = vmatprep.subr.mxu1 %v1950_v30  ;;  %3005 = vmatpush1.msra.mxu0 %v1921_v58  ;;  %v1854_v13 = vsel %vm12480_vm9, %v12479_v26, %v8217_v56  ;;  %vm12481_vm1 = vmmov %vm12478_vm11  ;;  %v1792_v50 = vsel %vm12484_vm8, %v12483_v32, %v12482_v7  ;;  %v12485_v56 = vld [vmem:[#allocation69_spill] sm:$0xff] }
 0x4fc   : > { %3074 = vmatpush1.msra.mxu1 %v1951_v35  ;;  %3006 = vmatprep.subr.mxu0 %v1888_v37  ;;  %v1825_v18 = vsel %vm12481_vm1, %v8169_v29, %v12477_v63  ;;  %vm12486_vm11 = vmmov %vm12481_vm1  ;;  %v1823_v35 = vsel %vm12481_vm1, %v12476_v53, %v12485_v56  ;;  %v12488_v59 = vld [vmem:[#allocation21_spill] sm:$0xff]  ;;  %vm12494_vm1 = vcmp.lt.s32.totalorder %v6984_v25, 17 }
 0x4fd   : > { %v9136_v57 = vpop.permute.xlu0 %2532  ;;  %3075 = vmatprep.subr.mxu1 %v1918_v40  ;;  %3007 = vmatpush1.msra.mxu0 %v1889_v42  ;;  %v1822_v29 = vsel %vm12486_vm11, %v12485_v56, %v8185_v20  ;;  %vm12487_vm9 = vmmov %vm12484_vm8  ;;  %v1760_v37 = vsel %vm12490_vm0, %v12489_v21, %v12488_v59  ;;  %v12491_v20 = vld [vmem:[#allocation75_spill] sm:$0xff] }
 0x4fe   : > { %3076 = vmatpush1.msra.mxu1 %v1919_v52  ;;  %3008 = vmatprep.subr.mxu0 %v1856_v54  ;;  %v2497_v34 = vpop.permute.xlu1 %2496  ;;  %v1793_v58 = vsel %vm12487_vm9, %v8137_v36, %v12483_v32  ;;  %v1790_v23 = vsel %vm12484_vm8, %v12491_v20, %v12392_v14  ;;  %vm12492_vm11 = vmmov %vm12490_vm0  ;;  %v2567_v52 = vsel %vm12494_vm1, %v9044_v0, %v9064_v43  ;;  %v12495_v14 = vld [vmem:[#allocation19_spill] sm:$0xff] }
 0x4ff   : > { %3077 = vmatprep.subr.mxu1 %v1886_v22  ;;  %3009 = vmatpush1.msra.mxu0 %v1857_v60  ;;  %v1761_v36 = vsel %vm12492_vm11, %v12394_v49, %v12489_v21  ;;  %vm12493_vm9 = vmmov %vm12484_vm8  ;;  %v1758_v49 = vsel %vm12490_vm0, %v12495_v14, %v12401_v39  ;;  %v2573_v39 = vsel %vm12494_vm1, %v9078_v11, %v8626_v15 }
 0x500   : > { %3078 = vmatpush1.msra.mxu1 %v1887_v33  ;;  %3010 = vmatprep.subr.mxu0 %v1824_v48  ;;  %v1791_v42 = vsel %vm12493_vm9, %v12482_v7, %v12491_v20  ;;  %vm12496_vm8 = vmmov %vm12494_vm1  ;;  %vm12498_vm9 = vcmp.lt.s32.totalorder %v6984_v25, 18 }
 0x501   : > { %v2499_v17 = vpop.permute.xlu0 %2498  ;;  %3079 = vmatprep.subr.mxu1 %v1854_v13  ;;  %3011 = vmatpush1.msra.mxu0 %v1825_v18  ;;  %v2568_v45 = vsel %vm12496_vm8, %v8606_v47, %v9044_v0  ;;  %vm12497_vm11 = vmmov %vm12490_vm0  ;;  %v2535_v9 = vsel %vm12498_vm9, %v9100_v16, %v9114_v46 }
 0x502   : > { %3080 = vmatpush1.msra.mxu1 %v1855_v55  ;;  %3012 = vmatprep.subr.mxu0 %v1792_v50  ;;  %v2501_v30 = vpop.permute.xlu1 %2500  ;;  %v1759_v54 = vsel %vm12497_vm11, %v12488_v59, %v12495_v14  ;;  %vm12499_vm0 = vmmov %vm12498_vm9  ;;  %vm12501_vm11 = vcmp.lt.s32.totalorder %v6984_v25, 19 }
 0x503   : > { %3081 = vmatprep.subr.mxu1 %v1822_v29  ;;  %3013 = vmatpush1.msra.mxu0 %v1793_v58  ;;  %v2536_v47 = vsel %vm12499_vm0, %v8686_v28, %v9100_v16  ;;  %vm12500_vm8 = vmmov %vm12494_vm1  ;;  %v2503_v60 = vsel %vm12501_vm11, %v2497_v34, %v2499_v17 }
 0x504   : > { %3082 = vmatpush1.msra.mxu1 %v1823_v35  ;;  %3014 = vmatprep.subr.mxu0 %v1760_v37  ;;  %v2566_v22 = vsel %vm12500_vm8, %v9064_v43, %v9078_v11  ;;  %vm12502_vm9 = vmmov %vm12499_vm0  ;;  %v2534_v43 = vsel %vm12499_vm0, %v9114_v46, %v9136_v57  ;;  %vm12504_vm8 = vcmp.lt.s32.totalorder %v6984_v25, 27  ;;  %vm12507_vm0 = vcmp.lt.s32.totalorder %v6984_v25, 28 }
 0x505   : > { %v2465_v40 = vpop.permute.xlu0 %2464  ;;  %3083 = vmatprep.subr.mxu1 %v1790_v23  ;;  %3015 = vmatpush1.msra.mxu0 %v1761_v36  ;;  %v2541_v15 = vsel %vm12502_vm9, %v9136_v57, %v8706_v3  ;;  %vm12503_vm1 = vmmov %vm12501_vm11 }
 0x506   : > { %3084 = vmatpush1.msra.mxu1 %v1791_v42  ;;  %3026 = vmatprep.subr.mxu0 %v2567_v52  ;;  %v2467_v41 = vpop.permute.xlu1 %2466  ;;  %v2504_v28 = vsel %vm12503_vm1, %v8762_v19, %v2497_v34  ;;  %vm12505_vm11 = vmmov %vm12503_vm1  ;;  %v2502_v34 = vsel %vm12503_vm1, %v2499_v17, %v2501_v30 }
 0x507   : > { %3085 = vmatprep.subr.mxu1 %v1758_v49  ;;  %3027 = vmatpush2.msra.mxu0 %v2568_v45  ;;  %v2471_v11 = vsel %vm12504_vm8, %v2465_v40, %v2467_v41  ;;  %v2509_v3 = vsel %vm12505_vm11, %v2501_v30, %v8782_v6  ;;  %vm12506_vm9 = vmmov %vm12504_vm8 }
 0x508   : > { %3086 = vmatpush1.msra.mxu1 %v1759_v54  ;;  %3028 = vmatprep.subr.mxu0 %v2535_v9  ;;  %v2472_v19 = vsel %vm12506_vm9, %v8806_v4, %v2465_v40  ;;  %vm12508_vm11 = vmmov %vm12504_vm8 }
 0x509   : > { %v2469_v0 = vpop.permute.xlu0 %2468  ;;  %3097 = vmatprep.subr.mxu1 %v2573_v39  ;;  %3029 = vmatpush2.msra.mxu0 %v2536_v47  ;;  %vm12509_vm9 = vmmov %vm12507_vm0  ;;  %v12515_v39 = vld [vmem:[#allocation62_spill] sm:$0xff] }
 0x50a   : > { %3098 = vmatpush2.msra.mxu1 %v2566_v22  ;;  %3030 = vmatprep.subr.mxu0 %v2503_v60  ;;  %v2433_v33 = vpop.permute.xlu1 %2432  ;;  %v2477_v57 = vsel %vm12504_vm8, %v2469_v0, %v8813_v62  ;;  %v2470_v6 = vsel %vm12508_vm11, %v2467_v41, %v2469_v0  ;;  %vm12510_vm1 = vmmov %vm12507_vm0  ;;  %vm12511_vm8 = vcmp.lt.s32.totalorder %v6984_v25, 29  ;;  %v12516_v0 = vld [vmem:[#allocation59_spill] sm:$0xff] }
 0x50b   : > { %3099 = vmatprep.subr.mxu1 %v2541_v15  ;;  %3031 = vmatpush2.msra.mxu0 %v2504_v28  ;;  %v2440_v4 = vsel %vm12509_vm9, %v8830_v12, %v2433_v33  ;;  %vm12512_vm11 = vmmov %vm12511_vm8 }
 0x50c   : > { %3100 = vmatpush2.msra.mxu1 %v2534_v43  ;;  %3032 = vmatprep.subr.mxu0 %v2471_v11  ;;  %vm12513_vm9 = vmmov %vm12511_vm8 }
 0x50d   : > { %v2435_v16 = vpop.permute.xlu0 %2434  ;;  %3101 = vmatprep.subr.mxu1 %v2509_v3  ;;  %3033 = vmatpush2.msra.mxu0 %v2472_v19 }
 0x50e   : > { %3102 = vmatpush2.msra.mxu1 %v2502_v34  ;;  %v2439_v46 = vsel %vm12507_vm0, %v2433_v33, %v2435_v16  ;;  %v2437_v53 = vpop.permute.xlu1 %2436  ;;  %v12517_v34 = vld [vmem:[#allocation28_spill] sm:$0xff] }
 0x50f   : > { %3034 = vmatprep.subr.mxu0 %v2439_v46  ;;  %3103 = vmatprep.subr.mxu1 %v2477_v57  ;;  %v2445_v63 = vsel %vm12510_vm1, %v2437_v53, %v8837_v8  ;;  %v2438_v48 = vsel %vm12507_vm0, %v2435_v16, %v2437_v53  ;;  %vm12514_vm1 = vmmov %vm12511_vm8  ;;  %v12518_v57 = vld [vmem:[#allocation41_spill] sm:$0xff]  ;;  %vm12546_vm0 = vcmp.lt.s32.totalorder %v6984_v25, 119 }
 0x510   : > { %3035 = vmatpush2.msra.mxu0 %v2440_v4  ;;  %3104 = vmatpush2.msra.mxu1 %v2470_v6  ;;  %v12520_v4 = vld [vmem:[#allocation27_spill] sm:$0xff] }
 0x511   : > { %v2401_v62 = vpop.permute.xlu0 %2400  ;;  %3105 = vmatprep.subr.mxu1 %v2445_v63 }
 0x512   : > { %3106 = vmatpush2.msra.mxu1 %v2438_v48  ;;  %v2403_v26 = vpop.permute.xlu1 %2402  ;;  %v2408_v12 = vsel %vm12512_vm11, %v8854_v31, %v2401_v62  ;;  %vm12548_vm11 = vcmp.lt.s32.totalorder %v6984_v25, 127 }
 0x513   : > { %v2407_v13 = vsel %vm12511_vm8, %v2401_v62, %v2403_v26  ;;  %v12521_v62 = vld [vmem:[#allocation44_spill] sm:$0xff]  ;;  %vm12547_vm8 = vmmov %vm12546_vm0 }
 0x514   : > { %3036 = vmatprep.subr.mxu0 %v2407_v13 }
 0x515   : > { %v2405_v18 = vpop.permute.xlu0 %2404  ;;  %3037 = vmatpush2.msra.mxu0 %v2408_v12 }
 0x516   : > { %v2413_v8 = vsel %vm12513_vm9, %v2405_v18, %v8861_v27  ;;  %v2369_v17 = vpop.permute.xlu1 %2368  ;;  %v2406_v55 = vsel %vm12514_vm1, %v2403_v26, %v2405_v18  ;;  %vm12549_vm9 = vmmov %vm12548_vm11 }
 0x517   : > { %3107 = vmatprep.subr.mxu1 %v2413_v8  ;;  %v2376_v31 = vsel %vm966_vm12, %v8878_v10, %v2369_v17  ;;  %vm12550_vm1 = vmmov %vm12546_vm0 }
 0x518   : > { %3108 = vmatpush2.msra.mxu1 %v2406_v55 }
 0x519   : > { %v2371_v7 = vpop.permute.xlu0 %2370 }
 0x51a   : > { %v2375_v32 = vsel %vm966_vm12, %v2369_v17, %v2371_v7  ;;  %v2373_v50 = vpop.permute.xlu1 %2372 }
 0x51b   : > { %3038 = vmatprep.subr.mxu0 %v2375_v32  ;;  %v2381_v27 = vsel %vm966_vm12, %v2373_v50, %v8885_v61  ;;  %v2374_v56 = vsel %vm966_vm12, %v2371_v7, %v2373_v50  ;;  %v12522_v50 = vld [vmem:[#allocation45_spill] sm:$0xff] }
 0x51c   : > { %3039 = vmatpush2.msra.mxu0 %v2376_v31  ;;  %3109 = vmatprep.subr.mxu1 %v2381_v27 }
 0x51d   : > { %v2337_v29 = vpop.permute.xlu0 %2336  ;;  %3110 = vmatpush2.msra.mxu1 %v2374_v56 }
 0x51e   : > { %v2339_v30 = vpop.permute.xlu1 %2338  ;;  %v2344_v10 = vsel %vm933_vm14, %v8902_v38, %v2337_v29 }
 0x51f   : > { %v2343_v58 = vsel %vm933_vm14, %v2337_v29, %v2339_v30  ;;  %v12523_v29 = vld [vmem:[#allocation33_spill] sm:$0xff] }
 0x520   : > { %3040 = vmatprep.subr.mxu0 %v2343_v58 }
 0x521   : > { %v2341_v35 = vpop.permute.xlu0 %2340  ;;  %3041 = vmatpush2.msra.mxu0 %v2344_v10  ;;  %v12524_v10 = vld [vmem:[#allocation22_spill] sm:$0xff] }
 0x522   : > { %v2349_v61 = vsel %vm933_vm14, %v2341_v35, %v8909_v44  ;;  %v2305_v59 = vpop.permute.xlu1 %2304  ;;  %v2342_v21 = vsel %vm933_vm14, %v2339_v30, %v2341_v35 }
 0x523   : > { %3111 = vmatprep.subr.mxu1 %v2349_v61  ;;  %v2312_v38 = vsel %vm900_vm15, %v8926_v5, %v2305_v59 }
 0x524   : > { %3112 = vmatpush2.msra.mxu1 %v2342_v21 }
 0x525   : > { %v2307_v37 = vpop.permute.xlu0 %2306 }
 0x526   : > { %v2311_v20 = vsel %vm900_vm15, %v2305_v59, %v2307_v37  ;;  %v2309_v23 = vpop.permute.xlu1 %2308  ;;  %v12526_v59 = vld [vmem:[#allocation20_spill] sm:$0xff] }
 0x527   : > { %3042 = vmatprep.subr.mxu0 %v2311_v20  ;;  %v2317_v44 = vsel %vm900_vm15, %v2309_v23, %v8933_v51  ;;  %v2310_v36 = vsel %vm900_vm15, %v2307_v37, %v2309_v23 }
 0x528   : > { %3043 = vmatpush2.msra.mxu0 %v2312_v38  ;;  %3113 = vmatprep.subr.mxu1 %v2317_v44 }
 0x529   : > { %v2273_v40 = vpop.permute.xlu0 %2272  ;;  %3114 = vmatpush2.msra.mxu1 %v2310_v36 }
 0x52a   : > { %v2275_v42 = vpop.permute.xlu1 %2274  ;;  %v2280_v5 = vsel %vm867_vm10, %v8950_v24, %v2273_v40 }
 0x52b   : > { %v2279_v52 = vsel %vm867_vm10, %v2273_v40, %v2275_v42 }
 0x52c   : > { %3044 = vmatprep.subr.mxu0 %v2279_v52 }
 0x52d   : > { %v2277_v14 = vpop.permute.xlu0 %2276  ;;  %3045 = vmatpush2.msra.mxu0 %v2280_v5 }
 0x52e   : > { %v2285_v51 = vsel %vm867_vm10, %v2277_v14, %v8955_v2  ;;  %v2241_v49 = vpop.permute.xlu1 %2240  ;;  %v2278_v41 = vsel %vm867_vm10, %v2275_v42, %v2277_v14 }
 0x52f   : > { %3115 = vmatprep.subr.mxu1 %v2285_v51  ;;  %v2248_v24 = vsel %vm834_vm13, %v8967_v1, %v2241_v49 }
 0x530   : > { %3116 = vmatpush2.msra.mxu1 %v2278_v41 }
 0x531   : > { %v2243_v45 = vpop.permute.xlu0 %2242 }
 0x532   : > { %v2247_v54 = vsel %vm834_vm13, %v2241_v49, %v2243_v45  ;;  %v2245_v9 = vpop.permute.xlu1 %2244 }
 0x533   : > { %3046 = vmatprep.subr.mxu0 %v2247_v54  ;;  %v2253_v2 = vsel %vm834_vm13, %v2245_v9, %v12515_v39  ;;  %v2246_v47 = vsel %vm834_vm13, %v2243_v45, %v2245_v9 }
 0x534   : > { %3047 = vmatpush2.msra.mxu0 %v2248_v24  ;;  %3117 = vmatprep.subr.mxu1 %v2253_v2 }
 0x535   : > { %3049 = vmatmul.mubr.f32.vlgmr.msra.gmra.mxu0 %v12516_v0  ;;  %3118 = vmatpush2.msra.mxu1 %v2246_v47 }
 0x536   : > { %3120 = vmatmul.mubr.f32.vlgmr.msra.gmra.mxu1 %v12516_v0 }
 0x53e   : > { %v2840_v22 = vpop.permute.xlu0 %2839 }
 0x58f   : > { %v2979_v60 = vpop.f32.mrf.mxu1 }
 0x590   : > { %v2908_v15 = vpop.f32.mrf.mxu0  ;;  %v2980_v33 = vadd.f32 %v2979_v60, %v2840_v22 }
 0x591   : > { %v2909_v28 = vadd.f32 %v2908_v15, %v2840_v22  ;;  %v2981_v1 = vpop.f32.mrf.mxu1 }
 0x592   : > { %v2910_v43 = vpop.f32.mrf.mxu0  ;;  %v3128_v11 = vmax.f32 %v2980_v33, 0.0  ;;  %v2982_v16 = vadd.f32 %v2981_v1, %v2840_v22 }
 0x593   : > { %v3126_v3 = vmax.f32 %v2909_v28, 0.0  ;;  %v2911_v19 = vadd.f32 %v2910_v43, %v2840_v22 }
 0x594   : > { %v9339_v46 = vmul.f32 %v3128_v11, %v12517_v34  ;;  %v3129_v48 = vmax.f32 %v2982_v16, 0.0 }
 0x595   : > { %v9342_v53 = vmul.f32 %v3126_v3, %v12518_v57  ;;  %v3127_v6 = vmax.f32 %v2911_v19, 0.0 }
 0x596   : > { %3146 = vrot.lane.b32.xlu0 %v9339_v46, %s12519_s4  ;;  %v9352_v26 = vmul.f32 %v3129_v48, %v12521_v62 }
 0x597   : > { %v9347_v63 = vmul.f32 %v3127_v6, %v12520_v4  ;;  %3142 = vrot.lane.b32.xlu1 %v9342_v53, %s12519_s4 }
 0x59b   : > { %3144 = vrot.lane.b32.xlu1 %v9347_v63, %s12519_s4 }
 0x59f   : > { %3148 = vrot.lane.b32.xlu1 %v9352_v26, %s12519_s4 }
 0x5f5   : > { %v3050_v13 = vpop.f32.mrf.mxu0 }
 0x5f6   : > { %v3051_v12 = vadd.f32 %v3050_v13, %v2840_v22  ;;  %v3121_v18 = vpop.f32.mrf.mxu1 }
 0x5f7   : > { %v3052_v8 = vpop.f32.mrf.mxu0  ;;  %v3122_v17 = vadd.f32 %v3121_v18, %v2840_v22 }
 0x5f8   : > { %v3130_v55 = vmax.f32 %v3051_v12, 0.0  ;;  %v3053_v7 = vadd.f32 %v3052_v8, %v2840_v22  ;;  %v3123_v32 = vpop.f32.mrf.mxu1 }
 0x5f9   : > { %v3132_v56 = vmax.f32 %v3122_v17, 0.0  ;;  %v3124_v58 = vadd.f32 %v3123_v32, %v2840_v22 }
 0x5fa   : > { %v9359_v31 = vmul.f32 %v3130_v55, %v12522_v50  ;;  %v3131_v27 = vmax.f32 %v3053_v7, 0.0 }
 0x5fb   : > { %v9367_v35 = vmul.f32 %v3132_v56, %v12524_v10  ;;  %v3133_v61 = vmax.f32 %v3124_v58, 0.0 }
 0x5fc   : > { %v9362_v30 = vmul.f32 %v3131_v27, %v12523_v29  ;;  %3150 = vrot.lane.b32.xlu0 %v9359_v31, %s12519_s4 }
 0x5fd   : > { %v9376_v21 = vmul.f32 %v3133_v61, %v12526_v59 }
 0x5fe   : > { %3152 = vrot.lane.b32.xlu1 %v9362_v30, %s12519_s4 }
 0x600   : > { %3154 = vrot.lane.b32.xlu0 %v9367_v35, %s12519_s4 }
 0x602   : > { %3176 = vrot.lane.b32.xlu1 %v9347_v63, %s12525_s27 }
 0x604   : > { %3174 = vrot.lane.b32.xlu0 %v9342_v53, %s12525_s27 }
 0x606   : > { %3156 = vrot.lane.b32.xlu1 %v9376_v21, %s12519_s4 }
 0x608   : > { %3178 = vrot.lane.b32.xlu0 %v9339_v46, %s12525_s27  ;;  %v9484_v23 = vpop.permute.xlu0 %3146 }
 0x609   : > { %v9470_v37 = vpop.permute.xlu1 %3142 }
 0x60a   : > { %3180 = vrot.lane.b32.xlu1 %v9352_v26, %s12525_s27 }
 0x60c   : > { %3182 = vrot.lane.b32.xlu0 %v9359_v31, %s12525_s27 }
 0x60d   : > { %v9478_v20 = vpop.permute.xlu1 %3144 }
 0x60e   : > { %3184 = vrot.lane.b32.xlu1 %v9362_v30, %s12525_s27 }
 0x610   : > { %3186 = vrot.lane.b32.xlu0 %v9367_v35, %s12525_s27 }
 0x611   : > { %v9488_v38 = vpop.permute.xlu1 %3148 }
 0x612   : > { %3188 = vrot.lane.b32.xlu1 %v9376_v21, %s12525_s27 }
 0x614   : > { %3206 = vrot.lane.b32.xlu0 %v9342_v53, %s12302_s12 }
 0x616   : > { %3208 = vrot.lane.b32.xlu1 %v9347_v63, %s12302_s12 }
 0x618   : > { %3210 = vrot.lane.b32.xlu0 %v9339_v46, %s12302_s12 }
 0x61a   : > { %3212 = vrot.lane.b32.xlu1 %v9352_v26, %s12302_s12 }
 0x61c   : > { %3214 = vrot.lane.b32.xlu0 %v9359_v31, %s12302_s12 }
 0x61e   : > { %3216 = vrot.lane.b32.xlu1 %v9362_v30, %s12302_s12 }
 0x620   : > { %3218 = vrot.lane.b32.xlu0 %v9367_v35, %s12302_s12 }
 0x622   : > { %3220 = vrot.lane.b32.xlu1 %v9376_v21, %s12302_s12 }
 0x624   : > { %3238 = vrot.lane.b32.xlu0 %v9342_v53, %s12303_s14 }
 0x626   : > { %3240 = vrot.lane.b32.xlu1 %v9347_v63, %s12303_s14 }
 0x628   : > { %3242 = vrot.lane.b32.xlu0 %v9339_v46, %s12303_s14 }
 0x62a   : > { %3244 = vrot.lane.b32.xlu1 %v9352_v26, %s12303_s14 }
 0x62c   : > { %3246 = vrot.lane.b32.xlu0 %v9359_v31, %s12303_s14 }
 0x62e   : > { %3248 = vrot.lane.b32.xlu1 %v9362_v30, %s12303_s14 }
 0x630   : > { %3250 = vrot.lane.b32.xlu0 %v9367_v35, %s12303_s14 }
 0x632   : > { %3252 = vrot.lane.b32.xlu1 %v9376_v21, %s12303_s14 }
 0x634   : > { %3270 = vrot.lane.b32.xlu0 %v9342_v53, %s12304_s26 }
 0x636   : > { %3272 = vrot.lane.b32.xlu1 %v9347_v63, %s12304_s26 }
 0x638   : > { %3274 = vrot.lane.b32.xlu0 %v9339_v46, %s12304_s26 }
 0x63a   : > { %3276 = vrot.lane.b32.xlu1 %v9352_v26, %s12304_s26 }
 0x63c   : > { %3278 = vrot.lane.b32.xlu0 %v9359_v31, %s12304_s26 }
 0x63e   : > { %3280 = vrot.lane.b32.xlu1 %v9362_v30, %s12304_s26 }
 0x640   : > { %3282 = vrot.lane.b32.xlu0 %v9367_v35, %s12304_s26 }
 0x642   : > { %3284 = vrot.lane.b32.xlu1 %v9376_v21, %s12304_s26 }
 0x644   : > { %3302 = vrot.lane.b32.xlu0 %v9342_v53, %s12305_s8 }
 0x646   : > { %3304 = vrot.lane.b32.xlu1 %v9347_v63, %s12305_s8 }
 0x648   : > { %3306 = vrot.lane.b32.xlu0 %v9339_v46, %s12305_s8 }
 0x64a   : > { %3308 = vrot.lane.b32.xlu1 %v9352_v26, %s12305_s8 }
 0x64c   : > { %3310 = vrot.lane.b32.xlu0 %v9359_v31, %s12305_s8 }
 0x64e   : > { %3312 = vrot.lane.b32.xlu1 %v9362_v30, %s12305_s8 }
 0x650   : > { %3314 = vrot.lane.b32.xlu0 %v9367_v35, %s12305_s8 }
 0x652   : > { %3316 = vrot.lane.b32.xlu1 %v9376_v21, %s12305_s8 }
 0x654   : > { %3334 = vrot.lane.b32.xlu0 %v9342_v53, %s12306_s5 }
 0x656   : > { %3336 = vrot.lane.b32.xlu1 %v9347_v63, %s12306_s5 }
 0x658   : > { %3338 = vrot.lane.b32.xlu0 %v9339_v46, %s12306_s5 }
 0x65a   : > { %3340 = vrot.lane.b32.xlu1 %v9352_v26, %s12306_s5 }
 0x65c   : > { %3342 = vrot.lane.b32.xlu0 %v9359_v31, %s12306_s5 }
 0x65e   : > { %3600 = vrot.lane.b32.xlu1 %v9347_v63, %s12326_s25 }
 0x660   : > { %3602 = vrot.lane.b32.xlu0 %v9339_v46, %s12326_s25 }
 0x662   : > { %3598 = vrot.lane.b32.xlu1 %v9342_v53, %s12326_s25 }
 0x664   : > { %3568 = vrot.lane.b32.xlu0 %v9347_v63, %s12330_s29 }
 0x666   : > { %3570 = vrot.lane.b32.xlu1 %v9339_v46, %s12330_s29 }
 0x668   : > { %3566 = vrot.lane.b32.xlu0 %v9342_v53, %s12330_s29 }
 0x66a   : > { %3604 = vrot.lane.b32.xlu1 %v9352_v26, %s12326_s25 }
 0x66c   : > { %3606 = vrot.lane.b32.xlu0 %v9359_v31, %s12326_s25 }
 0x66e   : > { %v9492_v44 = vpop.permute.xlu0 %3150  ;;  %3526 = vrot.lane.b32.xlu1 %v9342_v53, %s12331_s30 }
 0x66f   : > { %12527 = vst [vmem:[#allocation54_spill] sm:$0xff] %v9492_v44 }
 0x670   : > { %3528 = vrot.lane.b32.xlu0 %v9347_v63, %s12331_s30  ;;  %v9498_v36 = vpop.permute.xlu1 %3152 }
 0x671   : > { %12528 = vst [vmem:[#allocation49_spill] sm:$0xff] %v9498_v36 }
 0x672   : > { %3540 = vrot.lane.b32.xlu1 %v9376_v21, %s12331_s30  ;;  %v9502_v40 = vpop.permute.xlu0 %3154 }
 0x673   : > { %12529 = vst [vmem:[#allocation42_spill] sm:$0xff] %v9502_v40 }
 0x674   : > { %3572 = vrot.lane.b32.xlu0 %v9352_v26, %s12330_s29  ;;  %v9506_v42 = vpop.permute.xlu1 %3176 }
 0x676   : > { %3574 = vrot.lane.b32.xlu1 %v9359_v31, %s12330_s29  ;;  %v9510_v52 = vpop.permute.xlu0 %3174 }
 0x678   : > { %3494 = vrot.lane.b32.xlu0 %v9342_v53, %s12335_s9  ;;  %v9514_v5 = vpop.permute.xlu1 %3156 }
 0x67a   : > { %3496 = vrot.lane.b32.xlu1 %v9347_v63, %s12335_s9  ;;  %v9518_v14 = vpop.permute.xlu0 %3178 }
 0x67c   : > { %3508 = vrot.lane.b32.xlu0 %v9376_v21, %s12335_s9  ;;  %v9522_v51 = vpop.permute.xlu1 %3180 }
 0x67e   : > { %3462 = vrot.lane.b32.xlu1 %v9342_v53, %s12325_s23  ;;  %v9526_v49 = vpop.permute.xlu0 %3182 }
 0x67f   : > { %12530 = vst [vmem:[#allocation34_spill] sm:$0xff] %v9526_v49 }
 0x680   : > { %3464 = vrot.lane.b32.xlu0 %v9347_v63, %s12325_s23  ;;  %v9530_v41 = vpop.permute.xlu1 %3184 }
 0x681   : > { %12531 = vst [vmem:[#allocation26_spill] sm:$0xff] %v9530_v41 }
 0x682   : > { %3476 = vrot.lane.b32.xlu1 %v9376_v21, %s12325_s23  ;;  %v9534_v45 = vpop.permute.xlu0 %3186 }
 0x683   : > { %12532 = vst [vmem:[#allocation43_spill] sm:$0xff] %v9534_v45 }
 0x684   : > { %3530 = vrot.lane.b32.xlu0 %v9339_v46, %s12331_s30  ;;  %v9538_v54 = vpop.permute.xlu1 %3188 }
 0x686   : > { %3532 = vrot.lane.b32.xlu1 %v9352_v26, %s12331_s30  ;;  %v9542_v9 = vpop.permute.xlu0 %3206 }
 0x688   : > { %3430 = vrot.lane.b32.xlu0 %v9342_v53, %s12320_s22  ;;  %v9546_v24 = vpop.permute.xlu1 %3208 }
 0x68a   : > { %3432 = vrot.lane.b32.xlu1 %v9347_v63, %s12320_s22  ;;  %v9550_v39 = vpop.permute.xlu0 %3210 }
 0x68c   : > { %3444 = vrot.lane.b32.xlu0 %v9376_v21, %s12320_s22  ;;  %v9554_v2 = vpop.permute.xlu1 %3212 }
 0x68e   : > { %3498 = vrot.lane.b32.xlu1 %v9339_v46, %s12335_s9  ;;  %v9558_v47 = vpop.permute.xlu0 %3214 }
 0x68f   : > { %12533 = vst [vmem:[#allocation55_spill] sm:$0xff] %v9558_v47 }
 0x690   : > { %3500 = vrot.lane.b32.xlu0 %v9352_v26, %s12335_s9  ;;  %v9562_v0 = vpop.permute.xlu1 %3216 }
 0x691   : > { %12534 = vst [vmem:[#allocation56_spill] sm:$0xff] %v9562_v0 }
 0x692   : > { %3398 = vrot.lane.b32.xlu1 %v9342_v53, %s12315_s20  ;;  %v9566_v22 = vpop.permute.xlu0 %3218 }
 0x693   : > { %12535 = vst [vmem:[#allocation48_spill] sm:$0xff] %v9566_v22 }
 0x694   : > { %3400 = vrot.lane.b32.xlu0 %v9347_v63, %s12315_s20  ;;  %v9570_v60 = vpop.permute.xlu1 %3220 }
 0x696   : > { %3412 = vrot.lane.b32.xlu1 %v9376_v21, %s12315_s20  ;;  %v9574_v15 = vpop.permute.xlu0 %3238 }
 0x698   : > { %3466 = vrot.lane.b32.xlu0 %v9339_v46, %s12325_s23  ;;  %v9578_v33 = vpop.permute.xlu1 %3240 }
 0x69a   : > { %3468 = vrot.lane.b32.xlu1 %v9352_v26, %s12325_s23  ;;  %v9582_v28 = vpop.permute.xlu0 %3242 }
 0x69c   : > { %3366 = vrot.lane.b32.xlu0 %v9342_v53, %s12308_s10  ;;  %v9586_v1 = vpop.permute.xlu1 %3244 }
 0x69e   : > { %3368 = vrot.lane.b32.xlu1 %v9347_v63, %s12308_s10  ;;  %v9590_v43 = vpop.permute.xlu0 %3246 }
 0x69f   : > { %12536 = vst [vmem:[#allocation35_spill] sm:$0xff] %v9590_v43 }
 0x6a0   : > { %3380 = vrot.lane.b32.xlu0 %v9376_v21, %s12308_s10  ;;  %v9594_v11 = vpop.permute.xlu1 %3248 }
 0x6a1   : > { %12537 = vst [vmem:[#allocation36_spill] sm:$0xff] %v9594_v11 }
 0x6a2   : > { %3434 = vrot.lane.b32.xlu1 %v9339_v46, %s12320_s22  ;;  %v9598_v3 = vpop.permute.xlu0 %3250 }
 0x6a3   : > { %12538 = vst [vmem:[#allocation50_spill] sm:$0xff] %v9598_v3 }
 0x6a4   : > { %3436 = vrot.lane.b32.xlu0 %v9352_v26, %s12320_s22  ;;  %v9602_v19 = vpop.permute.xlu1 %3252 }
 0x6a6   : > { %3348 = vrot.lane.b32.xlu1 %v9376_v21, %s12306_s5  ;;  %v9606_v16 = vpop.permute.xlu0 %3270 }
 0x6a8   : > { %3402 = vrot.lane.b32.xlu0 %v9339_v46, %s12315_s20  ;;  %v9610_v6 = vpop.permute.xlu1 %3272 }
 0x6aa   : > { %3404 = vrot.lane.b32.xlu1 %v9352_v26, %s12315_s20  ;;  %v9614_v48 = vpop.permute.xlu0 %3274 }
 0x6ac   : > { %3370 = vrot.lane.b32.xlu0 %v9339_v46, %s12308_s10  ;;  %v9618_v13 = vpop.permute.xlu1 %3276 }
 0x6ae   : > { %3372 = vrot.lane.b32.xlu1 %v9352_v26, %s12308_s10  ;;  %v9622_v12 = vpop.permute.xlu0 %3278 }
 0x6af   : > { %12539 = vst [vmem:[#allocation51_spill] sm:$0xff] %v9622_v12 }
 0x6b0   : > { %3952 = vrot.lane.b32.xlu0 %v9347_v63, %s12414_s18  ;;  %v9626_v18 = vpop.permute.xlu1 %3280 }
 0x6b1   : > { %12540 = vst [vmem:[#allocation83_spill] sm:$0xff] %v9626_v18 }
 0x6b2   : > { %3954 = vrot.lane.b32.xlu1 %v9339_v46, %s12414_s18  ;;  %v9630_v8 = vpop.permute.xlu0 %3282 }
 0x6b3   : > { %12541 = vst [vmem:[#allocation76_spill] sm:$0xff] %v9630_v8 }
 0x6b4   : > { %3950 = vrot.lane.b32.xlu0 %v9342_v53, %s12414_s18  ;;  %v9634_v17 = vpop.permute.xlu1 %3284 }
 0x6b6   : > { %v9636_v55 = vpop.permute.xlu0 %3302  ;;  %3920 = vrot.lane.b32.xlu1 %v9347_v63, %s12418_s28 }
 0x6b8   : > { %3922 = vrot.lane.b32.xlu0 %v9339_v46, %s12418_s28  ;;  %v9642_v7 = vpop.permute.xlu1 %3304 }
 0x6ba   : > { %v9644_v32 = vpop.permute.xlu0 %3306  ;;  %3918 = vrot.lane.b32.xlu1 %v9342_v53, %s12418_s28 }
 0x6bc   : > { %3888 = vrot.lane.b32.xlu0 %v9347_v63, %s12342_s6  ;;  %v9650_v27 = vpop.permute.xlu1 %3308 }
 0x6be   : > { %v9652_v56 = vpop.permute.xlu0 %3310  ;;  %3890 = vrot.lane.b32.xlu1 %v9339_v46, %s12342_s6 }
 0x6bf   : > { %12542 = vst [vmem:[#allocation29_spill] sm:$0xff] %v9652_v56 }
 0x6c0   : > { %3886 = vrot.lane.b32.xlu0 %v9342_v53, %s12342_s6  ;;  %v9658_v58 = vpop.permute.xlu1 %3312 }
 0x6c1   : > { %12543 = vst [vmem:[#allocation25_spill] sm:$0xff] %v9658_v58 }
 0x6c2   : > { %v9660_v61 = vpop.permute.xlu0 %3314  ;;  %3956 = vrot.lane.b32.xlu1 %v9352_v26, %s12414_s18 }
 0x6c3   : > { %12544 = vst [vmem:[#allocation38_spill] sm:$0xff] %v9660_v61 }
 0x6c4   : > { %3958 = vrot.lane.b32.xlu0 %v9359_v31, %s12414_s18  ;;  %v9666_v59 = vpop.permute.xlu1 %3316 }
 0x6c6   : > { %v9668_v10 = vpop.permute.xlu0 %3334  ;;  %3856 = vrot.lane.b32.xlu1 %v9347_v63, %s12346_s13 }
 0x6c8   : > { %3858 = vrot.lane.b32.xlu0 %v9339_v46, %s12346_s13  ;;  %v9674_v29 = vpop.permute.xlu1 %3336 }
 0x6ca   : > { %v9676_v50 = vpop.permute.xlu0 %3338  ;;  %3854 = vrot.lane.b32.xlu1 %v9342_v53, %s12346_s13 }
 0x6cc   : > { %3924 = vrot.lane.b32.xlu0 %v9352_v26, %s12418_s28  ;;  %v9682_v62 = vpop.permute.xlu1 %3340 }
 0x6ce   : > { %v9684_v34 = vpop.permute.xlu0 %3342  ;;  %3926 = vrot.lane.b32.xlu1 %v9359_v31, %s12418_s28 }
 0x6cf   : > { %12545 = vst [vmem:[#allocation37_spill] sm:$0xff] %v9684_v34 }
 0x6d0   : > { %3824 = vrot.lane.b32.xlu0 %v9347_v63, %s12348_s0  ;;  %v3601_v4 = vpop.permute.xlu1 %3600 }
 0x6d2   : > { %v3603_v57 = vpop.permute.xlu0 %3602  ;;  %3826 = vrot.lane.b32.xlu1 %v9339_v46, %s12348_s0 }
 0x6d3   : > { %v3619_v40 = vsel %vm12546_vm0, %v3601_v4, %v3603_v57 }
 0x6d4   : > { %3822 = vrot.lane.b32.xlu0 %v9342_v53, %s12348_s0  ;;  %4242 = vmatprep.subr.mxu0 %v3619_v40  ;;  %v9696_v45 = vpop.permute.xlu1 %3598 }
 0x6d5   : > { %v3620_v22 = vsel %vm12547_vm8, %v9696_v45, %v3601_v4  ;;  %vm12551_vm8 = vmmov %vm12549_vm9 }
 0x6d6   : > { %v3569_v3 = vpop.permute.xlu0 %3568  ;;  %3892 = vrot.lane.b32.xlu1 %v9352_v26, %s12342_s6  ;;  %4243 = vmatpush1.msra.mxu0 %v3620_v22 }
 0x6d8   : > { %3894 = vrot.lane.b32.xlu0 %v9359_v31, %s12342_s6  ;;  %v3571_v44 = vpop.permute.xlu1 %3570 }
 0x6d9   : > { %v3587_v36 = vsel %vm12548_vm11, %v3569_v3, %v3571_v44  ;;  %vm12552_vm11 = vmmov %vm12551_vm8 }
 0x6da   : > { %v9707_v8 = vpop.permute.xlu0 %3566  ;;  %3792 = vrot.lane.b32.xlu1 %v9347_v63, %s12351_s3  ;;  %4244 = vmatprep.subr.mxu0 %v3587_v36 }
 0x6db   : > { %v3588_v4 = vsel %vm12549_vm9, %v9707_v8, %v3569_v3  ;;  %vm12554_vm9 = vcmp.lt.s32.totalorder %v6984_v25, 91 }
 0x6dc   : > { %3794 = vrot.lane.b32.xlu0 %v9339_v46, %s12351_s3  ;;  %4245 = vmatpush1.msra.mxu0 %v3588_v4  ;;  %v3605_v40 = vpop.permute.xlu1 %3604 }
 0x6dd   : > { %4246 = vmatprep.subr.mxu0 %v9347_v63  ;;  %v3618_v4 = vsel %vm12546_vm0, %v3603_v57, %v3605_v40  ;;  %vm12556_vm0 = vcmp.lt.s32.totalorder %v6984_v25, 99 }
 0x6de   : > { %v9717_v22 = vpop.permute.xlu0 %3606  ;;  %3790 = vrot.lane.b32.xlu1 %v9342_v53, %s12351_s3  ;;  %4247 = vmatpush1.msra.mxu0 %v9342_v53 }
 0x6df   : > { %v3617_v36 = vsel %vm12550_vm1, %v3605_v40, %v9717_v22  ;;  %vm12555_vm1 = vmmov %vm12554_vm9 }
 0x6e0   : > { %3860 = vrot.lane.b32.xlu0 %v9352_v26, %s12346_s13  ;;  %4313 = vmatprep.subr.mxu1 %v3617_v36  ;;  %v3527_v3 = vpop.permute.xlu1 %3526 }
 0x6e1   : > { %4314 = vmatpush1.msra.mxu1 %v3618_v4 }
 0x6e2   : > { %v3529_v49 = vpop.permute.xlu0 %3528  ;;  %3862 = vrot.lane.b32.xlu1 %v9359_v31, %s12346_s13 }
 0x6e3   : > { %v3548_v41 = vsel %vm727_vm2, %v3527_v3, %v3529_v49 }
 0x6e4   : > { %3760 = vrot.lane.b32.xlu0 %v9347_v63, %s12355_s24  ;;  %4248 = vmatprep.subr.mxu0 %v3548_v41  ;;  %v9735_v61 = vpop.permute.xlu1 %3540 }
 0x6e5   : > { %v3549_v36 = vsel %vm727_vm2, %v9735_v61, %v3527_v3 }
 0x6e6   : > { %v3573_v47 = vpop.permute.xlu0 %3572  ;;  %3762 = vrot.lane.b32.xlu1 %v9339_v46, %s12355_s24  ;;  %4249 = vmatpush1.msra.mxu0 %v3549_v36 }
 0x6e7   : > { %v3586_v3 = vsel %vm12552_vm11, %v3571_v44, %v3573_v47  ;;  %vm12558_vm11 = vcmp.lt.s32.totalorder %v6984_v25, 100 }
 0x6e8   : > { %3758 = vrot.lane.b32.xlu0 %v9342_v53, %s12355_s24  ;;  %v9744_v57 = vpop.permute.xlu1 %3574 }
 0x6e9   : > { %v3585_v41 = vsel %vm12551_vm8, %v3573_v47, %v9744_v57  ;;  %vm12557_vm8 = vmmov %vm12556_vm0 }
 0x6ea   : > { %v3495_v40 = vpop.permute.xlu0 %3494  ;;  %3828 = vrot.lane.b32.xlu1 %v9352_v26, %s12348_s0  ;;  %4315 = vmatprep.subr.mxu1 %v3585_v41 }
 0x6eb   : > { %4316 = vmatpush1.msra.mxu1 %v3586_v3 }
 0x6ec   : > { %3830 = vrot.lane.b32.xlu0 %v9359_v31, %s12348_s0  ;;  %4317 = vmatprep.subr.mxu1 %v9352_v26  ;;  %v3497_v4 = vpop.permute.xlu1 %3496 }
 0x6ed   : > { %4318 = vmatpush1.msra.mxu1 %v9339_v46  ;;  %v3516_v36 = vsel %vm694_vm3, %v3495_v40, %v3497_v4 }
 0x6ee   : > { %v9759_v0 = vpop.permute.xlu0 %3508  ;;  %3728 = vrot.lane.b32.xlu1 %v9347_v63, %s12356_s17  ;;  %4250 = vmatprep.subr.mxu0 %v3516_v36 }
 0x6ef   : > { %v3517_v44 = vsel %vm694_vm3, %v9759_v0, %v3495_v40 }
 0x6f0   : > { %3730 = vrot.lane.b32.xlu0 %v9339_v46, %s12356_s17  ;;  %4251 = vmatpush1.msra.mxu0 %v3517_v44  ;;  %v3463_v47 = vpop.permute.xlu1 %3462 }
 0x6f2   : > { %v3465_v41 = vpop.permute.xlu0 %3464  ;;  %3726 = vrot.lane.b32.xlu1 %v9342_v53, %s12356_s17 }
 0x6f3   : > { %v3484_v3 = vsel %vm661_vm4, %v3463_v47, %v3465_v41 }
 0x6f4   : > { %3796 = vrot.lane.b32.xlu0 %v9352_v26, %s12351_s3  ;;  %4252 = vmatprep.subr.mxu0 %v3484_v3  ;;  %v9774_v36 = vpop.permute.xlu1 %3476 }
 0x6f5   : > { %v3485_v40 = vsel %vm661_vm4, %v9774_v36, %v3463_v47 }
 0x6f6   : > { %v3531_v43 = vpop.permute.xlu0 %3530  ;;  %3798 = vrot.lane.b32.xlu1 %v9359_v31, %s12351_s3  ;;  %4253 = vmatpush1.msra.mxu0 %v3485_v40 }
 0x6f7   : > { %v3547_v47 = vsel %vm727_vm2, %v3529_v49, %v3531_v43 }
 0x6f8   : > { %3696 = vrot.lane.b32.xlu0 %v9347_v63, %s12363_s16  ;;  %v9783_v44 = vpop.permute.xlu1 %3532 }
 0x6f9   : > { %v3546_v3 = vsel %vm727_vm2, %v3531_v43, %v9783_v44 }
 0x6fa   : > { %v3431_v11 = vpop.permute.xlu0 %3430  ;;  %3698 = vrot.lane.b32.xlu1 %v9339_v46, %s12363_s16  ;;  %4319 = vmatprep.subr.mxu1 %v3546_v3 }
 0x6fb   : > { %4320 = vmatpush1.msra.mxu1 %v3547_v47 }
 0x6fc   : > { %3694 = vrot.lane.b32.xlu0 %v9342_v53, %s12363_s16  ;;  %v3433_v40 = vpop.permute.xlu1 %3432 }
 0x6fd   : > { %v3452_v12 = vsel %vm628_vm5, %v3431_v11, %v3433_v40 }
 0x6fe   : > { %v9796_v18 = vpop.permute.xlu0 %3444  ;;  %3764 = vrot.lane.b32.xlu1 %v9352_v26, %s12355_s24  ;;  %4254 = vmatprep.subr.mxu0 %v3452_v12 }
 0x6ff   : > { %v3453_v3 = vsel %vm628_vm5, %v9796_v18, %v3431_v11 }
 0x700   : > { %3766 = vrot.lane.b32.xlu0 %v9359_v31, %s12355_s24  ;;  %4255 = vmatpush1.msra.mxu0 %v3453_v3  ;;  %v3499_v49 = vpop.permute.xlu1 %3498 }
 0x701   : > { %v3515_v11 = vsel %vm694_vm3, %v3497_v4, %v3499_v49  ;;  %v9832_v4 = vld [vmem:[%s11829_s1 + $0x28] sm:$0xff] }
 0x702   : > { %v9805_v43 = vpop.permute.xlu0 %3500  ;;  %3664 = vrot.lane.b32.xlu1 %v9347_v63, %s12370_s21  ;;  %4306 = vmatprep.mubr.f32.mxu0 %v9832_v4 }
 0x703   : > { %v3514_v47 = vsel %vm694_vm3, %v3499_v49, %v9805_v43  ;;  %4377 = vmatprep.mubr.f32.mxu1 %v9832_v4 }
 0x704   : > { %3666 = vrot.lane.b32.xlu0 %v9339_v46, %s12370_s21  ;;  %4321 = vmatprep.subr.mxu1 %v3514_v47  ;;  %v3399_v12 = vpop.permute.xlu1 %3398 }
 0x705   : > { %4322 = vmatpush1.msra.mxu1 %v3515_v11 }
 0x706   : > { %v3401_v3 = vpop.permute.xlu0 %3400  ;;  %3662 = vrot.lane.b32.xlu1 %v9342_v53, %s12370_s21 }
 0x707   : > { %v3420_v56 = vsel %vm595_vm6, %v3399_v12, %v3401_v3 }
 0x708   : > { %3732 = vrot.lane.b32.xlu0 %v9352_v26, %s12356_s17  ;;  %4256 = vmatprep.subr.mxu0 %v3420_v56  ;;  %v9822_v58 = vpop.permute.xlu1 %3412 }
 0x709   : > { %12553 = vst [vmem:[#allocation81_spill] sm:$0xff] %v9822_v58  ;;  %v3421_v47 = vsel %vm595_vm6, %v9822_v58, %v3399_v12 }
 0x70a   : > { %v3467_v34 = vpop.permute.xlu0 %3466  ;;  %3734 = vrot.lane.b32.xlu1 %v9359_v31, %s12356_s17  ;;  %4257 = vmatpush1.msra.mxu0 %v3421_v47 }
 0x70b   : > { %v3483_v11 = vsel %vm661_vm4, %v3465_v41, %v3467_v34 }
 0x70c   : > { %3632 = vrot.lane.b32.xlu0 %v9347_v63, %s12372_s15  ;;  %v9836_v56 = vpop.permute.xlu1 %3468 }
 0x70d   : > { %v3482_v49 = vsel %vm661_vm4, %v3467_v34, %v9836_v56 }
 0x70e   : > { %v3367_v12 = vpop.permute.xlu0 %3366  ;;  %3634 = vrot.lane.b32.xlu1 %v9339_v46, %s12372_s15  ;;  %4323 = vmatprep.subr.mxu1 %v3482_v49 }
 0x70f   : > { %4324 = vmatpush1.msra.mxu1 %v3483_v11 }
 0x710   : > { %3630 = vrot.lane.b32.xlu0 %v9342_v53, %s12372_s15  ;;  %v3369_v63 = vpop.permute.xlu1 %3368  ;;  %v3356_v53 = vsel %vm12554_vm9, %v9668_v10, %v9674_v29  ;;  %vm12559_vm9 = vmmov %vm12558_vm11 }
 0x711   : > { %v3388_v47 = vsel %vm562_vm7, %v3367_v12, %v3369_v63 }
 0x712   : > { %v9851_v58 = vpop.permute.xlu0 %3380  ;;  %3700 = vrot.lane.b32.xlu1 %v9352_v26, %s12363_s16  ;;  %4258 = vmatprep.subr.mxu0 %v3388_v47 }
 0x713   : > { %v3389_v46 = vsel %vm562_vm7, %v9851_v58, %v3367_v12 }
 0x714   : > { %3702 = vrot.lane.b32.xlu0 %v9359_v31, %s12363_s16  ;;  %4259 = vmatpush1.msra.mxu0 %v3389_v46  ;;  %v3435_v34 = vpop.permute.xlu1 %3434 }
 0x715   : > { %4260 = vmatprep.subr.mxu0 %v3356_v53  ;;  %v3451_v11 = vsel %vm628_vm5, %v3433_v40, %v3435_v34  ;;  %v3324_v53 = vsel %vm12556_vm0, %v9636_v55, %v9642_v7  ;;  %v3325_v40 = vsel %vm12557_vm8, %v9666_v59, %v9636_v55  ;;  %vm12562_vm8 = vcmp.lt.s32.totalorder %v6984_v25, 109 }
 0x716   : > { %v9864_v41 = vpop.permute.xlu0 %3436  ;;  %3608 = vrot.lane.b32.xlu1 %v9362_v30, %s12326_s25 }
 0x717   : > { %v3450_v49 = vsel %vm628_vm5, %v3435_v34, %v9864_v41  ;;  %v3292_v34 = vsel %vm12558_vm11, %v9606_v16, %v9610_v6  ;;  %vm12563_vm11 = vmmov %vm12562_vm8 }
 0x718   : > { %3610 = vrot.lane.b32.xlu0 %v9367_v35, %s12326_s25  ;;  %4325 = vmatprep.subr.mxu1 %v3450_v49  ;;  %v9873_v12 = vpop.permute.xlu1 %3348  ;;  %v3293_v49 = vsel %vm12559_vm9, %v9634_v17, %v9606_v16  ;;  %vm12564_vm9 = vcmp.lt.s32.totalorder %v6984_v25, 110 }
 0x719   : > { %4326 = vmatpush1.msra.mxu1 %v3451_v11  ;;  %v3357_v47 = vsel %vm12555_vm1, %v9873_v12, %v9668_v10  ;;  %vm12560_vm1 = vcmp.lt.s32.totalorder %v6984_v25, 101 }
 0x71a   : > { %v3403_v46 = vpop.permute.xlu0 %3402  ;;  %3668 = vrot.lane.b32.xlu1 %v9352_v26, %s12370_s21  ;;  %4261 = vmatpush1.msra.mxu0 %v3357_v47  ;;  %v3260_v47 = vsel %vm12560_vm1, %v9574_v15, %v9578_v33  ;;  %vm12561_vm0 = vmmov %vm12560_vm1 }
 0x71b   : > { %4262 = vmatprep.subr.mxu0 %v3324_v53  ;;  %v3419_v53 = vsel %vm595_vm6, %v3401_v3, %v3403_v46  ;;  %v3261_v16 = vsel %vm12561_vm0, %v9602_v19, %v9574_v15  ;;  %v3229_v15 = vsel %vm12563_vm11, %v9570_v60, %v9542_v9  ;;  %vm12565_vm1 = vmmov %vm12564_vm9  ;;  %vm12566_vm0 = vcmp.lt.s32.totalorder %v6984_v25, 91 }
 0x71c   : > { %3670 = vrot.lane.b32.xlu0 %v9359_v31, %s12370_s21  ;;  %4263 = vmatpush1.msra.mxu0 %v3325_v40  ;;  %v9893_v10 = vpop.permute.xlu1 %3404  ;;  %vm12568_vm11 = vmmov %vm12566_vm0 }
 0x71d   : > { %4264 = vmatprep.subr.mxu0 %v3292_v34  ;;  %v3418_v55 = vsel %vm595_vm6, %v3403_v46, %v9893_v10  ;;  %v3228_v34 = vsel %vm12562_vm8, %v9542_v9, %v9546_v24  ;;  %v3354_v9 = vsel %vm12566_vm0, %v9676_v50, %v9682_v62  ;;  %vm12567_vm8 = vcmp.lt.s32.totalorder %v6984_v25, 111 }
 0x71e   : > { %v3371_v11 = vpop.permute.xlu0 %3370  ;;  %3576 = vrot.lane.b32.xlu1 %v9362_v30, %s12330_s29  ;;  %4265 = vmatpush1.msra.mxu0 %v3293_v49  ;;  %v3196_v49 = vsel %vm12564_vm9, %v9510_v52, %v9506_v42  ;;  %vm12569_vm9 = vcmp.lt.s32.totalorder %v6984_v25, 17  ;;  %vm12571_vm0 = vcmp.lt.s32.totalorder %v6984_v25, 99 }
 0x71f   : > { %4327 = vmatprep.subr.mxu1 %v3418_v55  ;;  %4266 = vmatprep.subr.mxu0 %v3260_v47  ;;  %v3387_v55 = vsel %vm562_vm7, %v3369_v63, %v3371_v11  ;;  %v3164_v63 = vsel %vm12567_vm8, %v9470_v37, %v9478_v20 }
 0x720   : > { %4328 = vmatpush1.msra.mxu1 %v3419_v53  ;;  %3578 = vrot.lane.b32.xlu0 %v9367_v35, %s12330_s29  ;;  %v9920_v40 = vpop.permute.xlu1 %3372 }
 0x721   : > { %4267 = vmatpush1.msra.mxu0 %v3261_v16  ;;  %v3386_v3 = vsel %vm562_vm7, %v3371_v11, %v9920_v40 }
 0x722   : > { %4268 = vmatprep.subr.mxu0 %v3228_v34  ;;  %v3953_v46 = vpop.permute.xlu0 %3952  ;;  %3636 = vrot.lane.b32.xlu1 %v9352_v26, %s12372_s15  ;;  %v3197_v26 = vsel %vm12565_vm1, %v9538_v54, %v9510_v52  ;;  %v3355_v52 = vsel %vm12568_vm11, %v9674_v29, %v9676_v50  ;;  %vm12570_vm1 = vmmov %vm12567_vm8  ;;  %v3322_v50 = vsel %vm12571_vm0, %v9644_v32, %v9650_v27 }
 0x723   : > { %4269 = vmatpush1.msra.mxu0 %v3229_v15  ;;  %4329 = vmatprep.subr.mxu1 %v3386_v3  ;;  %v3165_v16 = vsel %vm12570_vm1, %v9514_v5, %v9470_v37  ;;  %vm12572_vm8 = vmmov %vm12569_vm9 }
 0x724   : > { %4270 = vmatprep.subr.mxu0 %v3196_v49  ;;  %4330 = vmatpush1.msra.mxu1 %v3387_v55  ;;  %v9945_v47 = vpop.permute.xlu1 %3954  ;;  %vm12573_vm11 = vmmov %vm12571_vm0  ;;  %vm12576_vm0 = vcmp.lt.s32.totalorder %v6984_v25, 18 }
 0x725   : > { %3638 = vrot.lane.b32.xlu0 %v9359_v31, %s12372_s15  ;;  %4271 = vmatpush1.msra.mxu0 %v3197_v26  ;;  %v3971_v53 = vsel %vm12569_vm9, %v3953_v46, %v9945_v47  ;;  %v3323_v34 = vsel %vm12573_vm11, %v9642_v7, %v9644_v32  ;;  %vm12574_vm9 = vcmp.lt.s32.totalorder %v6984_v25, 100 }
 0x726   : > { %4331 = vmatprep.subr.mxu1 %v3354_v9  ;;  %4272 = vmatprep.subr.mxu0 %v3164_v63  ;;  %v9961_v11 = vpop.permute.xlu0 %3950  ;;  %v3290_v37 = vsel %vm12574_vm9, %v9614_v48, %v9618_v13  ;;  %vm12575_vm1 = vmmov %vm12574_vm9 }
 0x727   : > { %4332 = vmatpush1.msra.mxu1 %v3355_v52  ;;  %3612 = vrot.lane.b32.xlu1 %v9376_v21, %s12326_s25  ;;  %v3972_v29 = vsel %vm12572_vm8, %v9961_v11, %v3953_v46  ;;  %v3291_v7 = vsel %vm12575_vm1, %v9610_v6, %v9614_v48  ;;  %vm12577_vm8 = vcmp.lt.s32.totalorder %v6984_v25, 101  ;;  %vm12579_vm9 = vmmov %vm12576_vm0  ;;  %vm12580_vm1 = vcmp.lt.s32.totalorder %v6984_v25, 109 }
 0x728   : > { %4273 = vmatpush1.msra.mxu0 %v3165_v16  ;;  %4333 = vmatprep.subr.mxu1 %v3322_v50  ;;  %v3921_v3 = vpop.permute.xlu1 %3920  ;;  %v3258_v15 = vsel %vm12577_vm8, %v9582_v28, %v9586_v1  ;;  %vm12578_vm11 = vmmov %vm12577_vm8  ;;  %v3226_v55 = vsel %vm12580_vm1, %v9550_v39, %v9554_v2  ;;  %vm12582_vm8 = vcmp.lt.s32.totalorder %v6984_v25, 110 }
 0x729   : > { %4284 = vmatprep.subr.mxu0 %v3971_v53  ;;  %4334 = vmatpush1.msra.mxu1 %v3323_v34  ;;  %v3259_v6 = vsel %vm12578_vm11, %v9578_v33, %v9582_v28  ;;  %v3194_v28 = vsel %vm12582_vm8, %v9518_v14, %v9522_v51  ;;  %vm12583_vm11 = vmmov %vm12582_vm8 }
 0x72a   : > { %3534 = vrot.lane.b32.xlu0 %v9359_v31, %s12331_s30  ;;  %4285 = vmatpush2.msra.mxu0 %v3972_v29  ;;  %v9989_v46 = vpop.permute.xlu0 %3922  ;;  %v3195_v63 = vsel %vm12583_vm11, %v9506_v42, %v9518_v14  ;;  %vm12588_vm11 = vcmp.lt.s32.totalorder %v6984_v25, 17 }
 0x72b   : > { %4335 = vmatprep.subr.mxu1 %v3290_v37  ;;  %3536 = vrot.lane.b32.xlu1 %v9362_v30, %s12331_s30  ;;  %v3939_v32 = vsel %vm12576_vm0, %v3921_v3, %v9989_v46  ;;  %vm12581_vm0 = vmmov %vm12580_vm1  ;;  %vm12585_vm1 = vcmp.lt.s32.totalorder %v6984_v25, 111 }
 0x72c   : > { %4336 = vmatpush1.msra.mxu1 %v3291_v7  ;;  %4286 = vmatprep.subr.mxu0 %v3939_v32  ;;  %v10004_v49 = vpop.permute.xlu1 %3918  ;;  %v3227_v33 = vsel %vm12581_vm0, %v9546_v24, %v9550_v39  ;;  %v3162_v39 = vsel %vm12585_vm1, %v9484_v23, %v9488_v38  ;;  %vm12586_vm0 = vmmov %vm12585_vm1  ;;  %vm12590_vm1 = vcmp.lt.s32.totalorder %v6984_v25, 27 }
 0x72d   : > { %4337 = vmatprep.subr.mxu1 %v3258_v15  ;;  %v3940_v48 = vsel %vm12579_vm9, %v10004_v49, %v3921_v3  ;;  %vm12584_vm9 = vcmp.lt.s32.totalorder %v6984_v25, 19  ;;  %v3163_v42 = vsel %vm12586_vm0, %v9478_v20, %v9484_v23  ;;  %vm12591_vm0 = vmmov %vm12590_vm1 }
 0x72e   : > { %4338 = vmatpush1.msra.mxu1 %v3259_v6  ;;  %3580 = vrot.lane.b32.xlu0 %v9376_v21, %s12330_s29  ;;  %v3889_v26 = vpop.permute.xlu0 %3888  ;;  %vm12587_vm8 = vmmov %vm12584_vm9 }
 0x72f   : > { %4339 = vmatprep.subr.mxu1 %v3226_v55  ;;  %3502 = vrot.lane.b32.xlu1 %v9359_v31, %s12335_s9 }
 0x730   : > { %4340 = vmatpush1.msra.mxu1 %v3227_v33  ;;  %4287 = vmatpush2.msra.mxu0 %v3940_v48  ;;  %v3891_v9 = vpop.permute.xlu1 %3890 }
 0x731   : > { %4341 = vmatprep.subr.mxu1 %v3194_v28  ;;  %v3907_v24 = vsel %vm12584_vm9, %v3889_v26, %v3891_v9  ;;  %vm12589_vm9 = vmmov %vm12588_vm11 }
 0x732   : > { %4342 = vmatpush1.msra.mxu1 %v3195_v63  ;;  %3504 = vrot.lane.b32.xlu0 %v9362_v30, %s12335_s9  ;;  %v10041_v52 = vpop.permute.xlu0 %3886 }
 0x733   : > { %4343 = vmatprep.subr.mxu1 %v3162_v39  ;;  %3470 = vrot.lane.b32.xlu1 %v9359_v31, %s12325_s23  ;;  %v3908_v14 = vsel %vm12587_vm8, %v10041_v52, %v3889_v26  ;;  %vm12592_vm8 = vcmp.lt.s32.totalorder %v6984_v25, 18 }
 0x734   : > { %4344 = vmatpush1.msra.mxu1 %v3163_v42  ;;  %4288 = vmatprep.subr.mxu0 %v3907_v24  ;;  %v3957_v53 = vpop.permute.xlu1 %3956 }
 0x735   : > { %4289 = vmatpush2.msra.mxu0 %v3908_v14  ;;  %v3970_v50 = vsel %vm12589_vm9, %v9945_v47, %v3957_v53  ;;  %vm12594_vm9 = vcmp.lt.s32.totalorder %v6984_v25, 28 }
 0x736   : > { %3472 = vrot.lane.b32.xlu0 %v9362_v30, %s12325_s23  ;;  %v10054_v16 = vpop.permute.xlu0 %3958 }
 0x737   : > { %3538 = vrot.lane.b32.xlu1 %v9367_v35, %s12331_s30  ;;  %v3969_v20 = vsel %vm12588_vm11, %v3957_v53, %v10054_v16  ;;  %vm12593_vm11 = vmmov %vm12592_vm8 }
 0x738   : > { %4355 = vmatprep.subr.mxu1 %v3969_v20  ;;  %v3857_v23 = vpop.permute.xlu1 %3856 }
 0x739   : > { %4356 = vmatpush2.msra.mxu1 %v3970_v50 }
 0x73a   : > { %3438 = vrot.lane.b32.xlu0 %v9359_v31, %s12320_s22  ;;  %v3859_v29 = vpop.permute.xlu0 %3858 }
 0x73b   : > { %3440 = vrot.lane.b32.xlu1 %v9362_v30, %s12320_s22  ;;  %v3875_v34 = vsel %vm12590_vm1, %v3857_v23, %v3859_v29  ;;  %vm12595_vm1 = vmmov %vm12594_vm9 }
 0x73c   : > { %4290 = vmatprep.subr.mxu0 %v3875_v34  ;;  %v10070_v3 = vpop.permute.xlu1 %3854 }
 0x73d   : > { %v3876_v37 = vsel %vm12591_vm0, %v10070_v3, %v3857_v23  ;;  %vm12596_vm0 = vcmp.lt.s32.totalorder %v6984_v25, 19 }
 0x73e   : > { %3506 = vrot.lane.b32.xlu0 %v9367_v35, %s12335_s9  ;;  %v3925_v47 = vpop.permute.xlu0 %3924  ;;  %4291 = vmatpush2.msra.mxu0 %v3876_v37 }
 0x73f   : > { %3406 = vrot.lane.b32.xlu1 %v9359_v31, %s12315_s20  ;;  %v3938_v6 = vsel %vm12593_vm11, %v9989_v46, %v3925_v47  ;;  %vm12598_vm11 = vcmp.lt.s32.totalorder %v6984_v25, 29 }
 0x740   : > { %v10079_v7 = vpop.permute.xlu1 %3926 }
 0x741   : > { %v3937_v32 = vsel %vm12592_vm8, %v3925_v47, %v10079_v7  ;;  %vm12597_vm8 = vmmov %vm12596_vm0 }
 0x742   : > { %3408 = vrot.lane.b32.xlu0 %v9362_v30, %s12315_s20  ;;  %v3825_v15 = vpop.permute.xlu0 %3824  ;;  %4357 = vmatprep.subr.mxu1 %v3937_v32 }
 0x743   : > { %3474 = vrot.lane.b32.xlu1 %v9367_v35, %s12325_s23  ;;  %4358 = vmatpush2.msra.mxu1 %v3938_v6 }
 0x744   : > { %v3827_v48 = vpop.permute.xlu1 %3826 }
 0x745   : > { %v3843_v55 = vsel %vm12594_vm9, %v3825_v15, %v3827_v48  ;;  %vm12599_vm9 = vmmov %vm12598_vm11 }
 0x746   : > { %3374 = vrot.lane.b32.xlu0 %v9359_v31, %s12308_s10  ;;  %v10095_v26 = vpop.permute.xlu0 %3822  ;;  %4292 = vmatprep.subr.mxu0 %v3843_v55 }
 0x747   : > { %3376 = vrot.lane.b32.xlu1 %v9362_v30, %s12308_s10  ;;  %v3844_v46 = vsel %vm12595_vm1, %v10095_v26, %v3825_v15  ;;  %vm12600_vm1 = vcmp.lt.s32.totalorder %v6984_v25, 27 }
 0x748   : > { %4293 = vmatpush2.msra.mxu0 %v3844_v46  ;;  %v3893_v33 = vpop.permute.xlu1 %3892 }
 0x749   : > { %v3906_v39 = vsel %vm12597_vm8, %v3891_v9, %v3893_v33  ;;  %vm12602_vm8 = vcmp.lt.s32.totalorder %v6984_v25, 28 }
 0x74a   : > { %3442 = vrot.lane.b32.xlu0 %v9367_v35, %s12320_s22  ;;  %v10104_v28 = vpop.permute.xlu0 %3894 }
 0x74b   : > { %3344 = vrot.lane.b32.xlu1 %v9362_v30, %s12306_s5  ;;  %v3905_v63 = vsel %vm12596_vm0, %v3893_v33, %v10104_v28  ;;  %vm12601_vm0 = vmmov %vm12600_vm1 }
 0x74c   : > { %4359 = vmatprep.subr.mxu1 %v3905_v63  ;;  %v3793_v24 = vpop.permute.xlu1 %3792 }
 0x74d   : > { %4360 = vmatpush2.msra.mxu1 %v3906_v39 }
 0x74e   : > { %3410 = vrot.lane.b32.xlu0 %v9367_v35, %s12315_s20  ;;  %v3795_v42 = vpop.permute.xlu0 %3794 }
 0x74f   : > { %3378 = vrot.lane.b32.xlu1 %v9367_v35, %s12308_s10  ;;  %v3811_v14 = vsel %vm12598_vm11, %v3793_v24, %v3795_v42  ;;  %vm12603_vm11 = vmmov %vm12602_vm8 }
 0x750   : > { %4294 = vmatprep.subr.mxu0 %v3811_v14  ;;  %v10119_v53 = vpop.permute.xlu1 %3790 }
 0x751   : > { %v3812_v20 = vsel %vm12599_vm9, %v10119_v53, %v3793_v24 }
 0x752   : > { %3346 = vrot.lane.b32.xlu0 %v9367_v35, %s12306_s5  ;;  %v3861_v9 = vpop.permute.xlu0 %3860  ;;  %4295 = vmatpush2.msra.mxu0 %v3812_v20 }
 0x753   : > { %3960 = vrot.lane.b32.xlu1 %v9362_v30, %s12414_s18  ;;  %v3874_v37 = vsel %vm12601_vm0, %v3859_v29, %v3861_v9  ;;  %vm12608_vm0 = vcmp.lt.s32.totalorder %v6984_v25, 119 }
 0x754   : > { %v10128_v23 = vpop.permute.xlu1 %3862 }
 0x755   : > { %v3873_v50 = vsel %vm12600_vm1, %v3861_v9, %v10128_v23  ;;  %vm12604_vm1 = vmmov %vm12599_vm9 }
 0x756   : > { %3962 = vrot.lane.b32.xlu0 %v9367_v35, %s12414_s18  ;;  %v3761_v34 = vpop.permute.xlu0 %3760  ;;  %4361 = vmatprep.subr.mxu1 %v3873_v50 }
 0x757   : > { %3928 = vrot.lane.b32.xlu1 %v9362_v30, %s12418_s28  ;;  %4362 = vmatpush2.msra.mxu1 %v3874_v37 }
 0x758   : > { %v3763_v47 = vpop.permute.xlu1 %3762 }
 0x759   : > { %v3779_v32 = vsel %vm966_vm12, %v3761_v34, %v3763_v47 }
 0x75a   : > { %3930 = vrot.lane.b32.xlu0 %v9367_v35, %s12418_s28  ;;  %v10143_v15 = vpop.permute.xlu0 %3758  ;;  %4296 = vmatprep.subr.mxu0 %v3779_v32 }
 0x75b   : > { %3896 = vrot.lane.b32.xlu1 %v9362_v30, %s12342_s6  ;;  %v3780_v29 = vsel %vm966_vm12, %v10143_v15, %v3761_v34 }
 0x75c   : > { %4297 = vmatpush2.msra.mxu0 %v3780_v29  ;;  %v3829_v6 = vpop.permute.xlu1 %3828 }
 0x75d   : > { %v3842_v63 = vsel %vm12603_vm11, %v3827_v48, %v3829_v6  ;;  %vm12610_vm11 = vcmp.lt.s32.totalorder %v6984_v25, 127 }
 0x75e   : > { %3898 = vrot.lane.b32.xlu0 %v9367_v35, %s12342_s6  ;;  %v10152_v55 = vpop.permute.xlu0 %3830 }
 0x75f   : > { %3964 = vrot.lane.b32.xlu1 %v9376_v21, %s12414_s18  ;;  %v3841_v46 = vsel %vm12602_vm8, %v3829_v6, %v10152_v55  ;;  %vm12609_vm8 = vmmov %vm12608_vm0 }
 0x760   : > { %4363 = vmatprep.subr.mxu1 %v3841_v46  ;;  %v3729_v33 = vpop.permute.xlu1 %3728 }
 0x761   : > { %4364 = vmatpush2.msra.mxu1 %v3842_v63 }
 0x762   : > { %3864 = vrot.lane.b32.xlu0 %v9362_v30, %s12346_s13  ;;  %v3731_v24 = vpop.permute.xlu0 %3730 }
 0x763   : > { %3866 = vrot.lane.b32.xlu1 %v9367_v35, %s12346_s13  ;;  %v3747_v39 = vsel %vm933_vm14, %v3729_v33, %v3731_v24 }
 0x764   : > { %4298 = vmatprep.subr.mxu0 %v3747_v39  ;;  %v10167_v14 = vpop.permute.xlu1 %3726 }
 0x765   : > { %v3748_v20 = vsel %vm933_vm14, %v10167_v14, %v3729_v33 }
 0x766   : > { %3932 = vrot.lane.b32.xlu0 %v9376_v21, %s12418_s28  ;;  %v3797_v48 = vpop.permute.xlu0 %3796  ;;  %4299 = vmatpush2.msra.mxu0 %v3748_v20 }
 0x767   : > { %3832 = vrot.lane.b32.xlu1 %v9362_v30, %s12348_s0  ;;  %v3810_v37 = vsel %vm12604_vm1, %v3795_v42, %v3797_v48  ;;  %vm12612_vm1 = vmmov %vm12608_vm0 }
 0x768   : > { %v10176_v9 = vpop.permute.xlu1 %3798 }
 0x769   : > { %v3809_v50 = vsel %vm12599_vm9, %v3797_v48, %v10176_v9  ;;  %vm12611_vm9 = vmmov %vm12610_vm11 }
 0x76a   : > { %3834 = vrot.lane.b32.xlu0 %v9367_v35, %s12348_s0  ;;  %v3697_v34 = vpop.permute.xlu0 %3696  ;;  %4365 = vmatprep.subr.mxu1 %v3809_v50 }
 0x76b   : > { %3900 = vrot.lane.b32.xlu1 %v9376_v21, %s12342_s6  ;;  %4366 = vmatpush2.msra.mxu1 %v3810_v37 }
 0x76c   : > { %v3699_v32 = vpop.permute.xlu1 %3698 }
 0x76d   : > { %v3715_v29 = vsel %vm900_vm15, %v3697_v34, %v3699_v32 }
 0x76e   : > { %3800 = vrot.lane.b32.xlu0 %v9362_v30, %s12351_s3  ;;  %v10191_v6 = vpop.permute.xlu0 %3694  ;;  %4300 = vmatprep.subr.mxu0 %v3715_v29 }
 0x76f   : > { %12605 = vst [vmem:[#allocation32_spill] sm:$0xff] %v10191_v6  ;;  %3802 = vrot.lane.b32.xlu1 %v9367_v35, %s12351_s3  ;;  %v3716_v42 = vsel %vm900_vm15, %v10191_v6, %v3697_v34 }
 0x770   : > { %4301 = vmatpush2.msra.mxu0 %v3716_v42  ;;  %v3765_v46 = vpop.permute.xlu1 %3764 }
 0x771   : > { %v3778_v20 = vsel %vm966_vm12, %v3763_v47, %v3765_v46 }
 0x772   : > { %3868 = vrot.lane.b32.xlu0 %v9376_v21, %s12346_s13  ;;  %v10200_v33 = vpop.permute.xlu0 %3766 }
 0x773   : > { %3768 = vrot.lane.b32.xlu1 %v9362_v30, %s12355_s24  ;;  %v3777_v63 = vsel %vm966_vm12, %v3765_v46, %v10200_v33 }
 0x774   : > { %4367 = vmatprep.subr.mxu1 %v3777_v63  ;;  %v3665_v39 = vpop.permute.xlu1 %3664 }
 0x775   : > { %4368 = vmatpush2.msra.mxu1 %v3778_v20 }
 0x776   : > { %3770 = vrot.lane.b32.xlu0 %v9367_v35, %s12355_s24  ;;  %v3667_v48 = vpop.permute.xlu0 %3666 }
 0x777   : > { %3836 = vrot.lane.b32.xlu1 %v9376_v21, %s12348_s0  ;;  %v3683_v50 = vsel %vm867_vm10, %v3665_v39, %v3667_v48 }
 0x778   : > { %4302 = vmatprep.subr.mxu0 %v3683_v50  ;;  %v10215_v34 = vpop.permute.xlu1 %3662 }
 0x779   : > { %12606 = vst [vmem:[#allocation68_spill] sm:$0xff] %v10215_v34  ;;  %v3684_v37 = vsel %vm867_vm10, %v10215_v34, %v3665_v39  ;;  %v6270_v34 = vmov 2  }
 0x77a   : > { %3736 = vrot.lane.b32.xlu0 %v9362_v30, %s12356_s17  ;;  %v3733_v47 = vpop.permute.xlu0 %3732  ;;  %4303 = vmatpush2.msra.mxu0 %v3684_v37  ;;  %v10244_v37 = vld [vmem:[%s11829_s1 + $0x20] sm:$0xff] }
 0x77b   : > { %3738 = vrot.lane.b32.xlu1 %v9367_v35, %s12356_s17  ;;  %v3746_v63 = vsel %vm933_vm14, %v3731_v24, %v3733_v47  ;;  %6129 = vset.pattern.permute.xlu0 %v6270_v34 }
 0x77c   : > { %v10224_v29 = vpop.permute.xlu1 %3734 }
 0x77d   : > { %v3745_v42 = vsel %vm933_vm14, %v3733_v47, %v10224_v29 }
 0x77e   : > { %3804 = vrot.lane.b32.xlu0 %v9376_v21, %s12351_s3  ;;  %v3633_v46 = vpop.permute.xlu0 %3632  ;;  %4369 = vmatprep.subr.mxu1 %v3745_v42 }
 0x77f   : > { %3704 = vrot.lane.b32.xlu1 %v9362_v30, %s12363_s16  ;;  %4370 = vmatpush2.msra.mxu1 %v3746_v63 }
 0x780   : > { %v3635_v39 = vpop.permute.xlu1 %3634 }
 0x781   : > { %v3651_v20 = vsel %vm834_vm13, %v3633_v46, %v3635_v39 }
 0x782   : > { %3706 = vrot.lane.b32.xlu0 %v9367_v35, %s12363_s16  ;;  %v10239_v50 = vpop.permute.xlu0 %3630  ;;  %4304 = vmatprep.subr.mxu0 %v3651_v20 }
 0x783   : > { %12607 = vst [vmem:[#allocation23_spill] sm:$0xff] %v10239_v50  ;;  %3772 = vrot.lane.b32.xlu1 %v9376_v21, %s12355_s24  ;;  %v3652_v24 = vsel %vm834_vm13, %v10239_v50, %v3633_v46 }
 0x784   : > { %4305 = vmatpush2.msra.mxu0 %v3652_v24  ;;  %v3701_v47 = vpop.permute.xlu1 %3700 }
 0x785   : > { %4307 = vmatmul.mubr.f32.vlgmr.msra.gmra.mxu0 %v10244_v37  ;;  %v3714_v20 = vsel %vm900_vm15, %v3699_v32, %v3701_v47 }
 0x786   : > { %3672 = vrot.lane.b32.xlu0 %v9362_v30, %s12370_s21  ;;  %v10254_v42 = vpop.permute.xlu0 %3702  ;;  %4448 = vmatprep.mubr.f32.mxu0 %v9832_v4 }
 0x787   : > { %3674 = vrot.lane.b32.xlu1 %v9367_v35, %s12370_s21  ;;  %v3713_v63 = vsel %vm900_vm15, %v3701_v47, %v10254_v42 }
 0x788   : > { %4371 = vmatprep.subr.mxu1 %v3713_v63  ;;  %v3609_v46 = vpop.permute.xlu1 %3608 }
 0x789   : > { %4372 = vmatpush2.msra.mxu1 %v3714_v20  ;;  %v3616_v63 = vsel %vm12609_vm8, %v9717_v22, %v3609_v46  ;;  %vm12613_vm8 = vmmov %vm12611_vm9 }
 0x78a   : > { %3740 = vrot.lane.b32.xlu0 %v9376_v21, %s12356_s17  ;;  %v3611_v24 = vpop.permute.xlu0 %3610 }
 0x78b   : > { %3640 = vrot.lane.b32.xlu1 %v9362_v30, %s12372_s15  ;;  %v3615_v50 = vsel %vm12608_vm0, %v3609_v46, %v3611_v24 }
 0x78c   : > { %4384 = vmatprep.subr.mxu0 %v3615_v50  ;;  %v3669_v6 = vpop.permute.xlu1 %3668 }
 0x78d   : > { %4385 = vmatpush1.msra.mxu0 %v3616_v63  ;;  %v3682_v50 = vsel %vm867_vm10, %v3667_v48, %v3669_v6 }
 0x78e   : > { %3642 = vrot.lane.b32.xlu0 %v9367_v35, %s12372_s15  ;;  %v10275_v32 = vpop.permute.xlu0 %3670 }
 0x78f   : > { %3708 = vrot.lane.b32.xlu1 %v9376_v21, %s12363_s16  ;;  %v3681_v47 = vsel %vm867_vm10, %v3669_v6, %v10275_v32  ;;  %v6137_v6 = vld [vmem:[%s11830_s2] sm:$0xff] }
 0x790   : > { %4373 = vmatprep.subr.mxu1 %v3681_v47  ;;  %v3577_v34 = vpop.permute.xlu1 %3576 }
 0x791   : > { %4374 = vmatpush2.msra.mxu1 %v3682_v50  ;;  %v3584_v63 = vsel %vm12611_vm9, %v9744_v57, %v3577_v34  ;;  %vm12616_vm9 = vcmp.lt.s32.totalorder %v6984_v25, 91 }
 0x792   : > { %3676 = vrot.lane.b32.xlu0 %v9376_v21, %s12370_s21  ;;  %v3579_v22 = vpop.permute.xlu0 %3578 }
 0x793   : > { %3644 = vrot.lane.b32.xlu1 %v9376_v21, %s12372_s15  ;;  %v3583_v46 = vsel %vm12610_vm11, %v3577_v34, %v3579_v22  ;;  %vm12614_vm11 = vmmov %vm12613_vm8 }
 0x794   : > { %4386 = vmatprep.subr.mxu0 %v3583_v46  ;;  %v3637_v20 = vpop.permute.xlu1 %3636 }
 0x795   : > { %4387 = vmatpush1.msra.mxu0 %v3584_v63  ;;  %v3650_v57 = vsel %vm834_vm13, %v3635_v39, %v3637_v20 }
 0x796   : > { %4388 = vmatprep.subr.mxu0 %v9362_v30  ;;  %4239 = vperm.xlu0 %6129, %v6137_v6  }
 0x797   : > { %v10297_v48 = vpop.permute.xlu0 %3638  ;;  %4389 = vmatpush1.msra.mxu0 %v9359_v31 }
 0x798   : > { %v3649_v47 = vsel %vm834_vm13, %v3637_v20, %v10297_v48 }
 0x799   : > { %4375 = vmatprep.subr.mxu1 %v3649_v47  ;;  %v3613_v50 = vpop.permute.xlu1 %3612 }
 0x79a   : > { %4376 = vmatpush2.msra.mxu1 %v3650_v57  ;;  %v3621_v30 = vsel %vm12612_vm1, %v3613_v50, %v9696_v45  ;;  %v3614_v34 = vsel %vm12608_vm0, %v3611_v24, %v3613_v50  ;;  %vm12617_vm1 = vmmov %vm12616_vm9  ;;  %vm12620_vm0 = vcmp.lt.s32.totalorder %v6984_v25, 99 }
 0x79b   : > { %4455 = vmatprep.subr.mxu1 %v3621_v30  ;;  %4378 = vmatmul.mubr.f32.vlgmr.msra.gmra.mxu1 %v10244_v37 }
 0x79c   : > { %v3535_v31 = vpop.permute.xlu0 %3534  ;;  %4456 = vmatpush1.msra.mxu1 %v3614_v34  ;;  %4519 = vmatprep.mubr.f32.mxu1 %v9832_v4 }
 0x79d   : > { %v3537_v46 = vpop.permute.xlu1 %3536  ;;  %v3545_v39 = vsel %vm727_vm2, %v9783_v44, %v3535_v31 }
 0x79e   : > { %v3544_v63 = vsel %vm727_vm2, %v3535_v31, %v3537_v46 }
 0x79f   : > { %4390 = vmatprep.subr.mxu0 %v3544_v63 }
 0x7a0   : > { %v3581_v45 = vpop.permute.xlu0 %3580  ;;  %4391 = vmatpush1.msra.mxu0 %v3545_v39 }
 0x7a1   : > { %v3589_v24 = vsel %vm12613_vm8, %v3581_v45, %v9707_v8  ;;  %v3503_v20 = vpop.permute.xlu1 %3502  ;;  %v3582_v6 = vsel %vm12614_vm11, %v3579_v22, %v3581_v45  ;;  %vm12622_vm8 = vmmov %vm12620_vm0  ;;  %vm12625_vm11 = vcmp.lt.s32.totalorder %v6984_v25, 100 }
 0x7a2   : > { %4457 = vmatprep.subr.mxu1 %v3589_v24  ;;  %v3513_v8 = vsel %vm694_vm3, %v9805_v43, %v3503_v20 }
 0x7a3   : > { %4458 = vmatpush1.msra.mxu1 %v3582_v6 }
 0x7a4   : > { %v3505_v4 = vpop.permute.xlu0 %3504  ;;  %4459 = vmatprep.subr.mxu1 %v9376_v21 }
 0x7a5   : > { %4460 = vmatpush1.msra.mxu1 %v9367_v35  ;;  %v3512_v44 = vsel %vm694_vm3, %v3503_v20, %v3505_v4  ;;  %v3471_v47 = vpop.permute.xlu1 %3470 }
 0x7a6   : > { %4392 = vmatprep.subr.mxu0 %v3512_v44  ;;  %v3481_v35 = vsel %vm661_vm4, %v9836_v56, %v3471_v47 }
 0x7a7   : > { %4393 = vmatpush1.msra.mxu0 %v3513_v8 }
 0x7a8   : > { %v3473_v50 = vpop.permute.xlu0 %3472 }
 0x7a9   : > { %v3480_v22 = vsel %vm661_vm4, %v3471_v47, %v3473_v50  ;;  %v3539_v57 = vpop.permute.xlu1 %3538 }
 0x7aa   : > { %4394 = vmatprep.subr.mxu0 %v3480_v22  ;;  %v3542_v21 = vsel %vm727_vm2, %v3539_v57, %v9735_v61  ;;  %v3543_v30 = vsel %vm727_vm2, %v3537_v46, %v3539_v57  ;;  %v12615_v57 = vld [vmem:[#allocation37_spill] sm:$0xff] }
 0x7ab   : > { %4395 = vmatpush1.msra.mxu0 %v3481_v35  ;;  %4461 = vmatprep.subr.mxu1 %v3542_v21 }
 0x7ac   : > { %v3439_v43 = vpop.permute.xlu0 %3438  ;;  %4462 = vmatpush1.msra.mxu1 %v3543_v30  ;;  %v12618_v30 = vld [vmem:[#allocation25_spill] sm:$0xff] }
 0x7ad   : > { %v3441_v34 = vpop.permute.xlu1 %3440  ;;  %v3449_v56 = vsel %vm628_vm5, %v9864_v41, %v3439_v43 }
 0x7ae   : > { %v3448_v31 = vsel %vm628_vm5, %v3439_v43, %v3441_v34 }
 0x7af   : > { %4396 = vmatprep.subr.mxu0 %v3448_v31 }
 0x7b0   : > { %v3507_v63 = vpop.permute.xlu0 %3506  ;;  %4397 = vmatpush1.msra.mxu0 %v3449_v56 }
 0x7b1   : > { %v3510_v61 = vsel %vm694_vm3, %v3507_v63, %v9759_v0  ;;  %v3407_v46 = vpop.permute.xlu1 %3406  ;;  %v3511_v39 = vsel %vm694_vm3, %v3505_v4, %v3507_v63 }
 0x7b2   : > { %4463 = vmatprep.subr.mxu1 %v3510_v61  ;;  %v3417_v41 = vsel %vm595_vm6, %v9893_v10, %v3407_v46  ;;  %v12623_v61 = vld [vmem:[#allocation83_spill] sm:$0xff] }
 0x7b3   : > { %4464 = vmatpush1.msra.mxu1 %v3511_v39 }
 0x7b4   : > { %v3409_v45 = vpop.permute.xlu0 %3408 }
 0x7b5   : > { %v3416_v24 = vsel %vm595_vm6, %v3407_v46, %v3409_v45  ;;  %v3475_v20 = vpop.permute.xlu1 %3474  ;;  %v12624_v46 = vld [vmem:[#allocation51_spill] sm:$0xff] }
 0x7b6   : > { %4398 = vmatprep.subr.mxu0 %v3416_v24  ;;  %v3478_v0 = vsel %vm661_vm4, %v3475_v20, %v9774_v36  ;;  %v3479_v6 = vsel %vm661_vm4, %v3473_v50, %v3475_v20  ;;  %v3288_v39 = vsel %vm12625_vm11, %v12624_v46, %v12623_v61 }
 0x7b7   : > { %4399 = vmatpush1.msra.mxu0 %v3417_v41  ;;  %4465 = vmatprep.subr.mxu1 %v3478_v0  ;;  %v12627_v41 = vld [vmem:[#allocation36_spill] sm:$0xff]  ;;  %v12628_v0 = vld [vmem:[#allocation35_spill] sm:$0xff] }
 0x7b8   : > { %v3375_v4 = vpop.permute.xlu0 %3374  ;;  %4466 = vmatpush1.msra.mxu1 %v3479_v6 }
 0x7b9   : > { %v3377_v44 = vpop.permute.xlu1 %3376  ;;  %v3385_v10 = vsel %vm562_vm7, %v9920_v40, %v3375_v4  ;;  %v3353_v40 = vsel %vm12617_vm1, %v9682_v62, %v12615_v57  ;;  %vm12629_vm1 = vcmp.lt.s32.totalorder %v6984_v25, 101 }
 0x7ba   : > { %v3384_v47 = vsel %vm562_vm7, %v3375_v4, %v3377_v44  ;;  %v3256_v6 = vsel %vm12629_vm1, %v12628_v0, %v12627_v41 }
 0x7bb   : > { %4400 = vmatprep.subr.mxu0 %v3384_v47  ;;  %v12633_v47 = vld [vmem:[#allocation56_spill] sm:$0xff] }
 0x7bc   : > { %v3443_v8 = vpop.permute.xlu0 %3442  ;;  %4401 = vmatpush1.msra.mxu0 %v3385_v10  ;;  %v12634_v10 = vld [vmem:[#allocation55_spill] sm:$0xff] }
 0x7bd   : > { %v3446_v36 = vsel %vm628_vm5, %v3443_v8, %v9796_v18  ;;  %v3345_v50 = vpop.permute.xlu1 %3344  ;;  %v3447_v22 = vsel %vm628_vm5, %v3441_v34, %v3443_v8  ;;  %v12619_v18 = vld [vmem:[#allocation29_spill] sm:$0xff] }
 0x7be   : > { %4467 = vmatprep.subr.mxu1 %v3446_v36  ;;  %v3352_v35 = vsel %vm12616_vm9, %v12615_v57, %v3345_v50  ;;  %v3320_v43 = vsel %vm12620_vm0, %v12619_v18, %v12618_v30  ;;  %v12621_v34 = vld [vmem:[#allocation81_spill] sm:$0xff]  ;;  %v3321_v63 = vsel %vm12622_vm8, %v9650_v27, %v12619_v18  ;;  %vm12626_vm9 = vmmov %vm12625_vm11  ;;  %vm12630_vm0 = vcmp.lt.s32.totalorder %v6984_v25, 91  ;;  %v12640_v57 = vld [vmem:[#allocation26_spill] sm:$0xff] }
 0x7bf   : > { %4468 = vmatpush1.msra.mxu1 %v3447_v22  ;;  %4402 = vmatprep.subr.mxu0 %v3352_v35  ;;  %v3289_v27 = vsel %vm12626_vm9, %v9618_v13, %v12624_v46  ;;  %vm12631_vm8 = vmmov %vm12629_vm1  ;;  %vm12635_vm9 = vcmp.lt.s32.totalorder %v6984_v25, 109  ;;  %vm12637_vm1 = vcmp.lt.s32.totalorder %v6984_v25, 99  ;;  %v12641_v35 = vld [vmem:[#allocation34_spill] sm:$0xff] }
 0x7c0   : > { %v3411_v21 = vpop.permute.xlu0 %3410  ;;  %4403 = vmatpush1.msra.mxu0 %v3353_v40  ;;  %v3257_v13 = vsel %vm12631_vm8, %v9586_v1, %v12628_v0  ;;  %vm12632_vm11 = vmmov %vm12630_vm0  ;;  %v3224_v8 = vsel %vm12635_vm9, %v12634_v10, %v12633_v47 }
 0x7c1   : > { %4404 = vmatprep.subr.mxu0 %v3320_v43  ;;  %v3414_v31 = vsel %vm595_vm6, %v3411_v21, %v12621_v34  ;;  %v3379_v56 = vpop.permute.xlu1 %3378  ;;  %v3415_v62 = vsel %vm595_vm6, %v3409_v45, %v3411_v21  ;;  %vm12639_vm8 = vmmov %vm12637_vm1  ;;  %v12647_v43 = vld [vmem:[#allocation49_spill] sm:$0xff]  ;;  %v12648_v34 = vld [vmem:[#allocation54_spill] sm:$0xff] }
 0x7c2   : > { %4469 = vmatprep.subr.mxu1 %v3414_v31  ;;  %4405 = vmatpush1.msra.mxu0 %v3321_v63  ;;  %v3382_v24 = vsel %vm562_vm7, %v3379_v56, %v9851_v58  ;;  %v3383_v20 = vsel %vm562_vm7, %v3377_v44, %v3379_v56 }
 0x7c3   : > { %4470 = vmatpush1.msra.mxu1 %v3415_v62  ;;  %4406 = vmatprep.subr.mxu0 %v3288_v39 }
 0x7c4   : > { %v3347_v45 = vpop.permute.xlu0 %3346  ;;  %4471 = vmatprep.subr.mxu1 %v3382_v24  ;;  %4407 = vmatpush1.msra.mxu0 %v3289_v27  ;;  %v12660_v27 = vld [vmem:[#allocation43_spill] sm:$0xff] }
 0x7c5   : > { %4472 = vmatpush1.msra.mxu1 %v3383_v20  ;;  %4408 = vmatprep.subr.mxu0 %v3256_v6  ;;  %v3350_v58 = vsel %vm12630_vm0, %v3347_v45, %v9873_v12  ;;  %v3961_v4 = vpop.permute.xlu1 %3960  ;;  %v3351_v44 = vsel %vm12632_vm11, %v3345_v50, %v3347_v45  ;;  %v12636_v12 = vld [vmem:[#allocation38_spill] sm:$0xff]  ;;  %vm12638_vm0 = vmmov %vm12635_vm9  ;;  %vm12642_vm11 = vcmp.lt.s32.totalorder %v6984_v25, 110  ;;  %vm12644_vm9 = vcmp.lt.s32.totalorder %v6984_v25, 100 }
 0x7c6   : > { %4473 = vmatprep.subr.mxu1 %v3350_v58  ;;  %4409 = vmatpush1.msra.mxu0 %v3257_v13  ;;  %v3318_v36 = vsel %vm12637_vm1, %v12636_v12, %v9666_v59  ;;  %v3225_v1 = vsel %vm12638_vm0, %v9554_v2, %v12634_v10  ;;  %v3319_v22 = vsel %vm12639_vm8, %v12618_v30, %v12636_v12  ;;  %v12643_v59 = vld [vmem:[#allocation76_spill] sm:$0xff]  ;;  %vm12645_vm1 = vmmov %vm12642_vm11  ;;  %vm12649_vm8 = vcmp.lt.s32.totalorder %v6984_v25, 111  ;;  %v12665_v6 = vld [vmem:[#allocation42_spill] sm:$0xff] }
 0x7c7   : > { %4474 = vmatpush1.msra.mxu1 %v3351_v44  ;;  %4410 = vmatprep.subr.mxu0 %v3224_v8  ;;  %v3192_v40 = vsel %vm12642_vm11, %v12641_v35, %v12640_v57  ;;  %v3286_v2 = vsel %vm12644_vm9, %v12643_v59, %v9634_v17  ;;  %v3193_v18 = vsel %vm12645_vm1, %v9522_v51, %v12641_v35  ;;  %vm12646_vm0 = vmmov %vm12644_vm9  ;;  %v12650_v17 = vld [vmem:[#allocation50_spill] sm:$0xff]  ;;  %vm12651_vm11 = vcmp.lt.s32.totalorder %v6984_v25, 101 }
 0x7c8   : > { %v3963_v50 = vpop.permute.xlu0 %3962  ;;  %4475 = vmatprep.subr.mxu1 %v3318_v36  ;;  %4411 = vmatpush1.msra.mxu0 %v3225_v1  ;;  %v3287_v30 = vsel %vm12646_vm0, %v12623_v61, %v12643_v59  ;;  %v3160_v31 = vsel %vm12649_vm8, %v12648_v34, %v12647_v43  ;;  %v3254_v56 = vsel %vm12651_vm11, %v12650_v17, %v9602_v19  ;;  %vm12652_vm9 = vmmov %vm12649_vm8  ;;  %vm12654_vm0 = vcmp.lt.s32.totalorder %v6984_v25, 17  ;;  %v12655_v19 = vld [vmem:[#allocation48_spill] sm:$0xff] }
 0x7c9   : > { %4476 = vmatpush1.msra.mxu1 %v3319_v22  ;;  %4412 = vmatprep.subr.mxu0 %v3192_v40  ;;  %v3929_v21 = vpop.permute.xlu1 %3928  ;;  %v3161_v51 = vsel %vm12652_vm9, %v9488_v38, %v12648_v34  ;;  %vm12653_vm1 = vmmov %vm12651_vm11  ;;  %v3967_v61 = vsel %vm12654_vm0, %v3961_v4, %v3963_v50  ;;  %vm12656_vm8 = vcmp.lt.s32.totalorder %v6984_v25, 109 }
 0x7ca   : > { %4477 = vmatprep.subr.mxu1 %v3286_v2  ;;  %4413 = vmatpush1.msra.mxu0 %v3193_v18  ;;  %v3255_v62 = vsel %vm12653_vm1, %v12627_v41, %v12650_v17  ;;  %v3222_v46 = vsel %vm12656_vm8, %v12655_v19, %v9570_v60  ;;  %vm12657_vm11 = vmmov %vm12654_vm0  ;;  %vm12659_vm1 = vcmp.lt.s32.totalorder %v6984_v25, 18  ;;  %vm12661_vm0 = vcmp.lt.s32.totalorder %v6984_v25, 110 }
 0x7cb   : > { %4478 = vmatpush1.msra.mxu1 %v3287_v30  ;;  %4414 = vmatprep.subr.mxu0 %v3160_v31  ;;  %v3968_v38 = vsel %vm12657_vm11, %v10054_v16, %v3961_v4  ;;  %vm12658_vm9 = vmmov %vm12656_vm8  ;;  %v3190_v60 = vsel %vm12661_vm0, %v12660_v27, %v9538_v54 }
 0x7cc   : > { %v3931_v63 = vpop.permute.xlu0 %3930  ;;  %4479 = vmatprep.subr.mxu1 %v3254_v56  ;;  %4415 = vmatpush1.msra.mxu0 %v3161_v51  ;;  %v3223_v24 = vsel %vm12658_vm9, %v12633_v47, %v12655_v19  ;;  %vm12662_vm8 = vmmov %vm12659_vm1  ;;  %vm12664_vm9 = vcmp.lt.s32.totalorder %v6984_v25, 19 }
 0x7cd   : > { %4480 = vmatpush1.msra.mxu1 %v3255_v62  ;;  %4426 = vmatprep.subr.mxu0 %v3967_v61  ;;  %v3897_v39 = vpop.permute.xlu1 %3896  ;;  %v3935_v20 = vsel %vm12659_vm1, %v3929_v21, %v3931_v63  ;;  %v3936_v16 = vsel %vm12662_vm8, %v10079_v7, %v3929_v21  ;;  %vm12663_vm11 = vmmov %vm12661_vm0  ;;  %vm12666_vm1 = vcmp.lt.s32.totalorder %v6984_v25, 111 }
 0x7ce   : > { %4481 = vmatprep.subr.mxu1 %v3222_v46  ;;  %4427 = vmatpush2.msra.mxu0 %v3968_v38  ;;  %v3191_v41 = vsel %vm12663_vm11, %v12640_v57, %v12660_v27  ;;  %v3158_v54 = vsel %vm12666_vm1, %v12665_v6, %v9514_v5  ;;  %vm12667_vm0 = vmmov %vm12666_vm1  ;;  %vm12669_vm11 = vcmp.lt.s32.totalorder %v6984_v25, 17  ;;  %vm12671_vm1 = vcmp.lt.s32.totalorder %v6984_v25, 27 }
 0x7cf   : > { %4482 = vmatpush1.msra.mxu1 %v3223_v24  ;;  %4428 = vmatprep.subr.mxu0 %v3935_v20  ;;  %v3159_v7 = vsel %vm12667_vm0, %v12647_v43, %v12665_v6  ;;  %vm12668_vm8 = vmmov %vm12664_vm9 }
 0x7d0   : > { %v3899_v45 = vpop.permute.xlu0 %3898  ;;  %4483 = vmatprep.subr.mxu1 %v3190_v60  ;;  %4429 = vmatpush2.msra.mxu0 %v3936_v16  ;;  %v3904_v4 = vsel %vm12668_vm8, %v10104_v28, %v3897_v39  ;;  %vm12672_vm0 = vmmov %vm12671_vm1  ;;  %vm12673_vm8 = vcmp.lt.s32.totalorder %v6984_v25, 18 }
 0x7d1   : > { %4484 = vmatpush1.msra.mxu1 %v3191_v41  ;;  %v3903_v0 = vsel %vm12664_vm9, %v3897_v39, %v3899_v45  ;;  %v3965_v58 = vpop.permute.xlu1 %3964  ;;  %vm12670_vm9 = vmmov %vm12669_vm11 }
 0x7d2   : > { %4430 = vmatprep.subr.mxu0 %v3903_v0  ;;  %4485 = vmatprep.subr.mxu1 %v3158_v54  ;;  %v3973_v13 = vsel %vm12669_vm11, %v3965_v58, %v9961_v11  ;;  %v3966_v44 = vsel %vm12670_vm9, %v3963_v50, %v3965_v58  ;;  %vm12674_vm11 = vmmov %vm12673_vm8  ;;  %vm12675_vm9 = vcmp.lt.s32.totalorder %v6984_v25, 28  ;;  %v12686_v54 = vld [vmem:[#allocation32_spill] sm:$0xff] }
 0x7d3   : > { %4431 = vmatpush2.msra.mxu0 %v3904_v4  ;;  %4486 = vmatpush1.msra.mxu1 %v3159_v7  ;;  %v12687_v4 = vld [vmem:[#allocation68_spill] sm:$0xff] }
 0x7d4   : > { %v3865_v5 = vpop.permute.xlu0 %3864  ;;  %4497 = vmatprep.subr.mxu1 %v3973_v13 }
 0x7d5   : > { %4498 = vmatpush2.msra.mxu1 %v3966_v44  ;;  %v3867_v47 = vpop.permute.xlu1 %3866  ;;  %v3872_v28 = vsel %vm12672_vm0, %v10128_v23, %v3865_v5  ;;  %vm12677_vm0 = vcmp.lt.s32.totalorder %v6984_v25, 19 }
 0x7d6   : > { %v3871_v10 = vsel %vm12671_vm1, %v3865_v5, %v3867_v47  ;;  %vm12676_vm1 = vmmov %vm12675_vm9  ;;  %v12688_v5 = vld [vmem:[#allocation23_spill] sm:$0xff] }
 0x7d7   : > { %4432 = vmatprep.subr.mxu0 %v3871_v10 }
 0x7d8   : > { %v3933_v8 = vpop.permute.xlu0 %3932  ;;  %4433 = vmatpush2.msra.mxu0 %v3872_v28 }
 0x7d9   : > { %v3941_v11 = vsel %vm12673_vm8, %v3933_v8, %v10004_v49  ;;  %v3833_v12 = vpop.permute.xlu1 %3832  ;;  %v3934_v36 = vsel %vm12674_vm11, %v3931_v63, %v3933_v8  ;;  %vm12678_vm8 = vmmov %vm12677_vm0  ;;  %vm12679_vm11 = vcmp.lt.s32.totalorder %v6984_v25, 29 }
 0x7da   : > { %4499 = vmatprep.subr.mxu1 %v3941_v11  ;;  %v3840_v23 = vsel %vm12676_vm1, %v10152_v55, %v3833_v12  ;;  %vm12681_vm1 = vcmp.lt.s32.totalorder %v6984_v25, 27 }
 0x7db   : > { %4500 = vmatpush2.msra.mxu1 %v3934_v36 }
 0x7dc   : > { %v3835_v1 = vpop.permute.xlu0 %3834 }
 0x7dd   : > { %v3839_v50 = vsel %vm12675_vm9, %v3833_v12, %v3835_v1  ;;  %v3901_v22 = vpop.permute.xlu1 %3900  ;;  %vm12680_vm9 = vmmov %vm12679_vm11 }
 0x7de   : > { %4434 = vmatprep.subr.mxu0 %v3839_v50  ;;  %v3909_v49 = vsel %vm12677_vm0, %v3901_v22, %v10041_v52  ;;  %v3902_v57 = vsel %vm12678_vm8, %v3899_v45, %v3901_v22  ;;  %vm12682_vm0 = vmmov %vm12681_vm1  ;;  %vm12683_vm8 = vcmp.lt.s32.totalorder %v6984_v25, 28  ;;  %v12689_v50 = vld [vmem:[#allocation41_spill] sm:$0xff] }
 0x7df   : > { %4435 = vmatpush2.msra.mxu0 %v3840_v23  ;;  %4501 = vmatprep.subr.mxu1 %v3909_v49  ;;  %v12690_v49 = vld [vmem:[#allocation27_spill] sm:$0xff] }
 0x7e0   : > { %v3801_v35 = vpop.permute.xlu0 %3800  ;;  %4502 = vmatpush2.msra.mxu1 %v3902_v57 }
 0x7e1   : > { %v3803_v40 = vpop.permute.xlu1 %3802  ;;  %v3808_v55 = vsel %vm12680_vm9, %v10176_v9, %v3801_v35 }
 0x7e2   : > { %v3807_v59 = vsel %vm12679_vm11, %v3801_v35, %v3803_v40  ;;  %vm12684_vm11 = vmmov %vm12683_vm8 }
 0x7e3   : > { %4436 = vmatprep.subr.mxu0 %v3807_v59 }
 0x7e4   : > { %v3869_v2 = vpop.permute.xlu0 %3868  ;;  %4437 = vmatpush2.msra.mxu0 %v3808_v55 }
 0x7e5   : > { %v3877_v52 = vsel %vm12681_vm1, %v3869_v2, %v10070_v3  ;;  %v3769_v21 = vpop.permute.xlu1 %3768  ;;  %v3870_v18 = vsel %vm12682_vm0, %v3867_v47, %v3869_v2  ;;  %vm12685_vm1 = vmmov %vm12680_vm9  ;;  %v12691_v2 = vld [vmem:[#allocation28_spill] sm:$0xff]  ;;  %vm12697_vm0 = vcmp.lt.s32.totalorder %v6984_v25, 119 }
 0x7e6   : > { %4503 = vmatprep.subr.mxu1 %v3877_v52  ;;  %v3776_v9 = vsel %vm966_vm12, %v10200_v33, %v3769_v21 }
 0x7e7   : > { %4504 = vmatpush2.msra.mxu1 %v3870_v18  ;;  %v12692_v18 = vld [vmem:[#allocation44_spill] sm:$0xff] }
 0x7e8   : > { %v3771_v30 = vpop.permute.xlu0 %3770 }
 0x7e9   : > { %v3775_v43 = vsel %vm966_vm12, %v3769_v21, %v3771_v30  ;;  %v3837_v34 = vpop.permute.xlu1 %3836 }
 0x7ea   : > { %4438 = vmatprep.subr.mxu0 %v3775_v43  ;;  %v3845_v3 = vsel %vm12683_vm8, %v3837_v34, %v10095_v26  ;;  %v3838_v31 = vsel %vm12684_vm11, %v3835_v1, %v3837_v34  ;;  %vm12698_vm8 = vmmov %vm12697_vm0 }
 0x7eb   : > { %4439 = vmatpush2.msra.mxu0 %v3776_v9  ;;  %4505 = vmatprep.subr.mxu1 %v3845_v3  ;;  %vm12699_vm11 = vmmov %vm12697_vm0 }
 0x7ec   : > { %v3737_v17 = vpop.permute.xlu0 %3736  ;;  %4506 = vmatpush2.msra.mxu1 %v3838_v31 }
 0x7ed   : > { %v3739_v56 = vpop.permute.xlu1 %3738  ;;  %v3744_v33 = vsel %vm933_vm14, %v10224_v29, %v3737_v17 }
 0x7ee   : > { %v3743_v51 = vsel %vm933_vm14, %v3737_v17, %v3739_v56  ;;  %v12693_v17 = vld [vmem:[#allocation45_spill] sm:$0xff] }
 0x7ef   : > { %4440 = vmatprep.subr.mxu0 %v3743_v51 }
 0x7f0   : > { %v3805_v63 = vpop.permute.xlu0 %3804  ;;  %4441 = vmatpush2.msra.mxu0 %v3744_v33 }
 0x7f1   : > { %v3813_v26 = vsel %vm12680_vm9, %v3805_v63, %v10119_v53  ;;  %v3705_v62 = vpop.permute.xlu1 %3704  ;;  %v3806_v61 = vsel %vm12685_vm1, %v3803_v40, %v3805_v63  ;;  %v12694_v63 = vld [vmem:[#allocation33_spill] sm:$0xff]  ;;  %vm12700_vm9 = vmmov %vm12697_vm0  ;;  %vm12701_vm1 = vcmp.lt.s32.totalorder %v6984_v25, 127 }
 0x7f2   : > { %4507 = vmatprep.subr.mxu1 %v3813_v26  ;;  %v3712_v29 = vsel %vm900_vm15, %v10254_v42, %v3705_v62 }
 0x7f3   : > { %4508 = vmatpush2.msra.mxu1 %v3806_v61 }
 0x7f4   : > { %v3707_v19 = vpop.permute.xlu0 %3706 }
 0x7f5   : > { %v3711_v46 = vsel %vm900_vm15, %v3705_v62, %v3707_v19  ;;  %v3773_v39 = vpop.permute.xlu1 %3772 }
 0x7f6   : > { %4442 = vmatprep.subr.mxu0 %v3711_v46  ;;  %v3781_v53 = vsel %vm966_vm12, %v3773_v39, %v10143_v15  ;;  %v3774_v38 = vsel %vm966_vm12, %v3771_v30, %v3773_v39  ;;  %v12695_v39 = vld [vmem:[#allocation22_spill] sm:$0xff] }
 0x7f7   : > { %4443 = vmatpush2.msra.mxu0 %v3712_v29  ;;  %4509 = vmatprep.subr.mxu1 %v3781_v53 }
 0x7f8   : > { %v3673_v24 = vpop.permute.xlu0 %3672  ;;  %4510 = vmatpush2.msra.mxu1 %v3774_v38  ;;  %v12696_v38 = vld [vmem:[#allocation20_spill] sm:$0xff] }
 0x7f9   : > { %v3675_v20 = vpop.permute.xlu1 %3674  ;;  %v3680_v42 = vsel %vm867_vm10, %v10275_v32, %v3673_v24 }
 0x7fa   : > { %v3679_v27 = vsel %vm867_vm10, %v3673_v24, %v3675_v20 }
 0x7fb   : > { %4444 = vmatprep.subr.mxu0 %v3679_v27 }
 0x7fc   : > { %v3741_v60 = vpop.permute.xlu0 %3740  ;;  %4445 = vmatpush2.msra.mxu0 %v3680_v42 }
 0x7fd   : > { %v3749_v15 = vsel %vm933_vm14, %v3741_v60, %v10167_v14  ;;  %v3641_v16 = vpop.permute.xlu1 %3640  ;;  %v3742_v45 = vsel %vm933_vm14, %v3739_v56, %v3741_v60 }
 0x7fe   : > { %4511 = vmatprep.subr.mxu1 %v3749_v15  ;;  %v3648_v32 = vsel %vm834_vm13, %v10297_v48, %v3641_v16 }
 0x7ff   : > { %4512 = vmatpush2.msra.mxu1 %v3742_v45 }
 0x800   : > { %v3643_v41 = vpop.permute.xlu0 %3642 }
 0x801   : > { %v3647_v0 = vsel %vm834_vm13, %v3641_v16, %v3643_v41  ;;  %v3709_v6 = vpop.permute.xlu1 %3708 }
 0x802   : > { %4446 = vmatprep.subr.mxu0 %v3647_v0  ;;  %v3717_v14 = vsel %vm900_vm15, %v3709_v6, %v12686_v54  ;;  %v3710_v58 = vsel %vm900_vm15, %v3707_v19, %v3709_v6 }
 0x803   : > { %4447 = vmatpush2.msra.mxu0 %v3648_v32  ;;  %4513 = vmatprep.subr.mxu1 %v3717_v14 }
 0x804   : > { %v3677_v7 = vpop.permute.xlu0 %3676  ;;  %4449 = vmatmul.mubr.f32.vlgmr.msra.gmra.mxu0 %v10244_v37  ;;  %4514 = vmatpush2.msra.mxu1 %v3710_v58 }
 0x805   : > { %v3685_v13 = vsel %vm867_vm10, %v3677_v7, %v12687_v4  ;;  %v3645_v44 = vpop.permute.xlu1 %3644  ;;  %v3678_v48 = vsel %vm867_vm10, %v3675_v20, %v3677_v7 }
 0x806   : > { %4515 = vmatprep.subr.mxu1 %v3685_v13  ;;  %v3653_v47 = vsel %vm834_vm13, %v3645_v44, %v12688_v5  ;;  %v3646_v10 = vsel %vm834_vm13, %v3643_v41, %v3645_v44 }
 0x807   : > { %4516 = vmatpush2.msra.mxu1 %v3678_v48 }
 0x808   : > { %4517 = vmatprep.subr.mxu1 %v3653_v47 }
 0x809   : > { %4518 = vmatpush2.msra.mxu1 %v3646_v10 }
 0x80a   : > { %4520 = vmatmul.mubr.f32.vlgmr.msra.gmra.mxu1 %v10244_v37 }
 0x811   : > { %v4240_v28 = vpop.permute.xlu0 %4239 }
 0x845   : > { %v4308_v8 = vpop.f32.mrf.mxu0 }
 0x846   : > { %v4309_v11 = vadd.f32 %v4308_v8, %v4240_v28 }
 0x847   : > { %v4310_v12 = vpop.f32.mrf.mxu0 }
 0x848   : > { %v4526_v36 = vmax.f32 %v4309_v11, 0.0  ;;  %v4311_v1 = vadd.f32 %v4310_v12, %v4240_v28 }
 0x84a   : > { %v10600_v22 = vmul.f32 %v4526_v36, %v12689_v50  ;;  %v4527_v23 = vmax.f32 %v4311_v1, 0.0 }
 0x84c   : > { %v10603_v57 = vmul.f32 %v4527_v23, %v12690_v49  ;;  %4542 = vrot.lane.b32.xlu1 %v10600_v22, %s12519_s4 }
 0x850   : > { %4544 = vrot.lane.b32.xlu1 %v10603_v57, %s12519_s4 }
 0x85b   : > { %v4379_v37 = vpop.f32.mrf.mxu1 }
 0x85c   : > { %v4380_v35 = vadd.f32 %v4379_v37, %v4240_v28 }
 0x85d   : > { %v4381_v40 = vpop.f32.mrf.mxu1 }
 0x85e   : > { %v4528_v59 = vmax.f32 %v4380_v35, 0.0  ;;  %v4382_v55 = vadd.f32 %v4381_v40, %v4240_v28 }
 0x860   : > { %v10610_v52 = vmul.f32 %v4528_v59, %v12691_v2  ;;  %v4529_v21 = vmax.f32 %v4382_v55, 0.0 }
 0x862   : > { %v10613_v30 = vmul.f32 %v4529_v21, %v12692_v18  ;;  %4546 = vrot.lane.b32.xlu0 %v10610_v52, %s12519_s4 }
 0x864   : > { %4548 = vrot.lane.b32.xlu1 %v10613_v30, %s12519_s4 }
 0x8be   : > { %v10731_v20 = vpop.permute.xlu1 %4542 }
 0x8c2   : > { %v10739_v27 = vpop.permute.xlu1 %4544 }
 0x8c4   : > { %v4450_v43 = vpop.f32.mrf.mxu0 }
 0x8c5   : > { %v4451_v34 = vadd.f32 %v4450_v43, %v4240_v28 }
 0x8c6   : > { %v4452_v9 = vpop.f32.mrf.mxu0 }
 0x8c7   : > { %v4530_v3 = vmax.f32 %v4451_v34, 0.0  ;;  %v4453_v31 = vadd.f32 %v4452_v9, %v4240_v28 }
 0x8c9   : > { %v10620_v56 = vmul.f32 %v4530_v3, %v12693_v17  ;;  %v4531_v51 = vmax.f32 %v4453_v31, 0.0 }
 0x8ca   : > { %v4521_v33 = vpop.f32.mrf.mxu1 }
 0x8cb   : > { %v10623_v26 = vmul.f32 %v4531_v51, %v12694_v63  ;;  %v4522_v62 = vadd.f32 %v4521_v33, %v4240_v28  ;;  %4550 = vrot.lane.b32.xlu0 %v10620_v56, %s12519_s4 }
 0x8cc   : > { %v4523_v61 = vpop.f32.mrf.mxu1 }
 0x8cd   : > { %v4532_v19 = vmax.f32 %v4522_v62, 0.0  ;;  %v4524_v46 = vadd.f32 %v4523_v61, %v4240_v28  ;;  %4552 = vrot.lane.b32.xlu1 %v10623_v26, %s12519_s4 }
 0x8cf   : > { %v10630_v29 = vmul.f32 %v4532_v19, %v12695_v39  ;;  %v4533_v53 = vmax.f32 %v4524_v46, 0.0 }
 0x8d1   : > { %v10633_v24 = vmul.f32 %v4533_v53, %v12696_v38  ;;  %4554 = vrot.lane.b32.xlu0 %v10630_v29, %s12519_s4 }
 0x8d3   : > { %4556 = vrot.lane.b32.xlu1 %v10633_v24, %s12519_s4 }
 0x8d4   : > { %v10745_v42 = vpop.permute.xlu0 %4546 }
 0x8d5   : > { %4574 = vrot.lane.b32.xlu0 %v10600_v22, %s12525_s27 }
 0x8d6   : > { %v10749_v60 = vpop.permute.xlu1 %4548 }
 0x8d7   : > { %4576 = vrot.lane.b32.xlu1 %v10603_v57, %s12525_s27 }
 0x8d9   : > { %4578 = vrot.lane.b32.xlu0 %v10610_v52, %s12525_s27 }
 0x8db   : > { %4580 = vrot.lane.b32.xlu1 %v10613_v30, %s12525_s27 }
 0x8dd   : > { %4582 = vrot.lane.b32.xlu0 %v10620_v56, %s12525_s27 }
 0x8df   : > { %4584 = vrot.lane.b32.xlu1 %v10623_v26, %s12525_s27 }
 0x8e1   : > { %4586 = vrot.lane.b32.xlu0 %v10630_v29, %s12525_s27 }
 0x8e3   : > { %4588 = vrot.lane.b32.xlu1 %v10633_v24, %s12525_s27 }
 0x8e5   : > { %4606 = vrot.lane.b32.xlu0 %v10600_v22, %s12302_s12 }
 0x8e7   : > { %4608 = vrot.lane.b32.xlu1 %v10603_v57, %s12302_s12 }
 0x8e9   : > { %4610 = vrot.lane.b32.xlu0 %v10610_v52, %s12302_s12 }
 0x8eb   : > { %4612 = vrot.lane.b32.xlu1 %v10613_v30, %s12302_s12 }
 0x8ed   : > { %4614 = vrot.lane.b32.xlu0 %v10620_v56, %s12302_s12 }
 0x8ef   : > { %4616 = vrot.lane.b32.xlu1 %v10623_v26, %s12302_s12 }
 0x8f1   : > { %4618 = vrot.lane.b32.xlu0 %v10630_v29, %s12302_s12 }
 0x8f3   : > { %4620 = vrot.lane.b32.xlu1 %v10633_v24, %s12302_s12 }
 0x8f5   : > { %4638 = vrot.lane.b32.xlu0 %v10600_v22, %s12303_s14 }
 0x8f7   : > { %4640 = vrot.lane.b32.xlu1 %v10603_v57, %s12303_s14 }
 0x8f9   : > { %5000 = vrot.lane.b32.xlu0 %v10603_v57, %s12326_s25 }
 0x8fb   : > { %5002 = vrot.lane.b32.xlu1 %v10610_v52, %s12326_s25 }
 0x8fd   : > { %5004 = vrot.lane.b32.xlu0 %v10613_v30, %s12326_s25 }
 0x8ff   : > { %5006 = vrot.lane.b32.xlu1 %v10620_v56, %s12326_s25 }
 0x901   : > { %4998 = vrot.lane.b32.xlu0 %v10600_v22, %s12326_s25 }
 0x903   : > { %4968 = vrot.lane.b32.xlu1 %v10603_v57, %s12330_s29 }
 0x905   : > { %4970 = vrot.lane.b32.xlu0 %v10610_v52, %s12330_s29 }
 0x907   : > { %4972 = vrot.lane.b32.xlu1 %v10613_v30, %s12330_s29 }
 0x909   : > { %4974 = vrot.lane.b32.xlu0 %v10620_v56, %s12330_s29 }
 0x90b   : > { %4966 = vrot.lane.b32.xlu1 %v10600_v22, %s12330_s29 }
 0x90d   : > { %4926 = vrot.lane.b32.xlu0 %v10600_v22, %s12331_s30 }
 0x90f   : > { %4928 = vrot.lane.b32.xlu1 %v10603_v57, %s12331_s30 }
 0x911   : > { %4930 = vrot.lane.b32.xlu0 %v10610_v52, %s12331_s30 }
 0x913   : > { %4932 = vrot.lane.b32.xlu1 %v10613_v30, %s12331_s30 }
 0x915   : > { %4940 = vrot.lane.b32.xlu0 %v10633_v24, %s12331_s30 }
 0x917   : > { %4894 = vrot.lane.b32.xlu1 %v10600_v22, %s12335_s9 }
 0x919   : > { %4896 = vrot.lane.b32.xlu0 %v10603_v57, %s12335_s9 }
 0x91b   : > { %4898 = vrot.lane.b32.xlu1 %v10610_v52, %s12335_s9 }
 0x91d   : > { %4900 = vrot.lane.b32.xlu0 %v10613_v30, %s12335_s9 }
 0x91f   : > { %4908 = vrot.lane.b32.xlu1 %v10633_v24, %s12335_s9 }
 0x921   : > { %4862 = vrot.lane.b32.xlu0 %v10600_v22, %s12325_s23 }
 0x923   : > { %4864 = vrot.lane.b32.xlu1 %v10603_v57, %s12325_s23 }
 0x925   : > { %4866 = vrot.lane.b32.xlu0 %v10610_v52, %s12325_s23 }
 0x927   : > { %4868 = vrot.lane.b32.xlu1 %v10613_v30, %s12325_s23 }
 0x929   : > { %4876 = vrot.lane.b32.xlu0 %v10633_v24, %s12325_s23 }
 0x92b   : > { %4830 = vrot.lane.b32.xlu1 %v10600_v22, %s12320_s22 }
 0x92d   : > { %4832 = vrot.lane.b32.xlu0 %v10603_v57, %s12320_s22 }
 0x92f   : > { %4834 = vrot.lane.b32.xlu1 %v10610_v52, %s12320_s22 }
 0x931   : > { %4836 = vrot.lane.b32.xlu0 %v10613_v30, %s12320_s22 }
 0x933   : > { %4844 = vrot.lane.b32.xlu1 %v10633_v24, %s12320_s22 }
 0x935   : > { %4798 = vrot.lane.b32.xlu0 %v10600_v22, %s12315_s20 }
 0x937   : > { %4800 = vrot.lane.b32.xlu1 %v10603_v57, %s12315_s20 }
 0x939   : > { %4802 = vrot.lane.b32.xlu0 %v10610_v52, %s12315_s20 }
 0x93b   : > { %4804 = vrot.lane.b32.xlu1 %v10613_v30, %s12315_s20 }
 0x93d   : > { %4812 = vrot.lane.b32.xlu0 %v10633_v24, %s12315_s20  ;;  %v10753_v15 = vpop.permute.xlu0 %4550 }
 0x93f   : > { %4766 = vrot.lane.b32.xlu1 %v10600_v22, %s12308_s10  ;;  %v10757_v16 = vpop.permute.xlu1 %4552 }
 0x941   : > { %4768 = vrot.lane.b32.xlu0 %v10603_v57, %s12308_s10 }
 0x943   : > { %4770 = vrot.lane.b32.xlu1 %v10610_v52, %s12308_s10  ;;  %v10763_v45 = vpop.permute.xlu0 %4554 }
 0x945   : > { %4772 = vrot.lane.b32.xlu0 %v10613_v30, %s12308_s10  ;;  %v10767_v41 = vpop.permute.xlu1 %4556 }
 0x947   : > { %4780 = vrot.lane.b32.xlu1 %v10633_v24, %s12308_s10  ;;  %v10771_v0 = vpop.permute.xlu0 %4574 }
 0x949   : > { %4734 = vrot.lane.b32.xlu0 %v10600_v22, %s12306_s5  ;;  %v10775_v6 = vpop.permute.xlu1 %4576 }
 0x94b   : > { %4736 = vrot.lane.b32.xlu1 %v10603_v57, %s12306_s5  ;;  %v10779_v32 = vpop.permute.xlu0 %4578 }
 0x94d   : > { %4738 = vrot.lane.b32.xlu0 %v10610_v52, %s12306_s5  ;;  %v10783_v54 = vpop.permute.xlu1 %4580 }
 0x94f   : > { %4740 = vrot.lane.b32.xlu1 %v10613_v30, %s12306_s5  ;;  %v10787_v14 = vpop.permute.xlu0 %4582 }
 0x951   : > { %4748 = vrot.lane.b32.xlu0 %v10633_v24, %s12306_s5  ;;  %v10791_v58 = vpop.permute.xlu1 %4584 }
 0x953   : > { %4702 = vrot.lane.b32.xlu1 %v10600_v22, %s12305_s8  ;;  %v10795_v7 = vpop.permute.xlu0 %4586 }
 0x955   : > { %4704 = vrot.lane.b32.xlu0 %v10603_v57, %s12305_s8  ;;  %v10799_v4 = vpop.permute.xlu1 %4588 }
 0x957   : > { %4706 = vrot.lane.b32.xlu1 %v10610_v52, %s12305_s8  ;;  %v10803_v13 = vpop.permute.xlu0 %4606 }
 0x959   : > { %4708 = vrot.lane.b32.xlu0 %v10613_v30, %s12305_s8  ;;  %v10807_v44 = vpop.permute.xlu1 %4608 }
 0x95b   : > { %4716 = vrot.lane.b32.xlu1 %v10633_v24, %s12305_s8  ;;  %v10811_v48 = vpop.permute.xlu0 %4610 }
 0x95d   : > { %4670 = vrot.lane.b32.xlu0 %v10600_v22, %s12304_s26  ;;  %v10815_v5 = vpop.permute.xlu1 %4612 }
 0x95f   : > { %4672 = vrot.lane.b32.xlu1 %v10603_v57, %s12304_s26  ;;  %v10819_v47 = vpop.permute.xlu0 %4614 }
 0x961   : > { %4674 = vrot.lane.b32.xlu0 %v10610_v52, %s12304_s26  ;;  %v10823_v10 = vpop.permute.xlu1 %4616 }
 0x963   : > { %4676 = vrot.lane.b32.xlu1 %v10613_v30, %s12304_s26  ;;  %v10827_v28 = vpop.permute.xlu0 %4618 }
 0x965   : > { %4684 = vrot.lane.b32.xlu0 %v10633_v24, %s12304_s26  ;;  %v10831_v8 = vpop.permute.xlu1 %4620 }
 0x967   : > { %4642 = vrot.lane.b32.xlu1 %v10610_v52, %s12303_s14  ;;  %v10835_v11 = vpop.permute.xlu0 %4638 }
 0x969   : > { %4644 = vrot.lane.b32.xlu0 %v10613_v30, %s12303_s14  ;;  %v10839_v12 = vpop.permute.xlu1 %4640 }
 0x96b   : > { %4652 = vrot.lane.b32.xlu1 %v10633_v24, %s12303_s14  ;;  %v5001_v36 = vpop.permute.xlu0 %5000 }
 0x96d   : > { %5352 = vrot.lane.b32.xlu0 %v10603_v57, %s12414_s18  ;;  %v5003_v1 = vpop.permute.xlu1 %5002 }
 0x96e   : > { %v5019_v50 = vsel %vm12697_vm0, %v5001_v36, %v5003_v1  ;;  %vm12702_vm0 = vmmov %vm12701_vm1 }
 0x96f   : > { %5354 = vrot.lane.b32.xlu1 %v10610_v52, %s12414_s18  ;;  %v5005_v23 = vpop.permute.xlu0 %5004  ;;  %5642 = vmatprep.subr.mxu0 %v5019_v50 }
 0x970   : > { %v5018_v40 = vsel %vm12699_vm11, %v5003_v1, %v5005_v23  ;;  %vm12704_vm11 = vmmov %vm12702_vm0 }
 0x971   : > { %5356 = vrot.lane.b32.xlu0 %v10613_v30, %s12414_s18  ;;  %v10851_v49 = vpop.permute.xlu1 %5006 }
 0x972   : > { %v5017_v37 = vsel %vm12698_vm8, %v5005_v23, %v10851_v49  ;;  %vm12703_vm8 = vmmov %vm12702_vm0 }
 0x973   : > { %5358 = vrot.lane.b32.xlu1 %v10620_v56, %s12414_s18  ;;  %v10858_v35 = vpop.permute.xlu0 %4998  ;;  %5713 = vmatprep.subr.mxu1 %v5017_v37 }
 0x974   : > { %5714 = vmatpush1.msra.mxu1 %v5018_v40  ;;  %v5020_v59 = vsel %vm12700_vm9, %v10858_v35, %v5001_v36  ;;  %vm12705_vm9 = vcmp.lt.s32.totalorder %v6984_v25, 91 }
 0x975   : > { %5350 = vrot.lane.b32.xlu0 %v10600_v22, %s12414_s18  ;;  %5643 = vmatpush1.msra.mxu0 %v5020_v59  ;;  %v4969_v55 = vpop.permute.xlu1 %4968 }
 0x977   : > { %5320 = vrot.lane.b32.xlu1 %v10603_v57, %s12418_s28  ;;  %v4971_v2 = vpop.permute.xlu0 %4970 }
 0x978   : > { %v4987_v21 = vsel %vm12701_vm1, %v4969_v55, %v4971_v2  ;;  %vm12706_vm1 = vmmov %vm12705_vm9 }
 0x979   : > { %5322 = vrot.lane.b32.xlu0 %v10610_v52, %s12418_s28  ;;  %5644 = vmatprep.subr.mxu0 %v4987_v21  ;;  %v4973_v18 = vpop.permute.xlu1 %4972 }
 0x97a   : > { %v4986_v3 = vsel %vm12703_vm8, %v4971_v2, %v4973_v18 }
 0x97b   : > { %5324 = vrot.lane.b32.xlu1 %v10613_v30, %s12418_s28  ;;  %v10875_v43 = vpop.permute.xlu0 %4974 }
 0x97c   : > { %v4985_v34 = vsel %vm12702_vm0, %v4973_v18, %v10875_v43  ;;  %vm12707_vm0 = vmmov %vm12706_vm1 }
 0x97d   : > { %5326 = vrot.lane.b32.xlu0 %v10620_v56, %s12418_s28  ;;  %5715 = vmatprep.subr.mxu1 %v4985_v34  ;;  %v10882_v9 = vpop.permute.xlu1 %4966  ;;  %vm12708_vm8 = vmmov %vm12707_vm0 }
 0x97e   : > { %5716 = vmatpush1.msra.mxu1 %v4986_v3  ;;  %v4988_v31 = vsel %vm12704_vm11, %v10882_v9, %v4969_v55  ;;  %vm12709_vm11 = vcmp.lt.s32.totalorder %v6984_v25, 99 }
 0x97f   : > { %5318 = vrot.lane.b32.xlu1 %v10600_v22, %s12418_s28  ;;  %v4927_v17 = vpop.permute.xlu0 %4926  ;;  %5645 = vmatpush1.msra.mxu0 %v4988_v31 }
 0x980   : > { %5717 = vmatprep.subr.mxu1 %v10613_v30  ;;  %5646 = vmatprep.subr.mxu0 %v10603_v57 }
 0x981   : > { %5718 = vmatpush1.msra.mxu1 %v10610_v52  ;;  %5288 = vrot.lane.b32.xlu0 %v10603_v57, %s12342_s6  ;;  %v4929_v51 = vpop.permute.xlu1 %4928 }
 0x982   : > { %5647 = vmatpush1.msra.mxu0 %v10600_v22  ;;  %v4948_v33 = vsel %vm727_vm2, %v4927_v17, %v4929_v51 }
 0x983   : > { %5290 = vrot.lane.b32.xlu1 %v10610_v52, %s12342_s6  ;;  %v4931_v63 = vpop.permute.xlu0 %4930  ;;  %5648 = vmatprep.subr.mxu0 %v4948_v33 }
 0x984   : > { %v4947_v46 = vsel %vm727_vm2, %v4929_v51, %v4931_v63 }
 0x985   : > { %5292 = vrot.lane.b32.xlu0 %v10613_v30, %s12342_s6  ;;  %v10903_v62 = vpop.permute.xlu1 %4932 }
 0x986   : > { %v4946_v61 = vsel %vm727_vm2, %v4931_v63, %v10903_v62 }
 0x987   : > { %v10908_v19 = vpop.permute.xlu0 %4940  ;;  %5294 = vrot.lane.b32.xlu1 %v10620_v56, %s12342_s6  ;;  %5719 = vmatprep.subr.mxu1 %v4946_v61 }
 0x988   : > { %5720 = vmatpush1.msra.mxu1 %v4947_v46  ;;  %v4949_v39 = vsel %vm727_vm2, %v10908_v19, %v4927_v17 }
 0x989   : > { %5286 = vrot.lane.b32.xlu0 %v10600_v22, %s12342_s6  ;;  %5649 = vmatpush1.msra.mxu0 %v4949_v39  ;;  %v4895_v53 = vpop.permute.xlu1 %4894 }
 0x98b   : > { %v4897_v38 = vpop.permute.xlu0 %4896  ;;  %5256 = vrot.lane.b32.xlu1 %v10603_v57, %s12346_s13 }
 0x98c   : > { %v4916_v36 = vsel %vm694_vm3, %v4895_v53, %v4897_v38 }
 0x98d   : > { %5258 = vrot.lane.b32.xlu0 %v10610_v52, %s12346_s13  ;;  %5650 = vmatprep.subr.mxu0 %v4916_v36  ;;  %v4899_v1 = vpop.permute.xlu1 %4898 }
 0x98e   : > { %v4915_v40 = vsel %vm694_vm3, %v4897_v38, %v4899_v1 }
 0x98f   : > { %v10925_v50 = vpop.permute.xlu0 %4900  ;;  %5260 = vrot.lane.b32.xlu1 %v10613_v30, %s12346_s13 }
 0x990   : > { %v4914_v23 = vsel %vm694_vm3, %v4899_v1, %v10925_v50 }
 0x991   : > { %5262 = vrot.lane.b32.xlu0 %v10620_v56, %s12346_s13  ;;  %5721 = vmatprep.subr.mxu1 %v4914_v23  ;;  %v10934_v37 = vpop.permute.xlu1 %4908 }
 0x992   : > { %5722 = vmatpush1.msra.mxu1 %v4915_v40  ;;  %v4917_v59 = vsel %vm694_vm3, %v10934_v37, %v4895_v53 }
 0x993   : > { %v4863_v55 = vpop.permute.xlu0 %4862  ;;  %5254 = vrot.lane.b32.xlu1 %v10600_v22, %s12346_s13  ;;  %5651 = vmatpush1.msra.mxu0 %v4917_v59 }
 0x995   : > { %5224 = vrot.lane.b32.xlu0 %v10603_v57, %s12348_s0  ;;  %v4865_v2 = vpop.permute.xlu1 %4864 }
 0x996   : > { %v4884_v21 = vsel %vm661_vm4, %v4863_v55, %v4865_v2 }
 0x997   : > { %v4867_v18 = vpop.permute.xlu0 %4866  ;;  %5226 = vrot.lane.b32.xlu1 %v10610_v52, %s12348_s0  ;;  %5652 = vmatprep.subr.mxu0 %v4884_v21 }
 0x998   : > { %v4883_v17 = vsel %vm661_vm4, %v4865_v2, %v4867_v18 }
 0x999   : > { %5228 = vrot.lane.b32.xlu0 %v10613_v30, %s12348_s0  ;;  %v10951_v34 = vpop.permute.xlu1 %4868 }
 0x99a   : > { %v4882_v3 = vsel %vm661_vm4, %v4867_v18, %v10951_v34 }
 0x99b   : > { %v10956_v31 = vpop.permute.xlu0 %4876  ;;  %5230 = vrot.lane.b32.xlu1 %v10620_v56, %s12348_s0  ;;  %5723 = vmatprep.subr.mxu1 %v4882_v3 }
 0x99c   : > { %5724 = vmatpush1.msra.mxu1 %v4883_v17  ;;  %v4885_v51 = vsel %vm661_vm4, %v10956_v31, %v4863_v55 }
 0x99d   : > { %5222 = vrot.lane.b32.xlu0 %v10600_v22, %s12348_s0  ;;  %5653 = vmatpush1.msra.mxu0 %v4885_v51  ;;  %v4831_v33 = vpop.permute.xlu1 %4830 }
 0x99f   : > { %v4833_v63 = vpop.permute.xlu0 %4832  ;;  %5192 = vrot.lane.b32.xlu1 %v10603_v57, %s12351_s3 }
 0x9a0   : > { %v4852_v61 = vsel %vm628_vm5, %v4831_v33, %v4833_v63 }
 0x9a1   : > { %5194 = vrot.lane.b32.xlu0 %v10610_v52, %s12351_s3  ;;  %5654 = vmatprep.subr.mxu0 %v4852_v61  ;;  %v4835_v46 = vpop.permute.xlu1 %4834 }
 0x9a2   : > { %v4851_v36 = vsel %vm628_vm5, %v4833_v63, %v4835_v46 }
 0x9a3   : > { %v10973_v39 = vpop.permute.xlu0 %4836  ;;  %5196 = vrot.lane.b32.xlu1 %v10613_v30, %s12351_s3 }
 0x9a4   : > { %v4850_v53 = vsel %vm628_vm5, %v4835_v46, %v10973_v39 }
 0x9a5   : > { %5198 = vrot.lane.b32.xlu0 %v10620_v56, %s12351_s3  ;;  %5725 = vmatprep.subr.mxu1 %v4850_v53  ;;  %v10982_v38 = vpop.permute.xlu1 %4844 }
 0x9a6   : > { %5726 = vmatpush1.msra.mxu1 %v4851_v36  ;;  %v4853_v1 = vsel %vm628_vm5, %v10982_v38, %v4831_v33 }
 0x9a7   : > { %v4799_v23 = vpop.permute.xlu0 %4798  ;;  %5190 = vrot.lane.b32.xlu1 %v10600_v22, %s12351_s3  ;;  %5655 = vmatpush1.msra.mxu0 %v4853_v1 }
 0x9a9   : > { %5160 = vrot.lane.b32.xlu0 %v10603_v57, %s12355_s24  ;;  %v4801_v40 = vpop.permute.xlu1 %4800 }
 0x9aa   : > { %v4820_v59 = vsel %vm595_vm6, %v4799_v23, %v4801_v40 }
 0x9ab   : > { %v4803_v55 = vpop.permute.xlu0 %4802  ;;  %5162 = vrot.lane.b32.xlu1 %v10610_v52, %s12355_s24  ;;  %5656 = vmatprep.subr.mxu0 %v4820_v59 }
 0x9ac   : > { %v4819_v3 = vsel %vm595_vm6, %v4801_v40, %v4803_v55 }
 0x9ad   : > { %5164 = vrot.lane.b32.xlu0 %v10613_v30, %s12355_s24  ;;  %v10999_v2 = vpop.permute.xlu1 %4804 }
 0x9ae   : > { %v4818_v21 = vsel %vm595_vm6, %v4803_v55, %v10999_v2 }
 0x9af   : > { %v11004_v18 = vpop.permute.xlu0 %4812  ;;  %5166 = vrot.lane.b32.xlu1 %v10620_v56, %s12355_s24  ;;  %5727 = vmatprep.subr.mxu1 %v4818_v21 }
 0x9b0   : > { %5728 = vmatpush1.msra.mxu1 %v4819_v3  ;;  %v4821_v17 = vsel %vm595_vm6, %v11004_v18, %v4799_v23 }
 0x9b1   : > { %5158 = vrot.lane.b32.xlu0 %v10600_v22, %s12355_s24  ;;  %5657 = vmatpush1.msra.mxu0 %v4821_v17  ;;  %v4767_v51 = vpop.permute.xlu1 %4766 }
 0x9b3   : > { %v4769_v33 = vpop.permute.xlu0 %4768  ;;  %5128 = vrot.lane.b32.xlu1 %v10603_v57, %s12356_s17 }
 0x9b4   : > { %v4788_v63 = vsel %vm562_vm7, %v4767_v51, %v4769_v33 }
 0x9b5   : > { %5130 = vrot.lane.b32.xlu0 %v10610_v52, %s12356_s17  ;;  %5658 = vmatprep.subr.mxu0 %v4788_v63  ;;  %v4771_v61 = vpop.permute.xlu1 %4770 }
 0x9b6   : > { %v4787_v1 = vsel %vm562_vm7, %v4769_v33, %v4771_v61 }
 0x9b7   : > { %v11021_v46 = vpop.permute.xlu0 %4772  ;;  %5132 = vrot.lane.b32.xlu1 %v10613_v30, %s12356_s17 }
 0x9b8   : > { %v4786_v53 = vsel %vm562_vm7, %v4771_v61, %v11021_v46 }
 0x9b9   : > { %5134 = vrot.lane.b32.xlu0 %v10620_v56, %s12356_s17  ;;  %5729 = vmatprep.subr.mxu1 %v4786_v53  ;;  %v11030_v36 = vpop.permute.xlu1 %4780 }
 0x9ba   : > { %5730 = vmatpush1.msra.mxu1 %v4787_v1  ;;  %v4789_v23 = vsel %vm562_vm7, %v11030_v36, %v4767_v51 }
 0x9bb   : > { %v4735_v40 = vpop.permute.xlu0 %4734  ;;  %5126 = vrot.lane.b32.xlu1 %v10600_v22, %s12356_s17  ;;  %5659 = vmatpush1.msra.mxu0 %v4789_v23 }
 0x9bd   : > { %5096 = vrot.lane.b32.xlu0 %v10603_v57, %s12363_s16  ;;  %v4737_v59 = vpop.permute.xlu1 %4736 }
 0x9be   : > { %v4756_v55 = vsel %vm12705_vm9, %v4735_v40, %v4737_v59  ;;  %vm12710_vm9 = vmmov %vm12709_vm11 }
 0x9bf   : > { %v4739_v21 = vpop.permute.xlu0 %4738  ;;  %5098 = vrot.lane.b32.xlu1 %v10610_v52, %s12363_s16  ;;  %5660 = vmatprep.subr.mxu0 %v4756_v55 }
 0x9c0   : > { %v4755_v33 = vsel %vm12707_vm0, %v4737_v59, %v4739_v21 }
 0x9c1   : > { %5100 = vrot.lane.b32.xlu0 %v10613_v30, %s12363_s16  ;;  %v11047_v3 = vpop.permute.xlu1 %4740 }
 0x9c2   : > { %v4754_v17 = vsel %vm12706_vm1, %v4739_v21, %v11047_v3  ;;  %vm12711_vm1 = vmmov %vm12710_vm9 }
 0x9c3   : > { %v11052_v51 = vpop.permute.xlu0 %4748  ;;  %5102 = vrot.lane.b32.xlu1 %v10620_v56, %s12363_s16  ;;  %5731 = vmatprep.subr.mxu1 %v4754_v17  ;;  %vm12712_vm0 = vmmov %vm12711_vm1 }
 0x9c4   : > { %5732 = vmatpush1.msra.mxu1 %v4755_v33  ;;  %v4757_v63 = vsel %vm12708_vm8, %v11052_v51, %v4735_v40  ;;  %vm12713_vm8 = vcmp.lt.s32.totalorder %v6984_v25, 100 }
 0x9c5   : > { %5094 = vrot.lane.b32.xlu0 %v10600_v22, %s12363_s16  ;;  %5661 = vmatpush1.msra.mxu0 %v4757_v63  ;;  %v4703_v61 = vpop.permute.xlu1 %4702  ;;  %v11090_v63 = vld [vmem:[%s11829_s1 + $0x38] sm:$0xff] }
 0x9c6   : > { %5706 = vmatprep.mubr.f32.mxu0 %v11090_v63  ;;  %5777 = vmatprep.mubr.f32.mxu1 %v11090_v63 }
 0x9c7   : > { %v4705_v53 = vpop.permute.xlu0 %4704  ;;  %5064 = vrot.lane.b32.xlu1 %v10603_v57, %s12370_s21 }
 0x9c8   : > { %v4724_v1 = vsel %vm12709_vm11, %v4703_v61, %v4705_v53  ;;  %vm12714_vm11 = vmmov %vm12713_vm8 }
 0x9c9   : > { %5066 = vrot.lane.b32.xlu0 %v10610_v52, %s12370_s21  ;;  %5662 = vmatprep.subr.mxu0 %v4724_v1  ;;  %v4707_v23 = vpop.permute.xlu1 %4706 }
 0x9ca   : > { %v4723_v21 = vsel %vm12711_vm1, %v4705_v53, %v4707_v23  ;;  %vm12716_vm1 = vmmov %vm12713_vm8 }
 0x9cb   : > { %v11069_v59 = vpop.permute.xlu0 %4708  ;;  %5068 = vrot.lane.b32.xlu1 %v10613_v30, %s12370_s21 }
 0x9cc   : > { %v4722_v40 = vsel %vm12710_vm9, %v4707_v23, %v11069_v59  ;;  %vm12715_vm9 = vmmov %vm12713_vm8 }
 0x9cd   : > { %5070 = vrot.lane.b32.xlu0 %v10620_v56, %s12370_s21  ;;  %5733 = vmatprep.subr.mxu1 %v4722_v40  ;;  %v11078_v55 = vpop.permute.xlu1 %4716 }
 0x9ce   : > { %5734 = vmatpush1.msra.mxu1 %v4723_v21  ;;  %v4725_v17 = vsel %vm12712_vm0, %v11078_v55, %v4703_v61  ;;  %vm12717_vm0 = vcmp.lt.s32.totalorder %v6984_v25, 101 }
 0x9cf   : > { %v4671_v33 = vpop.permute.xlu0 %4670  ;;  %5062 = vrot.lane.b32.xlu1 %v10600_v22, %s12370_s21  ;;  %5663 = vmatpush1.msra.mxu0 %v4725_v17  ;;  %v4660_v17 = vsel %vm12717_vm0, %v10835_v11, %v10839_v12 }
 0x9d1   : > { %5032 = vrot.lane.b32.xlu0 %v10603_v57, %s12372_s15  ;;  %v4673_v1 = vpop.permute.xlu1 %4672 }
 0x9d2   : > { %v4692_v53 = vsel %vm12713_vm8, %v4671_v33, %v4673_v1  ;;  %vm12718_vm8 = vmmov %vm12717_vm0 }
 0x9d3   : > { %v4675_v61 = vpop.permute.xlu0 %4674  ;;  %5034 = vrot.lane.b32.xlu1 %v10610_v52, %s12372_s15  ;;  %5664 = vmatprep.subr.mxu0 %v4692_v53 }
 0x9d4   : > { %v4691_v21 = vsel %vm12715_vm9, %v4673_v1, %v4675_v61  ;;  %vm12720_vm9 = vmmov %vm12717_vm0 }
 0x9d5   : > { %5036 = vrot.lane.b32.xlu0 %v10613_v30, %s12372_s15  ;;  %v11102_v23 = vpop.permute.xlu1 %4676 }
 0x9d6   : > { %v4690_v57 = vsel %vm12714_vm11, %v4675_v61, %v11102_v23  ;;  %vm12719_vm11 = vmmov %vm12717_vm0 }
 0x9d7   : > { %v11107_v40 = vpop.permute.xlu0 %4684  ;;  %5038 = vrot.lane.b32.xlu1 %v10620_v56, %s12372_s15  ;;  %5735 = vmatprep.subr.mxu1 %v4690_v57 }
 0x9d8   : > { %5736 = vmatpush1.msra.mxu1 %v4691_v21  ;;  %v4693_v52 = vsel %vm12716_vm1, %v11107_v40, %v4671_v33  ;;  %vm12721_vm1 = vcmp.lt.s32.totalorder %v6984_v25, 109 }
 0x9d9   : > { %5030 = vrot.lane.b32.xlu0 %v10600_v22, %s12372_s15  ;;  %5665 = vmatpush1.msra.mxu0 %v4693_v52  ;;  %v4643_v30 = vpop.permute.xlu1 %4642  ;;  %v4626_v21 = vsel %vm12721_vm1, %v10811_v48, %v10815_v5  ;;  %vm12722_vm0 = vmmov %vm12721_vm1 }
 0x9da   : > { %5666 = vmatprep.subr.mxu0 %v4660_v17  ;;  %v4659_v1 = vsel %vm12719_vm11, %v10839_v12, %v4643_v30  ;;  %v4628_v12 = vsel %vm12722_vm0, %v10803_v13, %v10807_v44  ;;  %vm12724_vm11 = vmmov %vm12722_vm0 }
 0x9db   : > { %v11122_v53 = vpop.permute.xlu0 %4644  ;;  %5008 = vrot.lane.b32.xlu1 %v10623_v26, %s12326_s25  ;;  %v4629_v52 = vsel %vm12724_vm11, %v10831_v8, %v10803_v13  ;;  %vm12729_vm11 = vcmp.lt.s32.totalorder %v6984_v25, 111 }
 0x9dc   : > { %v4658_v33 = vsel %vm12718_vm8, %v4643_v30, %v11122_v53  ;;  %vm12723_vm8 = vmmov %vm12722_vm0 }
 0x9dd   : > { %5010 = vrot.lane.b32.xlu0 %v10630_v29, %s12326_s25  ;;  %5737 = vmatprep.subr.mxu1 %v4658_v33  ;;  %v11131_v22 = vpop.permute.xlu1 %4652 }
 0x9de   : > { %5738 = vmatpush1.msra.mxu1 %v4659_v1  ;;  %v4661_v61 = vsel %vm12720_vm9, %v11131_v22, %v10835_v11  ;;  %v4627_v11 = vsel %vm12723_vm8, %v10807_v44, %v10811_v48  ;;  %vm12725_vm9 = vcmp.lt.s32.totalorder %v6984_v25, 110  ;;  %v4562_v1 = vsel %vm12729_vm11, %v10745_v42, %v10749_v60 }
 0x9df   : > { %v5353_v57 = vpop.permute.xlu0 %5352  ;;  %5012 = vrot.lane.b32.xlu1 %v10633_v24, %s12326_s25  ;;  %5667 = vmatpush1.msra.mxu0 %v4661_v61  ;;  %v4594_v30 = vsel %vm12725_vm9, %v10779_v32, %v10783_v54  ;;  %vm12726_vm1 = vmmov %vm12725_vm9 }
 0x9e0   : > { %5739 = vmatprep.subr.mxu1 %v4626_v21  ;;  %5668 = vmatprep.subr.mxu0 %v4628_v12  ;;  %v4596_v44 = vsel %vm12726_vm1, %v10771_v0, %v10775_v6  ;;  %vm12727_vm0 = vmmov %vm12726_vm1 }
 0x9e1   : > { %5740 = vmatpush1.msra.mxu1 %v4627_v11  ;;  %4976 = vrot.lane.b32.xlu0 %v10623_v26, %s12330_s29  ;;  %v5355_v17 = vpop.permute.xlu1 %5354  ;;  %v4595_v48 = vsel %vm12727_vm0, %v10775_v6, %v10779_v32  ;;  %vm12728_vm8 = vmmov %vm12727_vm0 }
 0x9e2   : > { %5669 = vmatpush1.msra.mxu0 %v4629_v52  ;;  %5741 = vmatprep.subr.mxu1 %v4594_v30  ;;  %v4597_v33 = vsel %vm12728_vm8, %v10799_v4, %v10771_v0  ;;  %vm12730_vm9 = vmmov %vm12729_vm11  ;;  %vm12733_vm8 = vcmp.lt.s32.totalorder %v6984_v25, 17 }
 0x9e3   : > { %5670 = vmatprep.subr.mxu0 %v4596_v44  ;;  %5742 = vmatpush1.msra.mxu1 %v4595_v48  ;;  %v5357_v13 = vpop.permute.xlu0 %5356  ;;  %v4564_v6 = vsel %vm12730_vm9, %v10731_v20, %v10739_v27  ;;  %vm12731_vm1 = vmmov %vm12730_vm9 }
 0x9e4   : > { %4978 = vrot.lane.b32.xlu1 %v10630_v29, %s12330_s29  ;;  %5671 = vmatpush1.msra.mxu0 %v4597_v33  ;;  %v4563_v0 = vsel %vm12731_vm1, %v10739_v27, %v10745_v42  ;;  %vm12732_vm0 = vmmov %vm12731_vm1 }
 0x9e5   : > { %5743 = vmatprep.subr.mxu1 %v4562_v1  ;;  %5672 = vmatprep.subr.mxu0 %v4564_v6  ;;  %v11190_v32 = vpop.permute.xlu1 %5358  ;;  %v4565_v61 = vsel %vm12732_vm0, %v10767_v41, %v10731_v20  ;;  %vm12734_vm11 = vmmov %vm12733_vm8  ;;  %vm12737_vm0 = vcmp.lt.s32.totalorder %v6984_v25, 18 }
 0x9e6   : > { %5744 = vmatpush1.msra.mxu1 %v4563_v0  ;;  %4980 = vrot.lane.b32.xlu0 %v10633_v24, %s12330_s29  ;;  %v5369_v21 = vsel %vm12733_vm8, %v5357_v13, %v11190_v32  ;;  %v5371_v12 = vsel %vm12734_vm11, %v5353_v57, %v5355_v17  ;;  %vm12735_vm9 = vmmov %vm12733_vm8 }
 0x9e7   : > { %5673 = vmatpush1.msra.mxu0 %v4565_v61  ;;  %v11203_v27 = vpop.permute.xlu0 %5350  ;;  %5755 = vmatprep.subr.mxu1 %v5369_v21  ;;  %v5370_v42 = vsel %vm12735_vm9, %v5355_v17, %v5357_v13  ;;  %vm12736_vm1 = vmmov %vm12733_vm8 }
 0x9e8   : > { %5684 = vmatprep.subr.mxu0 %v5371_v12  ;;  %4934 = vrot.lane.b32.xlu1 %v10620_v56, %s12331_s30  ;;  %v5372_v20 = vsel %vm12736_vm1, %v11203_v27, %v5353_v57  ;;  %vm12738_vm8 = vmmov %vm12737_vm0  ;;  %vm12741_vm1 = vcmp.lt.s32.totalorder %v6984_v25, 19 }
 0x9e9   : > { %5756 = vmatpush2.msra.mxu1 %v5370_v42  ;;  %5685 = vmatpush2.msra.mxu0 %v5372_v20  ;;  %v5321_v11 = vpop.permute.xlu1 %5320  ;;  %vm12739_vm11 = vmmov %vm12737_vm0 }
 0x9ea   : > { %4936 = vrot.lane.b32.xlu0 %v10623_v26, %s12331_s30  ;;  %vm12740_vm9 = vmmov %vm12737_vm0 }
 0x9eb   : > { %v5323_v52 = vpop.permute.xlu0 %5322 }
 0x9ec   : > { %4938 = vrot.lane.b32.xlu1 %v10630_v29, %s12331_s30  ;;  %v5339_v30 = vsel %vm12737_vm0, %v5321_v11, %v5323_v52  ;;  %vm12742_vm0 = vmmov %vm12741_vm1 }
 0x9ed   : > { %5686 = vmatprep.subr.mxu0 %v5339_v30  ;;  %v5325_v44 = vpop.permute.xlu1 %5324 }
 0x9ee   : > { %4902 = vrot.lane.b32.xlu0 %v10620_v56, %s12335_s9  ;;  %v5338_v13 = vsel %vm12739_vm11, %v5323_v52, %v5325_v44  ;;  %vm12744_vm11 = vmmov %vm12742_vm0 }
 0x9ef   : > { %v11220_v17 = vpop.permute.xlu0 %5326 }
 0x9f0   : > { %4904 = vrot.lane.b32.xlu1 %v10623_v26, %s12335_s9  ;;  %v5337_v57 = vsel %vm12738_vm8, %v5325_v44, %v11220_v17  ;;  %vm12743_vm8 = vmmov %vm12742_vm0 }
 0x9f1   : > { %5757 = vmatprep.subr.mxu1 %v5337_v57  ;;  %v11227_v48 = vpop.permute.xlu1 %5318 }
 0x9f2   : > { %4906 = vrot.lane.b32.xlu0 %v10630_v29, %s12335_s9  ;;  %5758 = vmatpush2.msra.mxu1 %v5338_v13  ;;  %v5340_v33 = vsel %vm12740_vm9, %v11227_v48, %v5321_v11  ;;  %vm12745_vm9 = vcmp.lt.s32.totalorder %v6984_v25, 27  ;;  %s12841_s9 = sld [smem:[#allocation13_spill]] }
 0x9f3   : > { %v5289_v1 = vpop.permute.xlu0 %5288  ;;  %5687 = vmatpush2.msra.mxu0 %v5340_v33 }
 0x9f4   : > { %4870 = vrot.lane.b32.xlu1 %v10620_v56, %s12325_s23 }
 0x9f5   : > { %v5291_v6 = vpop.permute.xlu1 %5290 }
 0x9f6   : > { %4872 = vrot.lane.b32.xlu0 %v10623_v26, %s12325_s23  ;;  %v5307_v0 = vsel %vm12741_vm1, %v5289_v1, %v5291_v6  ;;  %vm12746_vm1 = vmmov %vm12745_vm9 }
 0x9f7   : > { %v5293_v61 = vpop.permute.xlu0 %5292  ;;  %5688 = vmatprep.subr.mxu0 %v5307_v0 }
 0x9f8   : > { %4874 = vrot.lane.b32.xlu1 %v10630_v29, %s12325_s23  ;;  %v5306_v20 = vsel %vm12743_vm8, %v5291_v6, %v5293_v61  ;;  %s12843_s23 = sld [smem:[#allocation86_spill]] }
 0x9f9   : > { %v11244_v21 = vpop.permute.xlu1 %5294 }
 0x9fa   : > { %4838 = vrot.lane.b32.xlu0 %v10620_v56, %s12320_s22  ;;  %v5305_v12 = vsel %vm12742_vm0, %v5293_v61, %v11244_v21  ;;  %vm12747_vm0 = vmmov %vm12746_vm1 }
 0x9fb   : > { %v11251_v42 = vpop.permute.xlu0 %5286  ;;  %5759 = vmatprep.subr.mxu1 %v5305_v12  ;;  %vm12748_vm8 = vmmov %vm12747_vm0 }
 0x9fc   : > { %4840 = vrot.lane.b32.xlu1 %v10623_v26, %s12320_s22  ;;  %5760 = vmatpush2.msra.mxu1 %v5306_v20  ;;  %v5308_v11 = vsel %vm12744_vm11, %v11251_v42, %v5289_v1  ;;  %vm12749_vm11 = vcmp.lt.s32.totalorder %v6984_v25, 28 }
 0x9fd   : > { %5689 = vmatpush2.msra.mxu0 %v5308_v11  ;;  %v5257_v52 = vpop.permute.xlu1 %5256 }
 0x9fe   : > { %4842 = vrot.lane.b32.xlu0 %v10630_v29, %s12320_s22 }
 0x9ff   : > { %v5259_v30 = vpop.permute.xlu0 %5258 }
 0xa00   : > { %4806 = vrot.lane.b32.xlu1 %v10620_v56, %s12315_s20  ;;  %v5275_v44 = vsel %vm12745_vm9, %v5257_v52, %v5259_v30  ;;  %vm12750_vm9 = vmmov %vm12749_vm11 }
 0xa01   : > { %5690 = vmatprep.subr.mxu0 %v5275_v44  ;;  %v5261_v57 = vpop.permute.xlu1 %5260 }
 0xa02   : > { %4808 = vrot.lane.b32.xlu0 %v10623_v26, %s12315_s20  ;;  %v5274_v6 = vsel %vm12747_vm0, %v5259_v30, %v5261_v57 }
 0xa03   : > { %v11268_v13 = vpop.permute.xlu0 %5262 }
 0xa04   : > { %4810 = vrot.lane.b32.xlu1 %v10630_v29, %s12315_s20  ;;  %v5273_v33 = vsel %vm12746_vm1, %v5261_v57, %v11268_v13  ;;  %vm12751_vm1 = vmmov %vm12750_vm9 }
 0xa05   : > { %5761 = vmatprep.subr.mxu1 %v5273_v33  ;;  %v11275_v1 = vpop.permute.xlu1 %5254  ;;  %vm12752_vm0 = vmmov %vm12751_vm1 }
 0xa06   : > { %4774 = vrot.lane.b32.xlu0 %v10620_v56, %s12308_s10  ;;  %5762 = vmatpush2.msra.mxu1 %v5274_v6  ;;  %v5276_v0 = vsel %vm12748_vm8, %v11275_v1, %v5257_v52  ;;  %vm12753_vm8 = vcmp.lt.s32.totalorder %v6984_v25, 29 }
 0xa07   : > { %v5225_v61 = vpop.permute.xlu0 %5224  ;;  %5691 = vmatpush2.msra.mxu0 %v5276_v0 }
 0xa08   : > { %4776 = vrot.lane.b32.xlu1 %v10623_v26, %s12308_s10 }
 0xa09   : > { %v5227_v12 = vpop.permute.xlu1 %5226 }
 0xa0a   : > { %4778 = vrot.lane.b32.xlu0 %v10630_v29, %s12308_s10  ;;  %v5243_v20 = vsel %vm12749_vm11, %v5225_v61, %v5227_v12  ;;  %vm12755_vm11 = vmmov %vm12753_vm8  ;;  %s12842_s10 = sld [smem:[#allocation16_spill]] }
 0xa0b   : > { %v5229_v11 = vpop.permute.xlu0 %5228  ;;  %5692 = vmatprep.subr.mxu0 %v5243_v20 }
 0xa0c   : > { %4742 = vrot.lane.b32.xlu1 %v10620_v56, %s12306_s5  ;;  %v5242_v57 = vsel %vm12751_vm1, %v5227_v12, %v5229_v11  ;;  %vm12758_vm1 = vmmov %vm12753_vm8 }
 0xa0d   : > { %v11292_v30 = vpop.permute.xlu1 %5230 }
 0xa0e   : > { %4744 = vrot.lane.b32.xlu0 %v10623_v26, %s12306_s5  ;;  %v5241_v52 = vsel %vm12750_vm9, %v5229_v11, %v11292_v30  ;;  %vm12756_vm9 = vmmov %vm12753_vm8 }
 0xa0f   : > { %v11299_v44 = vpop.permute.xlu0 %5222  ;;  %5763 = vmatprep.subr.mxu1 %v5241_v52 }
 0xa10   : > { %4746 = vrot.lane.b32.xlu1 %v10630_v29, %s12306_s5  ;;  %5764 = vmatpush2.msra.mxu1 %v5242_v57  ;;  %v5244_v33 = vsel %vm12752_vm0, %v11299_v44, %v5225_v61  ;;  %vm12768_vm0 = vcmp.lt.s32.totalorder %v6984_v25, 119  ;;  %p12844_p12 = scmp.ne.s32.totalorder %s12842_s10, 0  ;;  %s6272_s5 = smov [#allocation6]  }
 0xa11   : > { %5693 = vmatpush2.msra.mxu0 %v5244_v33  ;;  %v5193_v6 = vpop.permute.xlu1 %5192 }
 0xa12   : > { %4710 = vrot.lane.b32.xlu0 %v10620_v56, %s12305_s8 }
 0xa13   : > { %v5195_v0 = vpop.permute.xlu0 %5194 }
 0xa14   : > { %4712 = vrot.lane.b32.xlu1 %v10623_v26, %s12305_s8  ;;  %v5211_v12 = vsel %vm12753_vm8, %v5193_v6, %v5195_v0  ;;  %vm12769_vm8 = vmmov %vm12768_vm0 }
 0xa15   : > { %5694 = vmatprep.subr.mxu0 %v5211_v12  ;;  %v5197_v20 = vpop.permute.xlu1 %5196 }
 0xa16   : > { %4714 = vrot.lane.b32.xlu0 %v10630_v29, %s12305_s8  ;;  %v5210_v52 = vsel %vm12756_vm9, %v5195_v0, %v5197_v20  ;;  %vm12771_vm9 = vmmov %vm12768_vm0  ;;  %s6050_s8 = sshll.u32 %s12841_s9, 10 }
 0xa17   : > { %v11316_v11 = vpop.permute.xlu0 %5198  ;;  %s5963_s25 = scalar_lea.hbm %s12843_s23, %s6050_s8 }
 0xa18   : > { %12754 = vst [vmem:[#allocation24_spill] sm:$0xff] %v11316_v11  ;;  %4678 = vrot.lane.b32.xlu1 %v10620_v56, %s12304_s26  ;;  %v5209_v61 = vsel %vm12755_vm11, %v5197_v20, %v11316_v11  ;;  %vm12770_vm11 = vmmov %vm12768_vm0 }
 0xa19   : > { %5765 = vmatprep.subr.mxu1 %v5209_v61  ;;  %v11325_v57 = vpop.permute.xlu1 %5190 }
 0xa1a   : > { %12757 = vst [vmem:[#allocation65_spill] sm:$0xff] %v11325_v57  ;;  %4680 = vrot.lane.b32.xlu0 %v10623_v26, %s12304_s26  ;;  %v5212_v33 = vsel %vm12758_vm1, %v11325_v57, %v5193_v6  ;;  %5766 = vmatpush2.msra.mxu1 %v5210_v52  ;;  %vm12772_vm1 = vcmp.lt.s32.totalorder %v6984_v25, 127 }
 0xa1b   : > { %v5161_v12 = vpop.permute.xlu0 %5160  ;;  %5695 = vmatpush2.msra.mxu0 %v5212_v33 }
 0xa1c   : > { %4682 = vrot.lane.b32.xlu1 %v10630_v29, %s12304_s26 }
 0xa1d   : > { %v5163_v11 = vpop.permute.xlu1 %5162 }
 0xa1e   : > { %4646 = vrot.lane.b32.xlu0 %v10620_v56, %s12303_s14  ;;  %v5179_v0 = vsel %vm966_vm12, %v5161_v12, %v5163_v11 }
 0xa1f   : > { %v5165_v20 = vpop.permute.xlu0 %5164  ;;  %5696 = vmatprep.subr.mxu0 %v5179_v0 }
 0xa20   : > { %4648 = vrot.lane.b32.xlu1 %v10623_v26, %s12303_s14  ;;  %v5178_v52 = vsel %vm966_vm12, %v5163_v11, %v5165_v20 }
 0xa21   : > { %v11340_v61 = vpop.permute.xlu1 %5166 }
 0xa22   : > { %12759 = vst [vmem:[#allocation71_spill] sm:$0xff] %v11340_v61  ;;  %4650 = vrot.lane.b32.xlu0 %v10630_v29, %s12303_s14  ;;  %v5177_v6 = vsel %vm966_vm12, %v5165_v20, %v11340_v61 }
 0xa23   : > { %v11349_v33 = vpop.permute.xlu0 %5158  ;;  %5767 = vmatprep.subr.mxu1 %v5177_v6 }
 0xa24   : > { %12760 = vst [vmem:[#allocation40_spill] sm:$0xff] %v11349_v33  ;;  %v5180_v0 = vsel %vm966_vm12, %v11349_v33, %v5161_v12  ;;  %5360 = vrot.lane.b32.xlu1 %v10623_v26, %s12414_s18  ;;  %5768 = vmatpush2.msra.mxu1 %v5178_v52 }
 0xa25   : > { %5697 = vmatpush2.msra.mxu0 %v5180_v0  ;;  %v5129_v57 = vpop.permute.xlu1 %5128 }
 0xa26   : > { %5362 = vrot.lane.b32.xlu0 %v10630_v29, %s12414_s18 }
 0xa27   : > { %v5131_v61 = vpop.permute.xlu0 %5130 }
 0xa28   : > { %5364 = vrot.lane.b32.xlu1 %v10633_v24, %s12414_s18  ;;  %v5147_v11 = vsel %vm933_vm14, %v5129_v57, %v5131_v61 }
 0xa29   : > { %5698 = vmatprep.subr.mxu0 %v5147_v11  ;;  %v5133_v20 = vpop.permute.xlu1 %5132 }
 0xa2a   : > { %5328 = vrot.lane.b32.xlu0 %v10623_v26, %s12418_s28  ;;  %v5146_v52 = vsel %vm933_vm14, %v5131_v61, %v5133_v20 }
 0xa2b   : > { %v11364_v12 = vpop.permute.xlu0 %5134 }
 0xa2c   : > { %12761 = vst [vmem:[#allocation74_spill] sm:$0xff] %v11364_v12  ;;  %5330 = vrot.lane.b32.xlu1 %v10630_v29, %s12418_s28  ;;  %v5145_v6 = vsel %vm933_vm14, %v5133_v20, %v11364_v12 }
 0xa2d   : > { %5769 = vmatprep.subr.mxu1 %v5145_v6  ;;  %v11373_v0 = vpop.permute.xlu1 %5126 }
 0xa2e   : > { %12762 = vst [vmem:[#allocation47_spill] sm:$0xff] %v11373_v0  ;;  %5332 = vrot.lane.b32.xlu0 %v10633_v24, %s12418_s28  ;;  %v5148_v11 = vsel %vm933_vm14, %v11373_v0, %v5129_v57  ;;  %5770 = vmatpush2.msra.mxu1 %v5146_v52 }
 0xa2f   : > { %v5097_v33 = vpop.permute.xlu0 %5096  ;;  %5699 = vmatpush2.msra.mxu0 %v5148_v11 }
 0xa30   : > { %5296 = vrot.lane.b32.xlu1 %v10623_v26, %s12342_s6 }
 0xa31   : > { %v5099_v12 = vpop.permute.xlu1 %5098 }
 0xa32   : > { %5298 = vrot.lane.b32.xlu0 %v10630_v29, %s12342_s6  ;;  %v5115_v61 = vsel %vm900_vm15, %v5097_v33, %v5099_v12 }
 0xa33   : > { %v5101_v20 = vpop.permute.xlu0 %5100  ;;  %5700 = vmatprep.subr.mxu0 %v5115_v61 }
 0xa34   : > { %5300 = vrot.lane.b32.xlu1 %v10633_v24, %s12342_s6  ;;  %v5114_v52 = vsel %vm900_vm15, %v5099_v12, %v5101_v20  ;;  %s6179_s6 = sshll.u32 %s6272_s5, 4  ;;  %s6180_s6 = int_to_ptr.vmem [resolvable:$false] %s6179_s6 }
 0xa35   : > { %v11388_v6 = vpop.permute.xlu1 %5102 }
 0xa36   : > { %12763 = vst [vmem:[#allocation31_spill] sm:$0xff] %v11388_v6  ;;  %5264 = vrot.lane.b32.xlu0 %v10623_v26, %s12346_s13  ;;  %v5113_v57 = vsel %vm900_vm15, %v5101_v20, %v11388_v6 }
 0xa37   : > { %v11397_v11 = vpop.permute.xlu0 %5094  ;;  %5771 = vmatprep.subr.mxu1 %v5113_v57 }
 0xa38   : > { %12764 = vst [vmem:[#allocation77_spill] sm:$0xff] %v11397_v11  ;;  %v5116_v61 = vsel %vm900_vm15, %v11397_v11, %v5097_v33  ;;  %5266 = vrot.lane.b32.xlu1 %v10630_v29, %s12346_s13  ;;  %5772 = vmatpush2.msra.mxu1 %v5114_v52 }
 0xa39   : > { %5701 = vmatpush2.msra.mxu0 %v5116_v61  ;;  %v5065_v0 = vpop.permute.xlu1 %5064 }
 0xa3a   : > { %5268 = vrot.lane.b32.xlu0 %v10633_v24, %s12346_s13  ;;  %s6181_s13 = scalar_lea.vmem %s6180_s6, 2048 }
 0xa3b   : > { %v5067_v6 = vpop.permute.xlu0 %5066 }
 0xa3c   : > { %5232 = vrot.lane.b32.xlu1 %v10623_v26, %s12348_s0  ;;  %v5083_v12 = vsel %vm867_vm10, %v5065_v0, %v5067_v6 }
 0xa3d   : > { %5702 = vmatprep.subr.mxu0 %v5083_v12  ;;  %v5069_v20 = vpop.permute.xlu1 %5068 }
 0xa3e   : > { %5234 = vrot.lane.b32.xlu0 %v10630_v29, %s12348_s0  ;;  %v5082_v52 = vsel %vm867_vm10, %v5067_v6, %v5069_v20 }
 0xa3f   : > { %v11412_v33 = vpop.permute.xlu0 %5070 }
 0xa40   : > { %12765 = vst [vmem:[#allocation53_spill] sm:$0xff] %v11412_v33  ;;  %5236 = vrot.lane.b32.xlu1 %v10633_v24, %s12348_s0  ;;  %v5081_v57 = vsel %vm867_vm10, %v5069_v20, %v11412_v33 }
 0xa41   : > { %5773 = vmatprep.subr.mxu1 %v5081_v57  ;;  %v11421_v61 = vpop.permute.xlu1 %5062 }
 0xa42   : > { %12766 = vst [vmem:[#allocation39_spill] sm:$0xff] %v11421_v61  ;;  %5200 = vrot.lane.b32.xlu0 %v10623_v26, %s12351_s3  ;;  %v5084_v12 = vsel %vm867_vm10, %v11421_v61, %v5065_v0  ;;  %5774 = vmatpush2.msra.mxu1 %v5082_v52 }
 0xa43   : > { %v5033_v11 = vpop.permute.xlu0 %5032  ;;  %5703 = vmatpush2.msra.mxu0 %v5084_v12 }
 0xa44   : > { %5202 = vrot.lane.b32.xlu1 %v10630_v29, %s12351_s3 }
 0xa45   : > { %v5035_v33 = vpop.permute.xlu1 %5034 }
 0xa46   : > { %5204 = vrot.lane.b32.xlu0 %v10633_v24, %s12351_s3  ;;  %v5051_v6 = vsel %vm834_vm13, %v5033_v11, %v5035_v33 }
 0xa47   : > { %v5037_v20 = vpop.permute.xlu0 %5036  ;;  %5704 = vmatprep.subr.mxu0 %v5051_v6  ;;  %v11450_v6 = vld [vmem:[%s11829_s1 + $0x30] sm:$0xff] }
 0xa48   : > { %5168 = vrot.lane.b32.xlu1 %v10623_v26, %s12355_s24  ;;  %v5050_v52 = vsel %vm834_vm13, %v5035_v33, %v5037_v20 }
 0xa49   : > { %v11436_v57 = vpop.permute.xlu1 %5038 }
 0xa4a   : > { %12767 = vst [vmem:[#allocation80_spill] sm:$0xff] %v11436_v57  ;;  %5170 = vrot.lane.b32.xlu0 %v10630_v29, %s12355_s24  ;;  %v5049_v0 = vsel %vm834_vm13, %v5037_v20, %v11436_v57 }
 0xa4b   : > { %v11445_v12 = vpop.permute.xlu0 %5030  ;;  %5775 = vmatprep.subr.mxu1 %v5049_v0 }
 0xa4c   : > { %v5052_v61 = vsel %vm834_vm13, %v11445_v12, %v5033_v11  ;;  %5172 = vrot.lane.b32.xlu1 %v10633_v24, %s12355_s24  ;;  %5776 = vmatpush2.msra.mxu1 %v5050_v52 }
 0xa4d   : > { %5705 = vmatpush2.msra.mxu0 %v5052_v61  ;;  %v5009_v57 = vpop.permute.xlu1 %5008  ;;  %5778 = vmatmul.mubr.f32.vlgmr.msra.gmra.mxu1 %v11450_v6 }
 0xa4e   : > { %5136 = vrot.lane.b32.xlu0 %v10623_v26, %s12356_s17  ;;  %5707 = vmatmul.mubr.f32.vlgmr.msra.gmra.mxu0 %v11450_v6  ;;  %v5016_v61 = vsel %vm12769_vm8, %v10851_v49, %v5009_v57 }
 0xa4f   : > { %v5011_v33 = vpop.permute.xlu0 %5010  ;;  %5848 = vmatprep.mubr.f32.mxu0 %v11090_v63  ;;  %5919 = vmatprep.mubr.f32.mxu1 %v11090_v63 }
 0xa50   : > { %5138 = vrot.lane.b32.xlu1 %v10630_v29, %s12356_s17  ;;  %v5015_v11 = vsel %vm12768_vm0, %v5009_v57, %v5011_v33  ;;  %vm12773_vm0 = vmmov %vm12772_vm1 }
 0xa51   : > { %5784 = vmatprep.subr.mxu0 %v5015_v11  ;;  %v5013_v20 = vpop.permute.xlu1 %5012  ;;  %vm12774_vm8 = vmmov %vm12773_vm0 }
 0xa52   : > { %5140 = vrot.lane.b32.xlu0 %v10633_v24, %s12356_s17  ;;  %v5014_v0 = vsel %vm12770_vm11, %v5011_v33, %v5013_v20  ;;  %5785 = vmatpush1.msra.mxu0 %v5016_v61  ;;  %v5021_v63 = vsel %vm12771_vm9, %v5013_v20, %v10858_v35  ;;  %vm12775_vm11 = vmmov %vm12773_vm0 }
 0xa53   : > { %v4977_v52 = vpop.permute.xlu0 %4976  ;;  %5855 = vmatprep.subr.mxu1 %v5021_v63 }
 0xa54   : > { %5104 = vrot.lane.b32.xlu1 %v10623_v26, %s12363_s16  ;;  %5856 = vmatpush1.msra.mxu1 %v5014_v0  ;;  %v4984_v33 = vsel %vm12773_vm0, %v10875_v43, %v4977_v52  ;;  %vm12784_vm0 = vcmp.lt.s32.totalorder %v6984_v25, 100 }
 0xa56   : > { %5106 = vrot.lane.b32.xlu0 %v10630_v29, %s12363_s16  ;;  %v4979_v49 = vpop.permute.xlu1 %4978 }
 0xa57   : > { %v4983_v57 = vsel %vm12772_vm1, %v4977_v52, %v4979_v49 }
 0xa58   : > { %v4981_v11 = vpop.permute.xlu0 %4980  ;;  %5108 = vrot.lane.b32.xlu1 %v10633_v24, %s12363_s16  ;;  %5786 = vmatprep.subr.mxu0 %v4983_v57 }
 0xa59   : > { %v4982_v35 = vsel %vm12774_vm8, %v4979_v49, %v4981_v11  ;;  %5787 = vmatpush1.msra.mxu0 %v4984_v33  ;;  %v4989_v61 = vsel %vm12775_vm11, %v4981_v11, %v10882_v9  ;;  %v6271_v9 = vmov 3   ;;  %vm12785_vm8 = vmmov %vm12784_vm0 }
 0xa5a   : > { %5072 = vrot.lane.b32.xlu0 %v10623_v26, %s12370_s21  ;;  %5788 = vmatprep.subr.mxu0 %v10623_v26  ;;  %v4935_v20 = vpop.permute.xlu1 %4934  ;;  %vm12786_vm11 = vmmov %vm12784_vm0 }
 0xa5b   : > { %5857 = vmatprep.subr.mxu1 %v4989_v61  ;;  %5789 = vmatpush1.msra.mxu0 %v10620_v56  ;;  %v4945_v56 = vsel %vm727_vm2, %v10903_v62, %v4935_v20  ;;  %v6138_v61 = vld [vmem:[%s11830_s2] sm:$0xff] }
 0xa5c   : > { %5858 = vmatpush1.msra.mxu1 %v4982_v35  ;;  %v4937_v43 = vpop.permute.xlu0 %4936  ;;  %5074 = vrot.lane.b32.xlu1 %v10630_v29, %s12370_s21 }
 0xa5d   : > { %5859 = vmatprep.subr.mxu1 %v10633_v24  ;;  %v4944_v0 = vsel %vm727_vm2, %v4935_v20, %v4937_v43  ;;  %6130 = vset.pattern.permute.xlu0 %v6271_v9 }
 0xa5e   : > { %5860 = vmatpush1.msra.mxu1 %v10630_v29  ;;  %5076 = vrot.lane.b32.xlu0 %v10633_v24, %s12370_s21  ;;  %v4939_v63 = vpop.permute.xlu1 %4938 }
 0xa5f   : > { %5790 = vmatprep.subr.mxu0 %v4944_v0  ;;  %v4943_v52 = vsel %vm727_vm2, %v4937_v43, %v4939_v63  ;;  %v4942_v49 = vsel %vm727_vm2, %v4939_v63, %v10908_v19  ;;  %vm12776_vm2 = vcmp.lt.s32.totalorder %v6984_v25, 91 }
 0xa60   : > { %5791 = vmatpush1.msra.mxu0 %v4945_v56  ;;  %v4903_v57 = vpop.permute.xlu0 %4902  ;;  %5040 = vrot.lane.b32.xlu1 %v10623_v26, %s12372_s15 }
 0xa61   : > { %5861 = vmatprep.subr.mxu1 %v4942_v49  ;;  %v4913_v11 = vsel %vm694_vm3, %v10925_v50, %v4903_v57 }
 0xa62   : > { %5862 = vmatpush1.msra.mxu1 %v4943_v52  ;;  %5042 = vrot.lane.b32.xlu0 %v10630_v29, %s12372_s15  ;;  %v4905_v33 = vpop.permute.xlu1 %4904 }
 0xa63   : > { %v4912_v62 = vsel %vm694_vm3, %v4903_v57, %v4905_v33 }
 0xa64   : > { %v4907_v35 = vpop.permute.xlu0 %4906  ;;  %5044 = vrot.lane.b32.xlu1 %v10633_v24, %s12372_s15  ;;  %5792 = vmatprep.subr.mxu0 %v4912_v62  ;;  %s12839_s15 = sld [smem:[#allocation18_spill]] }
 0xa65   : > { %v4911_v26 = vsel %vm694_vm3, %v4905_v33, %v4907_v35  ;;  %5793 = vmatpush1.msra.mxu0 %v4913_v11  ;;  %v4910_v29 = vsel %vm694_vm3, %v4907_v35, %v10934_v37  ;;  %vm12777_vm3 = vmmov %vm12776_vm2 }
 0xa66   : > { %5863 = vmatprep.subr.mxu1 %v4910_v29  ;;  %v4871_v19 = vpop.permute.xlu1 %4870  ;;  %5639 = vperm.xlu0 %6130, %v6138_v61  }
 0xa67   : > { %5864 = vmatpush1.msra.mxu1 %v4911_v26  ;;  %v4881_v20 = vsel %vm661_vm4, %v10951_v34, %v4871_v19 }
 0xa68   : > { %v4873_v50 = vpop.permute.xlu0 %4872 }
 0xa69   : > { %v4880_v24 = vsel %vm661_vm4, %v4871_v19, %v4873_v50 }
 0xa6a   : > { %5794 = vmatprep.subr.mxu0 %v4880_v24  ;;  %v4875_v43 = vpop.permute.xlu1 %4874  ;;  %s12840_s21 = sshll.u32 %s12839_s15, 6  ;;  %s5951_s29 = scalar_lea.sflag [#allocation5], %s12839_s15 }
 0xa6b   : > { %v4879_v37 = vsel %vm661_vm4, %v4873_v50, %v4875_v43  ;;  %5795 = vmatpush1.msra.mxu0 %v4881_v20  ;;  %v4878_v0 = vsel %vm661_vm4, %v4875_v43, %v10956_v31  ;;  %vm12778_vm4 = vmmov %vm12776_vm2  ;;  %s11776_s24 = scalar_lea.vmem [#allocation6], %s12840_s21 }
 0xa6c   : > { %v4839_v9 = vpop.permute.xlu0 %4838  ;;  %5865 = vmatprep.subr.mxu1 %v4878_v0  ;;  %s5965_s26 = sshll.u32 %s11776_s24, 4  ;;  %s5966_s26 = int_to_ptr.vmem [resolvable:$true] %s5965_s26 }
 0xa6d   : > { %5866 = vmatpush1.msra.mxu1 %v4879_v37  ;;  %v4849_v34 = vsel %vm628_vm5, %v10973_v39, %v4839_v9  ;;  %s6175_s30 = scalar_lea.vmem %s5966_s26, 1024  ;;  %p6182_p3 = scmp.lt.s32.totalorder %s5966_s26, %s6180_s6 }
 0xa6e   : > { %v4841_v63 = vpop.permute.xlu1 %4840  ;;  %p6176_p11 = scmp.ne.s32.totalorder %s5966_s26, %s6175_s30  ;;  %p6183_p5 = scmp.lt.s32.totalorder %s6181_s13, %s6175_s30 }
 0xa6f   : > { %v4848_v56 = vsel %vm628_vm5, %v4839_v9, %v4841_v63 }
 0xa70   : > { %v4843_v52 = vpop.permute.xlu0 %4842  ;;  %5796 = vmatprep.subr.mxu0 %v4848_v56  ;;  %p6177_p13 = pnand %p6176_p11, %p12844_p12  ;;  %p6184_p8 = por %p6183_p5, %p6182_p3 }
 0xa71   : > { %v4847_v49 = vsel %vm628_vm5, %v4841_v63, %v4843_v52  ;;  %5797 = vmatpush1.msra.mxu0 %v4849_v34  ;;  %v4846_v31 = vsel %vm628_vm5, %v4843_v52, %v10982_v38  ;;  %vm12779_vm5 = vmmov %vm12776_vm2 }
 0xa72   : > { %5867 = vmatprep.subr.mxu1 %v4846_v31  ;;  %v4807_v57 = vpop.permute.xlu1 %4806  ;;  %p6178_p1 = pneg %p6177_p13 }
 0xa73   : > { %5868 = vmatpush1.msra.mxu1 %v4847_v49  ;;  %v4817_v39 = vsel %vm595_vm6, %v10999_v2, %v4807_v57 }
 0xa74   : > { %v4809_v33 = vpop.permute.xlu0 %4808  ;;  %p6185_p10 = pnand %p6184_p8, %p6178_p1 }
 0xa75   : > { %v4816_v62 = vsel %vm595_vm6, %v4807_v57, %v4809_v33 }
 0xa76   : > { %5798 = vmatprep.subr.mxu0 %v4816_v62  ;;  %v4811_v11 = vpop.permute.xlu1 %4810 }
 0xa77   : > { %v4815_v35 = vsel %vm595_vm6, %v4809_v33, %v4811_v11  ;;  %5799 = vmatpush1.msra.mxu0 %v4817_v39  ;;  %v4814_v38 = vsel %vm595_vm6, %v4811_v11, %v11004_v18  ;;  %vm12780_vm6 = vcmp.lt.s32.totalorder %v6984_v25, 99 }
 0xa78   : > { %v4775_v26 = vpop.permute.xlu0 %4774  ;;  %5869 = vmatprep.subr.mxu1 %v4814_v38  ;;  %vm12782_vm9 = vmmov %vm12780_vm6 }
 0xa79   : > { %5870 = vmatpush1.msra.mxu1 %v4815_v35  ;;  %v4785_v2 = vsel %vm562_vm7, %v11021_v46, %v4775_v26  ;;  %vm12783_vm1 = vmmov %vm12780_vm6 }
 0xa7a   : > { %v4777_v29 = vpop.permute.xlu1 %4776 }
 0xa7b   : > { %v4784_v19 = vsel %vm562_vm7, %v4775_v26, %v4777_v29 }
 0xa7c   : > { %v4779_v61 = vpop.permute.xlu0 %4778  ;;  %5800 = vmatprep.subr.mxu0 %v4784_v19 }
 0xa7d   : > { %v4783_v50 = vsel %vm562_vm7, %v4777_v29, %v4779_v61  ;;  %5801 = vmatpush1.msra.mxu0 %v4785_v2  ;;  %v4782_v18 = vsel %vm562_vm7, %v4779_v61, %v11030_v36  ;;  %vm12781_vm7 = vmmov %vm12780_vm6 }
 0xa7e   : > { %5871 = vmatprep.subr.mxu1 %v4782_v18  ;;  %v4743_v24 = vpop.permute.xlu1 %4742 }
 0xa7f   : > { %5872 = vmatpush1.msra.mxu1 %v4783_v50  ;;  %v4753_v46 = vsel %vm12777_vm3, %v11047_v3, %v4743_v24  ;;  %vm12788_vm3 = vcmp.lt.s32.totalorder %v6984_v25, 101 }
 0xa80   : > { %v4745_v20 = vpop.permute.xlu0 %4744 }
 0xa81   : > { %v4752_v43 = vsel %vm12776_vm2, %v4743_v24, %v4745_v20  ;;  %vm12787_vm2 = vmmov %vm12784_vm0 }
 0xa82   : > { %5802 = vmatprep.subr.mxu0 %v4752_v43  ;;  %v4747_v37 = vpop.permute.xlu1 %4746 }
 0xa83   : > { %v4751_v0 = vsel %vm12778_vm4, %v4745_v20, %v4747_v37  ;;  %5803 = vmatpush1.msra.mxu0 %v4753_v46  ;;  %v4750_v36 = vsel %vm12779_vm5, %v4747_v37, %v11052_v51  ;;  %vm12789_vm4 = vmmov %vm12788_vm3 }
 0xa84   : > { %v4711_v9 = vpop.permute.xlu0 %4710  ;;  %5873 = vmatprep.subr.mxu1 %v4750_v36  ;;  %vm12790_vm5 = vmmov %vm12788_vm3 }
 0xa85   : > { %5874 = vmatpush1.msra.mxu1 %v4751_v0  ;;  %v4721_v3 = vsel %vm12781_vm7, %v11069_v59, %v4711_v9  ;;  %vm12792_vm7 = vmmov %vm12788_vm3 }
 0xa86   : > { %v4713_v63 = vpop.permute.xlu1 %4712 }
 0xa87   : > { %v4720_v56 = vsel %vm12780_vm6, %v4711_v9, %v4713_v63  ;;  %vm12791_vm6 = vcmp.lt.s32.totalorder %v6984_v25, 109 }
 0xa88   : > { %v4715_v34 = vpop.permute.xlu0 %4714  ;;  %5804 = vmatprep.subr.mxu0 %v4720_v56 }
 0xa89   : > { %v4719_v52 = vsel %vm12782_vm9, %v4713_v63, %v4715_v34  ;;  %5805 = vmatpush1.msra.mxu0 %v4721_v3  ;;  %v4718_v51 = vsel %vm12783_vm1, %v4715_v34, %v11078_v55  ;;  %vm12793_vm9 = vmmov %vm12791_vm6  ;;  %vm12794_vm1 = vcmp.lt.s32.totalorder %v6984_v25, 110 }
 0xa8a   : > { %5875 = vmatprep.subr.mxu1 %v4718_v51  ;;  %v4679_v49 = vpop.permute.xlu1 %4678  ;;  %v4592_v2 = vsel %vm12794_vm1, %v10787_v14, %v10791_v58 }
 0xa8b   : > { %5876 = vmatpush1.msra.mxu1 %v4719_v52  ;;  %v4689_v59 = vsel %vm12785_vm8, %v11102_v23, %v4679_v49  ;;  %vm12796_vm8 = vmmov %vm12794_vm1 }
 0xa8c   : > { %v4681_v31 = vpop.permute.xlu0 %4680 }
 0xa8d   : > { %v4688_v57 = vsel %vm12784_vm0, %v4679_v49, %v4681_v31  ;;  %vm12795_vm0 = vmmov %vm12791_vm6 }
 0xa8e   : > { %5806 = vmatprep.subr.mxu0 %v4688_v57  ;;  %v4683_v33 = vpop.permute.xlu1 %4682 }
 0xa8f   : > { %v4687_v62 = vsel %vm12786_vm11, %v4681_v31, %v4683_v33  ;;  %5807 = vmatpush1.msra.mxu0 %v4689_v59  ;;  %v4686_v55 = vsel %vm12787_vm2, %v4683_v33, %v11107_v40  ;;  %v4624_v40 = vsel %vm12791_vm6, %v10819_v47, %v10823_v10  ;;  %vm12797_vm11 = vmmov %vm12795_vm0  ;;  %vm12798_vm2 = vcmp.lt.s32.totalorder %v6984_v25, 111 }
 0xa90   : > { %v4647_v39 = vpop.permute.xlu0 %4646  ;;  %5877 = vmatprep.subr.mxu1 %v4686_v55  ;;  %vm12802_vm6 = vcmp.lt.s32.totalorder %v6984_v25, 17 }
 0xa91   : > { %5878 = vmatpush1.msra.mxu1 %v4687_v62  ;;  %v4657_v23 = vsel %vm12789_vm4, %v11122_v53, %v4647_v39  ;;  %v4625_v53 = vsel %vm12793_vm9, %v10815_v5, %v10819_v47  ;;  %v4593_v5 = vsel %vm12796_vm8, %v10783_v54, %v10787_v14  ;;  %v4623_v47 = vsel %vm12797_vm11, %v10823_v10, %v10827_v28  ;;  %vm12800_vm4 = vmmov %vm12798_vm2  ;;  %v12825_v62 = vld [vmem:[#allocation24_spill] sm:$0xff] }
 0xa92   : > { %v4649_v11 = vpop.permute.xlu1 %4648  ;;  %v4561_v14 = vsel %vm12800_vm4, %v10749_v60, %v10753_v15  ;;  %vm12804_vm9 = vmmov %vm12802_vm6  ;;  %vm12808_vm11 = vcmp.lt.s32.totalorder %v6984_v25, 18 }
 0xa93   : > { %v4656_v35 = vsel %vm12788_vm3, %v4647_v39, %v4649_v11  ;;  %vm12799_vm3 = vmmov %vm12794_vm1 }
 0xa94   : > { %v4651_v38 = vpop.permute.xlu0 %4650  ;;  %5808 = vmatprep.subr.mxu0 %v4656_v35  ;;  %v4590_v50 = vsel %vm12799_vm3, %v10795_v7, %v10799_v4 }
 0xa95   : > { %v4655_v26 = vsel %vm12790_vm5, %v4649_v11, %v4651_v38  ;;  %5809 = vmatpush1.msra.mxu0 %v4657_v23  ;;  %v4654_v29 = vsel %vm12792_vm7, %v4651_v38, %v11131_v22  ;;  %v4622_v22 = vsel %vm12795_vm0, %v10827_v28, %v10831_v8  ;;  %v4560_v8 = vsel %vm12798_vm2, %v10753_v15, %v10757_v16  ;;  %vm12801_vm5 = vmmov %vm12794_vm1  ;;  %v12828_v11 = vld [vmem:[#allocation65_spill] sm:$0xff] }
 0xa96   : > { %5810 = vmatprep.subr.mxu0 %v4624_v40  ;;  %5879 = vmatprep.subr.mxu1 %v4654_v29  ;;  %v5361_v19 = vpop.permute.xlu1 %5360  ;;  %v4591_v10 = vsel %vm12801_vm5, %v10791_v58, %v10795_v7  ;;  %vm12803_vm7 = vmmov %vm12798_vm2  ;;  %vm12812_vm5 = vcmp.lt.s32.totalorder %v6984_v25, 19 }
 0xa97   : > { %5811 = vmatpush1.msra.mxu0 %v4625_v53  ;;  %5880 = vmatpush1.msra.mxu1 %v4655_v26  ;;  %v4558_v4 = vsel %vm12803_vm7, %v10763_v45, %v10767_v41  ;;  %v5368_v18 = vsel %vm12804_vm9, %v11190_v32, %v5361_v19  ;;  %vm12805_vm1 = vmmov %vm12798_vm2  ;;  %v12830_v26 = vld [vmem:[#allocation71_spill] sm:$0xff]  ;;  %v12831_v53 = vld [vmem:[#allocation40_spill] sm:$0xff] }
 0xa98   : > { %v5363_v61 = vpop.permute.xlu0 %5362  ;;  %5812 = vmatprep.subr.mxu0 %v4592_v2  ;;  %5881 = vmatprep.subr.mxu1 %v4622_v22  ;;  %v4559_v15 = vsel %vm12805_vm1, %v10757_v16, %v10763_v45  ;;  %vm12806_vm0 = vmmov %vm12802_vm6  ;;  %vm12816_vm1 = vcmp.lt.s32.totalorder %v6984_v25, 27 }
 0xa99   : > { %5813 = vmatpush1.msra.mxu0 %v4593_v5  ;;  %5882 = vmatpush1.msra.mxu1 %v4623_v47  ;;  %v5367_v28 = vsel %vm12802_vm6, %v5361_v19, %v5363_v61  ;;  %vm12807_vm8 = vmmov %vm12806_vm0  ;;  %v12832_v47 = vld [vmem:[#allocation74_spill] sm:$0xff] }
 0xa9a   : > { %5814 = vmatprep.subr.mxu0 %v4560_v8  ;;  %5883 = vmatprep.subr.mxu1 %v4590_v50  ;;  %v5365_v54 = vpop.permute.xlu1 %5364  ;;  %vm12809_vm2 = vmmov %vm12808_vm11 }
 0xa9b   : > { %5815 = vmatpush1.msra.mxu0 %v4561_v14  ;;  %5884 = vmatpush1.msra.mxu1 %v4591_v10  ;;  %v5373_v58 = vsel %vm12806_vm0, %v5365_v54, %v11203_v27  ;;  %v5366_v41 = vsel %vm12807_vm8, %v5363_v61, %v5365_v54  ;;  %vm12810_vm3 = vmmov %vm12809_vm2  ;;  %v12833_v14 = vld [vmem:[#allocation47_spill] sm:$0xff] }
 0xa9c   : > { %v5329_v60 = vpop.permute.xlu0 %5328  ;;  %5826 = vmatprep.subr.mxu0 %v5367_v28  ;;  %5885 = vmatprep.subr.mxu1 %v4558_v4  ;;  %vm12811_vm4 = vmmov %vm12809_vm2 }
 0xa9d   : > { %5827 = vmatpush2.msra.mxu0 %v5368_v18  ;;  %5886 = vmatpush1.msra.mxu1 %v4559_v15  ;;  %v5336_v24 = vsel %vm12809_vm2, %v11220_v17, %v5329_v60  ;;  %vm12813_vm6 = vmmov %vm12812_vm5  ;;  %vm12820_vm2 = vcmp.lt.s32.totalorder %v6984_v25, 28 }
 0xa9e   : > { %5897 = vmatprep.subr.mxu1 %v5373_v58  ;;  %v5331_v7 = vpop.permute.xlu1 %5330  ;;  %vm12814_vm7 = vmmov %vm12812_vm5 }
 0xa9f   : > { %5898 = vmatpush2.msra.mxu1 %v5366_v41  ;;  %v5335_v32 = vsel %vm12808_vm11, %v5329_v60, %v5331_v7  ;;  %vm12815_vm9 = vmmov %vm12812_vm5  ;;  %v12834_v60 = vld [vmem:[#allocation31_spill] sm:$0xff] }
 0xaa0   : > { %v5333_v16 = vpop.permute.xlu0 %5332  ;;  %5828 = vmatprep.subr.mxu0 %v5335_v32  ;;  %vm12817_vm0 = vmmov %vm12816_vm1 }
 0xaa1   : > { %v5334_v45 = vsel %vm12810_vm3, %v5331_v7, %v5333_v16  ;;  %5829 = vmatpush2.msra.mxu0 %v5336_v24  ;;  %v5341_v27 = vsel %vm12811_vm4, %v5333_v16, %v11227_v48  ;;  %vm12818_vm8 = vmmov %vm12817_vm0  ;;  %v12835_v7 = vld [vmem:[#allocation77_spill] sm:$0xff] }
 0xaa2   : > { %5899 = vmatprep.subr.mxu1 %v5341_v27  ;;  %v5297_v20 = vpop.permute.xlu1 %5296  ;;  %vm12819_vm11 = vmmov %vm12817_vm0  ;;  %v12836_v27 = vld [vmem:[#allocation53_spill] sm:$0xff] }
 0xaa3   : > { %5900 = vmatpush2.msra.mxu1 %v5334_v45  ;;  %v5304_v17 = vsel %vm12813_vm6, %v11244_v21, %v5297_v20  ;;  %vm12821_vm3 = vmmov %vm12820_vm2  ;;  %vm12824_vm6 = vcmp.lt.s32.totalorder %v6984_v25, 29 }
 0xaa4   : > { %v5299_v43 = vpop.permute.xlu0 %5298  ;;  %vm12822_vm4 = vmmov %vm12820_vm2 }
 0xaa5   : > { %v5303_v46 = vsel %vm12812_vm5, %v5297_v20, %v5299_v43  ;;  %vm12823_vm5 = vmmov %vm12820_vm2 }
 0xaa6   : > { %5830 = vmatprep.subr.mxu0 %v5303_v46  ;;  %v5301_v37 = vpop.permute.xlu1 %5300 }
 0xaa7   : > { %v5302_v0 = vsel %vm12814_vm7, %v5299_v43, %v5301_v37  ;;  %5831 = vmatpush2.msra.mxu0 %v5304_v17  ;;  %v5309_v48 = vsel %vm12815_vm9, %v5301_v37, %v11251_v42  ;;  %vm12826_vm7 = vmmov %vm12824_vm6  ;;  %v12837_v17 = vld [vmem:[#allocation39_spill] sm:$0xff] }
 0xaa8   : > { %v5265_v36 = vpop.permute.xlu0 %5264  ;;  %5901 = vmatprep.subr.mxu1 %v5309_v48  ;;  %vm12827_vm9 = vmmov %vm12824_vm6 }
 0xaa9   : > { %5902 = vmatpush2.msra.mxu1 %v5302_v0  ;;  %v5272_v21 = vsel %vm12817_vm0, %v11268_v13, %v5265_v36 }
 0xaaa   : > { %v5267_v9 = vpop.permute.xlu1 %5266 }
 0xaab   : > { %v5271_v63 = vsel %vm12816_vm1, %v5265_v36, %v5267_v9  ;;  %vm12829_vm1 = vmmov %vm12824_vm6 }
 0xaac   : > { %v5269_v56 = vpop.permute.xlu0 %5268  ;;  %5832 = vmatprep.subr.mxu0 %v5271_v63 }
 0xaad   : > { %v5270_v3 = vsel %vm12818_vm8, %v5267_v9, %v5269_v56  ;;  %5833 = vmatpush2.msra.mxu0 %v5272_v21  ;;  %v5277_v42 = vsel %vm12819_vm11, %v5269_v56, %v11275_v1  ;;  %v12838_v9 = vld [vmem:[#allocation80_spill] sm:$0xff] }
 0xaae   : > { %5903 = vmatprep.subr.mxu1 %v5277_v42  ;;  %v5233_v34 = vpop.permute.xlu1 %5232 }
 0xaaf   : > { %5904 = vmatpush2.msra.mxu1 %v5270_v3  ;;  %v5240_v13 = vsel %vm12821_vm3, %v11292_v30, %v5233_v34 }
 0xab0   : > { %v5235_v52 = vpop.permute.xlu0 %5234 }
 0xab1   : > { %v5239_v51 = vsel %vm12820_vm2, %v5233_v34, %v5235_v52 }
 0xab2   : > { %5834 = vmatprep.subr.mxu0 %v5239_v51  ;;  %v5237_v49 = vpop.permute.xlu1 %5236 }
 0xab3   : > { %v5238_v31 = vsel %vm12822_vm4, %v5235_v52, %v5237_v49  ;;  %5835 = vmatpush2.msra.mxu0 %v5240_v13  ;;  %v5245_v1 = vsel %vm12823_vm5, %v5237_v49, %v11299_v44 }
 0xab4   : > { %v5201_v57 = vpop.permute.xlu0 %5200  ;;  %5905 = vmatprep.subr.mxu1 %v5245_v1 }
 0xab5   : > { %5906 = vmatpush2.msra.mxu1 %v5238_v31  ;;  %v5208_v30 = vsel %vm12826_vm7, %v12825_v62, %v5201_v57 }
 0xab6   : > { %v5203_v59 = vpop.permute.xlu1 %5202 }
 0xab7   : > { %v5207_v33 = vsel %vm12824_vm6, %v5201_v57, %v5203_v59 }
 0xab8   : > { %v5205_v55 = vpop.permute.xlu0 %5204  ;;  %5836 = vmatprep.subr.mxu0 %v5207_v33 }
 0xab9   : > { %v5206_v39 = vsel %vm12827_vm9, %v5203_v59, %v5205_v55  ;;  %5837 = vmatpush2.msra.mxu0 %v5208_v30  ;;  %v5213_v44 = vsel %vm12829_vm1, %v5205_v55, %v12828_v11  ;;  %v6139_v59 = vld [vmem:[%s6402_s11 + $0x10] sm:$0xff]  ;;  %v6140_v30 = vld [vmem:[%s6402_s11] sm:$0xff] }
 0xaba   : > { %5907 = vmatprep.subr.mxu1 %v5213_v44  ;;  %v5169_v35 = vpop.permute.xlu1 %5168  ;;  %v6142_v44 = vld [vmem:[%s6402_s11 + $0x8] sm:$0xff] }
 0xabb   : > { %5908 = vmatpush2.msra.mxu1 %v5206_v39  ;;  %v5176_v40 = vsel %vm966_vm12, %v12830_v26, %v5169_v35  ;;  %v6141_v39 = vld [vmem:[%s6402_s11 + $0x18] sm:$0xff] }
 0xabc   : > { %v5171_v23 = vpop.permute.xlu0 %5170 }
 0xabd   : > { %v5175_v38 = vsel %vm966_vm12, %v5169_v35, %v5171_v23 }
 0xabe   : > { %5838 = vmatprep.subr.mxu0 %v5175_v38  ;;  %v5173_v29 = vpop.permute.xlu1 %5172 }
 0xabf   : > { %v5174_v19 = vsel %vm966_vm12, %v5171_v23, %v5173_v29  ;;  %5839 = vmatpush2.msra.mxu0 %v5176_v40  ;;  %v5181_v2 = vsel %vm966_vm12, %v5173_v29, %v12831_v53 }
 0xac0   : > { %v5137_v22 = vpop.permute.xlu0 %5136  ;;  %5909 = vmatprep.subr.mxu1 %v5181_v2 }
 0xac1   : > { %5910 = vmatpush2.msra.mxu1 %v5174_v19  ;;  %v5144_v8 = vsel %vm933_vm14, %v12832_v47, %v5137_v22 }
 0xac2   : > { %v5139_v61 = vpop.permute.xlu1 %5138 }
 0xac3   : > { %v5143_v5 = vsel %vm933_vm14, %v5137_v22, %v5139_v61  ;;  %v6143_v22 = vld [vmem:[%s6402_s11 + $0x20] sm:$0xff] }
 0xac4   : > { %v5141_v50 = vpop.permute.xlu0 %5140  ;;  %5840 = vmatprep.subr.mxu0 %v5143_v5 }
 0xac5   : > { %v5142_v54 = vsel %vm933_vm14, %v5139_v61, %v5141_v50  ;;  %5841 = vmatpush2.msra.mxu0 %v5144_v8  ;;  %v5149_v10 = vsel %vm933_vm14, %v5141_v50, %v12833_v14  ;;  %v6144_v50 = vld [vmem:[%s6402_s11 + $0x28] sm:$0xff]  ;;  %v6145_v14 = vld [vmem:[%s6402_s11 + $0x30] sm:$0xff] }
 0xac6   : > { %5911 = vmatprep.subr.mxu1 %v5149_v10  ;;  %v5105_v28 = vpop.permute.xlu1 %5104 }
 0xac7   : > { %5912 = vmatpush2.msra.mxu1 %v5142_v54  ;;  %v5112_v15 = vsel %vm900_vm15, %v12834_v60, %v5105_v28 }
 0xac8   : > { %v5107_v4 = vpop.permute.xlu0 %5106 }
 0xac9   : > { %v5111_v18 = vsel %vm900_vm15, %v5105_v28, %v5107_v4 }
 0xaca   : > { %5842 = vmatprep.subr.mxu0 %v5111_v18  ;;  %v5109_v58 = vpop.permute.xlu1 %5108 }
 0xacb   : > { %v5110_v41 = vsel %vm900_vm15, %v5107_v4, %v5109_v58  ;;  %5843 = vmatpush2.msra.mxu0 %v5112_v15  ;;  %v5117_v32 = vsel %vm900_vm15, %v5109_v58, %v12835_v7  ;;  %v6146_v4 = vld [vmem:[%s6402_s11 + $0x38] sm:$0xff] }
 0xacc   : > { %v5073_v24 = vpop.permute.xlu0 %5072  ;;  %5913 = vmatprep.subr.mxu1 %v5117_v32 }
 0xacd   : > { %5914 = vmatpush2.msra.mxu1 %v5110_v41  ;;  %v5080_v20 = vsel %vm867_vm10, %v12836_v27, %v5073_v24 }
 0xace   : > { %v5075_v16 = vpop.permute.xlu1 %5074 }
 0xacf   : > { %v5079_v45 = vsel %vm867_vm10, %v5073_v24, %v5075_v16 }
 0xad0   : > { %v5077_v43 = vpop.permute.xlu0 %5076  ;;  %5844 = vmatprep.subr.mxu0 %v5079_v45 }
 0xad1   : > { %v5078_v46 = vsel %vm867_vm10, %v5075_v16, %v5077_v43  ;;  %5845 = vmatpush2.msra.mxu0 %v5080_v20  ;;  %v5085_v37 = vsel %vm867_vm10, %v5077_v43, %v12837_v17 }
 0xad2   : > { %5915 = vmatprep.subr.mxu1 %v5085_v37  ;;  %v5041_v0 = vpop.permute.xlu1 %5040 }
 0xad3   : > { %5916 = vmatpush2.msra.mxu1 %v5078_v46  ;;  %v5048_v63 = vsel %vm834_vm13, %v12838_v9, %v5041_v0 }
 0xad4   : > { %v5043_v48 = vpop.permute.xlu0 %5042 }
 0xad5   : > { %v5047_v36 = vsel %vm834_vm13, %v5041_v0, %v5043_v48 }
 0xad6   : > { %5846 = vmatprep.subr.mxu0 %v5047_v36  ;;  %v5045_v21 = vpop.permute.xlu1 %5044 }
 0xad7   : > { %v5046_v56 = vsel %vm834_vm13, %v5043_v48, %v5045_v21  ;;  %5847 = vmatpush2.msra.mxu0 %v5048_v63  ;;  %v5053_v3 = vsel %vm834_vm13, %v5045_v21, %v11445_v12 }
 0xad8   : > { %5849 = vmatmul.mubr.f32.vlgmr.msra.gmra.mxu0 %v11450_v6  ;;  %5917 = vmatprep.subr.mxu1 %v5053_v3 }
 0xad9   : > { %5918 = vmatpush2.msra.mxu1 %v5046_v56 }
 0xada   : > { %5920 = vmatmul.mubr.f32.vlgmr.msra.gmra.mxu1 %v11450_v6 }
 0xae1   : > { %v5640_v42 = vpop.permute.xlu0 %5639 }
 0xb0d   : > { %v5779_v34 = vpop.f32.mrf.mxu1 }
 0xb0e   : > { %v5708_v52 = vpop.f32.mrf.mxu0  ;;  %v5780_v51 = vadd.f32 %v5779_v34, %v5640_v42 }
 0xb0f   : > { %v5709_v13 = vadd.f32 %v5708_v52, %v5640_v42  ;;  %v5781_v49 = vpop.f32.mrf.mxu1 }
 0xb10   : > { %v5928_v31 = vmax.f32 %v5780_v51, 0.0  ;;  %v5710_v25 = vpop.f32.mrf.mxu0  ;;  %v5782_v12 = vadd.f32 %v5781_v49, %v5640_v42 }
 0xb11   : > { %v5926_v1 = vmax.f32 %v5709_v13, 0.0  ;;  %v5711_v57 = vadd.f32 %v5710_v25, %v5640_v42 }
 0xb12   : > { %v5936_v33 = vadd.f32 %v6139_v59, %v5928_v31  ;;  %v5929_v62 = vmax.f32 %v5782_v12, 0.0 }
 0xb13   : > { %v5934_v55 = vadd.f32 %v6140_v30, %v5926_v1  ;;  %v5927_v6 = vmax.f32 %v5711_v57, 0.0 }
 0xb14   : > { %5944 = vst [vmem:[%s11776_s24 + $0x10] sm:$0xff] %v5936_v33  ;;  %v5937_v11 = vadd.f32 %v6141_v39, %v5929_v62 }
 0xb15   : > { %5942 = vst [vmem:[%s11776_s24] sm:$0xff] %v5934_v55  ;;  %v5935_v35 = vadd.f32 %v6142_v44, %v5927_v6 }
 0xb16   : > { %5945 = vst [vmem:[%s11776_s24 + $0x18] sm:$0xff] %v5937_v11 }
 0xb17   : > { %5943 = vst [vmem:[%s11776_s24 + $0x8] sm:$0xff] %v5935_v35 }
 0xb98   : > { %v5850_v23 = vpop.f32.mrf.mxu0 }
 0xb99   : > { %v5851_v38 = vadd.f32 %v5850_v23, %v5640_v42 }
 0xb9a   : > { %v5852_v26 = vpop.f32.mrf.mxu0  ;;  %v5921_v40 = vpop.f32.mrf.mxu1 }
 0xb9b   : > { %v5930_v29 = vmax.f32 %v5851_v38, 0.0  ;;  %v5853_v19 = vadd.f32 %v5852_v26, %v5640_v42  ;;  %v5922_v53 = vadd.f32 %v5921_v40, %v5640_v42 }
 0xb9c   : > { %v5923_v2 = vpop.f32.mrf.mxu1 }
 0xb9d   : > { %v5938_v61 = vadd.f32 %v6143_v22, %v5930_v29  ;;  %v5931_v5 = vmax.f32 %v5853_v19, 0.0  ;;  %v5932_v47 = vmax.f32 %v5922_v53, 0.0  ;;  %v5924_v8 = vadd.f32 %v5923_v2, %v5640_v42 }
 0xb9f   : > { %5946 = vst [vmem:[%s11776_s24 + $0x20] sm:$0xff] %v5938_v61  ;;  %v5939_v54 = vadd.f32 %v6144_v50, %v5931_v5  ;;  %v5940_v10 = vadd.f32 %v6145_v14, %v5932_v47  ;;  %v5933_v28 = vmax.f32 %v5924_v8, 0.0 }
 0xba1   : > { %5947 = vst [vmem:[%s11776_s24 + $0x28] sm:$0xff] %v5939_v54  ;;  %5948 = vst [vmem:[%s11776_s24 + $0x30] sm:$0xff] %v5940_v10  ;;  %v5941_v18 = vadd.f32 %v6146_v4, %v5933_v28 }
 0xba3   : > { %5949 = vst [vmem:[%s11776_s24 + $0x38] sm:$0xff] %v5941_v18 }
 0xba4   : > { %6188 = shalt.err (!%p6185_p10)
}
 0xba5   : > { %s6189_s11 = scalar_lea.hbm %s5963_s25, 1024  ;;  %s6193_s28 = scalar_lea.hbm %s12843_s23, 2048 }
 0xba6   : > { %p6190_p2 = scmp.ne.s32.totalorder %s5963_s25, %s6189_s11  ;;  %p6194_p7 = scmp.lt.s32.totalorder %s5963_s25, %s12843_s23 }
 0xba7   : > { %p6195_p0 = scmp.lt.s32.totalorder %s6193_s28, %s6189_s11 }
 0xba8   : > { %p6191_p4 = pnand %p6190_p2, %p12844_p12 }
 0xba9   : > { %p6196_p6 = por %p6195_p0, %p6194_p7 }
 0xbaa   : > { %p6192_p9 = pneg %p6191_p4 }
 0xbac   : > { %p6197_p11 = pnand %p6196_p6, %p6192_p9 }
 0xbae   : > { %6200 = shalt.err (!%p6197_p11)
}
 0xbaf   : > { %6053 = dma.vmem_to_hbm [thread:$0]  (%p12844_p12), %s5966_s26, 1024, %s5963_s25, %s5951_s29  }
 0xbb0 PF: > { %s12845_s7 = sld [smem:[#allocation9_spill]] }
 0xbb1   : > { %s12846_s12 = sld [smem:[#allocation17_spill]] }
 0xbb2   : > { %s12847_s4 = sld [smem:[#allocation12_spill]] }
 0xbb6   : > { %s5977_s0 = sand.u32 1, %s12845_s7  }
 0xbb7   : > { %p12848_p13 = scmp.ne.s32.totalorder %s12846_s12, 0  ;;  %s5978_s3 = scalar_lea.sflag [#allocation5], %s5977_s0 }
 0xbb8   : > { %p12849_p1 = scmp.ge.s32.totalorder %s12847_s4, 2 }
 0xbba   : > { %p6060_p3 = pnand %p12849_p1, %p12848_p13 }
 0xbbc   : > { %p6061_p5 = pneg %p6060_p3 }
 0xbbe   : > { %6222 = dma.done.wait (%p6061_p5), %s5978_s3, 1024  }
 0xbbf   : > { %6224 = vsyncadd (%p6061_p5), %s5978_s3, 4294966272  ;;  %s12850_s18 = sld [smem:[#allocation14_spill]] }
 0xbc0   : > { %s12851_s15 = sld [smem:[#allocation10_spill]] }
 0xbc1   : > { %s12852_s16 = sld [smem:[#allocation11_spill]] }
 0xbc2   : > { %s12853_s17 = sld [smem:[#allocation15_spill]] }
 0xbc5   : > { %p17_p8 = scmp.ge.s32.totalorder %s12850_s18, 4  }
 0xbc7   :  { %19 = sbr.rel (!%p17_p8) target bundleno = 9 (0x9), region = 81 }
 0xbcc   :  { %5983 = vsyncpa [#allocation4], 1 }
 0xbcd   :  { %5985 = vsyncpa [#allocation4 + $0x1], 1 }
 0xbce   :  { %5986 = vsyncpa [#allocation5], 1 }
 0xbcf   :  { %5988 = vsyncpa [#allocation5 + $0x1], 1 }

</bundles_post_ra>
